<compile_context>
chip_gen: v7x
topology: tpu7x:2x2x1
jax: 0.10.0
libtpu: 0.0.40
codegen_flags: <defaults>
</compile_context>

<pallas_src>
import functools
import math

import jax
import jax.numpy as jnp
from jax.experimental import pallas as pl
from jax.experimental.pallas import tpu as pltpu


def sublayer_connection_kernel(x_ref, w_ref, bias_ref, o_ref, *, eps, approx_recip):
    n = pl.program_id(1)
    tn = o_ref.shape[-1]
    x = x_ref[...]                                   # (tm, D) f32
    D = x.shape[-1]

    # ---- LayerNorm statistics, single pass (sum & sum of squares) ----------
    s1 = jnp.sum(x, axis=-1, keepdims=True)
    s2 = jnp.sum(x * x, axis=-1, keepdims=True)
    mean = s1 * (1.0 / D)
    var = jnp.maximum((s2 - s1 * mean) * (1.0 / (D - 1)), 0.0)   # unbiased; guard cancellation
    std = jnp.sqrt(var)
    inv = pl.reciprocal(std + eps, approx=approx_recip)          # EUP slot
    normed = ((x - mean) * inv).astype(w_ref.dtype)              # LN affine folded into W'/b'
    # TODO(synk): when D // tn > 1 the stats/normed are recomputed per N step;
    #             cache `normed` in a VMEM scratch at n == 0 if that ever matters.

    # ---- sublayer: Linear(D, tn) slab on the MXU, f32 accumulation ---------
    sub = jnp.dot(normed, w_ref[...], preferred_element_type=jnp.float32)

    # ---- dropout (inference mode => identity) + residual on this N slab ----
    x_res = x if tn == D else x_ref[:, pl.ds(pl.multiple_of(n * tn, 128), tn)]
    o_ref[...] = x_res + sub + bias_ref[...]


def _round_up(v, m):
    return ((v + m - 1) // m) * m


def _choose_tm(rows, D, *, max_tm=4096, min_steps=4, target_bytes=2 << 20):
    """~target_bytes of x per grid step, but keep >= min_steps steps when possible."""
    tm = min(max_tm, max(256, target_bytes // (D * 4)))
    if rows >= 8 * min_steps:
        tm = min(tm, max(8, rows // min_steps))
    else:
        tm = min(tm, max(8, rows))
    return max(8, (tm // 8) * 8)


def _choose_tn(D, w_elem_bytes, budget_bytes):
    """Largest N slab (multiple of 256, divisor of D) whose (D, tn) weight fits the budget."""
    if D * D * w_elem_bytes <= budget_bytes or D % 256 != 0:
        return D
    tn = 256
    while (tn * 2 <= D and D % (tn * 2) == 0
           and D * (tn * 2) * w_elem_bytes <= budget_bytes):
        tn *= 2
    return tn


def _vmem_estimate(tm, tn, D, w_elem_bytes, n_w_buffers):
    tile_in = tm * D * 4
    tile_out = tm * tn * 4
    w_block = D * tn * w_elem_bytes
    temporaries = int(2.5 * tile_in)          # xc / normed / f32 matmul result
    return (2 * tile_in + 2 * tile_out
            + n_w_buffers * (w_block + tn * 4)
            + temporaries + (8 << 20))        # Mosaic internal scratch / slack


def sublayer_connection(x, a2, b2, w, bias, *, eps=1e-6, tm=None):
    """x: (B, S, D) f32, a2/b2/bias: (D,), w: (D, D). Returns (B, S, D) f32."""
    B, S, D = x.shape
    rows = B * S
    assert D % 128 == 0, D   # TODO(synk): pad + mask the lane axis for odd d_model.

    # Mem-bound small-D path stays exact f32; large D -> bf16 operands for MXU.
    use_bf16 = D >= 1024
    w_dtype = jnp.bfloat16 if use_bf16 else jnp.float32
    w_elem_bytes = 2 if use_bf16 else 4

    # Fold the LayerNorm affine into the linear layer (exact, once, in f32):
    #   a2*(xc*inv) @ W + b2 @ W + bias == (xc*inv) @ (a2[:,None]*W) + (bias + b2 @ W)
    w_folded = (a2[:, None] * w).astype(w_dtype)                      # (D, D)
    bias_folded = (bias + b2 @ w).reshape(1, D).astype(jnp.float32)   # (1, D)

    # VMEM cap: ~85% of physical per-core VMEM (headroom for Mosaic scratch);
    # never request the full 64 MiB on v7x, allow >64 MiB on v5e/v6e (128 MiB).
    try:
        vmem_cap = int(pltpu.get_tpu_info().vmem_capacity_bytes * 0.85)
    except Exception:
        vmem_cap = 48 << 20

    tn = _choose_tn(D, w_elem_bytes, budget_bytes=min(12 << 20, vmem_cap // 4))
    num_n = D // tn
    n_w_buffers = 1 if num_n == 1 else 2

    tm = _choose_tm(rows, D) if tm is None else max(8, (min(tm, rows) // 8) * 8)
    while tm > 8 and _vmem_estimate(tm, tn, D, w_elem_bytes, n_w_buffers) > vmem_cap:
        tm = max(8, tm // 2)

    rows_p = _round_up(rows, tm)
    x2 = x.reshape(rows, D)
    if rows_p != rows:
        x2 = jnp.pad(x2, ((0, rows_p - rows), (0, 0)))   # padded rows are discarded below

    vmem_limit = int(min(_vmem_estimate(tm, tn, D, w_elem_bytes, n_w_buffers), vmem_cap))

    # Constant blocks (index_map fixed across the whole grid) need only 1 buffer.
    if num_n == 1:
        w_spec = pl.BlockSpec((D, tn), lambda i, n: (0, n), pipeline_mode=pl.Buffered(1))
        b_spec = pl.BlockSpec((1, tn), lambda i, n: (0, n), pipeline_mode=pl.Buffered(1))
    else:
        w_spec = pl.BlockSpec((D, tn), lambda i, n: (0, n))
        b_spec = pl.BlockSpec((1, tn), lambda i, n: (0, n))

    kernel = functools.partial(sublayer_connection_kernel, eps=eps, approx_recip=use_bf16)

    out = pl.pallas_call(
        kernel,
        out_shape=jax.ShapeDtypeStruct((rows_p, D), jnp.float32),
        grid_spec=pltpu.PrefetchScalarGridSpec(
            num_scalar_prefetch=0,
            grid=(rows_p // tm, num_n),
            in_specs=[
                pl.BlockSpec((tm, D), lambda i, n: (i, 0)),   # x row tile (reused across n)
                w_spec,                                       # folded weight slab
                b_spec,                                       # folded bias slab
            ],
            out_specs=pl.BlockSpec((tm, tn), lambda i, n: (i, n)),
        ),
        compiler_params=pltpu.CompilerParams(
            dimension_semantics=("parallel", "arbitrary"),
            vmem_limit_bytes=vmem_limit),
    )(x2, w_folded, bias_folded)

    if rows_p != rows:
        out = out[:rows]
    return out.reshape(B, S, D)


def reference(x, a2, b2, w, bias, eps=1e-6):
    """Pure-JAX f32 reference matching the PyTorch module (eval mode)."""
    mean = jnp.mean(x, axis=-1, keepdims=True)
    xc = x - mean
    var = jnp.sum(xc * xc, axis=-1, keepdims=True) / (x.shape[-1] - 1)
    std = jnp.sqrt(var)
    normed = a2 * xc / (std + eps) + b2
    return x + normed @ w + bias


if __name__ == "__main__":
    key = jax.random.PRNGKey(0)
    # rows = B*S = 4096 -> tm = 1024 (1 MiB x tile), 4 grid steps (>=2 per v7x core).
    B, S, D = 8, 512, 256
    kx, kw, kb, ka2, kb2 = jax.random.split(key, 5)

    x = jax.random.normal(kx, (B, S, D), dtype=jnp.float32)

    # LayerNorm params (perturbed from ones/zeros so the affine-folding path is exercised).
    a2 = 1.0 + 0.1 * jax.random.normal(ka2, (D,), dtype=jnp.float32)
    b2 = 0.1 * jax.random.normal(kb2, (D,), dtype=jnp.float32)

    # Deterministic sublayer (Linear D->D) parameters.
    w = jax.random.normal(kw, (D, D), dtype=jnp.float32) * (1.0 / math.sqrt(D))
    bias = jax.random.normal(kb, (D,), dtype=jnp.float32) * 0.02

    out = sublayer_connection(x, a2, b2, w, bias)
    out = jax.block_until_ready(out)

    ref = reference(x, a2, b2, w, bias)
    assert out.shape == (B, S, D)
    max_err = float(jnp.max(jnp.abs(out - ref)))
    # f32 matmul path at this D is typically ~1e-5; tolerance kept loose enough
    # to also cover the bf16 (large-D) path.
    assert jnp.allclose(out, ref, atol=2e-2, rtol=2e-2), f"mismatch vs reference: {max_err}"

    print("KERNEL_OK")
</pallas_src>

<mosaic_0001>
module attributes {stable_mosaic.version = 11 : i64} {
  func.func @sublayer_connection_kernel(%arg0: i32, %arg1: i32, %arg2: memref<1024x256xf32, #tpu.memory_space<vmem>>, %arg3: memref<256x256xf32, #tpu.memory_space<vmem>>, %arg4: memref<1x256xf32, #tpu.memory_space<vmem>>, %arg5: memref<1024x256xf32, #tpu.memory_space<vmem>>) attributes {dimension_semantics = [#tpu.dimension_semantics<parallel>, #tpu.dimension_semantics<arbitrary>], iteration_bounds = array<i64: 4, 1>, scalar_prefetch = 0 : i64, scratch_operands = 0 : i64, tpu.core_type = #tpu.core_type<tc>, window_params = [{transform_indices = @transform_0, window_bounds = array<i64: 1024, 256>}, {pipeline_mode = #tpu.pipeline_mode<synchronous>, transform_indices = @transform_1, window_bounds = array<i64: 256, 256>}, {pipeline_mode = #tpu.pipeline_mode<synchronous>, transform_indices = @transform_2, window_bounds = array<i64: 1, 256>}, {transform_indices = @transform_3, window_bounds = array<i64: 1024, 256>}]} {
    %c0 = arith.constant 0 : index
    %c0_0 = arith.constant 0 : index
    %0 = vector.load %arg2[%c0, %c0_0] : memref<1024x256xf32, #tpu.memory_space<vmem>>, vector<1024x256xf32>
    %cst = arith.constant dense<0.000000e+00> : vector<1024xf32>
    %1 = vector.multi_reduction <add>, %0, %cst [1] : vector<1024x256xf32> to vector<1024xf32>
    %2 = vector.shape_cast %1 : vector<1024xf32> to vector<1024x1xf32>
    %3 = arith.mulf %0, %0 : vector<1024x256xf32>
    %cst_1 = arith.constant dense<0.000000e+00> : vector<1024xf32>
    %4 = vector.multi_reduction <add>, %3, %cst_1 [1] : vector<1024x256xf32> to vector<1024xf32>
    %5 = vector.shape_cast %4 : vector<1024xf32> to vector<1024x1xf32>
    %cst_2 = arith.constant 3.906250e-03 : f32
    %6 = vector.broadcast %cst_2 : f32 to vector<1024x1xf32>
    %7 = arith.mulf %2, %6 : vector<1024x1xf32>
    %8 = arith.mulf %2, %7 : vector<1024x1xf32>
    %9 = arith.subf %5, %8 : vector<1024x1xf32>
    %cst_3 = arith.constant 0.00392156886 : f32
    %10 = vector.broadcast %cst_3 : f32 to vector<1024x1xf32>
    %11 = arith.mulf %9, %10 : vector<1024x1xf32>
    %cst_4 = arith.constant 0.000000e+00 : f32
    %12 = vector.broadcast %cst_4 : f32 to vector<1024x1xf32>
    %13 = arith.maximumf %11, %12 : vector<1024x1xf32>
    %14 = math.sqrt %13 : vector<1024x1xf32>
    %cst_5 = arith.constant 9.99999997E-7 : f32
    %15 = vector.broadcast %cst_5 : f32 to vector<1024x1xf32>
    %16 = arith.addf %14, %15 : vector<1024x1xf32>
    %17 = tpu.reciprocal %16 : vector<1024x1xf32> -> vector<1024x1xf32>
    %18 = vector.broadcast %7 : vector<1024x1xf32> to vector<1024x256xf32>
    %19 = arith.subf %0, %18 : vector<1024x256xf32>
    %20 = vector.broadcast %17 : vector<1024x1xf32> to vector<1024x256xf32>
    %21 = arith.mulf %19, %20 : vector<1024x256xf32>
    %c0_6 = arith.constant 0 : index
    %c0_7 = arith.constant 0 : index
    %22 = vector.load %arg3[%c0_6, %c0_7] : memref<256x256xf32, #tpu.memory_space<vmem>>, vector<256x256xf32>
    %cst_8 = arith.constant dense<0.000000e+00> : vector<1024x256xf32>
    %23 = tpu.matmul %21, %22, %cst_8 {dimension_numbers = #tpu.dot_dimension_numbers<[1], [0], [0], [1], [0, 0, 1, 1], [], []>} : vector<1024x256xf32>, vector<256x256xf32>, vector<1024x256xf32> -> vector<1024x256xf32>
    %24 = arith.addf %0, %23 : vector<1024x256xf32>
    %c0_9 = arith.constant 0 : index
    %c0_10 = arith.constant 0 : index
    %25 = vector.load %arg4[%c0_9, %c0_10] : memref<1x256xf32, #tpu.memory_space<vmem>>, vector<1x256xf32>
    %26 = vector.broadcast %25 : vector<1x256xf32> to vector<1024x256xf32>
    %27 = arith.addf %24, %26 : vector<1024x256xf32>
    %c0_11 = arith.constant 0 : index
    %c0_12 = arith.constant 0 : index
    %28 = vector.load %arg5[%c0_11, %c0_12] : memref<1024x256xf32, #tpu.memory_space<vmem>>, vector<1024x256xf32>
    tpu.vector_store %arg5[%c0_11, %c0_12], %27 {strides = array<i32>} : memref<1024x256xf32, #tpu.memory_space<vmem>>, vector<1024x256xf32>,
    return
  }
  func.func @transform_0(%arg0: i32, %arg1: i32) -> (i32, i32) {
    %c0_i32 = arith.constant 0 : i32
    %c0_i32_0 = arith.constant 0 : i32
    return %arg0, %c0_i32 : i32, i32
  }
  func.func @transform_1(%arg0: i32, %arg1: i32) -> (i32, i32) {
    %c0_i32 = arith.constant 0 : i32
    %c0_i32_0 = arith.constant 0 : i32
    return %c0_i32, %arg1 : i32, i32
  }
  func.func @transform_2(%arg0: i32, %arg1: i32) -> (i32, i32) {
    %c0_i32 = arith.constant 0 : i32
    %c0_i32_0 = arith.constant 0 : i32
    return %c0_i32, %arg1 : i32, i32
  }
  func.func @transform_3(%arg0: i32, %arg1: i32) -> (i32, i32) {
    %c0_i32 = arith.constant 0 : i32
    return %arg0, %arg1 : i32, i32
  }
}

</mosaic_0001>

<bundles_post_ra>
// kernel: tpu_custom_call.1
= control target key start
LH: loop header
LB: loop body
LE: loop exit
PB: predicated region body
PF: predicated region fallthrough
CT: control target
= control target key end

     0   :  { %8 = vsyncpa [#allocation3], 0  ;;  %s13198_s0 = inlined_call_operand.hbm [shape: f32[4096,256], index: 0, kind: input, shape index: {}]   ;;  %s13199_s1 = inlined_call_operand.hbm [shape: f32[256,256], index: 1, kind: input, shape index: {}]   ;;  %s13200_s2 = inlined_call_operand.hbm [shape: f32[1,256], index: 2, kind: input, shape index: {}]   ;;  %s13201_s3 = inlined_call_operand.hbm [shape: f32[4096,256], index: 3, kind: output, shape index: {}]  }
   0x1   :  { %10 = vsyncpa [#allocation3 + $0x1], 0 }
   0x2   :  { %11 = vsyncpa [#allocation6], 0 }
   0x3   :  { %12 = vsyncpa [#allocation4], 0 }
   0x4   :  { %14 = vsyncpa [#allocation4 + $0x1], 0  ;;  %s7061_s12 = smov 0   ;;  %s7063_s13 = smov 0  }
   0x5   :  { %s7065_s14 = smov 0   ;;  %s7067_s15 = smov 0  }
   0x6   :  { %s7069_s16 = smov 0   ;;  %s7071_s17 = smov 0  }
   0x7 LB: > { %s5637_s18 = sadd.s32 4294967295, %s7031_s17   ;;  %s5638_s19 = sadd.s32 4294967294, %s7031_s17   ;;  %s7031_s17 = sphi %s7071_s17, %s20_s17   ;;  %s7027_s16 = sphi %s7069_s16, %s13630_s16   ;;  %s7023_s15 = sphi %s7067_s15, %s13629_s15   ;;  %s7019_s14 = sphi %s7065_s14, %s13628_s14   ;;  %s7015_s13 = sphi %s7063_s13, %s13627_s13   ;;  %s7011_s12 = sphi %s7061_s12, %s13626_s12  }
   0x8   : > { %p52_p0 = scmp.ne.s32.totalorder %s7015_s13, %s7011_s12  ;;  %p7095_p1 = scmp.eq.s32.totalorder %s5637_s18, 0 }
   0x9   : > { %p7099_p2 = scmp.eq.s32.totalorder %s5637_s18, 3  ;;  %p136_p3 = scmp.eq.s32.totalorder %s5638_s19, 3 }
   0xa   : > { %s13229_s20 = scalar_select %p7095_p1, 1, 0 }
   0xb   : > { %s13230_s21 = scalar_select %p7099_p2, 1, 0 }
   0xc   : > { %p7105_p4 = por %p7095_p1, %p52_p0  ;;  %p5639_p5 = scmp.ge.s32.totalorder %s7031_s17, 1 }
   0xd   : > { %p7110_p6 = por %p136_p3, %p52_p0  ;;  %p143_p7 = scmp.lt.s32.totalorder %s7031_s17, 5 }
   0xe   : > { %s13231_s22 = scalar_select %p7105_p4, 1, 0 }
   0xf   : > { %s13232_s23 = scalar_select %p7110_p6, 1, 0 }
  0x10   : > { %p7115_p8 = pnand %p5639_p5, %p143_p7  ;;  %s7033_s25 = smov [#allocation5]  }
  0x11   : > { %s158_s26 = sshll.u32 %s7033_s25, 4  ;;  %s7034_s28 = smov [#allocation7]   ;;  %s159_s26 = int_to_ptr.vmem [resolvable:$true] %s158_s26 }
  0x12   : > { %s13233_s24 = scalar_select %p7115_p8, 1, 0 }
  0x13   : > { %p5770_p9 = pneg %p7115_p8  ;;  %s175_s29 = sshll.u32 %s7034_s28, 4  ;;  %s7127_s29 = int_to_ptr.vmem [resolvable:$true] %s175_s29 }
  0x14   : > { %s6859_s5 = scalar_lea.hbm %s13199_s1, 8192 }
  0x15   : > { %p7123_p10 = pnand %p5770_p9, %p7095_p1  ;;  %p6860_p11 = scmp.ne.s32.totalorder %s13199_s1, %s6859_s5 }
  0x16   : > { %p6866_p3 = scmp.lt.u32.totalorder %s6859_s5, %s13199_s1 }
  0x17   : > { %p6861_p12 = pneg %p7123_p10 }
  0x19   : > { %p6862_p13 = pnand %p6861_p12, %p6860_p11 }
  0x1b   : > { %p6863_p0 = pneg %p6862_p13 }
  0x1d   : > { %p6868_p5 = pnand %p6866_p3, %p6863_p0 }
  0x1f   : > { %6871 = shalt.err (!%p6868_p5)
}
  0x20   : > { %s6872_s10 = scalar_lea.vmem %s159_s26, 8192  ;;  %p6880_p1 = scmp.lt.s32.totalorder %s159_s26, %s159_s26 }
  0x21   : > { %p6873_p7 = scmp.ne.s32.totalorder %s159_s26, %s6872_s10  ;;  %p6881_p4 = scmp.lt.s32.totalorder %s6872_s10, %s6872_s10 }
  0x23   : > { %p6875_p9 = pnand %p6873_p7, %p6861_p12  ;;  %p6882_p8 = por %p6881_p4, %p6880_p1 }
  0x25   : > { %p6876_p6 = pneg %p6875_p9 }
  0x27   : > { %p6883_p2 = pnand %p6882_p8, %p6876_p6 }
  0x29   : > { %6886 = shalt.err (!%p6883_p2)
}
  0x2a   : > { %s7035_s11 = smov 256   ;;  %s7036_s18 = smov 16  }
  0x2b   : > { %5773 = dma.hbm_to_vmem [thread:$0]  (!%p7123_p10), %s13199_s1, 8192, %s159_s26, [#allocation6], %s7035_s11, %s7035_s11, %s7036_s18  }
  0x2c   : > { %s6887_s4 = scalar_lea.hbm %s13200_s2, 32 }
  0x2d   : > { %p6888_p1 = scmp.ne.s32.totalorder %s13200_s2, %s6887_s4  ;;  %p6894_p6 = scmp.lt.u32.totalorder %s6887_s4, %s13200_s2 }
  0x2f   : > { %p6890_p2 = pnand %p6888_p1, %p6861_p12 }
  0x31   : > { %p6891_p4 = pneg %p6890_p2 }
  0x33   : > { %p6896_p8 = pnand %p6894_p6, %p6891_p4 }
  0x35   : > { %6899 = shalt.err (!%p6896_p8)
}
  0x36   : > { %s6900_s26 = scalar_lea.vmem %s7127_s29, 32  ;;  %p6908_p3 = scmp.lt.s32.totalorder %s7127_s29, %s7127_s29 }
  0x37   : > { %p6901_p11 = scmp.ne.s32.totalorder %s7127_s29, %s6900_s26  ;;  %p6909_p5 = scmp.lt.s32.totalorder %s6900_s26, %s6900_s26 }
  0x39   : > { %p6903_p13 = pnand %p6901_p11, %p6861_p12  ;;  %p6910_p7 = por %p6909_p5, %p6908_p3 }
  0x3b   : > { %p6904_p0 = pneg %p6903_p13 }
  0x3d   : > { %p6911_p9 = pnand %p6910_p7, %p6904_p0 }
  0x3f   : > { %6914 = shalt.err (!%p6911_p9)
}
  0x40   : > { %5776 = dma.hbm_to_vmem [thread:$0]  (!%p7123_p10), %s13200_s2, 32, %s7127_s29, [#allocation6]  }
  0x41   : > { %s32_s19 = sadd.s32 1, %s7027_s16  ;;  %s39_s25 = sadd.s32 1, %s7019_s14 }
  0x42   : > { %p34_p12 = scmp.ge.s32.totalorder %s32_s19, 4  ;;  %p46_p1 = scmp.ne.s32.totalorder %s7019_s14, %s7015_s13 }
  0x43   : > { %p47_p2 = scmp.eq.s32.totalorder %s7031_s17, 0  ;;  %p5787_p4 = scmp.lt.s32.totalorder %s7031_s17, 4 }
  0x44   : > { %s13632_s19 = smov (%p34_p12, %s32_s19), 0  ;;  %p13235_p8 = scmp.ne.s32.totalorder %s13230_s21, 0 }
  0x45   : > { %p48_p6 = por %p47_p2, %p46_p1  ;;  %s36_s28 = ssub.s32 %s7027_s16, %s13632_s19 }
  0x46   : > { %p7189_p11 = por %p13235_p8, %p46_p1  ;;  %s186_s30 = sand.u32 1, %s7019_s14  }
  0x47   : > { %p37_p13 = scmp.eq.s32.totalorder %s36_s28, 0  ;;  %s5643_s29 = sshll.u32 %s186_s30, 11 }
  0x48   : > { %s5659_s4 = sshll.u32 %s7027_s16, 15  ;;  %s190_s21 = scalar_lea.vmem [#allocation2], %s5643_s29 }
  0x49   : > { %s7198_s5 = scalar_select %p37_p13, %s7019_s14, %s39_s25  }
  0x4a   : > { %s7203_s8 = scalar_lea.hbm %s13198_s0, %s5659_s4  ;;  %s198_s26 = sshll.u32 %s190_s21, 4  ;;  %s7211_s26 = int_to_ptr.vmem [resolvable:$true] %s198_s26 }
  0x4b   : > { %p7207_p10 = pnand %p5787_p4, %p48_p6  ;;  %s7213_s10 = scalar_lea.sflag [#allocation3], %s186_s30 }
  0x4c   : > { %s6915_s25 = scalar_lea.hbm %s7203_s8, 32768  ;;  %s6920_s4 = scalar_lea.hbm %s13198_s0, 131072 }
  0x4d   : > { %p6916_p0 = scmp.ne.s32.totalorder %s7203_s8, %s6915_s25  ;;  %p6917_p3 = pneg %p7207_p10 }
  0x4e   : > { %p6921_p9 = scmp.lt.u32.totalorder %s7203_s8, %s13198_s0  ;;  %p6922_p12 = scmp.lt.u32.totalorder %s6920_s4, %s6915_s25 }
  0x4f   : > { %p6918_p5 = pnand %p6917_p3, %p6916_p0  ;;  %p6924_p2 = scmp.lt.u32.totalorder %s6915_s25, %s7203_s8 }
  0x50   : > { %p6923_p1 = por %p6922_p12, %p6921_p9 }
  0x51   : > { %p6919_p7 = pneg %p6918_p5 }
  0x52   : > { %p6925_p4 = por %p6924_p2, %p6923_p1 }
  0x54   : > { %p6926_p6 = pnand %p6925_p4, %p6919_p7 }
  0x56   : > { %6929 = shalt.err (!%p6926_p6)
}
  0x57   : > { %s6930_s30 = scalar_lea.vmem %s7211_s26, 32768  ;;  %s7037_s21 = smov [#allocation2]  }
  0x58   : > { %p6931_p8 = scmp.ne.s32.totalorder %s7211_s26, %s6930_s30  ;;  %s6935_s28 = sshll.u32 %s7037_s21, 4  ;;  %s6936_s28 = int_to_ptr.vmem [resolvable:$false] %s6935_s28 }
  0x59   : > { %s6937_s29 = scalar_lea.vmem %s6936_s28, 65536  ;;  %p6938_p5 = scmp.lt.s32.totalorder %s7211_s26, %s6936_s28 }
  0x5a   : > { %p6933_p13 = pnand %p6931_p8, %p6917_p3  ;;  %p6939_p9 = scmp.lt.s32.totalorder %s6937_s29, %s6930_s30 }
  0x5c   : > { %p6934_p0 = pneg %p6933_p13  ;;  %p6940_p12 = por %p6939_p9, %p6938_p5 }
  0x5e   : > { %p6941_p1 = pnand %p6940_p12, %p6934_p0 }
  0x60   : > { %6944 = shalt.err (!%p6941_p1)
}
  0x61   : > { %5780 = dma.hbm_to_vmem [thread:$0]  (!%p7207_p10), %s7203_s8, 32768, %s7211_s26, %s7213_s10, %s7035_s11, %s7035_s11, %s7036_s18  }
  0x62   : > { %p13238_p3 = scmp.ne.s32.totalorder %s13233_s24, 0 }
  0x64   : > { %210 = sbr.rel (%p13238_p3) target bundleno = 1237 (0x4d5), region = 32 }
  0x6b   : > { %s7247_s25 = sand.u32 1, %s7015_s13   ;;  %p13239_p7 = scmp.ne.s32.totalorder %s13231_s22, 0 }
  0x6c   : > { %s5648_s4 = sshll.u32 %s7247_s25, 11  ;;  %s213_s6 = scalar_lea.sflag [#allocation3], %s7247_s25 }
  0x6d   : > { %s7253_s9 = scalar_lea.vmem [#allocation2], %s5648_s4 }
  0x6e   : > { %6998 = dma.done.wait (%p13239_p7), %s213_s6, 32768  }
  0x6f   : > { %7000 = vsyncadd (%p13239_p7), %s213_s6, 4294934528  ;;  %p13240_p10 = scmp.ne.s32.totalorder %s13229_s20, 0 }
  0x71   : > { %7002 = dma.done.wait (%p13240_p10), [#allocation6], 8224  }
  0x72   : > { %7004 = vsyncadd (%p13240_p10), [#allocation6], 4294959072  ;;  %v254_v0 = vld [vmem:[%s7253_s9 + $0x10] sm:$0xff]  ;;  %v255_v1 = vld [vmem:[%s7253_s9 + $0x18] sm:$0xff]  ;;  %s9596_s20 = scalar_lea.vmem [#allocation8], %s5648_s4  ;;  %s5661_s22 = sshll.u32 %s7023_s15, 15 }
  0x73   : > { %v252_v2 = vld [vmem:[%s7253_s9] sm:$0xff]  ;;  %v511_v3 = vadd.f32 %v255_v1, %v254_v0  ;;  %v253_v4 = vld [vmem:[%s7253_s9 + $0x8] sm:$0xff]  ;;  %v382_v5 = vld [vmem:[%s7253_s9 + $0x410] sm:$0xff]  ;;  %v894_v26 = vmul.f32 %v254_v0, %v254_v0  ;;  %v895_v27 = vmul.f32 %v255_v1, %v255_v1  ;;  %s5530_s24 = sshll.u32 %s9596_s20, 4  ;;  %s13144_s15 = scalar_lea.hbm %s13201_s3, %s5661_s22  ;;  %s13146_s24 = int_to_ptr.vmem [resolvable:$true] %s5530_s24 }
  0x74   : > { %v383_v6 = vld [vmem:[%s7253_s9 + $0x418] sm:$0xff]  ;;  %v508_v7 = vadd.f32 %v253_v4, %v252_v2  ;;  %v380_v8 = vld [vmem:[%s7253_s9 + $0x400] sm:$0xff]  ;;  %v381_v9 = vld [vmem:[%s7253_s9 + $0x408] sm:$0xff]  ;;  %v892_v20 = vmul.f32 %v252_v2, %v252_v2  ;;  %v893_v21 = vmul.f32 %v253_v4, %v253_v4  ;;  %v1022_v23 = vmul.f32 %v382_v5, %v382_v5  ;;  %s5514_s8 = scalar_lea.sflag [#allocation4], %s7247_s25  ;;  %s6945_s26 = scalar_lea.vmem %s13146_s24, 32768 }
  0x75   : > { %512 = vadd.xlane.f32.xlu1 %v511_v3  ;;  %v703_v10 = vadd.f32 %v383_v6, %v382_v5  ;;  %v700_v11 = vadd.f32 %v381_v9, %v380_v8  ;;  %v384_v12 = vld [vmem:[%s7253_s9 + $0x420] sm:$0xff]  ;;  %v385_v13 = vld [vmem:[%s7253_s9 + $0x428] sm:$0xff]  ;;  %v1020_v17 = vmul.f32 %v380_v8, %v380_v8  ;;  %v1021_v18 = vmul.f32 %v381_v9, %v381_v9  ;;  %v386_v30 = vld [vmem:[%s7253_s9 + $0x430] sm:$0xff]  ;;  %p6946_p2 = scmp.ne.s32.totalorder %s13146_s24, %s6945_s26  ;;  %s7038_s10 = smov [#allocation8]  }
  0x76   : > { %509 = vadd.xlane.f32.xlu0 %v508_v7  ;;  %v256_v14 = vld [vmem:[%s7253_s9 + $0x20] sm:$0xff]  ;;  %v257_v15 = vld [vmem:[%s7253_s9 + $0x28] sm:$0xff]  ;;  %v706_v16 = vadd.f32 %v385_v13, %v384_v12  ;;  %v1023_v24 = vmul.f32 %v383_v6, %v383_v6  ;;  %v1148_v25 = vadd.f32 %v893_v21, %v892_v20  ;;  %v1151_v29 = vadd.f32 %v895_v27, %v894_v26  ;;  %v387_v31 = vld [vmem:[%s7253_s9 + $0x438] sm:$0xff]  ;;  %s6949_s7 = sshll.u32 %s7038_s10, 4  ;;  %s6950_s7 = int_to_ptr.vmem [resolvable:$false] %s6949_s7 }
  0x77   : > { %v514_v19 = vadd.f32 %v257_v15, %v256_v14  ;;  %v1340_v22 = vadd.f32 %v1021_v18, %v1020_v17  ;;  %v258_v32 = vld [vmem:[%s7253_s9 + $0x30] sm:$0xff]  ;;  %v259_v33 = vld [vmem:[%s7253_s9 + $0x38] sm:$0xff]  ;;  %v709_v34 = vadd.f32 %v387_v31, %v386_v30  ;;  %v1024_v35 = vmul.f32 %v384_v12, %v384_v12  ;;  %v388_v42 = vld [vmem:[%s7253_s9 + $0x440] sm:$0xff]  ;;  %p6947_p4 = pnand %p6946_p2, %p7189_p11  ;;  %s6951_s30 = scalar_lea.vmem %s6950_s7, 65536 }
  0x78   : > { %v1343_v28 = vadd.f32 %v1023_v24, %v1022_v23  ;;  %v1025_v36 = vmul.f32 %v385_v13, %v385_v13  ;;  %v517_v37 = vadd.f32 %v259_v33, %v258_v32  ;;  %v896_v38 = vmul.f32 %v256_v14, %v256_v14  ;;  %v389_v43 = vld [vmem:[%s7253_s9 + $0x448] sm:$0xff]  ;;  %v260_v44 = vld [vmem:[%s7253_s9 + $0x40] sm:$0xff]  ;;  %v3839_v53 = vld [vmem:[#allocation5 + $0x18] sm:$0xff]  ;;  %p6952_p8 = scmp.lt.s32.totalorder %s13146_s24, %s6950_s7  ;;  %p6953_p13 = scmp.lt.s32.totalorder %s6951_s30, %s6945_s26 }
  0x79   : > { %704 = vadd.xlane.f32.xlu1 %v703_v10  ;;  %v897_v39 = vmul.f32 %v257_v15, %v257_v15  ;;  %v261_v45 = vld [vmem:[%s7253_s9 + $0x48] sm:$0xff]  ;;  %v712_v46 = vadd.f32 %v389_v43, %v388_v42  ;;  %v1026_v47 = vmul.f32 %v386_v30, %v386_v30  ;;  %v1027_v48 = vmul.f32 %v387_v31, %v387_v31  ;;  %v3836_v54 = vld [vmem:[#allocation5] sm:$0xff]  ;;  %v3838_v55 = vld [vmem:[#allocation5 + $0x10] sm:$0xff]  ;;  %p6948_p6 = pneg %p6947_p4 }
  0x7a   : > { %701 = vadd.xlane.f32.xlu0 %v700_v11  ;;  %v1346_v40 = vadd.f32 %v1025_v36, %v1024_v35  ;;  %v3837_v49 = vld [vmem:[#allocation5 + $0x8] sm:$0xff]  ;;  %v520_v50 = vadd.f32 %v261_v45, %v260_v44  ;;  %v898_v51 = vmul.f32 %v258_v32, %v258_v32  ;;  %v899_v52 = vmul.f32 %v259_v33, %v259_v33  ;;  %v390_v56 = vld [vmem:[%s7253_s9 + $0x450] sm:$0xff]  ;;  %v3843_v58 = vld [vmem:[#allocation5 + $0x38] sm:$0xff]  ;;  %p6954_p0 = por %p6953_p13, %p6952_p8 }
  0x7b   : > { %v1154_v41 = vadd.f32 %v897_v39, %v896_v38  ;;  %v3841_v57 = vld [vmem:[#allocation5 + $0x28] sm:$0xff]  ;;  %v1349_v59 = vadd.f32 %v1027_v48, %v1026_v47  ;;  %v391_v60 = vld [vmem:[%s7253_s9 + $0x458] sm:$0xff]  ;;  %v5662_v61 = vpack.c.bf16 %v3839_v53, %v3837_v49  ;;  %v5664_v62 = vpack.c.bf16 %v3838_v55, %v3836_v54  ;;  %v3840_v63 = vld [vmem:[#allocation5 + $0x20] sm:$0xff] }
  0x7c   : > { %v3842_v0 = vld [vmem:[#allocation5 + $0x30] sm:$0xff]  ;;  %v1157_v1 = vadd.f32 %v899_v52, %v898_v51  ;;  %v3845_v2 = vld [vmem:[#allocation5 + $0x48] sm:$0xff]  ;;  %v3847_v3 = vld [vmem:[#allocation5 + $0x58] sm:$0xff]  ;;  %v5666_v6 = vpack.c.bf16 %v3843_v58, %v3841_v57  ;;  %v715_v7 = vadd.f32 %v391_v60, %v390_v56  ;;  %v1028_v9 = vmul.f32 %v388_v42, %v388_v42  ;;  %p6955_p5 = pnand %p6954_p0, %p6948_p6 }
  0x7d   : > { %707 = vadd.xlane.f32.xlu1 %v706_v16  ;;  %v262_v4 = vld [vmem:[%s7253_s9 + $0x50] sm:$0xff]  ;;  %v263_v5 = vld [vmem:[%s7253_s9 + $0x58] sm:$0xff]  ;;  %5663 = vmatprep.subr.bf16.mxu0 %v5662_v61  ;;  %v5668_v8 = vpack.c.bf16 %v3842_v0, %v3840_v63  ;;  %v1029_v10 = vmul.f32 %v389_v43, %v389_v43  ;;  %v5670_v11 = vpack.c.bf16 %v3847_v3, %v3845_v2  ;;  %v3844_v12 = vld [vmem:[#allocation5 + $0x40] sm:$0xff] }
  0x7e   : > { %515 = vadd.xlane.f32.xlu0 %v514_v19  ;;  %5726 = vmatprep.subr.bf16.mxu1 %v5662_v61  ;;  %v3846_v13 = vld [vmem:[#allocation5 + $0x50] sm:$0xff]  ;;  %v523_v14 = vadd.f32 %v263_v5, %v262_v4  ;;  %v900_v15 = vmul.f32 %v260_v44, %v260_v44  ;;  %v901_v16 = vmul.f32 %v261_v45, %v261_v45  ;;  %v3849_v17 = vld [vmem:[#allocation5 + $0x68] sm:$0xff]  ;;  %v3851_v18 = vld [vmem:[#allocation5 + $0x78] sm:$0xff] }
  0x7f   : > { %5665 = vmatpush1.bf16.msra.mxu0 %v5664_v62  ;;  %5742 = vmatpush1.bf16.msra.mxu1 %v5664_v62  ;;  %v392_v19 = vld [vmem:[%s7253_s9 + $0x460] sm:$0xff]  ;;  %v5672_v20 = vpack.c.bf16 %v3846_v13, %v3844_v12  ;;  %v1352_v21 = vadd.f32 %v1029_v10, %v1028_v9  ;;  %v5674_v23 = vpack.c.bf16 %v3851_v18, %v3849_v17  ;;  %v3853_v27 = vld [vmem:[#allocation5 + $0x88] sm:$0xff]  ;;  %v3859_v42 = vld [vmem:[#allocation5 + $0xb8] sm:$0xff] }
  0x80   : > { %5667 = vmatprep.subr.bf16.mxu0 %v5666_v6  ;;  %5727 = vmatprep.subr.bf16.mxu1 %v5666_v6  ;;  %v3848_v24 = vld [vmem:[#allocation5 + $0x60] sm:$0xff]  ;;  %v1160_v26 = vadd.f32 %v901_v16, %v900_v15  ;;  %v265_v30 = vld [vmem:[%s7253_s9 + $0x68] sm:$0xff]  ;;  %v1030_v33 = vmul.f32 %v390_v56, %v390_v56  ;;  %v902_v39 = vmul.f32 %v262_v4, %v262_v4  ;;  %v394_v43 = vld [vmem:[%s7253_s9 + $0x470] sm:$0xff] }
  0x81   : > { %1341 = vadd.xlane.f32.xlu1 %v1340_v22  ;;  %v393_v22 = vld [vmem:[%s7253_s9 + $0x468] sm:$0xff]  ;;  %v3852_v36 = vld [vmem:[#allocation5 + $0x80] sm:$0xff]  ;;  %v3858_v49 = vld [vmem:[#allocation5 + $0xb0] sm:$0xff]  ;;  %v1032_v57 = vmul.f32 %v392_v19, %v392_v19  ;;  %v905_v0 = vmul.f32 %v265_v30, %v265_v30  ;;  %v1034_v17 = vmul.f32 %v394_v43, %v394_v43 }
  0x82   : > { %1149 = vadd.xlane.f32.xlu0 %v1148_v25  ;;  %v3850_v25 = vld [vmem:[#allocation5 + $0x70] sm:$0xff]  ;;  %v718_v31 = vadd.f32 %v393_v22, %v392_v19  ;;  %v3856_v48 = vld [vmem:[#allocation5 + $0xa0] sm:$0xff]  ;;  %v3861_v51 = vld [vmem:[#allocation5 + $0xc8] sm:$0xff]  ;;  %v1033_v58 = vmul.f32 %v393_v22, %v393_v22 }
  0x83   : > { %5669 = vmatpush1.bf16.msra.mxu0 %v5668_v8  ;;  %5743 = vmatpush1.bf16.msra.mxu1 %v5668_v8  ;;  %v5676_v32 = vpack.c.bf16 %v3850_v25, %v3848_v24  ;;  %v3863_v52 = vld [vmem:[#allocation5 + $0xd8] sm:$0xff]  ;;  %v266_v53 = vld [vmem:[%s7253_s9 + $0x70] sm:$0xff]  ;;  %v5684_v56 = vpack.c.bf16 %v3858_v49, %v3856_v48  ;;  %v396_v3 = vld [vmem:[%s7253_s9 + $0x480] sm:$0xff] }
  0x84   : > { %5671 = vmatprep.subr.bf16.mxu0 %v5670_v11  ;;  %5728 = vmatprep.subr.bf16.mxu1 %v5670_v11  ;;  %v267_v54 = vld [vmem:[%s7253_s9 + $0x78] sm:$0xff]  ;;  %v3862_v61 = vld [vmem:[#allocation5 + $0xd0] sm:$0xff]  ;;  %v397_v6 = vld [vmem:[%s7253_s9 + $0x488] sm:$0xff] }
  0x85   : > { %1344 = vadd.xlane.f32.xlu1 %v1343_v28  ;;  %v3855_v28 = vld [vmem:[#allocation5 + $0x98] sm:$0xff]  ;;  %v529_v62 = vadd.f32 %v267_v54, %v266_v53  ;;  %v3864_v8 = vld [vmem:[#allocation5 + $0xe0] sm:$0xff]  ;;  %v3866_v9 = vld [vmem:[#allocation5 + $0xf0] sm:$0xff]  ;;  %v724_v15 = vadd.f32 %v397_v6, %v396_v3  ;;  %v907_v24 = vmul.f32 %v267_v54, %v267_v54 }
  0x86   : > { %1152 = vadd.xlane.f32.xlu0 %v1151_v29  ;;  %v264_v29 = vld [vmem:[%s7253_s9 + $0x60] sm:$0xff]  ;;  %v5678_v35 = vpack.c.bf16 %v3855_v28, %v3853_v27  ;;  %v3867_v2 = vld [vmem:[#allocation5 + $0xf8] sm:$0xff]  ;;  %v3869_v11 = vld [vmem:[#allocation5 + $0x108] sm:$0xff]  ;;  %v5692_v16 = vpack.c.bf16 %v3866_v9, %v3864_v8 }
  0x87   : > { %5673 = vmatpush1.bf16.msra.mxu0 %v5672_v20  ;;  %5744 = vmatpush1.bf16.msra.mxu1 %v5672_v20  ;;  %v526_v38 = vadd.f32 %v265_v30, %v264_v29  ;;  %v904_v63 = vmul.f32 %v264_v29, %v264_v29  ;;  %v3871_v12 = vld [vmem:[#allocation5 + $0x118] sm:$0xff]  ;;  %v268_v13 = vld [vmem:[%s7253_s9 + $0x80] sm:$0xff]  ;;  %v3873_v25 = vld [vmem:[#allocation5 + $0x128] sm:$0xff] }
  0x88   : > { %5675 = vmatprep.subr.bf16.mxu0 %v5674_v23  ;;  %5729 = vmatprep.subr.bf16.mxu1 %v5674_v23  ;;  %v5694_v19 = vpack.c.bf16 %v3871_v12, %v3869_v11  ;;  %v3868_v20 = vld [vmem:[#allocation5 + $0x100] sm:$0xff]  ;;  %v906_v23 = vmul.f32 %v266_v53, %v266_v53  ;;  %v398_v27 = vld [vmem:[%s7253_s9 + $0x490] sm:$0xff]  ;;  %v399_v30 = vld [vmem:[%s7253_s9 + $0x498] sm:$0xff] }
  0x89   : > { %710 = vadd.xlane.f32.xlu1 %v709_v34  ;;  %v1031_v34 = vmul.f32 %v391_v60, %v391_v60  ;;  %v3860_v60 = vld [vmem:[#allocation5 + $0xc0] sm:$0xff]  ;;  %v1166_v10 = vadd.f32 %v905_v0, %v904_v63  ;;  %v3881_v49 = vld [vmem:[#allocation5 + $0x168] sm:$0xff]  ;;  %v402_v11 = vld [vmem:[%s7253_s9 + $0x4b0] sm:$0xff] }
  0x8a   : > { %518 = vadd.xlane.f32.xlu0 %v517_v37  ;;  %v3854_v37 = vld [vmem:[#allocation5 + $0x90] sm:$0xff]  ;;  %v5688_v4 = vpack.c.bf16 %v3862_v61, %v3860_v60  ;;  %v401_v54 = vld [vmem:[%s7253_s9 + $0x4a8] sm:$0xff]  ;;  %v3887_v60 = vld [vmem:[#allocation5 + $0x198] sm:$0xff] }
  0x8b   : > { %5677 = vmatpush1.bf16.msra.mxu0 %v5676_v32  ;;  %5745 = vmatpush1.bf16.msra.mxu1 %v5676_v32  ;;  %v5680_v44 = vpack.c.bf16 %v3854_v37, %v3852_v36  ;;  %v1355_v45 = vadd.f32 %v1031_v34, %v1030_v33  ;;  %v3872_v32 = vld [vmem:[#allocation5 + $0x120] sm:$0xff]  ;;  %v3874_v33 = vld [vmem:[#allocation5 + $0x130] sm:$0xff]  ;;  %v1169_v34 = vadd.f32 %v907_v24, %v906_v23  ;;  %v3879_v36 = vld [vmem:[#allocation5 + $0x158] sm:$0xff] }
  0x8c   : > { %5679 = vmatprep.subr.bf16.mxu0 %v5678_v35  ;;  %5730 = vmatprep.subr.bf16.mxu1 %v5678_v35  ;;  %v3877_v35 = vld [vmem:[#allocation5 + $0x148] sm:$0xff]  ;;  %v270_v37 = vld [vmem:[%s7253_s9 + $0x90] sm:$0xff]  ;;  %v272_v61 = vld [vmem:[%s7253_s9 + $0xa0] sm:$0xff] }
  0x8d   : > { %1347 = vadd.xlane.f32.xlu1 %v1346_v40  ;;  %v903_v40 = vmul.f32 %v263_v5, %v263_v5  ;;  %v1358_v5 = vadd.f32 %v1033_v58, %v1032_v57  ;;  %v3882_v57 = vld [vmem:[#allocation5 + $0x170] sm:$0xff]  ;;  %v3889_v9 = vld [vmem:[#allocation5 + $0x1a8] sm:$0xff] }
  0x8e   : > { %1155 = vadd.xlane.f32.xlu0 %v1154_v41  ;;  %v3857_v41 = vld [vmem:[#allocation5 + $0xa8] sm:$0xff] }
  0x8f   : > { %v5682_v47 = vpack.c.bf16 %v3859_v42, %v3857_v41  ;;  %5681 = vmatpush1.bf16.msra.mxu0 %v5680_v44  ;;  %5746 = vmatpush1.bf16.msra.mxu1 %v5680_v44  ;;  %v1036_v41 = vmul.f32 %v396_v3, %v396_v3  ;;  %v1037_v42 = vmul.f32 %v397_v6, %v397_v6  ;;  %v3876_v44 = vld [vmem:[#allocation5 + $0x140] sm:$0xff] }
  0x91   : > { %713 = vadd.xlane.f32.xlu1 %v712_v46  ;;  %v395_v46 = vld [vmem:[%s7253_s9 + $0x478] sm:$0xff]  ;;  %5683 = vmatprep.subr.bf16.mxu0 %v5682_v47  ;;  %v1364_v53 = vadd.f32 %v1037_v42, %v1036_v41  ;;  %v404_v41 = vld [vmem:[%s7253_s9 + $0x4c0] sm:$0xff]  ;;  %v405_v42 = vld [vmem:[%s7253_s9 + $0x4c8] sm:$0xff] }
  0x92   : > { %521 = vadd.xlane.f32.xlu0 %v520_v50  ;;  %v1163_v50 = vadd.f32 %v903_v40, %v902_v39  ;;  %v721_v55 = vadd.f32 %v395_v46, %v394_v43  ;;  %5731 = vmatprep.subr.bf16.mxu1 %v5682_v47  ;;  %v1035_v18 = vmul.f32 %v395_v46, %v395_v46 }
  0x93   : > { %5685 = vmatpush1.bf16.msra.mxu0 %v5684_v56  ;;  %5747 = vmatpush1.bf16.msra.mxu1 %v5684_v56  ;;  %v727_v39 = vadd.f32 %v399_v30, %v398_v27  ;;  %v5700_v40 = vpack.c.bf16 %v3874_v33, %v3872_v32  ;;  %v5702_v43 = vpack.c.bf16 %v3879_v36, %v3877_v35  ;;  %v3880_v56 = vld [vmem:[#allocation5 + $0x160] sm:$0xff]  ;;  %v3897_v33 = vld [vmem:[#allocation5 + $0x1e8] sm:$0xff] }
  0x94   : > { %v1361_v29 = vadd.f32 %v1035_v18, %v1034_v17  ;;  %v908_v47 = vmul.f32 %v268_v13, %v268_v13  ;;  %v5708_v0 = vpack.c.bf16 %v3882_v57, %v3880_v56  ;;  %v3890_v17 = vld [vmem:[#allocation5 + $0x1b0] sm:$0xff]  ;;  %v279_v57 = vld [vmem:[%s7253_s9 + $0xd8] sm:$0xff] }
  0x95   : > { %1350 = vadd.xlane.f32.xlu1 %v1349_v59  ;;  %v5686_v59 = vpack.c.bf16 %v3863_v52, %v3861_v51  ;;  %v400_v51 = vld [vmem:[%s7253_s9 + $0x4a0] sm:$0xff]  ;;  %v278_v56 = vld [vmem:[%s7253_s9 + $0xd0] sm:$0xff] }
  0x96   : > { %1158 = vadd.xlane.f32.xlu0 %v1157_v1  ;;  %v3865_v1 = vld [vmem:[#allocation5 + $0xe8] sm:$0xff]  ;;  %v730_v63 = vadd.f32 %v401_v54, %v400_v51 }
  0x97   : > { %5687 = vmatprep.subr.bf16.mxu0 %v5686_v59  ;;  %5732 = vmatprep.subr.bf16.mxu1 %v5686_v59  ;;  %v3885_v59 = vld [vmem:[#allocation5 + $0x188] sm:$0xff] }
  0x98   : > { %5689 = vmatpush1.bf16.msra.mxu0 %v5688_v4  ;;  %5748 = vmatpush1.bf16.msra.mxu1 %v5688_v4  ;;  %v5710_v3 = vpack.c.bf16 %v3887_v60, %v3885_v59  ;;  %v3884_v4 = vld [vmem:[#allocation5 + $0x180] sm:$0xff]  ;;  %v1044_v59 = vmul.f32 %v404_v41, %v404_v41  ;;  %v1045_v60 = vmul.f32 %v405_v42, %v405_v42 }
  0x99   : > { %716 = vadd.xlane.f32.xlu1 %v715_v7  ;;  %v5690_v7 = vpack.c.bf16 %v3867_v2, %v3865_v1  ;;  %v1038_v1 = vmul.f32 %v398_v27, %v398_v27  ;;  %v1039_v2 = vmul.f32 %v399_v30, %v399_v30 }
  0x9a   : > { %524 = vadd.xlane.f32.xlu0 %v523_v14  ;;  %v269_v14 = vld [vmem:[%s7253_s9 + $0x88] sm:$0xff] }
  0x9b   : > { %5691 = vmatprep.subr.bf16.mxu0 %v5690_v7  ;;  %v532_v22 = vadd.f32 %v269_v14, %v268_v13  ;;  %5733 = vmatprep.subr.bf16.mxu1 %v5690_v7  ;;  %v909_v48 = vmul.f32 %v269_v14, %v269_v14  ;;  %v910_v7 = vmul.f32 %v270_v37, %v270_v37  ;;  %v403_v14 = vld [vmem:[%s7253_s9 + $0x4b8] sm:$0xff] }
  0x9c   : > { %5693 = vmatpush1.bf16.msra.mxu0 %v5692_v16  ;;  %5749 = vmatpush1.bf16.msra.mxu1 %v5692_v16  ;;  %v1367_v13 = vadd.f32 %v1039_v2, %v1038_v1  ;;  %v3888_v16 = vld [vmem:[#allocation5 + $0x1a0] sm:$0xff]  ;;  %v733_v23 = vadd.f32 %v403_v14, %v402_v11 }
  0x9d   : > { %1353 = vadd.xlane.f32.xlu1 %v1352_v21  ;;  %v3870_v21 = vld [vmem:[#allocation5 + $0x110] sm:$0xff]  ;;  %5695 = vmatprep.subr.bf16.mxu0 %v5694_v19  ;;  %v1172_v58 = vadd.f32 %v909_v48, %v908_v47  ;;  %v5716_v24 = vpack.c.bf16 %v3890_v17, %v3888_v16  ;;  %v1042_v47 = vmul.f32 %v402_v11, %v402_v11  ;;  %v408_v2 = vld [vmem:[%s7253_s9 + $0x4e0] sm:$0xff]  ;;  %v283_v17 = vld [vmem:[%s7253_s9 + $0xf8] sm:$0xff] }
  0x9e   : > { %1161 = vadd.xlane.f32.xlu0 %v1160_v26  ;;  %v3875_v26 = vld [vmem:[#allocation5 + $0x138] sm:$0xff]  ;;  %v5696_v28 = vpack.c.bf16 %v3870_v21, %v3868_v20  ;;  %5734 = vmatprep.subr.bf16.mxu1 %v5694_v19  ;;  %v3893_v19 = vld [vmem:[#allocation5 + $0x1c8] sm:$0xff]  ;;  %v274_v21 = vld [vmem:[%s7253_s9 + $0xb0] sm:$0xff]  ;;  %v1043_v48 = vmul.f32 %v403_v14, %v403_v14  ;;  %v919_v11 = vmul.f32 %v279_v57, %v279_v57 }
  0x9f   : > { %v3895_v20 = vld [vmem:[#allocation5 + $0x1d8] sm:$0xff]  ;;  %v410_v14 = vld [vmem:[%s7253_s9 + $0x4f0] sm:$0xff] }
  0xa0   : > { %5697 = vmatpush1.bf16.msra.mxu0 %v5696_v28  ;;  %5750 = vmatpush1.bf16.msra.mxu1 %v5696_v28  ;;  %v5718_v27 = vpack.c.bf16 %v3895_v20, %v3893_v19  ;;  %v3892_v28 = vld [vmem:[#allocation5 + $0x1c0] sm:$0xff]  ;;  %v282_v16 = vld [vmem:[%s7253_s9 + $0xf0] sm:$0xff]  ;;  %v1048_v19 = vmul.f32 %v408_v2, %v408_v2 }
  0xa1   : > { %719 = vadd.xlane.f32.xlu1 %v718_v31  ;;  %v5698_v31 = vpack.c.bf16 %v3875_v26, %v3873_v25  ;;  %v1040_v25 = vmul.f32 %v400_v51, %v400_v51  ;;  %v1041_v26 = vmul.f32 %v401_v54, %v401_v54  ;;  %v406_v54 = vld [vmem:[%s7253_s9 + $0x4d0] sm:$0xff] }
  0xa2   : > { %527 = vadd.xlane.f32.xlu0 %v526_v38  ;;  %v271_v38 = vld [vmem:[%s7253_s9 + $0x98] sm:$0xff] }
  0xa3   : > { %5699 = vmatprep.subr.bf16.mxu0 %v5698_v31  ;;  %v535_v46 = vadd.f32 %v271_v38, %v270_v37  ;;  %5735 = vmatprep.subr.bf16.mxu1 %v5698_v31  ;;  %v911_v8 = vmul.f32 %v271_v38, %v271_v38  ;;  %v912_v31 = vmul.f32 %v272_v61, %v272_v61  ;;  %v3896_v38 = vld [vmem:[#allocation5 + $0x1e0] sm:$0xff] }
  0xa4   : > { %5701 = vmatpush1.bf16.msra.mxu0 %v5700_v40  ;;  %5751 = vmatpush1.bf16.msra.mxu1 %v5700_v40  ;;  %v1370_v36 = vadd.f32 %v1041_v26, %v1040_v25  ;;  %v412_v26 = vld [vmem:[%s7253_s9 + $0x500] sm:$0xff] }
  0xa5   : > { %1356 = vadd.xlane.f32.xlu1 %v1355_v45  ;;  %v3878_v45 = vld [vmem:[#allocation5 + $0x150] sm:$0xff]  ;;  %5703 = vmatprep.subr.bf16.mxu0 %v5702_v43  ;;  %v1175_v18 = vadd.f32 %v911_v8, %v910_v7  ;;  %v1046_v7 = vmul.f32 %v406_v54, %v406_v54 }
  0xa6   : > { %1164 = vadd.xlane.f32.xlu0 %v1163_v50  ;;  %v3883_v50 = vld [vmem:[#allocation5 + $0x178] sm:$0xff]  ;;  %v5704_v52 = vpack.c.bf16 %v3878_v45, %v3876_v44  ;;  %5736 = vmatprep.subr.bf16.mxu1 %v5702_v43  ;;  %v276_v43 = vld [vmem:[%s7253_s9 + $0xc0] sm:$0xff]  ;;  %v277_v44 = vld [vmem:[%s7253_s9 + $0xc8] sm:$0xff] }
  0xa8   : > { %5705 = vmatpush1.bf16.msra.mxu0 %v5704_v52  ;;  %5752 = vmatpush1.bf16.msra.mxu1 %v5704_v52  ;;  %v1373_v52 = vadd.f32 %v1043_v48, %v1042_v47 }
  0xa9   : > { %722 = vadd.xlane.f32.xlu1 %v721_v55  ;;  %v5706_v55 = vpack.c.bf16 %v3883_v50, %v3881_v49  ;;  %v544_v49 = vadd.f32 %v277_v44, %v276_v43  ;;  %v914_v50 = vmul.f32 %v274_v21, %v274_v21 }
  0xaa   : > { %530 = vadd.xlane.f32.xlu0 %v529_v62  ;;  %v273_v62 = vld [vmem:[%s7253_s9 + $0xa8] sm:$0xff] }
  0xab   : > { %5707 = vmatprep.subr.bf16.mxu0 %v5706_v55  ;;  %v538_v6 = vadd.f32 %v273_v62, %v272_v61  ;;  %5737 = vmatprep.subr.bf16.mxu1 %v5706_v55  ;;  %v913_v32 = vmul.f32 %v273_v62, %v273_v62  ;;  %v407_v55 = vld [vmem:[%s7253_s9 + $0x4d8] sm:$0xff]  ;;  %v547_v61 = vadd.f32 %v279_v57, %v278_v56 }
  0xac   : > { %5709 = vmatpush1.bf16.msra.mxu0 %v5708_v0  ;;  %5753 = vmatpush1.bf16.msra.mxu1 %v5708_v0  ;;  %v916_v62 = vmul.f32 %v276_v43, %v276_v43  ;;  %v1376_v0 = vadd.f32 %v1045_v60, %v1044_v59  ;;  %v1047_v8 = vmul.f32 %v407_v55, %v407_v55  ;;  %v419_v57 = vld [vmem:[%s7253_s9 + $0x538] sm:$0xff] }
  0xad   : > { %1359 = vadd.xlane.f32.xlu1 %v1358_v5  ;;  %v3886_v5 = vld [vmem:[#allocation5 + $0x190] sm:$0xff]  ;;  %5711 = vmatprep.subr.bf16.mxu0 %v5710_v3  ;;  %v1178_v40 = vadd.f32 %v913_v32, %v912_v31  ;;  %v922_v32 = vmul.f32 %v282_v16, %v282_v16  ;;  %v291_v59 = vld [vmem:[%s7253_s9 + $0x138] sm:$0xff] }
  0xae   : > { %1167 = vadd.xlane.f32.xlu0 %v1166_v10  ;;  %v3891_v10 = vld [vmem:[#allocation5 + $0x1b8] sm:$0xff]  ;;  %v5712_v12 = vpack.c.bf16 %v3886_v5, %v3884_v4  ;;  %5738 = vmatprep.subr.bf16.mxu1 %v5710_v3  ;;  %v409_v3 = vld [vmem:[%s7253_s9 + $0x4e8] sm:$0xff]  ;;  %v280_v4 = vld [vmem:[%s7253_s9 + $0xe0] sm:$0xff] }
  0xaf   : > { %v281_v5 = vld [vmem:[%s7253_s9 + $0xe8] sm:$0xff]  ;;  %v1049_v20 = vmul.f32 %v409_v3, %v409_v3 }
  0xb0   : > { %5713 = vmatpush1.bf16.msra.mxu0 %v5712_v12  ;;  %5754 = vmatpush1.bf16.msra.mxu1 %v5712_v12  ;;  %v1379_v12 = vadd.f32 %v1047_v8, %v1046_v7  ;;  %v931_v7 = vmul.f32 %v291_v59, %v291_v59  ;;  %v422_v8 = vld [vmem:[%s7253_s9 + $0x550] sm:$0xff] }
  0xb1   : > { %725 = vadd.xlane.f32.xlu1 %v724_v15  ;;  %v5714_v15 = vpack.c.bf16 %v3891_v10, %v3889_v9  ;;  %v550_v9 = vadd.f32 %v281_v5, %v280_v4  ;;  %v918_v10 = vmul.f32 %v278_v56, %v278_v56  ;;  %v418_v56 = vld [vmem:[%s7253_s9 + $0x530] sm:$0xff] }
  0xb2   : > { %533 = vadd.xlane.f32.xlu0 %v532_v22  ;;  %v275_v22 = vld [vmem:[%s7253_s9 + $0xb8] sm:$0xff] }
  0xb3   : > { %5715 = vmatprep.subr.bf16.mxu0 %v5714_v15  ;;  %v541_v30 = vadd.f32 %v275_v22, %v274_v21  ;;  %5739 = vmatprep.subr.bf16.mxu1 %v5714_v15  ;;  %v915_v51 = vmul.f32 %v275_v22, %v275_v22  ;;  %v411_v15 = vld [vmem:[%s7253_s9 + $0x4f8] sm:$0xff]  ;;  %v553_v21 = vadd.f32 %v283_v17, %v282_v16 }
  0xb4   : > { %5717 = vmatpush1.bf16.msra.mxu0 %v5716_v24  ;;  %5755 = vmatpush1.bf16.msra.mxu1 %v5716_v24  ;;  %v920_v22 = vmul.f32 %v280_v4, %v280_v4  ;;  %v1382_v24 = vadd.f32 %v1049_v20, %v1048_v19  ;;  %v1051_v31 = vmul.f32 %v411_v15, %v411_v15 }
  0xb5   : > { %1362 = vadd.xlane.f32.xlu1 %v1361_v29  ;;  %v3894_v29 = vld [vmem:[#allocation5 + $0x1d0] sm:$0xff]  ;;  %5719 = vmatprep.subr.bf16.mxu0 %v5718_v27  ;;  %v1058_v4 = vmul.f32 %v418_v56, %v418_v56 }
  0xb6   : > { %1170 = vadd.xlane.f32.xlu0 %v1169_v34  ;;  %v3899_v34 = vld [vmem:[#allocation5 + $0x1f8] sm:$0xff]  ;;  %v5720_v35 = vpack.c.bf16 %v3894_v29, %v3892_v28  ;;  %5740 = vmatprep.subr.bf16.mxu1 %v5718_v27  ;;  %v413_v27 = vld [vmem:[%s7253_s9 + $0x508] sm:$0xff]  ;;  %v284_v28 = vld [vmem:[%s7253_s9 + $0x100] sm:$0xff] }
  0xb7   : > { %v5722_v37 = vpack.c.bf16 %v3899_v34, %v3897_v33  ;;  %v285_v29 = vld [vmem:[%s7253_s9 + $0x108] sm:$0xff]  ;;  %v923_v33 = vmul.f32 %v283_v17, %v283_v17  ;;  %v414_v34 = vld [vmem:[%s7253_s9 + $0x510] sm:$0xff]  ;;  %v924_v47 = vmul.f32 %v284_v28, %v284_v28 }
  0xb8   : > { %5721 = vmatpush1.bf16.msra.mxu0 %v5720_v35  ;;  %5756 = vmatpush1.bf16.msra.mxu1 %v5720_v35  ;;  %v415_v35 = vld [vmem:[%s7253_s9 + $0x518] sm:$0xff]  ;;  %v925_v48 = vmul.f32 %v285_v29, %v285_v29 }
  0xb9   : > { %728 = vadd.xlane.f32.xlu1 %v727_v39  ;;  %v3898_v39 = vld [vmem:[#allocation5 + $0x1f0] sm:$0xff]  ;;  %5723 = vmatprep.subr.bf16.mxu0 %v5722_v37 }
  0xba   : > { %536 = vadd.xlane.f32.xlu0 %v535_v46  ;;  %v5724_v45 = vpack.c.bf16 %v3898_v39, %v3896_v38  ;;  %v736_v46 = vadd.f32 %v405_v42, %v404_v41  ;;  %5741 = vmatprep.subr.bf16.mxu1 %v5722_v37  ;;  %v287_v37 = vld [vmem:[%s7253_s9 + $0x118] sm:$0xff]  ;;  %v748_v38 = vadd.f32 %v413_v27, %v412_v26 }
  0xbb   : > { %v556_v39 = vadd.f32 %v285_v29, %v284_v28  ;;  %v1193_v41 = vadd.f32 %v923_v33, %v922_v32  ;;  %v751_v42 = vadd.f32 %v415_v35, %v414_v34  ;;  %v424_v28 = vld [vmem:[%s7253_s9 + $0x560] sm:$0xff]  ;;  %v425_v33 = vld [vmem:[%s7253_s9 + $0x568] sm:$0xff] }
  0xbc   : > { %5725 = vmatpush1.bf16.msra.mxu0 %v5724_v45  ;;  %5757 = vmatpush1.bf16.msra.mxu1 %v5724_v45  ;;  %v1052_v45 = vmul.f32 %v412_v26, %v412_v26 }
  0xbd   : > { %1365 = vadd.xlane.f32.xlu1 %v1364_v53  ;;  %v1181_v53 = vadd.f32 %v915_v51, %v914_v50  ;;  %v288_v50 = vld [vmem:[%s7253_s9 + $0x120] sm:$0xff]  ;;  %v289_v51 = vld [vmem:[%s7253_s9 + $0x128] sm:$0xff] }
  0xbe   : > { %1173 = vadd.xlane.f32.xlu0 %v1172_v58  ;;  %v739_v58 = vadd.f32 %v407_v55, %v406_v54  ;;  %v927_v55 = vmul.f32 %v287_v37, %v287_v37 }
  0xc1   : > { %731 = vadd.xlane.f32.xlu1 %v730_v63  ;;  %v917_v63 = vmul.f32 %v277_v44, %v277_v44  ;;  %v416_v44 = vld [vmem:[%s7253_s9 + $0x520] sm:$0xff] }
  0xc2   : > { %539 = vadd.xlane.f32.xlu0 %v538_v6  ;;  %v742_v6 = vadd.f32 %v409_v3, %v408_v2  ;;  %v1056_v60 = vmul.f32 %v416_v44, %v416_v44  ;;  %v292_v2 = vld [vmem:[%s7253_s9 + $0x140] sm:$0xff]  ;;  %v293_v3 = vld [vmem:[%s7253_s9 + $0x148] sm:$0xff] }
  0xc3   : > { %v1184_v1 = vadd.f32 %v917_v63, %v916_v62  ;;  %v928_v62 = vmul.f32 %v288_v50, %v288_v50  ;;  %v929_v63 = vmul.f32 %v289_v51, %v289_v51  ;;  %v933_v32 = vmul.f32 %v293_v3, %v293_v3 }
  0xc5   : > { %1368 = vadd.xlane.f32.xlu1 %v1367_v13  ;;  %v1187_v13 = vadd.f32 %v919_v11, %v918_v10  ;;  %v7350_v10 = vadd.f32 %v925_v48, %v924_v47  ;;  %v1065_v47 = vmul.f32 %v425_v33, %v425_v33 }
  0xc6   : > { %1176 = vadd.xlane.f32.xlu0 %v1175_v18  ;;  %v745_v18 = vadd.f32 %v411_v15, %v410_v14  ;;  %v295_v15 = vld [vmem:[%s7253_s9 + $0x158] sm:$0xff] }
  0xc9   : > { %734 = vadd.xlane.f32.xlu1 %v733_v23  ;;  %v921_v23 = vmul.f32 %v281_v5, %v281_v5  ;;  %v1059_v5 = vmul.f32 %v419_v57, %v419_v57 }
  0xca   : > { %542 = vadd.xlane.f32.xlu0 %v541_v30  ;;  %v1050_v30 = vmul.f32 %v410_v14, %v410_v14  ;;  %v294_v14 = vld [vmem:[%s7253_s9 + $0x150] sm:$0xff] }
  0xcb   : > { %v1190_v25 = vadd.f32 %v921_v23, %v920_v22  ;;  %v7373_v23 = vadd.f32 %v293_v3, %v292_v2 }
  0xcd   : > { %1371 = vadd.xlane.f32.xlu1 %v1370_v36  ;;  %v286_v36 = vld [vmem:[%s7253_s9 + $0x110] sm:$0xff] }
  0xce   : > { %1179 = vadd.xlane.f32.xlu0 %v1178_v40  ;;  %v1385_v40 = vadd.f32 %v1051_v31, %v1050_v30  ;;  %v7335_v43 = vadd.f32 %v287_v37, %v286_v36  ;;  %v926_v54 = vmul.f32 %v286_v36, %v286_v36  ;;  %v932_v31 = vmul.f32 %v292_v2, %v292_v2 }
  0xcf   : > { %v1062_v36 = vmul.f32 %v422_v8, %v422_v8 }
  0xd0   : > { %v7361_v17 = vadd.f32 %v927_v55, %v926_v54 }
  0xd1   : > { %737 = vadd.xlane.f32.xlu1 %v736_v46  ;;  %v1053_v46 = vmul.f32 %v413_v27, %v413_v27  ;;  %v7381_v27 = vadd.f32 %v295_v15, %v294_v14 }
  0xd2   : > { %545 = vadd.xlane.f32.xlu0 %v544_v49  ;;  %v417_v49 = vld [vmem:[%s7253_s9 + $0x528] sm:$0xff] }
  0xd3   : > { %v7352_v11 = vadd.f32 %v417_v49, %v416_v44  ;;  %v298_v44 = vld [vmem:[%s7253_s9 + $0x170] sm:$0xff] }
  0xd4   : > { %v938_v55 = vmul.f32 %v298_v44, %v298_v44 }
  0xd5   : > { %1374 = vadd.xlane.f32.xlu1 %v1373_v52  ;;  %v1054_v52 = vmul.f32 %v414_v34, %v414_v34  ;;  %v296_v34 = vld [vmem:[%s7253_s9 + $0x160] sm:$0xff] }
  0xd6   : > { %1182 = vadd.xlane.f32.xlu0 %v1181_v53  ;;  %v1055_v53 = vmul.f32 %v415_v35, %v415_v35  ;;  %v297_v35 = vld [vmem:[%s7253_s9 + $0x168] sm:$0xff]  ;;  %v936_v48 = vmul.f32 %v296_v34, %v296_v34 }
  0xd8   : > { %v7359_v16 = vadd.f32 %v1055_v53, %v1054_v52  ;;  %v301_v52 = vld [vmem:[%s7253_s9 + $0x188] sm:$0xff] }
  0xd9   : > { %740 = vadd.xlane.f32.xlu1 %v739_v58  ;;  %v290_v58 = vld [vmem:[%s7253_s9 + $0x130] sm:$0xff] }
  0xda   : > { %548 = vadd.xlane.f32.xlu0 %v547_v61  ;;  %v1057_v61 = vmul.f32 %v417_v49, %v417_v49  ;;  %v7365_v19 = vadd.f32 %v291_v59, %v290_v58  ;;  %v937_v49 = vmul.f32 %v297_v35, %v297_v35  ;;  %v7401_v59 = vadd.f32 %v425_v33, %v424_v28  ;;  %v305_v33 = vld [vmem:[%s7253_s9 + $0x1a8] sm:$0xff] }
  0xdc   : > { %v7367_v20 = vadd.f32 %v1057_v61, %v1056_v60  ;;  %v7403_v60 = vadd.f32 %v297_v35, %v296_v34  ;;  %v431_v61 = vld [vmem:[%s7253_s9 + $0x598] sm:$0xff] }
  0xdd   : > { %1377 = vadd.xlane.f32.xlu1 %v1376_v0  ;;  %v420_v0 = vld [vmem:[%s7253_s9 + $0x540] sm:$0xff]  ;;  %v1071_v35 = vmul.f32 %v431_v61, %v431_v61 }
  0xde   : > { %1185 = vadd.xlane.f32.xlu0 %v1184_v1  ;;  %v421_v1 = vld [vmem:[%s7253_s9 + $0x548] sm:$0xff]  ;;  %v1060_v29 = vmul.f32 %v420_v0, %v420_v0 }
  0xdf   : > { %v7371_v22 = vadd.f32 %v421_v1, %v420_v0  ;;  %v1061_v30 = vmul.f32 %v421_v1, %v421_v1 }
  0xe1   : > { %743 = vadd.xlane.f32.xlu1 %v742_v6  ;;  %v930_v6 = vmul.f32 %v290_v58, %v290_v58  ;;  %v7397_v58 = vadd.f32 %v1061_v30, %v1060_v29  ;;  %v941_v29 = vmul.f32 %v301_v52, %v301_v52  ;;  %v432_v30 = vld [vmem:[%s7253_s9 + $0x5a0] sm:$0xff] }
  0xe2   : > { %551 = vadd.xlane.f32.xlu0 %v550_v9  ;;  %v1388_v9 = vadd.f32 %v1053_v46, %v1052_v45  ;;  %v299_v45 = vld [vmem:[%s7253_s9 + $0x178] sm:$0xff]  ;;  %v1064_v46 = vmul.f32 %v424_v28, %v424_v28 }
  0xe3   : > { %v7414_v3 = vadd.f32 %v299_v45, %v298_v44  ;;  %v307_v44 = vld [vmem:[%s7253_s9 + $0x1b8] sm:$0xff] }
  0xe5   : > { %1380 = vadd.xlane.f32.xlu1 %v1379_v12  ;;  %v7354_v12 = vadd.f32 %v289_v51, %v288_v50  ;;  %v429_v50 = vld [vmem:[%s7253_s9 + $0x588] sm:$0xff]  ;;  %v300_v51 = vld [vmem:[%s7253_s9 + $0x180] sm:$0xff] }
  0xe6   : > { %1188 = vadd.xlane.f32.xlu0 %v1187_v13  ;;  %v423_v13 = vld [vmem:[%s7253_s9 + $0x558] sm:$0xff]  ;;  %v940_v28 = vmul.f32 %v300_v51, %v300_v51 }
  0xe7   : > { %v7379_v26 = vadd.f32 %v423_v13, %v422_v8  ;;  %v1063_v37 = vmul.f32 %v423_v13, %v423_v13 }
  0xe9   : > { %746 = vadd.xlane.f32.xlu1 %v745_v18  ;;  %v7363_v18 = vadd.f32 %v419_v57, %v418_v56  ;;  %v939_v56 = vmul.f32 %v299_v45, %v299_v45  ;;  %v430_v57 = vld [vmem:[%s7253_s9 + $0x590] sm:$0xff]  ;;  %v7408_v0 = vadd.f32 %v1063_v37, %v1062_v36  ;;  %v1072_v45 = vmul.f32 %v432_v30, %v432_v30 }
  0xea   : > { %554 = vadd.xlane.f32.xlu0 %v553_v21  ;;  %v7369_v21 = vadd.f32 %v929_v63, %v928_v62  ;;  %v302_v62 = vld [vmem:[%s7253_s9 + $0x190] sm:$0xff]  ;;  %v303_v63 = vld [vmem:[%s7253_s9 + $0x198] sm:$0xff]  ;;  %v7429_v13 = vadd.f32 %v431_v61, %v430_v57  ;;  %v1070_v34 = vmul.f32 %v430_v57, %v430_v57 }
  0xeb   : > { %v942_v36 = vmul.f32 %v302_v62, %v302_v62  ;;  %v943_v37 = vmul.f32 %v303_v63, %v303_v63 }
  0xec   : > { %13242 = vst [vmem:[#allocation13_spill] sm:$0xff] %v7429_v13 }
  0xed   : > { %1383 = vadd.xlane.f32.xlu1 %v1382_v24  ;;  %v7375_v24 = vadd.f32 %v1059_v5, %v1058_v4  ;;  %v7417_v4 = vadd.f32 %v1065_v47, %v1064_v46  ;;  %v7419_v5 = vadd.f32 %v937_v49, %v936_v48  ;;  %v945_v47 = vmul.f32 %v305_v33, %v305_v33  ;;  %v436_v48 = vld [vmem:[%s7253_s9 + $0x5c0] sm:$0xff] }
  0xee   : > { %1191 = vadd.xlane.f32.xlu0 %v1190_v25  ;;  %v7377_v25 = vadd.f32 %v931_v7, %v930_v6  ;;  %v7423_v7 = vadd.f32 %v301_v52, %v300_v51  ;;  %v309_v51 = vld [vmem:[%s7253_s9 + $0x1c8] sm:$0xff]  ;;  %v7464_v13 = vadd.f32 %v943_v37, %v942_v36  ;;  %v1076_v36 = vmul.f32 %v436_v48, %v436_v48 }
  0xf0   : > { %13244 = vst [vmem:[#allocation15_spill] sm:$0xff] %v7464_v13  ;;  %v7533_v13 = vld [vmem:[%s7253_s9 + $0x208] sm:$0xff] }
  0xf1   : > { %749 = vadd.xlane.f32.xlu1 %v748_v38  ;;  %v934_v38 = vmul.f32 %v294_v14, %v294_v14  ;;  %v7431_v14 = vadd.f32 %v303_v63, %v302_v62  ;;  %v438_v62 = vld [vmem:[%s7253_s9 + $0x5d0] sm:$0xff]  ;;  %v439_v63 = vld [vmem:[%s7253_s9 + $0x5d8] sm:$0xff] }
  0xf2   : > { %557 = vadd.xlane.f32.xlu0 %v556_v39  ;;  %v935_v39 = vmul.f32 %v295_v15, %v295_v15  ;;  %v1069_v15 = vmul.f32 %v429_v50, %v429_v50 }
  0xf3   : > { %13243 = vst [vmem:[#allocation14_spill] sm:$0xff] %v7431_v14  ;;  %v7462_v14 = vadd.f32 %v1071_v35, %v1070_v34  ;;  %v310_v34 = vld [vmem:[%s7253_s9 + $0x1d0] sm:$0xff]  ;;  %v311_v35 = vld [vmem:[%s7253_s9 + $0x1d8] sm:$0xff] }
  0xf4   : > { %v7410_v1 = vadd.f32 %v935_v39, %v934_v38  ;;  %v434_v38 = vld [vmem:[%s7253_s9 + $0x5b0] sm:$0xff]  ;;  %v435_v39 = vld [vmem:[%s7253_s9 + $0x5b8] sm:$0xff] }
  0xf5   : > { %1386 = vadd.xlane.f32.xlu1 %v1385_v40  ;;  %v426_v40 = vld [vmem:[%s7253_s9 + $0x570] sm:$0xff]  ;;  %v1074_v52 = vmul.f32 %v434_v38, %v434_v38 }
  0xf6   : > { %1194 = vadd.xlane.f32.xlu0 %v1193_v41  ;;  %v427_v41 = vld [vmem:[%s7253_s9 + $0x578] sm:$0xff]  ;;  %v1066_v53 = vmul.f32 %v426_v40, %v426_v40 }
  0xf7   : > { %v1067_v54 = vmul.f32 %v427_v41, %v427_v41  ;;  %v7412_v2 = vadd.f32 %v427_v41, %v426_v40  ;;  %v306_v41 = vld [vmem:[%s7253_s9 + $0x1b0] sm:$0xff] }
  0xf9   : > { %752 = vadd.xlane.f32.xlu1 %v751_v42  ;;  %v428_v42 = vld [vmem:[%s7253_s9 + $0x580] sm:$0xff]  ;;  %v7425_v8 = vadd.f32 %v1067_v54, %v1066_v53  ;;  %v1075_v53 = vmul.f32 %v435_v39, %v435_v39  ;;  %v946_v54 = vmul.f32 %v306_v41, %v306_v41 }
  0xfa   : > { %560 = vadd.xlane.f32.xlu0 %v7335_v43  ;;  %v7399_v43 = vadd.f32 %v933_v32, %v932_v31  ;;  %v7421_v6 = vadd.f32 %v429_v50, %v428_v42  ;;  %v433_v31 = vld [vmem:[%s7253_s9 + $0x5a8] sm:$0xff]  ;;  %v304_v32 = vld [vmem:[%s7253_s9 + $0x1a0] sm:$0xff] }
  0xfb   : > { %v1073_v46 = vmul.f32 %v433_v31, %v433_v31  ;;  %v308_v50 = vld [vmem:[%s7253_s9 + $0x1c0] sm:$0xff]  ;;  %v7455_v57 = vadd.f32 %v433_v31, %v432_v30  ;;  %v7457_v61 = vadd.f32 %v305_v33, %v304_v32 }
  0xfc   : > { %v7479_v30 = vadd.f32 %v309_v51, %v308_v50 }
  0xfd   : > { %1389 = vadd.xlane.f32.xlu1 %v1388_v9  ;;  %v7427_v9 = vadd.f32 %v939_v56, %v938_v55  ;;  %v7453_v56 = vadd.f32 %v941_v29, %v940_v28  ;;  %v7473_v28 = vadd.f32 %v1073_v46, %v1072_v45  ;;  %v312_v45 = vld [vmem:[%s7253_s9 + $0x1e0] sm:$0xff]  ;;  %v1078_v46 = vmul.f32 %v438_v62, %v438_v62 }
  0xfe   : > { %1197 = vadd.xlane.f32.xlu0 %v7350_v10  ;;  %v1068_v10 = vmul.f32 %v428_v42, %v428_v42  ;;  %v437_v42 = vld [vmem:[%s7253_s9 + $0x5c8] sm:$0xff]  ;;  %13250 = vst [vmem:[#allocation21_spill] sm:$0xff] %v7479_v30  ;;  %v315_v30 = vld [vmem:[%s7253_s9 + $0x1f8] sm:$0xff] }
  0xff   : > { %13241 = vst [vmem:[#allocation12_spill] sm:$0xff] %v7427_v9  ;;  %v7466_v9 = vadd.f32 %v435_v39, %v434_v38  ;;  %13247 = vst [vmem:[#allocation18_spill] sm:$0xff] %v7473_v28  ;;  %v1077_v37 = vmul.f32 %v437_v42, %v437_v42  ;;  %v948_v38 = vmul.f32 %v308_v50, %v308_v50  ;;  %v7519_v28 = vld [vmem:[%s7253_s9 + $0x608] sm:$0xff] }
 0x100   : > { %v7451_v55 = vadd.f32 %v1069_v15, %v1068_v10  ;;  %v7468_v10 = vadd.f32 %v307_v44, %v306_v41  ;;  %v949_v39 = vmul.f32 %v309_v51, %v309_v51  ;;  %v440_v41 = vld [vmem:[%s7253_s9 + $0x5e0] sm:$0xff]  ;;  %v7504_v51 = vadd.f32 %v311_v35, %v310_v34 }
 0x101   : > { %755 = vadd.xlane.f32.xlu1 %v7352_v11  ;;  %v944_v11 = vmul.f32 %v304_v32, %v304_v32  ;;  %13245 = vst [vmem:[#allocation16_spill] sm:$0xff] %v7466_v9  ;;  %v7481_v32 = vadd.f32 %v1075_v53, %v1074_v52  ;;  %v1079_v52 = vmul.f32 %v439_v63, %v439_v63  ;;  %v7530_v9 = vld [vmem:[%s7253_s9 + $0x200] sm:$0xff] }
 0x102   : > { %563 = vadd.xlane.f32.xlu0 %v7354_v12  ;;  %v7441_v40 = vpop.xlane.xlu1 %512  ;;  %v947_v12 = vmul.f32 %v307_v44, %v307_v44  ;;  %13246 = vst [vmem:[#allocation17_spill] sm:$0xff] %v7468_v10  ;;  %v441_v44 = vld [vmem:[%s7253_s9 + $0x5e8] sm:$0xff]  ;;  %v950_v53 = vmul.f32 %v310_v34, %v310_v34  ;;  %13254 = vst [vmem:[#allocation25_spill] sm:$0xff] %v7504_v51  ;;  %v7521_v34 = vadd.f32 %v1077_v37, %v1076_v36 }
 0x103   : > { %v7446_v49 = vpop.xlane.xlu0 %509  ;;  %v7475_v29 = vadd.f32 %v945_v47, %v944_v11  ;;  %13251 = vst [vmem:[#allocation22_spill] sm:$0xff] %v7481_v32  ;;  %v313_v47 = vld [vmem:[%s7253_s9 + $0x1e8] sm:$0xff]  ;;  %v7512_v32 = vadd.f32 %v441_v44, %v440_v41  ;;  %v7540_v36 = vadd.f32 %v1079_v52, %v1078_v46 }
 0x104   : > { %v7483_v33 = vadd.f32 %v947_v12, %v946_v54  ;;  %v951_v54 = vmul.f32 %v311_v35, %v311_v35  ;;  %v442_v12 = vld [vmem:[%s7253_s9 + $0x5f0] sm:$0xff]  ;;  %13256 = vst [vmem:[#allocation27_spill] sm:$0xff] %v7521_v34  ;;  %v7523_v35 = vadd.f32 %v949_v39, %v948_v38  ;;  %v7525_v51 = vadd.f32 %v313_v47, %v312_v45 }
 0x105   : > { %1392 = vadd.xlane.f32.xlu1 %v7359_v16  ;;  %13248 = vst [vmem:[#allocation19_spill] sm:$0xff] %v7475_v29  ;;  %v7477_v16 = vadd.f32 %v437_v42, %v436_v48  ;;  %v443_v48 = vld [vmem:[%s7253_s9 + $0x5f8] sm:$0xff]  ;;  %v7499_v42 = vmul.f32 0.00390625, %v7446_v49  ;;  %13255 = vst [vmem:[#allocation26_spill] sm:$0xff] %v7512_v32  ;;  %v953_v29 = vmul.f32 %v313_v47, %v313_v47 }
 0x106   : > { %1200 = vadd.xlane.f32.xlu0 %v7361_v17  ;;  %v7471_v15 = vpop.xlane.xlu1 %704  ;;  %13252 = vst [vmem:[#allocation23_spill] sm:$0xff] %v7483_v33  ;;  %v7485_v17 = vadd.f32 %v439_v63, %v438_v62  ;;  %v1080_v62 = vmul.f32 %v440_v41, %v440_v41  ;;  %v1081_v63 = vmul.f32 %v441_v44, %v441_v44  ;;  %13257 = vst [vmem:[#allocation28_spill] sm:$0xff] %v7523_v35 }
 0x107   : > { %13249 = vst [vmem:[#allocation20_spill] sm:$0xff] %v7477_v16  ;;  %v702_v31 = vpop.xlane.xlu0 %701  ;;  %v952_v16 = vmul.f32 %v312_v45, %v312_v45  ;;  %13258 = vst [vmem:[#allocation29_spill] sm:$0xff] %v7525_v51  ;;  %v7527_v10 = vadd.f32 %v443_v48, %v442_v12  ;;  %v7536_v41 = vmul.f32 0.00390625, %v7471_v15  ;;  %v7542_v37 = vadd.f32 %v951_v54, %v950_v53  ;;  %v7564_v54 = vld [vmem:[%s7253_s9 + $0x18] sm:$0xff] }
 0x108   : > { %13253 = vst [vmem:[#allocation24_spill] sm:$0xff] %v7485_v17  ;;  %v7492_v11 = vmul.f32 0.00390625, %v702_v31  ;;  %v7508_v17 = vmul.f32 0.00390625, %v7441_v40  ;;  %13260 = vst [vmem:[#allocation31_spill] sm:$0xff] %v7540_v36  ;;  %v1660_v38 = vmul.f32 %v7499_v42, %v7446_v49  ;;  %v7549_v47 = vadd.f32 %v1081_v63, %v1080_v62  ;;  %v319_v62 = vld [vmem:[%s7253_s9 + $0x218] sm:$0xff] }
 0x109   : > { %758 = vadd.xlane.f32.xlu1 %v7363_v18  ;;  %v314_v18 = vld [vmem:[%s7253_s9 + $0x1f0] sm:$0xff]  ;;  %13259 = vst [vmem:[#allocation30_spill] sm:$0xff] %v7527_v10  ;;  %13261 = vst [vmem:[#allocation32_spill] sm:$0xff] %v7542_v37  ;;  %v7557_v52 = vadd.f32 %v953_v29, %v952_v16  ;;  %v1082_v63 = vmul.f32 %v442_v12, %v442_v12  ;;  %v1725_v29 = vmul.f32 %v7536_v41, %v7471_v15  ;;  %v7591_v15 = vld [vmem:[%s7253_s9] sm:$0xff] }
 0x10a   : > { %566 = vadd.xlane.f32.xlu0 %v7365_v19  ;;  %v7502_v50 = vpop.xlane.xlu1 %707  ;;  %v7516_v19 = vld [vmem:[%s7253_s9 + $0x600] sm:$0xff]  ;;  %v1724_v44 = vmul.f32 %v7492_v11, %v702_v31  ;;  %v7547_v45 = vadd.f32 %v315_v30, %v314_v18  ;;  %13263 = vst [vmem:[#allocation34_spill] sm:$0xff] %v7549_v47  ;;  %v955_v47 = vmul.f32 %v315_v30, %v315_v30 }
 0x10b   : > { %v7510_v33 = vpop.xlane.xlu0 %515  ;;  %v7553_v31 = vadd.f32 %v7519_v28, %v7516_v19  ;;  %13265 = vst [vmem:[#allocation36_spill] sm:$0xff] %v7557_v52  ;;  %v7687_v51 = vmul.f32 %v7533_v13, %v7533_v13 }
 0x10c   : > { %13262 = vst [vmem:[#allocation33_spill] sm:$0xff] %v7547_v45  ;;  %v7611_v30 = vmul.f32 0.00390625, %v7510_v33 }
 0x10d   : > { %1395 = vadd.xlane.f32.xlu1 %v7367_v20  ;;  %13264 = vst [vmem:[#allocation35_spill] sm:$0xff] %v7553_v31  ;;  %v1661_v20 = vmul.f32 %v7508_v17, %v7441_v40  ;;  %v1083_v40 = vmul.f32 %v443_v48, %v443_v48  ;;  %v318_v48 = vld [vmem:[%s7253_s9 + $0x210] sm:$0xff]  ;;  %13273 = vst [vmem:[#allocation44_spill] sm:$0xff] %v7687_v51 }
 0x10e   : > { %1203 = vadd.xlane.f32.xlu0 %v7369_v21  ;;  %v1342_v39 = vpop.xlane.xlu1 %1341  ;;  %v7561_v21 = vadd.f32 %v7533_v13, %v7530_v9 }
 0x10f   : > { %v1852_v46 = vsub.f32 %v1342_v39, %v1724_v44  ;;  %v1150_v49 = vpop.xlane.xlu0 %1149  ;;  %v7569_v44 = vld [vmem:[%s7253_s9 + $0x610] sm:$0xff]  ;;  %v7572_v39 = vld [vmem:[%s7253_s9 + $0x618] sm:$0xff]  ;;  %v7606_v36 = vadd.f32 %v1083_v40, %v1082_v63  ;;  %v1085_v63 = vmul.f32 %v7519_v28, %v7519_v28 }
 0x110   : > { %13266 = vst [vmem:[#allocation37_spill] sm:$0xff] %v7561_v21  ;;  %v1788_v53 = vsub.f32 %v1150_v49, %v1660_v38  ;;  %13267 = vst [vmem:[#allocation38_spill] sm:$0xff] %v7572_v39  ;;  %v7578_v21 = vld [vmem:[%s7253_s9 + $0x8] sm:$0xff]  ;;  %v7583_v49 = vld [vmem:[%s7253_s9 + $0x10] sm:$0xff]  ;;  %v7596_v38 = vmul.f32 0.00390625, %v7502_v50 }
 0x111   : > { %v1980_v16 = vmul.f32 0.003921569, %v1852_v46  ;;  %761 = vadd.xlane.f32.xlu1 %v7371_v22  ;;  %v954_v46 = vmul.f32 %v314_v18, %v314_v18  ;;  %13269 = vst [vmem:[#allocation40_spill] sm:$0xff] %v7606_v36  ;;  %v7608_v22 = vadd.f32 %v319_v62, %v318_v48  ;;  %v7623_v62 = vld [vmem:[%s7253_s9 + $0x410] sm:$0xff]  ;;  %v7666_v48 = vld [vmem:[%s7253_s9 + $0x420] sm:$0xff] }
 0x112   : > { %v1916_v31 = vmul.f32 0.003921569, %v1788_v53  ;;  %569 = vadd.xlane.f32.xlu0 %v7373_v23  ;;  %v1345_v52 = vpop.xlane.xlu1 %1344  ;;  %v7602_v23 = vadd.f32 %v7572_v39, %v7569_v44  ;;  %v1726_v40 = vmul.f32 %v7596_v38, %v7502_v50  ;;  %v7681_v50 = vmul.f32 %v7530_v9, %v7530_v9 }
 0x113   : > { %v7598_v45 = vmax.f32 %v1980_v16, 0.0  ;;  %v1853_v12 = vsub.f32 %v1345_v52, %v1725_v29  ;;  %v1153_v10 = vpop.xlane.xlu0 %1152  ;;  %13270 = vst [vmem:[#allocation41_spill] sm:$0xff] %v7608_v22  ;;  %v7616_v52 = vld [vmem:[%s7253_s9 + $0x418] sm:$0xff]  ;;  %v1662_v22 = vmul.f32 %v7611_v30, %v7510_v33 }
 0x114   : > { %13268 = vst [vmem:[#allocation39_spill] sm:$0xff] %v7602_v23  ;;  %v7604_v53 = vmax.f32 %v1916_v31, 0.0  ;;  %v1789_v37 = vsub.f32 %v1153_v10, %v1661_v20  ;;  %v448_v31 = vld [vmem:[%s7253_s9 + $0x620] sm:$0xff]  ;;  %13272 = vst [vmem:[#allocation43_spill] sm:$0xff] %v7681_v50 }
 0x115   : > { %5845 = vrsqrt.f32 %v7598_v45  ;;  %v1981_v18 = vmul.f32 0.003921569, %v1853_v12  ;;  %1398 = vadd.xlane.f32.xlu1 %v7375_v24  ;;  %v7627_v24 = vadd.f32 %v955_v47, %v954_v46  ;;  %v7639_v12 = vld [vmem:[%s7253_s9 + $0x400] sm:$0xff]  ;;  %v7646_v46 = vld [vmem:[%s7253_s9 + $0x428] sm:$0xff]  ;;  %vm2622_vm0 = vcmp.eq.f32.partialorder %v7598_v45, inf }
 0x116   : > { %5847 = vrsqrt.f32 %v7604_v53  ;;  %v1917_v10 = vmul.f32 0.003921569, %v1789_v37  ;;  %1206 = vadd.xlane.f32.xlu0 %v7377_v25  ;;  %v711_v20 = vpop.xlane.xlu1 %710  ;;  %v7634_v37 = vld [vmem:[%s7253_s9 + $0x408] sm:$0xff]  ;;  %v7675_v23 = vld [vmem:[%s7253_s9 + $0x20] sm:$0xff]  ;;  %vm2624_vm1 = vcmp.eq.f32.partialorder %v7598_v45, 0.0  ;;  %vm2174_vm2 = vcmp.eq.f32.partialorder %v7604_v53, inf }
 0x117   : > { %13271 = vst [vmem:[#allocation42_spill] sm:$0xff] %v7627_v24  ;;  %v7631_v29 = vmax.f32 %v1981_v18, 0.0  ;;  %v519_v16 = vpop.xlane.xlu0 %518  ;;  %v1084_v18 = vmul.f32 %v7516_v19, %v7516_v19  ;;  %v449_v25 = vld [vmem:[%s7253_s9 + $0x628] sm:$0xff]  ;;  %v7671_v28 = vmul.f32 0.00390625, %v711_v20  ;;  %vm2176_vm3 = vcmp.eq.f32.partialorder %v7604_v53, 0.0 }
 0x118   : > { %v7643_v47 = vmax.f32 %v1917_v10, 0.0  ;;  %v7661_v10 = vld [vmem:[%s7253_s9 + $0x28] sm:$0xff]  ;;  %v7683_v24 = vmul.f32 0.00390625, %v519_v16  ;;  %v7689_v32 = vadd.f32 %v449_v25, %v448_v31  ;;  %v2177_v9 = vand.u32 2147483648, %v7604_v53 }
 0x119   : > { %5849 = vrsqrt.f32 %v7631_v29  ;;  %764 = vadd.xlane.f32.xlu1 %v7379_v26  ;;  %v7693_v26 = vadd.f32 %v1085_v63, %v1084_v18  ;;  %v1727_v13 = vmul.f32 %v7671_v28, %v711_v20  ;;  %v7704_v63 = vmul.f32 %v7569_v44, %v7569_v44 }
 0x11a   : > { %5851 = vrsqrt.f32 %v7643_v47  ;;  %572 = vadd.xlane.f32.xlu0 %v7381_v27  ;;  %v1348_v33 = vpop.xlane.xlu1 %1347  ;;  %13274 = vst [vmem:[#allocation45_spill] sm:$0xff] %v7689_v32  ;;  %vm2629_vm4 = vcmp.eq.f32.partialorder %v7631_v29, inf  ;;  %vm2631_vm5 = vcmp.eq.f32.partialorder %v7631_v29, 0.0  ;;  %vm2181_vm6 = vcmp.eq.f32.partialorder %v7643_v47, inf }
 0x11b   : > { %v1854_v36 = vsub.f32 %v1348_v33, %v1726_v40  ;;  %v1156_v19 = vpop.xlane.xlu0 %1155  ;;  %13275 = vst [vmem:[#allocation46_spill] sm:$0xff] %v7693_v26  ;;  %v2625_v40 = vand.u32 2147483648, %v7598_v45  ;;  %13276 = vst [vmem:[#allocation47_spill] sm:$0xff] %v7704_v63  ;;  %vm2183_vm7 = vcmp.eq.f32.partialorder %v7643_v47, 0.0  ;;  %v2184_v44 = vand.u32 2147483648, %v7643_v47 }
 0x11c   : > { %v1790_v27 = vsub.f32 %v1156_v19, %v1662_v22 }
 0x11d   : > { %v1982_v35 = vmul.f32 0.003921569, %v1854_v36  ;;  %1401 = vadd.xlane.f32.xlu1 %v7397_v58  ;;  %v1663_v58 = vmul.f32 %v7683_v24, %v519_v16  ;;  %v2632_v16 = vand.u32 2147483648, %v7631_v29 }
 0x11e   : > { %v1918_v31 = vmul.f32 0.003921569, %v1790_v27  ;;  %1209 = vadd.xlane.f32.xlu0 %v7399_v43  ;;  %v714_v22 = vpop.xlane.xlu1 %713 }
 0x11f   : > { %v5846_v36 = vpop.eup %5845  ;;  %v7707_v25 = vmax.f32 %v1982_v35, 0.0  ;;  %v522_v18 = vpop.xlane.xlu0 %521  ;;  %v7736_v26 = vmul.f32 0.00390625, %v714_v22 }
 0x120   : > { %v5848_v20 = vpop.eup %5847  ;;  %v7711_v43 = vmax.f32 %v1918_v31, 0.0  ;;  %v2621_v19 = vmul.f32 %v5846_v36, %v7598_v45  ;;  %v7727_v31 = vld [vmem:[%s7253_s9 + $0x38] sm:$0xff] }
 0x121   : > { %5853 = vrsqrt.f32 %v7707_v25  ;;  %767 = vadd.xlane.f32.xlu1 %v7401_v59  ;;  %v2173_v35 = vmul.f32 %v5848_v20, %v7604_v53  ;;  %13277 = vst [vmem:[#allocation48_spill] sm:$0xff] %v7727_v31  ;;  %v7732_v36 = vld [vmem:[%s7253_s9 + $0x438] sm:$0xff]  ;;  %vm2636_vm8 = vcmp.eq.f32.partialorder %v7707_v25, inf  ;;  %vm2638_vm11 = vcmp.eq.f32.partialorder %v7707_v25, 0.0 }
 0x122   : > { %5855 = vrsqrt.f32 %v7711_v43  ;;  %575 = vadd.xlane.f32.xlu0 %v7403_v60  ;;  %v1351_v33 = vpop.xlane.xlu1 %1350  ;;  %v2623_v27 = vsel %vm2622_vm0, %v7598_v45, %v2621_v19  ;;  %13278 = vst [vmem:[#allocation49_spill] sm:$0xff] %v7732_v36  ;;  %v7749_v36 = vld [vmem:[%s7253_s9 + $0x30] sm:$0xff]  ;;  %vm2188_vm9 = vcmp.eq.f32.partialorder %v7711_v43, inf  ;;  %vm2190_vm10 = vcmp.eq.f32.partialorder %v7711_v43, 0.0 }
 0x123   : > { %v5850_v32 = vpop.eup %5849  ;;  %v1855_v60 = vsub.f32 %v1351_v33, %v1727_v13  ;;  %v1159_v63 = vpop.xlane.xlu0 %1158  ;;  %v2175_v19 = vsel %vm2174_vm2, %v7604_v53, %v2173_v35  ;;  %v2626_v51 = vsel %vm2624_vm1, %v2625_v40, %v2623_v27  ;;  %v3330_v45 = vsub.f32 %v7749_v36, %v7683_v24 }
 0x124   : > { %v5852_v50 = vpop.eup %5851  ;;  %v2628_v59 = vmul.f32 %v5850_v32, %v7631_v29  ;;  %v1791_v34 = vsub.f32 %v1159_v63, %v1663_v58  ;;  %v2178_v20 = vsel %vm2176_vm3, %v2177_v9, %v2175_v19  ;;  %v3132_v39 = vadd.f32 1e-06, %v2626_v51  ;;  %v7765_v63 = vld [vmem:[%s7253_s9 + $0x430] sm:$0xff] }
 0x125   : > { %v2180_v31 = vmul.f32 %v5852_v50, %v7643_v47  ;;  %v1983_v13 = vmul.f32 0.003921569, %v1855_v60  ;;  %1404 = vadd.xlane.f32.xlu1 %v7408_v0  ;;  %v3068_v33 = vadd.f32 1e-06, %v2178_v20  ;;  %v7753_v40 = vmul.f32 0.00390625, %v522_v18 }
 0x126   : > { %v1919_v32 = vmul.f32 0.003921569, %v1791_v34  ;;  %1212 = vadd.xlane.f32.xlu0 %v7410_v1  ;;  %v717_v53 = vpop.xlane.xlu1 %716  ;;  %5857 = vrcp.f32 %v3132_v39  ;;  %v2630_v51 = vsel %vm2629_vm4, %v7631_v29, %v2628_v59  ;;  %v3458_v34 = vsub.f32 %v7765_v63, %v7671_v28 }
 0x127   : > { %v7759_v50 = vmax.f32 %v1983_v13, 0.0  ;;  %v525_v0 = vpop.xlane.xlu0 %524  ;;  %5859 = vrcp.f32 %v3068_v33  ;;  %v2182_v9 = vsel %vm2181_vm6, %v7643_v47, %v2180_v31  ;;  %v1728_v1 = vmul.f32 %v7736_v26, %v714_v22 }
 0x128   : > { %v7770_v39 = vmax.f32 %v1919_v32, 0.0  ;;  %v2185_v58 = vsel %vm2183_vm7, %v2184_v44, %v2182_v9  ;;  %v2633_v35 = vsel %vm2631_vm5, %v2632_v16, %v2630_v51  ;;  %v1664_v59 = vmul.f32 %v7753_v40, %v522_v18 }
 0x129   : > { %5861 = vrsqrt.f32 %v7759_v50  ;;  %770 = vadd.xlane.f32.xlu1 %v7412_v2  ;;  %v3069_v27 = vadd.f32 1e-06, %v2185_v58  ;;  %v3133_v31 = vadd.f32 1e-06, %v2633_v35  ;;  %v7781_v22 = vmul.f32 0.00390625, %v717_v53 }
 0x12a   : > { %5863 = vrsqrt.f32 %v7770_v39  ;;  %v7783_v20 = vmul.f32 0.00390625, %v525_v0  ;;  %578 = vadd.xlane.f32.xlu0 %v7414_v3  ;;  %v1354_v29 = vpop.xlane.xlu1 %1353  ;;  %v2191_v19 = vand.u32 2147483648, %v7711_v43  ;;  %v2639_v3 = vand.u32 2147483648, %v7707_v25 }
 0x12b   : > { %v5854_v47 = vpop.eup %5853  ;;  %v1856_v44 = vsub.f32 %v1354_v29, %v1728_v1  ;;  %v1162_v16 = vpop.xlane.xlu0 %1161  ;;  %5865 = vrcp.f32 %v3069_v27  ;;  %v1729_v32 = vmul.f32 %v7781_v22, %v717_v53  ;;  %vm2195_vm12 = vcmp.eq.f32.partialorder %v7770_v39, inf }
 0x12c   : > { %v5856_v2 = vpop.eup %5855  ;;  %v2635_v18 = vmul.f32 %v5854_v47, %v7707_v25  ;;  %v1792_v60 = vsub.f32 %v1162_v16, %v1664_v59  ;;  %5867 = vrcp.f32 %v3133_v31  ;;  %v1665_v51 = vmul.f32 %v7783_v20, %v525_v0 }
 0x12d   : > { %v2187_v13 = vmul.f32 %v5856_v2, %v7711_v43  ;;  %v1984_v33 = vmul.f32 0.003921569, %v1856_v44  ;;  %1407 = vadd.xlane.f32.xlu1 %v7417_v4  ;;  %vm2197_vm13 = vcmp.eq.f32.partialorder %v7770_v39, 0.0  ;;  %v13279_v47 = vsub.f32 %v7634_v37, %v7492_v11 }
 0x12e   : > { %v1920_v9 = vmul.f32 0.003921569, %v1792_v60  ;;  %1215 = vadd.xlane.f32.xlu0 %v7419_v5  ;;  %v720_v1 = vpop.xlane.xlu1 %719  ;;  %v2637_v58 = vsel %vm2636_vm8, %v7707_v25, %v2635_v18  ;;  %v2198_v25 = vand.u32 2147483648, %v7770_v39  ;;  %v13280_v16 = vsub.f32 %v7639_v12, %v7492_v11 }
 0x12f   : > { %v7800_v35 = vmax.f32 %v1984_v33, 0.0  ;;  %v7802_v27 = vpop.xlane.xlu0 %527  ;;  %v2189_v4 = vsel %vm2188_vm9, %v7711_v43, %v2187_v13  ;;  %v2640_v31 = vsel %vm2638_vm11, %v2639_v3, %v2637_v58  ;;  %vm2643_vm14 = vcmp.eq.f32.partialorder %v7759_v50, inf }
 0x130   : > { %v5858_v53 = vpop.eup %5857  ;;  %v7808_v0 = vmax.f32 %v1920_v9, 0.0  ;;  %v2192_v5 = vsel %vm2190_vm10, %v2191_v19, %v2189_v4  ;;  %v3134_v59 = vadd.f32 1e-06, %v2640_v31  ;;  %v13281_v18 = vsub.f32 %v7578_v21, %v7499_v42 }
 0x131   : > { %v5860_v29 = vpop.eup %5859  ;;  %5869 = vrsqrt.f32 %v7800_v35  ;;  %773 = vadd.xlane.f32.xlu1 %v7421_v6  ;;  %v3709_v44 = vmul.f32 %v5858_v53, %v13279_v47  ;;  %v3708_v2 = vmul.f32 %v5858_v53, %v13280_v16  ;;  %v13282_v6 = vsub.f32 %v7591_v15, %v7499_v42  ;;  %v7837_v42 = vld [vmem:[%s7253_s9 + $0x48] sm:$0xff] }
 0x132   : > { %5871 = vrsqrt.f32 %v7808_v0  ;;  %581 = vadd.xlane.f32.xlu0 %v7423_v7  ;;  %v1357_v43 = vpop.xlane.xlu1 %1356  ;;  %v3581_v60 = vmul.f32 %v5860_v29, %v13281_v18  ;;  %vm2645_vm15 = vcmp.eq.f32.partialorder %v7759_v50, 0.0  ;;  %v3070_v13 = vadd.f32 1e-06, %v2192_v5  ;;  %v13283_v5 = vld [vmem:[#allocation12_spill] sm:$0xff] }
 0x133   : > { %v3580_v37 = vmul.f32 %v5860_v29, %v13282_v6  ;;  %v5862_v11 = vpop.eup %5861  ;;  %v1857_v12 = vsub.f32 %v1357_v43, %v1729_v32  ;;  %v1165_v19 = vpop.xlane.xlu0 %1164  ;;  %4348 = vmatprep.mubr.f32.mxu1 %v3709_v44  ;;  %5873 = vrcp.f32 %v3134_v59  ;;  %v2646_v7 = vand.u32 2147483648, %v7759_v50 }
 0x134   : > { %v5864_v33 = vpop.eup %5863  ;;  %v2642_v3 = vmul.f32 %v5862_v11, %v7759_v50  ;;  %v7834_v21 = vmul.f32 0.00390625, %v720_v1  ;;  %v1793_v9 = vsub.f32 %v1165_v19, %v1665_v51  ;;  %3964 = vmatprep.mubr.f32.mxu0 %v3581_v60  ;;  %4349 = vmatmul.mubr.f32.vlgmr.msra.gmra.mrb[0].mxu1 %v3708_v2  ;;  %v3333_v15 = vsub.f32 %v7837_v42, %v7753_v40  ;;  %v13288_v19 = vld [vmem:[#allocation13_spill] sm:$0xff] }
 0x135   : > { %v5866_v32 = vpop.eup %5865  ;;  %v2194_v58 = vmul.f32 %v5864_v33, %v7770_v39  ;;  %v7843_v4 = vmul.f32 0.00390625, %v7802_v27  ;;  %v1985_v31 = vmul.f32 0.003921569, %v1857_v12  ;;  %3965 = vmatmul.mubr.f32.vlgmr.msra.gmra.mrb[0].mxu0 %v3580_v37  ;;  %1410 = vadd.xlane.f32.xlu1 %v7425_v8  ;;  %5875 = vrcp.f32 %v3070_v13  ;;  %v7865_v37 = vld [vmem:[%s7253_s9 + $0x448] sm:$0xff] }
 0x136   : > { %v5868_v51 = vpop.eup %5867  ;;  %v1921_v53 = vmul.f32 0.003921569, %v1793_v9  ;;  %1218 = vadd.xlane.f32.xlu0 %v13283_v5  ;;  %v723_v59 = vpop.xlane.xlu1 %722  ;;  %v13284_v29 = vsub.f32 %v7564_v54, %v7508_v17  ;;  %v13285_v44 = vsub.f32 %v7583_v49, %v7508_v17  ;;  %v2644_v2 = vsel %vm2643_vm14, %v7759_v50, %v2642_v3 }
 0x137   : > { %v7856_v43 = vmax.f32 %v1985_v31, 0.0  ;;  %v531_v8 = vpop.xlane.xlu0 %530  ;;  %v13286_v18 = vsub.f32 %v7616_v52, %v7536_v41  ;;  %v13287_v6 = vsub.f32 %v7623_v62, %v7536_v41  ;;  %v3461_v17 = vsub.f32 %v7865_v37, %v7736_v26 }
 0x138   : > { %v3583_v47 = vmul.f32 %v5866_v32, %v13284_v29  ;;  %v3582_v16 = vmul.f32 %v5866_v32, %v13285_v44  ;;  %v1730_v49 = vmul.f32 %v7834_v21, %v720_v1  ;;  %v7870_v11 = vmax.f32 %v1921_v53, 0.0 }
 0x139   : > { %v3711_v60 = vmul.f32 %v5868_v51, %v13286_v18  ;;  %v3710_v54 = vmul.f32 %v5868_v51, %v13287_v6  ;;  %v2196_v12 = vsel %vm2195_vm12, %v7770_v39, %v2194_v58  ;;  %v2647_v52 = vsel %vm2645_vm15, %v2646_v7, %v2644_v2  ;;  %776 = vadd.xlane.f32.xlu1 %v13288_v19  ;;  %v13289_v7 = vld [vmem:[#allocation14_spill] sm:$0xff] }
 0x13a   : > { %3970 = vmatprep.mubr.f32.mxu0 %v3583_v47  ;;  %v1666_v41 = vmul.f32 %v7843_v4, %v7802_v27  ;;  %5877 = vrsqrt.f32 %v7856_v43  ;;  %v2199_v62 = vsel %vm2197_vm13, %v2198_v25, %v2196_v12  ;;  %v3135_v1 = vadd.f32 1e-06, %v2647_v52  ;;  %v1360_v13 = vpop.xlane.xlu1 %1359  ;;  %584 = vadd.xlane.f32.xlu0 %v13289_v7 }
 0x13b   : > { %4354 = vmatprep.mubr.f32.mxu1 %v3711_v60  ;;  %3971 = vmatmul.mubr.f32.gmra.mrb[2].mxu0 %v3582_v16  ;;  %5879 = vrsqrt.f32 %v7870_v11  ;;  %v3071_v33 = vadd.f32 1e-06, %v2199_v62  ;;  %vm2202_vm0 = vcmp.eq.f32.partialorder %v7808_v0, inf  ;;  %vm2204_vm1 = vcmp.eq.f32.partialorder %v7808_v0, 0.0  ;;  %v5870_v50 = vpop.eup %5869  ;;  %v1168_v39 = vpop.xlane.xlu0 %1167 }
 0x13c   : > { %4355 = vmatmul.mubr.f32.gmra.mrb[2].mxu1 %v3710_v54  ;;  %v7886_v27 = vmul.f32 0.00390625, %v723_v59  ;;  %v1858_v3 = vsub.f32 %v1360_v13, %v1730_v49  ;;  %5881 = vrcp.f32 %v3135_v1  ;;  %vm2650_vm2 = vcmp.eq.f32.partialorder %v7800_v35, inf  ;;  %v5872_v25 = vpop.eup %5871 }
 0x13d   : > { %v2649_v9 = vmul.f32 %v5870_v50, %v7800_v35  ;;  %v7891_v32 = vmul.f32 0.00390625, %v531_v8  ;;  %v1794_v58 = vsub.f32 %v1168_v39, %v1666_v41  ;;  %5883 = vrcp.f32 %v3071_v33  ;;  %v5874_v31 = vpop.eup %5873  ;;  %1413 = vadd.xlane.f32.xlu1 %v7451_v55 }
 0x13e   : > { %v2201_v51 = vmul.f32 %v5872_v25, %v7808_v0  ;;  %v1986_v53 = vmul.f32 0.003921569, %v1858_v3  ;;  %vm2652_vm3 = vcmp.eq.f32.partialorder %v7800_v35, 0.0  ;;  %v2653_v5 = vand.u32 2147483648, %v7800_v35  ;;  %v726_v47 = vpop.xlane.xlu1 %725  ;;  %1221 = vadd.xlane.f32.xlu0 %v7453_v56 }
 0x13f   : > { %v1922_v29 = vmul.f32 0.003921569, %v1794_v58  ;;  %v13290_v44 = vsub.f32 %v7646_v46, %v7596_v38  ;;  %v13291_v2 = vsub.f32 %v7666_v48, %v7596_v38  ;;  %v2651_v60 = vsel %vm2650_vm2, %v7800_v35, %v2649_v9  ;;  %v5876_v6 = vpop.eup %5875  ;;  %v7909_v49 = vpop.xlane.xlu0 %533 }
 0x140   : > { %v7906_v54 = vmax.f32 %v1986_v53, 0.0  ;;  %v2203_v55 = vsel %vm2202_vm0, %v7808_v0, %v2201_v51  ;;  %v2205_v46 = vand.u32 2147483648, %v7808_v0  ;;  %v2654_v12 = vsel %vm2652_vm3, %v2653_v5, %v2651_v60  ;;  %v13294_v51 = vld [vmem:[#allocation49_spill] sm:$0xff]  ;;  %v13297_v60 = vld [vmem:[#allocation48_spill] sm:$0xff] }
 0x141   : > { %v3713_v16 = vmul.f32 %v5874_v31, %v13290_v44  ;;  %v3712_v18 = vmul.f32 %v5874_v31, %v13291_v2  ;;  %v1731_v38 = vmul.f32 %v7886_v27, %v723_v59  ;;  %v7916_v48 = vmax.f32 %v1922_v29, 0.0  ;;  %779 = vadd.xlane.f32.xlu1 %v7455_v57  ;;  %v13296_v2 = vld [vmem:[#allocation15_spill] sm:$0xff] }
 0x142   : > { %v13292_v35 = vsub.f32 %v7661_v10, %v7611_v30  ;;  %v13293_v56 = vsub.f32 %v7675_v23, %v7611_v30  ;;  %v1667_v62 = vmul.f32 %v7891_v32, %v531_v8  ;;  %5885 = vrsqrt.f32 %v7906_v54  ;;  %v1363_v10 = vpop.xlane.xlu1 %1362  ;;  %587 = vadd.xlane.f32.xlu0 %v7457_v61 }
 0x143   : > { %4360 = vmatprep.mubr.f32.mxu1 %v3713_v16  ;;  %v2206_v1 = vsel %vm2204_vm1, %v2205_v46, %v2203_v55  ;;  %v3136_v59 = vadd.f32 1e-06, %v2654_v12  ;;  %5887 = vrsqrt.f32 %v7916_v48  ;;  %vm2209_vm4 = vcmp.eq.f32.partialorder %v7870_v11, inf  ;;  %v1171_v13 = vpop.xlane.xlu0 %1170 }
 0x144   : > { %v3585_v52 = vmul.f32 %v5876_v6, %v13292_v35  ;;  %v3584_v41 = vmul.f32 %v5876_v6, %v13293_v56  ;;  %4361 = vmatmul.mubr.f32.gmra.mrb[4].mxu1 %v3712_v18  ;;  %v3072_v19 = vadd.f32 1e-06, %v2206_v1  ;;  %vm2211_vm5 = vcmp.eq.f32.partialorder %v7870_v11, 0.0  ;;  %v5878_v23 = vpop.eup %5877  ;;  %v6376_v1 = vld [vmem:[%s7253_s9 + $0x440] sm:$0xff] }
 0x145   : > { %v7932_v30 = vmul.f32 0.00390625, %v726_v47  ;;  %v7935_v8 = vmul.f32 0.00390625, %v7909_v49  ;;  %v1859_v0 = vsub.f32 %v1363_v10, %v1731_v38  ;;  %5889 = vrcp.f32 %v3136_v59  ;;  %v5880_v33 = vpop.eup %5879  ;;  %1416 = vadd.xlane.f32.xlu1 %v7462_v14  ;;  %v6375_v38 = vld [vmem:[%s7253_s9 + $0x40] sm:$0xff] }
 0x146   : > { %3976 = vmatprep.mubr.f32.mxu0 %v3585_v52  ;;  %v2656_v57 = vmul.f32 %v5878_v23, %v7856_v43  ;;  %v1795_v50 = vsub.f32 %v1171_v13, %v1667_v62  ;;  %5891 = vrcp.f32 %v3072_v19  ;;  %v2212_v7 = vand.u32 2147483648, %v7870_v11  ;;  %v5882_v3 = vpop.eup %5881  ;;  %v729_v31 = vpop.xlane.xlu1 %728  ;;  %1224 = vadd.xlane.f32.xlu0 %v13296_v2  ;;  %v6378_v13 = vld [vmem:[%s7253_s9 + $0x458] sm:$0xff] }
 0x147   : > { %3977 = vmatmul.mubr.f32.gmra.mrb[4].mxu0 %v3584_v41  ;;  %v2208_v39 = vmul.f32 %v5880_v33, %v7870_v11  ;;  %v1987_v25 = vmul.f32 0.003921569, %v1859_v0  ;;  %vm2657_vm6 = vcmp.eq.f32.partialorder %v7856_v43, inf  ;;  %v2660_v9 = vand.u32 2147483648, %v7856_v43  ;;  %v5884_v58 = vpop.eup %5883  ;;  %v537_v18 = vpop.xlane.xlu0 %536  ;;  %v13300_v41 = vld [vmem:[#allocation17_spill] sm:$0xff] }
 0x148   : > { %v1923_v61 = vmul.f32 0.003921569, %v1795_v50  ;;  %v13295_v53 = vsub.f32 %v13294_v51, %v7671_v28  ;;  %v3714_v29 = vmul.f32 %v5882_v3, %v3458_v34  ;;  %v2658_v44 = vsel %vm2657_vm6, %v7856_v43, %v2656_v57 }
 0x149   : > { %v7951_v16 = vmax.f32 %v1987_v25, 0.0  ;;  %v13298_v6 = vsub.f32 %v13297_v60, %v7683_v24  ;;  %v3586_v55 = vmul.f32 %v5884_v58, %v3330_v45  ;;  %vm2659_vm7 = vcmp.eq.f32.partialorder %v7856_v43, 0.0  ;;  %v13299_v43 = vld [vmem:[#allocation16_spill] sm:$0xff] }
 0x14a   : > { %v3715_v5 = vmul.f32 %v5882_v3, %v13295_v53  ;;  %v1732_v28 = vmul.f32 %v7932_v30, %v726_v47  ;;  %v7962_v63 = vmax.f32 %v1923_v61, 0.0  ;;  %v2210_v34 = vsel %vm2209_vm4, %v7870_v11, %v2208_v39  ;;  %782 = vadd.xlane.f32.xlu1 %v13299_v43  ;;  %v1366_v47 = vpop.xlane.xlu1 %1365  ;;  %590 = vadd.xlane.f32.xlu0 %v13300_v41 }
 0x14b   : > { %v3587_v14 = vmul.f32 %v5884_v58, %v13298_v6  ;;  %v2661_v46 = vsel %vm2659_vm7, %v2660_v9, %v2658_v44  ;;  %5893 = vrsqrt.f32 %v7951_v16  ;;  %v7968_v12 = vmul.f32 0.00390625, %v729_v31  ;;  %v1174_v62 = vpop.xlane.xlu0 %1173  ;;  %v13301_v58 = vld [vmem:[#allocation18_spill] sm:$0xff] }
 0x14c   : > { %4366 = vmatprep.mubr.f32.mxu1 %v3715_v5  ;;  %v2213_v24 = vsel %vm2211_vm5, %v2212_v7, %v2210_v34  ;;  %v3137_v36 = vadd.f32 1e-06, %v2661_v46  ;;  %v1668_v45 = vmul.f32 %v7935_v8, %v7909_v49  ;;  %5895 = vrsqrt.f32 %v7962_v63  ;;  %v5886_v56 = vpop.eup %5885  ;;  %v7982_v49 = vld [vmem:[%s7253_s9 + $0x58] sm:$0xff] }
 0x14d   : > { %3982 = vmatprep.mubr.f32.mxu0 %v3587_v14  ;;  %4367 = vmatmul.mubr.f32.gmra.mrb[6].mxu1 %v3714_v29  ;;  %v3332_v35 = vsub.f32 %v6375_v38, %v7753_v40  ;;  %v3073_v52 = vadd.f32 1e-06, %v2213_v24  ;;  %v1860_v11 = vsub.f32 %v1366_v47, %v1732_v28  ;;  %v3460_v59 = vsub.f32 %v6376_v1, %v7736_v26  ;;  %v5888_v19 = vpop.eup %5887  ;;  %v13302_v29 = vld [vmem:[#allocation19_spill] sm:$0xff]  ;;  %v6379_v14 = vld [vmem:[%s7253_s9 + $0x50] sm:$0xff] }
 0x14e   : > { %3983 = vmatmul.mubr.f32.gmra.mrb[6].mxu0 %v3586_v55  ;;  %v3335_v10 = vsub.f32 %v7982_v49, %v7783_v20  ;;  %5897 = vrcp.f32 %v3137_v36  ;;  %v7986_v23 = vmul.f32 0.00390625, %v537_v18  ;;  %v1796_v0 = vsub.f32 %v1174_v62, %v1668_v45  ;;  %1419 = vadd.xlane.f32.xlu1 %v13301_v58  ;;  %v7994_v61 = vpop.xlane.xlu1 %731  ;;  %v6380_v36 = vld [vmem:[%s7253_s9 + $0x450] sm:$0xff] }
 0x14f   : > { %5899 = vrcp.f32 %v3073_v52  ;;  %v3463_v33 = vsub.f32 %v6378_v13, %v7781_v22  ;;  %v5890_v57 = vpop.eup %5889  ;;  %v2663_v50 = vmul.f32 %v5886_v56, %v7906_v54  ;;  %v2215_v7 = vmul.f32 %v5888_v19, %v7916_v48  ;;  %1227 = vadd.xlane.f32.xlu0 %v13302_v29  ;;  %v540_v44 = vpop.xlane.xlu0 %539  ;;  %v13306_v13 = vld [vmem:[#allocation38_spill] sm:$0xff] }
 0x150   : > { %v1733_v3 = vmul.f32 %v7968_v12, %v729_v31  ;;  %v1988_v39 = vmul.f32 0.003921569, %v1860_v11  ;;  %v5892_v25 = vpop.eup %5891  ;;  %v1924_v9 = vmul.f32 0.003921569, %v1796_v0  ;;  %v3717_v51 = vmul.f32 %v5890_v57, %v3461_v17 }
 0x151   : > { %v3716_v53 = vmul.f32 %v5890_v57, %v3460_v59  ;;  %vm2216_vm8 = vcmp.eq.f32.partialorder %v7916_v48, inf  ;;  %v3589_v31 = vmul.f32 %v5892_v25, %v3333_v15  ;;  %v3588_v2 = vmul.f32 %v5892_v25, %v3332_v35  ;;  %v13303_v15 = vld [vmem:[#allocation20_spill] sm:$0xff] }
 0x152   : > { %v8000_v5 = vmax.f32 %v1988_v39, 0.0  ;;  %v2219_v60 = vand.u32 2147483648, %v7916_v48  ;;  %v8007_v6 = vmax.f32 %v1924_v9, 0.0  ;;  %4372 = vmatprep.mubr.f32.mxu1 %v3717_v51  ;;  %v2217_v26 = vsel %vm2216_vm8, %v7916_v48, %v2215_v7  ;;  %785 = vadd.xlane.f32.xlu1 %v13303_v15  ;;  %v1369_v17 = vpop.xlane.xlu1 %1368  ;;  %v13307_v7 = vld [vmem:[#allocation23_spill] sm:$0xff] }
 0x153   : > { %vm2218_vm9 = vcmp.eq.f32.partialorder %v7916_v48, 0.0  ;;  %vm2664_vm10 = vcmp.eq.f32.partialorder %v7906_v54, inf  ;;  %v1669_v37 = vmul.f32 %v7986_v23, %v537_v18  ;;  %3988 = vmatprep.mubr.f32.mxu0 %v3589_v31  ;;  %4373 = vmatmul.mubr.f32.gmra.mrb[8].mxu1 %v3716_v53  ;;  %v3334_v55 = vsub.f32 %v6379_v14, %v7783_v20  ;;  %v13304_v18 = vld [vmem:[#allocation21_spill] sm:$0xff]  ;;  %v1177_v24 = vpop.xlane.xlu0 %1176 }
 0x154   : > { %v2220_v40 = vsel %vm2218_vm9, %v2219_v60, %v2217_v26  ;;  %v2665_v42 = vsel %vm2664_vm10, %v7906_v54, %v2663_v50  ;;  %5901 = vrsqrt.f32 %v8007_v6  ;;  %3989 = vmatmul.mubr.f32.gmra.mrb[8].mxu0 %v3588_v2  ;;  %v2667_v28 = vand.u32 2147483648, %v7906_v54  ;;  %593 = vadd.xlane.f32.xlu0 %v13304_v18  ;;  %v6382_v2 = vld [vmem:[%s7253_s9 + $0x60] sm:$0xff] }
 0x155   : > { %v3074_v48 = vadd.f32 1e-06, %v2220_v40  ;;  %v5894_v34 = vpop.eup %5893  ;;  %5903 = vrsqrt.f32 %v8000_v5  ;;  %v1861_v46 = vsub.f32 %v1369_v17, %v1733_v3  ;;  %v3462_v45 = vsub.f32 %v6380_v36, %v7781_v22  ;;  %v13305_v22 = vld [vmem:[#allocation22_spill] sm:$0xff] }
 0x156   : > { %vm2666_vm11 = vcmp.eq.f32.partialorder %v7906_v54, 0.0  ;;  %v5896_v43 = vpop.eup %5895  ;;  %v8025_v47 = vmul.f32 0.00390625, %v7994_v61  ;;  %v1797_v38 = vsub.f32 %v1177_v24, %v1669_v37  ;;  %v8028_v41 = vmul.f32 0.00390625, %v540_v44  ;;  %1422 = vadd.xlane.f32.xlu1 %v13305_v22  ;;  %v8031_v54 = vpop.xlane.xlu1 %734 }
 0x157   : > { %5905 = vrcp.f32 %v3074_v48  ;;  %v2668_v35 = vsel %vm2666_vm11, %v2667_v28, %v2665_v42  ;;  %v2222_v56 = vmul.f32 %v5896_v43, %v7962_v63  ;;  %v1989_v11 = vmul.f32 0.003921569, %v1861_v46  ;;  %v8037_v3 = vpop.xlane.xlu0 %542 }
 0x158   : > { %v5898_v52 = vpop.eup %5897  ;;  %v3138_v62 = vadd.f32 1e-06, %v2668_v35  ;;  %v1925_v59 = vmul.f32 0.003921569, %v1797_v38  ;;  %v1087_v57 = vmul.f32 %v13306_v13, %v13306_v13  ;;  %v2670_v50 = vmul.f32 %v5894_v34, %v7951_v16  ;;  %1230 = vadd.xlane.f32.xlu0 %v13307_v7  ;;  %v13311_v38 = vld [vmem:[#allocation28_spill] sm:$0xff] }
 0x159   : > { %v5900_v1 = vpop.eup %5899  ;;  %v3719_v19 = vmul.f32 %v5898_v52, %v3463_v33  ;;  %v3718_v0 = vmul.f32 %v5898_v52, %v3462_v45  ;;  %vm2223_vm12 = vcmp.eq.f32.partialorder %v7962_v63, inf  ;;  %v6381_v33 = vld [vmem:[%s7253_s9 + $0x68] sm:$0xff]  ;;  %v1734_v53 = vmul.f32 %v8025_v47, %v7994_v61  ;;  %v13310_v45 = vld [vmem:[#allocation27_spill] sm:$0xff] }
 0x15a   : > { %v3591_v39 = vmul.f32 %v5900_v1, %v3335_v10  ;;  %v3590_v25 = vmul.f32 %v5900_v1, %v3334_v55  ;;  %v8043_v9 = vmax.f32 %v1925_v59, 0.0  ;;  %v3337_v58 = vsub.f32 %v6381_v33, %v7843_v4  ;;  %v13308_v10 = vld [vmem:[#allocation24_spill] sm:$0xff]  ;;  %v1372_v31 = vpop.xlane.xlu1 %1371  ;;  %v13309_v61 = vld [vmem:[#allocation25_spill] sm:$0xff] }
 0x15b   : > { %4378 = vmatprep.mubr.f32.mxu1 %v3719_v19  ;;  %5907 = vrcp.f32 %v3138_v62  ;;  %v2224_v51 = vsel %vm2223_vm12, %v7962_v63, %v2222_v56  ;;  %v1670_v29 = vmul.f32 %v8028_v41, %v540_v44  ;;  %v8051_v20 = vmax.f32 %v1989_v11, 0.0  ;;  %788 = vadd.xlane.f32.xlu1 %v13308_v10  ;;  %v1180_v26 = vpop.xlane.xlu0 %1179  ;;  %v13312_v11 = vld [vmem:[#allocation43_spill] sm:$0xff]  ;;  %v13313_v62 = vld [vmem:[#allocation44_spill] sm:$0xff] }
 0x15c   : > { %3994 = vmatprep.mubr.f32.mxu0 %v3591_v39  ;;  %4379 = vmatmul.mubr.f32.gmra.mrb[10].mxu1 %v3718_v0  ;;  %v2226_v49 = vand.u32 2147483648, %v7962_v63  ;;  %5909 = vrsqrt.f32 %v8043_v9  ;;  %v3336_v60 = vsub.f32 %v6382_v2, %v7843_v4  ;;  %vm2225_vm13 = vcmp.eq.f32.partialorder %v7962_v63, 0.0  ;;  %v8068_v4 = vld [vmem:[%s7253_s9 + $0x220] sm:$0xff]  ;;  %v8071_v63 = vld [vmem:[%s7253_s9 + $0x228] sm:$0xff] }
 0x15d   : > { %3995 = vmatmul.mubr.f32.gmra.mrb[10].mxu0 %v3590_v25  ;;  %vm2671_vm14 = vcmp.eq.f32.partialorder %v7951_v16, inf  ;;  %596 = vadd.xlane.f32.xlu0 %v13309_v61  ;;  %v1862_v44 = vsub.f32 %v1372_v31, %v1734_v53  ;;  %v2674_v42 = vand.u32 2147483648, %v7951_v16  ;;  %v8064_v17 = vmul.f32 0.00390625, %v8031_v54  ;;  %v13314_v19 = vld [vmem:[#allocation47_spill] sm:$0xff]  ;;  %v13316_v2 = vld [vmem:[#allocation29_spill] sm:$0xff] }
 0x15e   : > { %v2227_v37 = vsel %vm2225_vm13, %v2226_v49, %v2224_v51  ;;  %v2672_v40 = vsel %vm2671_vm14, %v7951_v16, %v2670_v50  ;;  %v5902_v15 = vpop.eup %5901  ;;  %v1798_v14 = vsub.f32 %v1180_v26, %v1670_v29  ;;  %vm2673_vm15 = vcmp.eq.f32.partialorder %v7951_v16, 0.0  ;;  %v8079_v16 = vpop.xlane.xlu1 %737  ;;  %v6383_v50 = vld [vmem:[%s7253_s9 + $0x468] sm:$0xff]  ;;  %v6384_v39 = vld [vmem:[%s7253_s9 + $0x460] sm:$0xff]  ;;  %v13315_v29 = vld [vmem:[#allocation26_spill] sm:$0xff] }
 0x15f   : > { %v3075_v55 = vadd.f32 1e-06, %v2227_v37  ;;  %v5904_v48 = vpop.eup %5903  ;;  %v2229_v28 = vmul.f32 %v5902_v15, %v8007_v6  ;;  %5911 = vrsqrt.f32 %v8051_v20  ;;  %v8076_v34 = vmul.f32 0.00390625, %v8037_v3  ;;  %1425 = vadd.xlane.f32.xlu1 %v13310_v45  ;;  %v8082_v35 = vpop.xlane.xlu0 %545  ;;  %v6385_v37 = vld [vmem:[%s7253_s9 + $0x78] sm:$0xff]  ;;  %v6386_v45 = vld [vmem:[%s7253_s9 + $0x70] sm:$0xff] }
 0x160   : > { %v2675_v18 = vsel %vm2673_vm15, %v2674_v42, %v2672_v40  ;;  %v1990_v24 = vmul.f32 0.003921569, %v1862_v44  ;;  %v1926_v36 = vmul.f32 0.003921569, %v1798_v14  ;;  %v8086_v1 = vadd.f32 %v13313_v62, %v13312_v11  ;;  %v6388_v62 = vld [vmem:[%s7253_s9 + $0x470] sm:$0xff] }
 0x161   : > { %v5906_v46 = vpop.eup %5905  ;;  %5913 = vrcp.f32 %v3075_v55  ;;  %v3139_v43 = vadd.f32 1e-06, %v2675_v18  ;;  %1233 = vadd.xlane.f32.xlu0 %v13311_v38  ;;  %v8090_v59 = vadd.f32 %v8071_v63, %v8068_v4  ;;  %vm2230_vm0 = vcmp.eq.f32.partialorder %v8007_v6, inf  ;;  %v13317_v55 = vld [vmem:[#allocation31_spill] sm:$0xff] }
 0x162   : > { %v3593_v52 = vmul.f32 %v5906_v46, %v3337_v58  ;;  %v3592_v56 = vmul.f32 %v5906_v46, %v3336_v60  ;;  %v8092_v22 = vmax.f32 %v1926_v36, 0.0  ;;  %v8096_v0 = vadd.f32 %v1087_v57, %v13314_v19  ;;  %v1375_v49 = vpop.xlane.xlu1 %1374 }
 0x163   : > { %5915 = vrcp.f32 %v3139_v43  ;;  %v2677_v13 = vmul.f32 %v5904_v48, %v8000_v5  ;;  %v3465_v7 = vsub.f32 %v6383_v50, %v7834_v21  ;;  %v3464_v25 = vsub.f32 %v6384_v39, %v7834_v21  ;;  %791 = vadd.xlane.f32.xlu1 %v13315_v29  ;;  %v1183_v60 = vpop.xlane.xlu0 %1182  ;;  %v13320_v29 = vld [vmem:[#allocation33_spill] sm:$0xff] }
 0x164   : > { %4000 = vmatprep.mubr.f32.mxu0 %v3593_v52  ;;  %v2231_v33 = vsel %vm2230_vm0, %v8007_v6, %v2229_v28  ;;  %v1735_v51 = vmul.f32 %v8064_v17, %v8031_v54  ;;  %v1671_v53 = vmul.f32 %v8076_v34, %v8037_v3  ;;  %v8108_v57 = vmax.f32 %v1990_v24, 0.0  ;;  %v13318_v24 = vld [vmem:[#allocation32_spill] sm:$0xff] }
 0x165   : > { %v5908_v58 = vpop.eup %5907  ;;  %4001 = vmatmul.mubr.f32.gmra.mrb[12].mxu0 %v3592_v56  ;;  %v2233_v10 = vand.u32 2147483648, %v8007_v6  ;;  %5917 = vrsqrt.f32 %v8092_v22  ;;  %599 = vadd.xlane.f32.xlu0 %v13316_v2  ;;  %vm2232_vm1 = vcmp.eq.f32.partialorder %v8007_v6, 0.0  ;;  %vm2678_vm2 = vcmp.eq.f32.partialorder %v8000_v5, inf  ;;  %v6387_v56 = vld [vmem:[%s7253_s9 + $0x478] sm:$0xff] }
 0x166   : > { %v3721_v21 = vmul.f32 %v5908_v58, %v3465_v7  ;;  %v3720_v31 = vmul.f32 %v5908_v58, %v3464_v25  ;;  %v5910_v54 = vpop.eup %5909  ;;  %v1863_v3 = vsub.f32 %v1375_v49, %v1735_v51  ;;  %v1799_v61 = vsub.f32 %v1183_v60, %v1671_v53  ;;  %v8127_v48 = vpop.xlane.xlu1 %740  ;;  %v13319_v58 = vld [vmem:[#allocation30_spill] sm:$0xff] }
 0x167   : > { %v2234_v44 = vsel %vm2232_vm1, %v2233_v10, %v2231_v33  ;;  %v8117_v26 = vmul.f32 0.00390625, %v8079_v16  ;;  %v3339_v40 = vsub.f32 %v6385_v37, %v7891_v32  ;;  %v2679_v15 = vsel %vm2678_vm2, %v8000_v5, %v2677_v13  ;;  %1428 = vadd.xlane.f32.xlu1 %v13317_v55  ;;  %v8132_v36 = vpop.xlane.xlu0 %548  ;;  %v6389_v60 = vld [vmem:[%s7253_s9 + $0x210] sm:$0xff]  ;;  %v6390_v55 = vld [vmem:[%s7253_s9 + $0x88] sm:$0xff] }
 0x168   : > { %4384 = vmatprep.mubr.f32.mxu1 %v3721_v21  ;;  %v3076_v42 = vadd.f32 1e-06, %v2234_v44  ;;  %5919 = vrsqrt.f32 %v8108_v57  ;;  %v8124_v6 = vmul.f32 0.00390625, %v8082_v35  ;;  %v1927_v14 = vmul.f32 0.003921569, %v1799_v61  ;;  %v13321_v61 = vld [vmem:[#allocation34_spill] sm:$0xff] }
 0x169   : > { %4385 = vmatmul.mubr.f32.gmra.mrb[12].mxu1 %v3720_v31  ;;  %v2681_v28 = vand.u32 2147483648, %v8000_v5  ;;  %v5912_v18 = vpop.eup %5911  ;;  %v2236_v46 = vmul.f32 %v5910_v54, %v8043_v9  ;;  %1236 = vadd.xlane.f32.xlu0 %v13318_v24  ;;  %v3338_v43 = vsub.f32 %v6386_v45, %v7891_v32  ;;  %vm2680_vm3 = vcmp.eq.f32.partialorder %v8000_v5, 0.0 }
 0x16a   : > { %5921 = vrcp.f32 %v3076_v42  ;;  %v1991_v52 = vmul.f32 0.003921569, %v1863_v3  ;;  %v3467_v11 = vsub.f32 %v6387_v56, %v7886_v27  ;;  %v3466_v19 = vsub.f32 %v6388_v62, %v7886_v27  ;;  %v1378_v51 = vpop.xlane.xlu1 %1377  ;;  %v8166_v42 = vld [vmem:[%s7253_s9 + $0x630] sm:$0xff] }
 0x16b   : > { %v5914_v38 = vpop.eup %5913  ;;  %v2682_v13 = vsel %vm2680_vm3, %v2681_v28, %v2679_v15  ;;  %v1736_v50 = vmul.f32 %v8117_v26, %v8079_v16  ;;  %v8143_v7 = vmax.f32 %v1927_v14, 0.0  ;;  %v2684_v33 = vmul.f32 %v5912_v18, %v8051_v20  ;;  %794 = vadd.xlane.f32.xlu1 %v13319_v58  ;;  %v1186_v49 = vpop.xlane.xlu0 %1185  ;;  %v13322_v15 = vld [vmem:[#allocation36_spill] sm:$0xff]  ;;  %v8185_v56 = vld [vmem:[%s7253_s9 + $0x230] sm:$0xff] }
 0x16c   : > { %v3595_v39 = vmul.f32 %v5914_v38, %v3339_v40  ;;  %v3594_v25 = vmul.f32 %v5914_v38, %v3338_v43  ;;  %v1672_v5 = vmul.f32 %v8124_v6, %v8082_v35  ;;  %v3140_v53 = vadd.f32 1e-06, %v2682_v13  ;;  %v6391_v18 = vld [vmem:[%s7253_s9 + $0x80] sm:$0xff]  ;;  %v6392_v13 = vld [vmem:[%s7253_s9 + $0x218] sm:$0xff] }
 0x16d   : > { %v5916_v32 = vpop.eup %5915  ;;  %vm2237_vm4 = vcmp.eq.f32.partialorder %v8043_v9, inf  ;;  %602 = vadd.xlane.f32.xlu0 %v13320_v29  ;;  %v8152_v21 = vmax.f32 %v1991_v52, 0.0  ;;  %v2240_v35 = vand.u32 2147483648, %v8043_v9  ;;  %vm2239_vm5 = vcmp.eq.f32.partialorder %v8043_v9, 0.0  ;;  %v6393_v29 = vld [vmem:[%s7253_s9 + $0x620] sm:$0xff] }
 0x16e   : > { %4006 = vmatprep.mubr.f32.mxu0 %v3595_v39  ;;  %v3723_v27 = vmul.f32 %v5916_v32, %v3467_v11  ;;  %v3722_v16 = vmul.f32 %v5916_v32, %v3466_v19  ;;  %v2238_v10 = vsel %vm2237_vm4, %v8043_v9, %v2236_v46  ;;  %v1800_v31 = vsub.f32 %v1186_v49, %v1672_v5  ;;  %v8162_v44 = vpop.xlane.xlu1 %743  ;;  %v8169_v9 = vld [vmem:[%s7253_s9 + $0x638] sm:$0xff] }
 0x16f   : > { %4007 = vmatmul.mubr.f32.gmra.mrb[14].mxu0 %v3594_v25  ;;  %5923 = vrcp.f32 %v3140_v53  ;;  %v5918_v2 = vpop.eup %5917  ;;  %vm2685_vm6 = vcmp.eq.f32.partialorder %v8051_v20, inf  ;;  %v8159_v54 = vmul.f32 %v6389_v60, %v6389_v60  ;;  %v1864_v3 = vsub.f32 %v1378_v51, %v1736_v50  ;;  %1431 = vadd.xlane.f32.xlu1 %v13321_v61  ;;  %v8172_v14 = vpop.xlane.xlu0 %551  ;;  %v8188_v11 = vld [vmem:[%s7253_s9 + $0x238] sm:$0xff]  ;;  %v13324_v51 = vld [vmem:[#allocation37_spill] sm:$0xff] }
 0x170   : > { %5925 = vrsqrt.f32 %v8143_v7  ;;  %4390 = vmatprep.mubr.f32.mxu1 %v3723_v27  ;;  %v2241_v37 = vsel %vm2239_vm5, %v2240_v35, %v2238_v10  ;;  %v2686_v40 = vsel %vm2685_vm6, %v8051_v20, %v2684_v33  ;;  %v3341_v28 = vsub.f32 %v6390_v55, %v7935_v8  ;;  %v13323_v5 = vld [vmem:[#allocation35_spill] sm:$0xff] }
 0x171   : > { %4391 = vmatmul.mubr.f32.gmra.mrb[14].mxu1 %v3722_v16  ;;  %1239 = vadd.xlane.f32.xlu0 %v13322_v15  ;;  %v3340_v46 = vsub.f32 %v6391_v18, %v7935_v8  ;;  %v3077_v24 = vadd.f32 1e-06, %v2241_v37  ;;  %v2688_v45 = vand.u32 2147483648, %v8051_v20  ;;  %5927 = vrsqrt.f32 %v8152_v21 }
 0x172   : > { %v5920_v43 = vpop.eup %5919  ;;  %v8181_v38 = vmul.f32 0.00390625, %v8132_v36  ;;  %v1928_v52 = vmul.f32 0.003921569, %v1800_v31  ;;  %vm2687_vm7 = vcmp.eq.f32.partialorder %v8051_v20, 0.0  ;;  %v2243_v19 = vmul.f32 %v5918_v2, %v8092_v22  ;;  %v8200_v58 = vpop.xlane.xlu1 %1380  ;;  %v6394_v2 = vld [vmem:[%s7253_s9 + $0x488] sm:$0xff] }
 0x173   : > { %v2689_v8 = vsel %vm2687_vm7, %v2688_v45, %v2686_v40  ;;  %v959_v50 = vmul.f32 %v6392_v13, %v6392_v13  ;;  %v8194_v39 = vadd.f32 %v8169_v9, %v8166_v42  ;;  %v8197_v25 = vmul.f32 0.00390625, %v8127_v48  ;;  %797 = vadd.xlane.f32.xlu1 %v13323_v5  ;;  %v1189_v53 = vpop.xlane.xlu0 %1188  ;;  %v6396_v5 = vld [vmem:[%s7253_s9 + $0x98] sm:$0xff] }
 0x174   : > { %v5922_v62 = vpop.eup %5921  ;;  %v1992_v32 = vmul.f32 0.003921569, %v1864_v3  ;;  %5929 = vrcp.f32 %v3077_v24  ;;  %v3141_v27 = vadd.f32 1e-06, %v2689_v8  ;;  %v8205_v16 = vadd.f32 %v8188_v11, %v8185_v56  ;;  %v6395_v3 = vld [vmem:[%s7253_s9 + $0x480] sm:$0xff] }
 0x175   : > { %v3597_v20 = vmul.f32 %v5922_v62, %v3341_v28  ;;  %v3596_v33 = vmul.f32 %v5922_v62, %v3340_v46  ;;  %605 = vadd.xlane.f32.xlu0 %v13324_v51  ;;  %v8208_v49 = vmul.f32 %v6393_v29, %v6393_v29  ;;  %v2691_v10 = vmul.f32 %v5920_v43, %v8108_v57  ;;  %v13325_v28 = vld [vmem:[#allocation40_spill] sm:$0xff] }
 0x176   : > { %v1673_v31 = vmul.f32 %v8181_v38, %v8132_v36  ;;  %v8213_v35 = vmax.f32 %v1928_v52, 0.0  ;;  %vm2244_vm8 = vcmp.eq.f32.partialorder %v8092_v22, inf  ;;  %v3469_v60 = vsub.f32 %v6394_v2, %v7932_v30  ;;  %v8226_v18 = vpop.xlane.xlu1 %746  ;;  %v6397_v2 = vld [vmem:[%s7253_s9 + $0x498] sm:$0xff] }
 0x177   : > { %4012 = vmatprep.mubr.f32.mxu0 %v3597_v20  ;;  %v3468_v61 = vsub.f32 %v6395_v3, %v7932_v30  ;;  %5931 = vrcp.f32 %v3141_v27  ;;  %v2245_v37 = vsel %vm2244_vm8, %v8092_v22, %v2243_v19  ;;  %v1737_v15 = vmul.f32 %v8197_v25, %v8127_v48  ;;  %1434 = vadd.xlane.f32.xlu1 %v13325_v28  ;;  %v13326_v30 = vld [vmem:[#allocation42_spill] sm:$0xff]  ;;  %v8230_v52 = vpop.xlane.xlu0 %554  ;;  %v13328_v27 = vld [vmem:[#allocation41_spill] sm:$0xff] }
 0x178   : > { %4013 = vmatmul.mubr.f32.gmra.mrb[16].mxu0 %v3596_v33  ;;  %v8223_v36 = vmax.f32 %v1992_v32, 0.0  ;;  %v1801_v55 = vsub.f32 %v1189_v53, %v1673_v31  ;;  %v2247_v46 = vand.u32 2147483648, %v8092_v22  ;;  %vm2246_vm9 = vcmp.eq.f32.partialorder %v8092_v22, 0.0  ;;  %v13327_v53 = vld [vmem:[#allocation39_spill] sm:$0xff]  ;;  %v6398_v3 = vld [vmem:[%s7253_s9 + $0x90] sm:$0xff] }
 0x179   : > { %v5924_v40 = vpop.eup %5923  ;;  %1242 = vadd.xlane.f32.xlu0 %v13326_v30  ;;  %vm2692_vm10 = vcmp.eq.f32.partialorder %v8108_v57, inf  ;;  %5933 = vrsqrt.f32 %v8213_v35  ;;  %v8236_v48 = vmul.f32 0.00390625, %v8162_v44  ;;  %v1865_v8 = vsub.f32 %v8200_v58, %v1737_v15 }
 0x17a   : > { %v5926_v24 = vpop.eup %5925  ;;  %v3725_v45 = vmul.f32 %v5924_v40, %v3469_v60  ;;  %v3724_v43 = vmul.f32 %v5924_v40, %v3468_v61  ;;  %v2248_v62 = vsel %vm2246_vm9, %v2247_v46, %v2245_v37  ;;  %v2693_v19 = vsel %vm2692_vm10, %v8108_v57, %v2691_v10  ;;  %v1384_v58 = vpop.xlane.xlu1 %1383 }
 0x17b   : > { %v3078_v13 = vadd.f32 1e-06, %v2248_v62  ;;  %v2695_v32 = vand.u32 2147483648, %v8108_v57  ;;  %v8242_v20 = vadd.f32 %v959_v50, %v8159_v54  ;;  %v5928_v22 = vpop.eup %5927  ;;  %v2250_v33 = vmul.f32 %v5926_v24, %v8143_v7  ;;  %800 = vadd.xlane.f32.xlu1 %v13327_v53  ;;  %v8254_v29 = vpop.xlane.xlu0 %1191 }
 0x17c   : > { %4396 = vmatprep.mubr.f32.mxu1 %v3725_v45  ;;  %5935 = vrsqrt.f32 %v8223_v36  ;;  %v3343_v51 = vsub.f32 %v6396_v5, %v7986_v23  ;;  %vm2694_vm11 = vcmp.eq.f32.partialorder %v8108_v57, 0.0  ;;  %v8251_v54 = vmul.f32 0.00390625, %v8172_v14 }
 0x17d   : > { %4397 = vmatmul.mubr.f32.gmra.mrb[16].mxu1 %v3724_v43  ;;  %v1929_v50 = vmul.f32 0.003921569, %v1801_v55  ;;  %608 = vadd.xlane.f32.xlu0 %v13328_v27  ;;  %5937 = vrcp.f32 %v3078_v13  ;;  %v2696_v10 = vsel %vm2694_vm11, %v2695_v32, %v2693_v19  ;;  %v1738_v31 = vmul.f32 %v8236_v48, %v8162_v44  ;;  %v6399_v55 = vld [vmem:[%s7253_s9 + $0x490] sm:$0xff] }
 0x17e   : > { %v3471_v60 = vsub.f32 %v6397_v2, %v7968_v12  ;;  %v3342_v57 = vsub.f32 %v6398_v3, %v7986_v23  ;;  %v3142_v61 = vadd.f32 1e-06, %v2696_v10  ;;  %v5930_v37 = vpop.eup %5929  ;;  %v2698_v40 = vmul.f32 %v5928_v22, %v8152_v21  ;;  %v13329_v44 = vld [vmem:[#allocation46_spill] sm:$0xff]  ;;  %v8267_v45 = vpop.xlane.xlu1 %749  ;;  %v6401_v2 = vld [vmem:[%s7253_s9 + $0xa8] sm:$0xff] }
 0x17f   : > { %v1993_v15 = vmul.f32 0.003921569, %v1865_v8  ;;  %v3470_v28 = vsub.f32 %v6399_v55, %v7968_v12  ;;  %vm2251_vm12 = vcmp.eq.f32.partialorder %v8143_v7, inf  ;;  %v3599_v46 = vmul.f32 %v5930_v37, %v3343_v51  ;;  %1437 = vadd.xlane.f32.xlu1 %v13329_v44  ;;  %v8275_v12 = vpop.xlane.xlu0 %557  ;;  %v6400_v8 = vld [vmem:[%s7253_s9 + $0x628] sm:$0xff] }
 0x180   : > { %v3598_v24 = vmul.f32 %v5930_v37, %v3342_v57  ;;  %5939 = vrcp.f32 %v3142_v61  ;;  %v2252_v23 = vsel %vm2251_vm12, %v8143_v7, %v2250_v33  ;;  %v1674_v30 = vmul.f32 %v8251_v54, %v8172_v14  ;;  %v6402_v37 = vld [vmem:[%s7253_s9 + $0xa0] sm:$0xff] }
 0x181   : > { %v5932_v43 = vpop.eup %5931  ;;  %v8272_v62 = vmax.f32 %v1929_v50, 0.0  ;;  %1245 = vadd.xlane.f32.xlu0 %v8086_v1  ;;  %v2254_v19 = vand.u32 2147483648, %v8143_v7  ;;  %v8279_v13 = vmul.f32 %v6400_v8, %v6400_v8  ;;  %4018 = vmatprep.mubr.f32.mxu0 %v3599_v46  ;;  %v1866_v5 = vsub.f32 %v1384_v58, %v1738_v31  ;;  %v13330_v50 = vld [vmem:[#allocation45_spill] sm:$0xff] }
 0x182   : > { %v3727_v32 = vmul.f32 %v5932_v43, %v3471_v60  ;;  %v3726_v22 = vmul.f32 %v5932_v43, %v3470_v28  ;;  %vm2253_vm13 = vcmp.eq.f32.partialorder %v8143_v7, 0.0  ;;  %v8282_v33 = vmax.f32 %v1993_v15, 0.0  ;;  %4019 = vmatmul.mubr.f32.gmra.mrb[18].mxu0 %v3598_v24  ;;  %v8290_v58 = vpop.xlane.xlu1 %1386 }
 0x183   : > { %v8285_v14 = vmul.f32 0.00390625, %v8226_v18  ;;  %v2255_v1 = vsel %vm2253_vm13, %v2254_v19, %v2252_v23  ;;  %vm2699_vm14 = vcmp.eq.f32.partialorder %v8152_v21, inf  ;;  %v5934_v51 = vpop.eup %5933  ;;  %v1802_v53 = vsub.f32 %v8254_v29, %v1674_v30  ;;  %803 = vadd.xlane.f32.xlu1 %v13330_v50  ;;  %v8302_v60 = vpop.xlane.xlu0 %1194  ;;  %v6403_v23 = vld [vmem:[%s7253_s9 + $0x4a8] sm:$0xff]  ;;  %v6404_v30 = vld [vmem:[%s7253_s9 + $0x4a0] sm:$0xff] }
 0x184   : > { %4402 = vmatprep.mubr.f32.mxu1 %v3727_v32  ;;  %v3079_v7 = vadd.f32 1e-06, %v2255_v1  ;;  %v2700_v27 = vsel %vm2699_vm14, %v8152_v21, %v2698_v40  ;;  %v960_v10 = vmul.f32 %v8068_v4, %v8068_v4  ;;  %5941 = vrsqrt.f32 %v8272_v62 }
 0x185   : > { %v8297_v31 = vmul.f32 0.00390625, %v8230_v52  ;;  %4403 = vmatmul.mubr.f32.gmra.mrb[18].mxu1 %v3726_v22  ;;  %v3345_v29 = vsub.f32 %v6401_v2, %v8028_v41  ;;  %611 = vadd.xlane.f32.xlu0 %v8090_v59  ;;  %v2702_v3 = vand.u32 2147483648, %v8152_v21  ;;  %v1994_v61 = vmul.f32 0.003921569, %v1866_v5 }
 0x186   : > { %v5936_v57 = vpop.eup %5935  ;;  %v3344_v4 = vsub.f32 %v6402_v37, %v8028_v41  ;;  %5943 = vrcp.f32 %v3079_v7  ;;  %vm2701_vm15 = vcmp.eq.f32.partialorder %v8152_v21, 0.0  ;;  %v2257_v15 = vmul.f32 %v5934_v51, %v8213_v35  ;;  %v8313_v44 = vpop.xlane.xlu1 %752  ;;  %v6405_v7 = vld [vmem:[%s7253_s9 + $0xb8] sm:$0xff] }
 0x187   : > { %v5938_v40 = vpop.eup %5937  ;;  %5945 = vrsqrt.f32 %v8282_v33  ;;  %v1739_v59 = vmul.f32 %v8285_v14, %v8226_v18  ;;  %v2703_v55 = vsel %vm2701_vm15, %v2702_v3, %v2700_v27  ;;  %v1930_v28 = vmul.f32 0.003921569, %v1802_v53  ;;  %1440 = vadd.xlane.f32.xlu1 %v8096_v0  ;;  %v8322_v18 = vpop.xlane.xlu0 %560  ;;  %v6406_v3 = vld [vmem:[%s7253_s9 + $0xb0] sm:$0xff] }
 0x188   : > { %v3601_v46 = vmul.f32 %v5938_v40, %v3345_v29  ;;  %v3600_v24 = vmul.f32 %v5938_v40, %v3344_v4  ;;  %v3143_v41 = vadd.f32 1e-06, %v2703_v55  ;;  %v1675_v21 = vmul.f32 %v8297_v31, %v8230_v52 }
 0x189   : > { %v3473_v43 = vsub.f32 %v6403_v23, %v8025_v47  ;;  %v3472_v19 = vsub.f32 %v6404_v30, %v8025_v47  ;;  %1248 = vadd.xlane.f32.xlu0 %v8242_v20  ;;  %v961_v8 = vmul.f32 %v8071_v63, %v8071_v63  ;;  %v2705_v32 = vmul.f32 %v5936_v57, %v8223_v36 }
 0x18a   : > { %v5940_v0 = vpop.eup %5939  ;;  %v8327_v22 = vmax.f32 %v1994_v61, 0.0  ;;  %4024 = vmatprep.mubr.f32.mxu0 %v3601_v46  ;;  %v1867_v52 = vsub.f32 %v8290_v58, %v1739_v59  ;;  %5947 = vrcp.f32 %v3143_v41  ;;  %v8331_v5 = vmul.f32 0.00390625, %v8267_v45  ;;  %v8338_v51 = vpop.xlane.xlu1 %1389  ;;  %v8373_v46 = vld [vmem:[%s7253_s9 + $0x648] sm:$0xff]  ;;  %v6407_v41 = vld [vmem:[%s7253_s9 + $0x4b8] sm:$0xff] }
 0x18b   : > { %v3729_v47 = vmul.f32 %v5940_v0, %v3473_v43  ;;  %4025 = vmatmul.mubr.f32.gmra.mrb[20].mxu0 %v3600_v24  ;;  %v3728_v20 = vmul.f32 %v5940_v0, %v3472_v19  ;;  %vm2258_vm0 = vcmp.eq.f32.partialorder %v8213_v35, inf  ;;  %v8334_v1 = vmax.f32 %v1930_v28, 0.0  ;;  %806 = vadd.xlane.f32.xlu1 %v8194_v39  ;;  %v8349_v2 = vpop.xlane.xlu0 %1197  ;;  %v8370_v28 = vld [vmem:[%s7253_s9 + $0x640] sm:$0xff]  ;;  %v8383_v43 = vld [vmem:[%s7253_s9 + $0x248] sm:$0xff]  ;;  %v6408_v19 = vld [vmem:[%s7253_s9 + $0x4b0] sm:$0xff] }
 0x18c   : > { %v1803_v63 = vsub.f32 %v8302_v60, %v1675_v21  ;;  %v1442_v53 = vadd.f32 %v8279_v13, %v8208_v49  ;;  %v2259_v50 = vsel %vm2258_vm0, %v8213_v35, %v2257_v15  ;;  %v8344_v58 = vmul.f32 0.00390625, %v8275_v12 }
 0x18d   : > { %4408 = vmatprep.mubr.f32.mxu1 %v3729_v47  ;;  %v3347_v27 = vsub.f32 %v6405_v7, %v8076_v34  ;;  %614 = vadd.xlane.f32.xlu0 %v8205_v16  ;;  %v1250_v39 = vadd.f32 %v961_v8, %v960_v10  ;;  %v2261_v29 = vand.u32 2147483648, %v8213_v35  ;;  %5949 = vrsqrt.f32 %v8327_v22 }
 0x18e   : > { %4409 = vmatmul.mubr.f32.gmra.mrb[20].mxu1 %v3728_v20  ;;  %v1995_v49 = vmul.f32 0.003921569, %v1867_v52  ;;  %vm2260_vm1 = vcmp.eq.f32.partialorder %v8213_v35, 0.0  ;;  %vm2706_vm2 = vcmp.eq.f32.partialorder %v8223_v36, inf  ;;  %v5942_v13 = vpop.eup %5941  ;;  %v1740_v60 = vmul.f32 %v8331_v5, %v8267_v45  ;;  %v8361_v35 = vpop.xlane.xlu1 %755 }
 0x18f   : > { %v3346_v16 = vsub.f32 %v6406_v3, %v8076_v34  ;;  %v2262_v57 = vsel %vm2260_vm1, %v2261_v29, %v2259_v50  ;;  %v2707_v10 = vsel %vm2706_vm2, %v8223_v36, %v2705_v32  ;;  %5951 = vrsqrt.f32 %v8334_v1  ;;  %1443 = vadd.xlane.f32.xlu1 %v1442_v53  ;;  %v8366_v55 = vpop.xlane.xlu0 %563 }
 0x190   : > { %v5944_v61 = vpop.eup %5943  ;;  %v1931_v37 = vmul.f32 0.003921569, %v1803_v63  ;;  %v3080_v4 = vadd.f32 1e-06, %v2262_v57  ;;  %v2709_v45 = vand.u32 2147483648, %v8223_v36  ;;  %v1676_v34 = vmul.f32 %v8344_v58, %v8275_v12  ;;  %v8380_v12 = vld [vmem:[%s7253_s9 + $0x240] sm:$0xff] }
 0x191   : > { %v5946_v40 = vpop.eup %5945  ;;  %v3603_v15 = vmul.f32 %v5944_v61, %v3347_v27  ;;  %v3602_v59 = vmul.f32 %v5944_v61, %v3346_v16  ;;  %1251 = vadd.xlane.f32.xlu0 %v1250_v39  ;;  %vm2708_vm3 = vcmp.eq.f32.partialorder %v8223_v36, 0.0  ;;  %v8375_v24 = vmax.f32 %v1995_v49, 0.0 }
 0x192   : > { %v3475_v21 = vsub.f32 %v6407_v41, %v8064_v17  ;;  %5953 = vrcp.f32 %v3080_v4  ;;  %v2710_v23 = vsel %vm2708_vm3, %v2709_v45, %v2707_v10  ;;  %v2264_v30 = vmul.f32 %v5942_v13, %v8272_v62  ;;  %v8397_v53 = vpop.xlane.xlu1 %1392  ;;  %v6409_v4 = vld [vmem:[%s7253_s9 + $0xc8] sm:$0xff] }
 0x193   : > { %4030 = vmatprep.mubr.f32.mxu0 %v3603_v15  ;;  %v3474_v36 = vsub.f32 %v6408_v19, %v8064_v17  ;;  %v1868_v8 = vsub.f32 %v8338_v51, %v1740_v60  ;;  %v3144_v0 = vadd.f32 1e-06, %v2710_v23  ;;  %v8389_v52 = vmax.f32 %v1931_v37, 0.0  ;;  %v8401_v51 = vpop.xlane.xlu0 %1200 }
 0x194   : > { %v5948_v32 = vpop.eup %5947  ;;  %v8392_v47 = vmul.f32 0.00390625, %v8313_v44  ;;  %4031 = vmatmul.mubr.f32.gmra.mrb[22].mxu0 %v3602_v59  ;;  %v1804_v20 = vsub.f32 %v8349_v2, %v1676_v34  ;;  %v808_v63 = vadd.f32 %v8373_v46, %v8370_v28  ;;  %v616_v17 = vadd.f32 %v8383_v43, %v8380_v12  ;;  %v6411_v59 = vld [vmem:[%s7253_s9 + $0xc0] sm:$0xff] }
 0x195   : > { %v3731_v50 = vmul.f32 %v5948_v32, %v3475_v21  ;;  %v3730_v7 = vmul.f32 %v5948_v32, %v3474_v36  ;;  %5955 = vrcp.f32 %v3144_v0  ;;  %v8405_v27 = vmul.f32 0.00390625, %v8322_v18  ;;  %v8442_v21 = vld [vmem:[%s7253_s9 + $0x650] sm:$0xff]  ;;  %v8451_v36 = vld [vmem:[%s7253_s9 + $0x658] sm:$0xff] }
 0x196   : > { %5957 = vrsqrt.f32 %v8375_v24  ;;  %809 = vadd.xlane.f32.xlu1 %v808_v63  ;;  %v1090_v2 = vmul.f32 %v8166_v42, %v8166_v42  ;;  %v1996_v39 = vmul.f32 0.003921569, %v1868_v8  ;;  %617 = vadd.xlane.f32.xlu0 %v616_v17  ;;  %v1091_v29 = vmul.f32 %v8169_v9, %v8169_v9  ;;  %v8419_v3 = vpop.xlane.xlu1 %758  ;;  %v8460_v63 = vld [vmem:[%s7253_s9 + $0x250] sm:$0xff]  ;;  %v6412_v17 = vld [vmem:[%s7253_s9 + $0x4c0] sm:$0xff] }
 0x197   : > { %4414 = vmatprep.mubr.f32.mxu1 %v3731_v50  ;;  %v962_v49 = vmul.f32 %v8185_v56, %v8185_v56  ;;  %vm2265_vm4 = vcmp.eq.f32.partialorder %v8272_v62, inf  ;;  %v8414_v13 = vpop.eup %5949  ;;  %5959 = vrsqrt.f32 %v8389_v52  ;;  %v1932_v60 = vmul.f32 0.003921569, %v1804_v20  ;;  %v8425_v10 = vpop.xlane.xlu0 %566  ;;  %v8463_v50 = vld [vmem:[%s7253_s9 + $0x258] sm:$0xff] }
 0x198   : > { %4415 = vmatmul.mubr.f32.gmra.mrb[22].mxu1 %v3730_v7  ;;  %v963_v42 = vmul.f32 %v8188_v11, %v8188_v11  ;;  %v2266_v9 = vsel %vm2265_vm4, %v8272_v62, %v2264_v30  ;;  %v2712_v56 = vmul.f32 %v5946_v40, %v8282_v33  ;;  %v1741_v16 = vmul.f32 %v8392_v47, %v8313_v44  ;;  %v6410_v44 = vld [vmem:[%s7253_s9 + $0x4c8] sm:$0xff] }
 0x199   : > { %v1445_v57 = vadd.f32 %v1091_v29, %v1090_v2  ;;  %v2268_v61 = vand.u32 2147483648, %v8272_v62  ;;  %v5952_v37 = vpop.eup %5951  ;;  %v8430_v11 = vmul.f32 %v8405_v27, %v8322_v18  ;;  %v3349_v45 = vsub.f32 %v6409_v4, %v8124_v6 }
 0x19a   : > { %v1253_v34 = vadd.f32 %v963_v42, %v962_v49  ;;  %vm2267_vm5 = vcmp.eq.f32.partialorder %v8272_v62, 0.0  ;;  %v8435_v40 = vmax.f32 %v1996_v39, 0.0  ;;  %v3477_v15 = vsub.f32 %v6410_v44, %v8117_v26 }
 0x19b   : > { %v3348_v41 = vsub.f32 %v6411_v59, %v8124_v6  ;;  %1446 = vadd.xlane.f32.xlu1 %v1445_v57  ;;  %v2269_v18 = vsel %vm2267_vm5, %v2268_v61, %v2266_v9  ;;  %v8444_v30 = vmax.f32 %v1932_v60, 0.0  ;;  %v8447_v62 = vmul.f32 0.00390625, %v8361_v35  ;;  %v8453_v6 = vpop.xlane.xlu1 %1395  ;;  %v8465_v7 = vpop.xlane.xlu0 %1203 }
 0x19c   : > { %v5954_v23 = vpop.eup %5953  ;;  %1254 = vadd.xlane.f32.xlu0 %v1253_v34  ;;  %v3081_v19 = vadd.f32 1e-06, %v2269_v18  ;;  %vm2713_vm6 = vcmp.eq.f32.partialorder %v8282_v33, inf  ;;  %v8456_v8 = vmul.f32 0.00390625, %v8366_v55  ;;  %v3476_v2 = vsub.f32 %v6412_v17, %v8117_v26  ;;  %v6414_v17 = vld [vmem:[%s7253_s9 + $0xd0] sm:$0xff] }
 0x19d   : > { %v3605_v0 = vmul.f32 %v5954_v23, %v3349_v45  ;;  %v3604_v32 = vmul.f32 %v5954_v23, %v3348_v41  ;;  %v2714_v20 = vsel %vm2713_vm6, %v8282_v33, %v2712_v56  ;;  %v1869_v39 = vsub.f32 %v8397_v53, %v1741_v16 }
 0x19e   : > { %5961 = vrcp.f32 %v3081_v19  ;;  %v2716_v29 = vand.u32 2147483648, %v8282_v33  ;;  %v1805_v60 = vsub.f32 %v8401_v51, %v8430_v11  ;;  %vm2715_vm7 = vcmp.eq.f32.partialorder %v8282_v33, 0.0 }
 0x19f   : > { %v5956_v49 = vpop.eup %5955  ;;  %5963 = vrsqrt.f32 %v8435_v40  ;;  %4036 = vmatprep.mubr.f32.mxu0 %v3605_v0  ;;  %v811_v42 = vadd.f32 %v8451_v36, %v8442_v21  ;;  %v619_v16 = vadd.f32 %v8463_v50, %v8460_v63  ;;  %v8479_v57 = vpop.xlane.xlu1 %761  ;;  %v2271_v61 = vmul.f32 %v5952_v37, %v8334_v1  ;;  %v6413_v0 = vld [vmem:[%s7253_s9 + $0xd8] sm:$0xff] }
 0x1a0   : > { %v5958_v9 = vpop.eup %5957  ;;  %v3733_v56 = vmul.f32 %v5956_v49, %v3477_v15  ;;  %4037 = vmatmul.mubr.f32.gmra.mrb[24].mxu0 %v3604_v32  ;;  %v3732_v26 = vmul.f32 %v5956_v49, %v3476_v2  ;;  %v2717_v53 = vsel %vm2715_vm7, %v2716_v29, %v2714_v20  ;;  %5965 = vrsqrt.f32 %v8444_v30  ;;  %v8485_v11 = vpop.xlane.xlu0 %569  ;;  %v8528_v49 = vld [vmem:[%s7253_s9 + $0x660] sm:$0xff] }
 0x1a1   : > { %v3145_v51 = vadd.f32 1e-06, %v2717_v53  ;;  %812 = vadd.xlane.f32.xlu1 %v811_v42  ;;  %v1092_v33 = vmul.f32 %v8370_v28, %v8370_v28  ;;  %v5960_v4 = vpop.eup %5959  ;;  %v1997_v45 = vmul.f32 0.003921569, %v1869_v39  ;;  %620 = vadd.xlane.f32.xlu0 %v619_v16  ;;  %v1093_v34 = vmul.f32 %v8373_v46, %v8373_v46  ;;  %v8540_v53 = vld [vmem:[%s7253_s9 + $0x260] sm:$0xff] }
 0x1a2   : > { %4420 = vmatprep.mubr.f32.mxu1 %v3733_v56  ;;  %v964_v44 = vmul.f32 %v8380_v12, %v8380_v12  ;;  %v965_v37 = vmul.f32 %v8383_v43, %v8383_v43  ;;  %v2719_v15 = vmul.f32 %v8414_v13, %v8327_v22  ;;  %v8497_v28 = vmul.f32 %v8447_v62, %v8361_v35 }
 0x1a3   : > { %v1678_v59 = vmul.f32 %v8456_v8, %v8366_v55  ;;  %4421 = vmatmul.mubr.f32.gmra.mrb[24].mxu1 %v3732_v26  ;;  %5967 = vrcp.f32 %v3145_v51  ;;  %v1933_v46 = vmul.f32 0.003921569, %v1805_v60  ;;  %v1448_v41 = vadd.f32 %v1093_v34, %v1092_v33  ;;  %v8502_v43 = vpop.xlane.xlu1 %1398  ;;  %v8531_v60 = vld [vmem:[%s7253_s9 + $0x668] sm:$0xff] }
 0x1a4   : > { %v1256_v12 = vadd.f32 %v965_v37, %v964_v44  ;;  %vm2272_vm8 = vcmp.eq.f32.partialorder %v8334_v1, inf  ;;  %v8505_v13 = vmul.f32 %v5958_v9, %v8375_v24  ;;  %v8508_v18 = vmul.f32 %v5960_v4, %v8389_v52  ;;  %v8514_v23 = vpop.xlane.xlu0 %1206 }
 0x1a5   : > { %v8511_v35 = vmul.f32 0.00390625, %v8419_v3  ;;  %v2273_v55 = vsel %vm2272_vm8, %v8334_v1, %v2271_v61  ;;  %v8516_v19 = vmax.f32 %v1997_v45, 0.0  ;;  %v3351_v32 = vsub.f32 %v6413_v0, %v8181_v38  ;;  %1449 = vadd.xlane.f32.xlu1 %v1448_v41  ;;  %v6415_v45 = vld [vmem:[%s7253_s9 + $0x4d8] sm:$0xff] }
 0x1a6   : > { %1257 = vadd.xlane.f32.xlu0 %v1256_v12  ;;  %v2275_v20 = vand.u32 2147483648, %v8334_v1  ;;  %vm2720_vm9 = vcmp.eq.f32.partialorder %v8327_v22, inf  ;;  %v3350_v2 = vsub.f32 %v6414_v17, %v8181_v38  ;;  %v1806_v39 = vsub.f32 %v8465_v7, %v1678_v59  ;;  %v8543_v7 = vld [vmem:[%s7253_s9 + $0x268] sm:$0xff]  ;;  %v6416_v12 = vld [vmem:[%s7253_s9 + $0x4d0] sm:$0xff] }
 0x1a7   : > { %vm2274_vm10 = vcmp.eq.f32.partialorder %v8334_v1, 0.0  ;;  %v2721_v29 = vsel %vm2720_vm9, %v8327_v22, %v2719_v15  ;;  %v8533_v9 = vmax.f32 %v1933_v46, 0.0  ;;  %v8536_v56 = vmul.f32 0.00390625, %v8425_v10  ;;  %v8545_v1 = vpop.xlane.xlu1 %764 }
 0x1a8   : > { %v5962_v42 = vpop.eup %5961  ;;  %v2276_v26 = vsel %vm2274_vm10, %v2275_v20, %v2273_v55  ;;  %v2723_v38 = vand.u32 2147483648, %v8327_v22  ;;  %vm2722_vm11 = vcmp.eq.f32.partialorder %v8327_v22, 0.0  ;;  %v8550_v4 = vpop.xlane.xlu0 %572  ;;  %v3479_v34 = vsub.f32 %v6415_v45, %v8197_v25 }
 0x1a9   : > { %v8547_v16 = vpop.eup %5963  ;;  %v3607_v61 = vmul.f32 %v5962_v42, %v3351_v32  ;;  %v3606_v51 = vmul.f32 %v5962_v42, %v3350_v2  ;;  %v3082_v33 = vadd.f32 1e-06, %v2276_v26  ;;  %v1870_v44 = vsub.f32 %v8453_v6, %v8497_v28 }
 0x1aa   : > { %v2724_v37 = vsel %vm2722_vm11, %v2723_v38, %v2721_v29  ;;  %v814_v15 = vadd.f32 %v8531_v60, %v8528_v49  ;;  %v5966_v59 = vpop.eup %5965  ;;  %v1934_v46 = vmul.f32 0.003921569, %v1806_v39  ;;  %v622_v22 = vadd.f32 %v8543_v7, %v8540_v53 }
 0x1ab   : > { %4042 = vmatprep.mubr.f32.mxu0 %v3607_v61  ;;  %5969 = vrcp.f32 %v3082_v33  ;;  %v3146_v41 = vadd.f32 1e-06, %v2724_v37  ;;  %v3478_v55 = vsub.f32 %v6416_v12, %v8197_v25  ;;  %v1094_v6 = vmul.f32 %v8442_v21, %v8442_v21  ;;  %v8567_v0 = vpop.xlane.xlu1 %1401  ;;  %v8600_v33 = vld [vmem:[%s7253_s9 + $0x670] sm:$0xff]  ;;  %v6418_v12 = vld [vmem:[%s7253_s9 + $0x4e8] sm:$0xff] }
 0x1ac   : > { %5971 = vrsqrt.f32 %v8516_v19  ;;  %4043 = vmatmul.mubr.f32.gmra.mrb[26].mxu0 %v3606_v51  ;;  %815 = vadd.xlane.f32.xlu1 %v814_v15  ;;  %v1095_v28 = vmul.f32 %v8451_v36, %v8451_v36  ;;  %v1679_v20 = vmul.f32 %v8536_v56, %v8425_v10  ;;  %v966_v17 = vmul.f32 %v8460_v63, %v8460_v63  ;;  %v8575_v2 = vpop.xlane.xlu0 %1209 }
 0x1ad   : > { %v5968_v32 = vpop.eup %5967  ;;  %5973 = vrcp.f32 %v3146_v41  ;;  %623 = vadd.xlane.f32.xlu0 %v622_v22  ;;  %v967_v25 = vmul.f32 %v8463_v50, %v8463_v50  ;;  %v1998_v29 = vmul.f32 0.003921569, %v1870_v44  ;;  %v1743_v42 = vmul.f32 %v8511_v35, %v8419_v3  ;;  %v6417_v44 = vld [vmem:[%s7253_s9 + $0xe8] sm:$0xff] }
 0x1ae   : > { %v3735_v21 = vmul.f32 %v5968_v32, %v3479_v34  ;;  %v3734_v39 = vmul.f32 %v5968_v32, %v3478_v55  ;;  %v1451_v36 = vadd.f32 %v1095_v28, %v1094_v6  ;;  %5975 = vrsqrt.f32 %v8533_v9  ;;  %v6419_v6 = vld [vmem:[%s7253_s9 + $0xe0] sm:$0xff] }
 0x1af   : > { %v8580_v10 = vmax.f32 %v1934_v46, 0.0  ;;  %v1259_v26 = vadd.f32 %v967_v25, %v966_v17  ;;  %v8583_v63 = vmul.f32 %v5966_v59, %v8444_v30  ;;  %v1807_v50 = vsub.f32 %v8514_v23, %v1679_v20  ;;  %v8588_v61 = vpop.xlane.xlu1 %767  ;;  %v8610_v59 = vld [vmem:[%s7253_s9 + $0x678] sm:$0xff]  ;;  %v8613_v46 = vld [vmem:[%s7253_s9 + $0x270] sm:$0xff] }
 0x1b0   : > { %4426 = vmatprep.mubr.f32.mxu1 %v3735_v21  ;;  %1452 = vadd.xlane.f32.xlu1 %v1451_v36  ;;  %vm2279_vm12 = vcmp.eq.f32.partialorder %v8389_v52, inf  ;;  %v2282_v38 = vand.u32 2147483648, %v8389_v52  ;;  %v8591_v3 = vmul.f32 0.00390625, %v8479_v57  ;;  %v8594_v51 = vmul.f32 0.00390625, %v8485_v11  ;;  %v8602_v45 = vpop.xlane.xlu0 %575  ;;  %v6420_v36 = vld [vmem:[%s7253_s9 + $0x4e0] sm:$0xff] }
 0x1b1   : > { %4427 = vmatmul.mubr.f32.gmra.mrb[26].mxu1 %v3734_v39  ;;  %1260 = vadd.xlane.f32.xlu0 %v1259_v26  ;;  %v2280_v23 = vsel %vm2279_vm12, %v8389_v52, %v8508_v18  ;;  %vm2281_vm13 = vcmp.eq.f32.partialorder %v8389_v52, 0.0  ;;  %v8604_v34 = vmax.f32 %v1998_v29, 0.0  ;;  %v3353_v37 = vsub.f32 %v6417_v44, %v8251_v54  ;;  %v8616_v18 = vld [vmem:[%s7253_s9 + $0x278] sm:$0xff] }
 0x1b2   : > { %v2283_v15 = vsel %vm2281_vm13, %v2282_v38, %v2280_v23  ;;  %vm2727_vm14 = vcmp.eq.f32.partialorder %v8375_v24, inf  ;;  %5977 = vrsqrt.f32 %v8580_v10  ;;  %v1871_v52 = vsub.f32 %v8502_v43, %v1743_v42 }
 0x1b3   : > { %v3083_v41 = vadd.f32 1e-06, %v2283_v15  ;;  %v2728_v22 = vsel %vm2727_vm14, %v8375_v24, %v8505_v13  ;;  %v3481_v55 = vsub.f32 %v6418_v12, %v8236_v48  ;;  %v3352_v28 = vsub.f32 %v6419_v6, %v8251_v54  ;;  %v8627_v17 = vpop.xlane.xlu1 %1404 }
 0x1b4   : > { %v1935_v32 = vmul.f32 0.003921569, %v1807_v50  ;;  %v2730_v20 = vand.u32 2147483648, %v8375_v24  ;;  %vm2729_vm15 = vcmp.eq.f32.partialorder %v8375_v24, 0.0  ;;  %v817_v43 = vadd.f32 %v8610_v59, %v8600_v33  ;;  %v8634_v21 = vpop.xlane.xlu0 %1212 }
 0x1b5   : > { %v5970_v25 = vpop.eup %5969  ;;  %5979 = vrcp.f32 %v3083_v41  ;;  %v625_v13 = vadd.f32 %v8616_v18, %v8613_v46  ;;  %v3480_v42 = vsub.f32 %v6420_v36, %v8236_v48  ;;  %v1999_v38 = vmul.f32 0.003921569, %v1871_v52 }
 0x1b6   : > { %v8636_v39 = vpop.eup %5971  ;;  %v3609_v54 = vmul.f32 %v5970_v25, %v3353_v37  ;;  %v3608_v29 = vmul.f32 %v5970_v25, %v3352_v28  ;;  %v2731_v26 = vsel %vm2729_vm15, %v2730_v20, %v2728_v22  ;;  %818 = vadd.xlane.f32.xlu1 %v817_v43  ;;  %v1096_v24 = vmul.f32 %v8528_v49, %v8528_v49  ;;  %v8679_v43 = vld [vmem:[%s7253_s9 + $0x680] sm:$0xff] }
 0x1b7   : > { %v5974_v50 = vpop.eup %5973  ;;  %v3147_v23 = vadd.f32 1e-06, %v2731_v26  ;;  %626 = vadd.xlane.f32.xlu0 %v625_v13  ;;  %v1097_v44 = vmul.f32 %v8531_v60, %v8531_v60  ;;  %v8644_v37 = vmax.f32 %v1935_v32, 0.0  ;;  %v968_v48 = vmul.f32 %v8540_v53, %v8540_v53  ;;  %v8648_v22 = vpop.xlane.xlu1 %770 }
 0x1b8   : > { %4048 = vmatprep.mubr.f32.mxu0 %v3609_v54  ;;  %v3737_v15 = vmul.f32 %v5974_v50, %v3481_v55  ;;  %v3736_v41 = vmul.f32 %v5974_v50, %v3480_v42  ;;  %v8650_v52 = vpop.eup %5975  ;;  %v1680_v12 = vmul.f32 %v8594_v51, %v8485_v11  ;;  %v969_v60 = vmul.f32 %v8543_v7, %v8543_v7  ;;  %v8656_v55 = vpop.xlane.xlu0 %578 }
 0x1b9   : > { %4049 = vmatmul.mubr.f32.gmra.mrb[28].mxu0 %v3608_v29  ;;  %5981 = vrcp.f32 %v3147_v23  ;;  %v1454_v49 = vadd.f32 %v1097_v44, %v1096_v24  ;;  %v2733_v6 = vmul.f32 %v8547_v16, %v8435_v40  ;;  %v1744_v53 = vmul.f32 %v8591_v3, %v8479_v57  ;;  %v6421_v57 = vld [vmem:[%s7253_s9 + $0xf8] sm:$0xff]  ;;  %v8697_v24 = vld [vmem:[%s7253_s9 + $0x280] sm:$0xff]  ;;  %v8700_v44 = vld [vmem:[%s7253_s9 + $0x288] sm:$0xff] }
 0x1ba   : > { %5983 = vrsqrt.f32 %v8604_v34  ;;  %4432 = vmatprep.mubr.f32.mxu1 %v3737_v15  ;;  %v8664_v11 = vmul.f32 0.00390625, %v8545_v1  ;;  %v8666_v28 = vmax.f32 %v1999_v38, 0.0  ;;  %v1808_v7 = vsub.f32 %v8575_v2, %v1680_v12  ;;  %v8682_v2 = vld [vmem:[%s7253_s9 + $0x688] sm:$0xff]  ;;  %v6422_v29 = vld [vmem:[%s7253_s9 + $0x4f8] sm:$0xff] }
 0x1bb   : > { %4433 = vmatmul.mubr.f32.gmra.mrb[28].mxu1 %v3736_v41  ;;  %1455 = vadd.xlane.f32.xlu1 %v1454_v49  ;;  %v1262_v32 = vadd.f32 %v969_v60, %v968_v48  ;;  %vm2286_vm0 = vcmp.eq.f32.partialorder %v8444_v30, inf  ;;  %5985 = vrsqrt.f32 %v8644_v37  ;;  %v8672_v16 = vmul.f32 0.00390625, %v8550_v4  ;;  %v8684_v13 = vpop.xlane.xlu1 %1407 }
 0x1bc   : > { %v3355_v20 = vsub.f32 %v6421_v57, %v8297_v31  ;;  %v2287_v25 = vsel %vm2286_vm0, %v8444_v30, %v8583_v63  ;;  %v5978_v54 = vpop.eup %5977  ;;  %v3483_v36 = vsub.f32 %v6422_v29, %v8285_v14  ;;  %v1872_v42 = vsub.f32 %v8567_v0, %v1744_v53  ;;  %v6423_v63 = vld [vmem:[%s7253_s9 + $0xf0] sm:$0xff]  ;;  %v8702_v0 = vpop.xlane.xlu0 %1215 }
 0x1bd   : > { %1263 = vadd.xlane.f32.xlu0 %v1262_v32  ;;  %v2289_v26 = vand.u32 2147483648, %v8444_v30  ;;  %vm2734_vm1 = vcmp.eq.f32.partialorder %v8435_v40, inf  ;;  %v3354_v50 = vsub.f32 %v6423_v63, %v8297_v31  ;;  %vm2288_vm2 = vcmp.eq.f32.partialorder %v8444_v30, 0.0 }
 0x1be   : > { %v2735_v38 = vsel %vm2734_vm1, %v8435_v40, %v2733_v6  ;;  %v2737_v23 = vand.u32 2147483648, %v8435_v40  ;;  %v1936_v41 = vmul.f32 0.003921569, %v1808_v7  ;;  %vm2736_vm3 = vcmp.eq.f32.partialorder %v8435_v40, 0.0  ;;  %v6424_v6 = vld [vmem:[%s7253_s9 + $0x4f0] sm:$0xff] }
 0x1bf   : > { %v5980_v15 = vpop.eup %5979  ;;  %v2290_v48 = vsel %vm2288_vm2, %v2289_v26, %v2287_v25  ;;  %v820_v31 = vadd.f32 %v8682_v2, %v8679_v43  ;;  %v3482_v53 = vsub.f32 %v6424_v6, %v8285_v14  ;;  %v2000_v32 = vmul.f32 0.003921569, %v1872_v42  ;;  %v8717_v25 = vpop.xlane.xlu1 %773 }
 0x1c0   : > { %v3611_v12 = vmul.f32 %v5980_v15, %v3355_v20  ;;  %v3610_v30 = vmul.f32 %v5980_v15, %v3354_v50  ;;  %v3084_v49 = vadd.f32 1e-06, %v2290_v48  ;;  %v2738_v60 = vsel %vm2736_vm3, %v2737_v23, %v2735_v38  ;;  %v8729_v23 = vpop.xlane.xlu0 %581 }
 0x1c1   : > { %v3148_v57 = vadd.f32 1e-06, %v2738_v60  ;;  %821 = vadd.xlane.f32.xlu1 %v820_v31  ;;  %v628_v29 = vadd.f32 %v8700_v44, %v8697_v24  ;;  %v1098_v40 = vmul.f32 %v8600_v33, %v8600_v33  ;;  %v1099_v7 = vmul.f32 %v8610_v59, %v8610_v59 }
 0x1c2   : > { %4054 = vmatprep.mubr.f32.mxu0 %v3611_v12  ;;  %5987 = vrcp.f32 %v3084_v49  ;;  %v970_v20 = vmul.f32 %v8613_v46, %v8613_v46  ;;  %v2292_v42 = vmul.f32 %v8650_v52, %v8533_v9  ;;  %v8721_v26 = vmax.f32 %v1936_v41, 0.0  ;;  %v8755_v12 = vld [vmem:[%s7253_s9 + $0x690] sm:$0xff]  ;;  %v6426_v49 = vld [vmem:[%s7253_s9 + $0x508] sm:$0xff] }
 0x1c3   : > { %v5982_v14 = vpop.eup %5981  ;;  %4055 = vmatmul.mubr.f32.gmra.mrb[30].mxu0 %v3610_v30  ;;  %5989 = vrcp.f32 %v3148_v57  ;;  %629 = vadd.xlane.f32.xlu0 %v628_v29  ;;  %v971_v33 = vmul.f32 %v8616_v18, %v8616_v18  ;;  %v2740_v59 = vmul.f32 %v8636_v39, %v8516_v19  ;;  %v1457_v38 = vadd.f32 %v1099_v7, %v1098_v40  ;;  %v8758_v30 = vld [vmem:[%s7253_s9 + $0x698] sm:$0xff]  ;;  %v8771_v29 = vpop.xlane.xlu1 %1410 }
 0x1c4   : > { %v8725_v63 = vpop.eup %5983  ;;  %v3739_v46 = vmul.f32 %v5982_v14, %v3483_v36  ;;  %v3738_v50 = vmul.f32 %v5982_v14, %v3482_v53  ;;  %5991 = vrsqrt.f32 %v8666_v28  ;;  %v1745_v52 = vmul.f32 %v8664_v11, %v8545_v1  ;;  %v8769_v57 = vld [vmem:[%s7253_s9 + $0x298] sm:$0xff] }
 0x1c5   : > { %v1681_v15 = vmul.f32 %v8672_v16, %v8550_v4  ;;  %v1265_v18 = vadd.f32 %v971_v33, %v970_v20  ;;  %v8736_v41 = vpop.eup %5985  ;;  %v8739_v39 = vmul.f32 %v5978_v54, %v8580_v10  ;;  %v8741_v36 = vmax.f32 %v2000_v32, 0.0  ;;  %1458 = vadd.xlane.f32.xlu1 %v1457_v38  ;;  %v6425_v4 = vld [vmem:[%s7253_s9 + $0x108] sm:$0xff]  ;;  %v8766_v32 = vld [vmem:[%s7253_s9 + $0x290] sm:$0xff] }
 0x1c6   : > { %4438 = vmatprep.mubr.f32.mxu1 %v3739_v46  ;;  %v8744_v48 = vmul.f32 0.00390625, %v8588_v61  ;;  %vm2293_vm4 = vcmp.eq.f32.partialorder %v8533_v9, inf  ;;  %5993 = vrsqrt.f32 %v8721_v26  ;;  %v8749_v1 = vmul.f32 0.00390625, %v8602_v45  ;;  %v8782_v46 = vpop.xlane.xlu0 %1218 }
 0x1c7   : > { %4439 = vmatmul.mubr.f32.gmra.mrb[30].mxu1 %v3738_v50  ;;  %v3357_v54 = vsub.f32 %v6425_v4, %v8344_v58  ;;  %1266 = vadd.xlane.f32.xlu0 %v1265_v18  ;;  %v2294_v31 = vsel %vm2293_vm4, %v8533_v9, %v2292_v42  ;;  %v3485_v60 = vsub.f32 %v6426_v49, %v8331_v5  ;;  %v2296_v53 = vand.u32 2147483648, %v8533_v9  ;;  %v6428_v50 = vld [vmem:[%s7253_s9 + $0x500] sm:$0xff] }
 0x1c8   : > { %v1873_v6 = vsub.f32 %v8627_v17, %v1745_v52  ;;  %vm2741_vm5 = vcmp.eq.f32.partialorder %v8516_v19, inf  ;;  %v1809_v40 = vsub.f32 %v8634_v21, %v1681_v15  ;;  %vm2295_vm6 = vcmp.eq.f32.partialorder %v8533_v9, 0.0  ;;  %v6427_v17 = vld [vmem:[%s7253_s9 + $0x100] sm:$0xff] }
 0x1c9   : > { %v2742_v7 = vsel %vm2741_vm5, %v8516_v19, %v2740_v59  ;;  %v2744_v20 = vand.u32 2147483648, %v8516_v19  ;;  %v3356_v14 = vsub.f32 %v6427_v17, %v8344_v58  ;;  %v2297_v42 = vsel %vm2295_vm6, %v2296_v53, %v2294_v31 }
 0x1ca   : > { %vm2743_vm7 = vcmp.eq.f32.partialorder %v8516_v19, 0.0  ;;  %v823_v33 = vadd.f32 %v8758_v30, %v8755_v12  ;;  %v3484_v21 = vsub.f32 %v6428_v50, %v8331_v5  ;;  %v3085_v38 = vadd.f32 1e-06, %v2297_v42 }
 0x1cb   : > { %v2745_v9 = vsel %vm2743_vm7, %v2744_v20, %v2742_v7  ;;  %v631_v59 = vadd.f32 %v8769_v57, %v8766_v32  ;;  %v2001_v15 = vmul.f32 0.003921569, %v1873_v6  ;;  %v1100_v58 = vmul.f32 %v8679_v43, %v8679_v43  ;;  %v8795_v6 = vpop.xlane.xlu1 %776 }
 0x1cc   : > { %v5988_v52 = vpop.eup %5987  ;;  %v3149_v18 = vadd.f32 1e-06, %v2745_v9  ;;  %824 = vadd.xlane.f32.xlu1 %v823_v33  ;;  %v1101_v19 = vmul.f32 %v8682_v2, %v8682_v2  ;;  %v1937_v53 = vmul.f32 0.003921569, %v1809_v40  ;;  %5995 = vrcp.f32 %v3085_v38  ;;  %v8832_v38 = vld [vmem:[%s7253_s9 + $0x6a0] sm:$0xff]  ;;  %v6429_v9 = vld [vmem:[%s7253_s9 + $0x118] sm:$0xff] }
 0x1cd   : > { %v5990_v4 = vpop.eup %5989  ;;  %v3613_v31 = vmul.f32 %v5988_v52, %v3357_v54  ;;  %v3612_v49 = vmul.f32 %v5988_v52, %v3356_v14  ;;  %632 = vadd.xlane.f32.xlu0 %v631_v59  ;;  %v8793_v20 = vmul.f32 0.00390625, %v8656_v55  ;;  %v1682_v43 = vmul.f32 %v8749_v1, %v8602_v45  ;;  %v6430_v52 = vld [vmem:[%s7253_s9 + $0x518] sm:$0xff] }
 0x1ce   : > { %v3741_v5 = vmul.f32 %v5990_v4, %v3485_v60  ;;  %v3740_v7 = vmul.f32 %v5990_v4, %v3484_v21  ;;  %5997 = vrcp.f32 %v3149_v18  ;;  %v8797_v17 = vpop.eup %5991  ;;  %v1460_v2 = vadd.f32 %v1101_v19, %v1100_v58  ;;  %v8847_v58 = vld [vmem:[%s7253_s9 + $0x2a8] sm:$0xff] }
 0x1cf   : > { %4060 = vmatprep.mubr.f32.mxu0 %v3613_v31  ;;  %v972_v54 = vmul.f32 %v8697_v24, %v8697_v24  ;;  %v973_v60 = vmul.f32 %v8700_v44, %v8700_v44  ;;  %v2747_v40 = vmul.f32 %v8725_v63, %v8604_v34  ;;  %v8809_v14 = vmul.f32 %v8736_v41, %v8644_v37  ;;  %v8814_v24 = vpop.xlane.xlu0 %584  ;;  %v8853_v31 = vpop.xlane.xlu1 %1413 }
 0x1d0   : > { %5999 = vrsqrt.f32 %v8741_v36  ;;  %v1746_v45 = vmul.f32 %v8744_v48, %v8588_v61  ;;  %4444 = vmatprep.mubr.f32.mxu1 %v3741_v5  ;;  %4061 = vmatmul.mubr.f32.gmra.mrb[32].mxu0 %v3612_v49  ;;  %v5994_v44 = vpop.eup %5993  ;;  %v8817_v63 = vmul.f32 0.00390625, %v8648_v22  ;;  %v1810_v41 = vsub.f32 %v8702_v0, %v1682_v43  ;;  %v8835_v0 = vld [vmem:[%s7253_s9 + $0x6a8] sm:$0xff] }
 0x1d1   : > { %4445 = vmatmul.mubr.f32.gmra.mrb[32].mxu1 %v3740_v7  ;;  %1461 = vadd.xlane.f32.xlu1 %v1460_v2  ;;  %v1268_v42 = vadd.f32 %v973_v60, %v972_v54  ;;  %vm2300_vm8 = vcmp.eq.f32.partialorder %v8580_v10, inf  ;;  %v8821_v61 = vmax.f32 %v2001_v15, 0.0  ;;  %v8823_v33 = vmax.f32 %v1937_v53, 0.0  ;;  %v6431_v7 = vld [vmem:[%s7253_s9 + $0x110] sm:$0xff] }
 0x1d2   : > { %v8827_v50 = vmul.f32 %v8793_v20, %v8656_v55  ;;  %v2301_v21 = vsel %vm2300_vm8, %v8580_v10, %v8739_v39  ;;  %v3359_v59 = vsub.f32 %v6429_v9, %v8405_v27  ;;  %v3487_v15 = vsub.f32 %v6430_v52, %v8392_v47  ;;  %v8844_v55 = vld [vmem:[%s7253_s9 + $0x2a0] sm:$0xff] }
 0x1d3   : > { %1269 = vadd.xlane.f32.xlu0 %v1268_v42  ;;  %v2303_v18 = vand.u32 2147483648, %v8580_v10  ;;  %vm2748_vm9 = vcmp.eq.f32.partialorder %v8604_v34, inf  ;;  %v1874_v39 = vsub.f32 %v8684_v13, %v1746_v45  ;;  %vm2302_vm10 = vcmp.eq.f32.partialorder %v8580_v10, 0.0  ;;  %v8862_v54 = vpop.xlane.xlu0 %1221 }
 0x1d4   : > { %v2749_v19 = vsel %vm2748_vm9, %v8604_v34, %v2747_v40  ;;  %v2751_v4 = vand.u32 2147483648, %v8604_v34  ;;  %v1938_v49 = vmul.f32 0.003921569, %v1810_v41  ;;  %vm2750_vm11 = vcmp.eq.f32.partialorder %v8604_v34, 0.0  ;;  %v6432_v40 = vld [vmem:[%s7253_s9 + $0x510] sm:$0xff] }
 0x1d5   : > { %v2304_v53 = vsel %vm2302_vm10, %v2303_v18, %v2301_v21  ;;  %v826_v5 = vadd.f32 %v8835_v0, %v8832_v38  ;;  %v3358_v43 = vsub.f32 %v6431_v7, %v8405_v27  ;;  %v634_v10 = vadd.f32 %v8847_v58, %v8844_v55 }
 0x1d6   : > { %v3086_v13 = vadd.f32 1e-06, %v2304_v53  ;;  %v2752_v2 = vsel %vm2750_vm11, %v2751_v4, %v2749_v19  ;;  %v5996_v60 = vpop.eup %5995  ;;  %v3486_v45 = vsub.f32 %v6432_v40, %v8392_v47  ;;  %v1102_v34 = vmul.f32 %v8755_v12, %v8755_v12  ;;  %v8918_v40 = vld [vmem:[%s7253_s9 + $0x2b0] sm:$0xff] }
 0x1d7   : > { %v3150_v41 = vadd.f32 1e-06, %v2752_v2  ;;  %827 = vadd.xlane.f32.xlu1 %v826_v5  ;;  %v1103_v42 = vmul.f32 %v8758_v30, %v8758_v30  ;;  %v3615_v21 = vmul.f32 %v5996_v60, %v3359_v59  ;;  %v3614_v9 = vmul.f32 %v5996_v60, %v3358_v43  ;;  %635 = vadd.xlane.f32.xlu0 %v634_v10  ;;  %v6433_v43 = vld [vmem:[%s7253_s9 + $0x128] sm:$0xff] }
 0x1d8   : > { %v5998_v27 = vpop.eup %5997  ;;  %v2002_v52 = vmul.f32 0.003921569, %v1874_v39  ;;  %6001 = vrcp.f32 %v3086_v13  ;;  %v8870_v4 = vmax.f32 %v1938_v49, 0.0  ;;  %v974_v30 = vmul.f32 %v8766_v32, %v8766_v32  ;;  %v8879_v39 = vpop.xlane.xlu1 %779  ;;  %v6434_v2 = vld [vmem:[%s7253_s9 + $0x528] sm:$0xff] }
 0x1d9   : > { %v3743_v18 = vmul.f32 %v5998_v27, %v3487_v15  ;;  %v3742_v19 = vmul.f32 %v5998_v27, %v3486_v45  ;;  %6003 = vrcp.f32 %v3150_v41  ;;  %4066 = vmatprep.mubr.f32.mxu0 %v3615_v21  ;;  %v1463_v12 = vadd.f32 %v1103_v42, %v1102_v34  ;;  %v8921_v45 = vld [vmem:[%s7253_s9 + $0x2b8] sm:$0xff] }
 0x1da   : > { %v8872_v47 = vpop.eup %5999  ;;  %6005 = vrsqrt.f32 %v8823_v33  ;;  %v975_v59 = vmul.f32 %v8769_v57, %v8769_v57  ;;  %v2754_v15 = vmul.f32 %v8797_v17, %v8666_v28  ;;  %v8884_v49 = vmul.f32 %v5994_v44, %v8721_v26  ;;  %4067 = vmatmul.mubr.f32.gmra.mrb[34].mxu0 %v3614_v9  ;;  %v8894_v44 = vpop.xlane.xlu0 %587 }
 0x1db   : > { %6007 = vrsqrt.f32 %v8821_v61  ;;  %v1747_v53 = vmul.f32 %v8817_v63, %v8648_v22  ;;  %4450 = vmatprep.mubr.f32.mxu1 %v3743_v18  ;;  %v8889_v32 = vmax.f32 %v2002_v52, 0.0  ;;  %v1811_v57 = vsub.f32 %v8782_v46, %v8827_v50  ;;  %1464 = vadd.xlane.f32.xlu1 %v1463_v12  ;;  %v8906_v46 = vld [vmem:[%s7253_s9 + $0x6b0] sm:$0xff]  ;;  %v8909_v50 = vld [vmem:[%s7253_s9 + $0x6b8] sm:$0xff]  ;;  %v6435_v52 = vld [vmem:[%s7253_s9 + $0x120] sm:$0xff] }
 0x1dc   : > { %4451 = vmatmul.mubr.f32.gmra.mrb[34].mxu1 %v3742_v19  ;;  %v1271_v17 = vadd.f32 %v975_v59, %v974_v30  ;;  %vm2307_vm12 = vcmp.eq.f32.partialorder %v8644_v37, inf  ;;  %6009 = vrsqrt.f32 %v8870_v4  ;;  %v8898_v22 = vmul.f32 0.00390625, %v8717_v25  ;;  %v8930_v9 = vpop.xlane.xlu1 %1416  ;;  %v6436_v30 = vld [vmem:[%s7253_s9 + $0x520] sm:$0xff] }
 0x1dd   : > { %v8901_v5 = vmul.f32 0.00390625, %v8729_v23  ;;  %v2308_v7 = vsel %vm2307_vm12, %v8644_v37, %v8809_v14  ;;  %v3361_v13 = vsub.f32 %v6433_v43, %v8456_v8  ;;  %v3489_v10 = vsub.f32 %v6434_v2, %v8447_v62 }
 0x1de   : > { %1272 = vadd.xlane.f32.xlu0 %v1271_v17  ;;  %v2310_v60 = vand.u32 2147483648, %v8644_v37  ;;  %vm2755_vm13 = vcmp.eq.f32.partialorder %v8666_v28, inf  ;;  %v1875_v14 = vsub.f32 %v8771_v29, %v1747_v53  ;;  %vm2309_vm14 = vcmp.eq.f32.partialorder %v8644_v37, 0.0 }
 0x1df   : > { %v2756_v41 = vsel %vm2755_vm13, %v8666_v28, %v2754_v15  ;;  %v2758_v34 = vand.u32 2147483648, %v8666_v28  ;;  %v1939_v42 = vmul.f32 0.003921569, %v1811_v57  ;;  %vm2757_vm15 = vcmp.eq.f32.partialorder %v8666_v28, 0.0  ;;  %v8942_v57 = vpop.xlane.xlu0 %1224 }
 0x1e0   : > { %v2311_v27 = vsel %vm2309_vm14, %v2310_v60, %v2308_v7  ;;  %v829_v21 = vadd.f32 %v8909_v50, %v8906_v46  ;;  %v3360_v18 = vsub.f32 %v6435_v52, %v8456_v8  ;;  %v637_v37 = vadd.f32 %v8921_v45, %v8918_v40 }
 0x1e1   : > { %v3087_v19 = vadd.f32 1e-06, %v2311_v27  ;;  %v2759_v29 = vsel %vm2757_vm15, %v2758_v34, %v2756_v41  ;;  %v3488_v59 = vsub.f32 %v6436_v30, %v8447_v62  ;;  %v1104_v28 = vmul.f32 %v8832_v38, %v8832_v38  ;;  %v6438_v30 = vld [vmem:[%s7253_s9 + $0x538] sm:$0xff] }
 0x1e2   : > { %v6002_v12 = vpop.eup %6001  ;;  %v3151_v15 = vadd.f32 1e-06, %v2759_v29  ;;  %830 = vadd.xlane.f32.xlu1 %v829_v21  ;;  %v1105_v53 = vmul.f32 %v8835_v0, %v8835_v0  ;;  %v2003_v43 = vmul.f32 0.003921569, %v1875_v14  ;;  %638 = vadd.xlane.f32.xlu0 %v637_v37  ;;  %v8944_v62 = vmax.f32 %v1939_v42, 0.0  ;;  %v6437_v37 = vld [vmem:[%s7253_s9 + $0x138] sm:$0xff] }
 0x1e3   : > { %v6004_v8 = vpop.eup %6003  ;;  %v3617_v17 = vmul.f32 %v6002_v12, %v3361_v13  ;;  %v3616_v7 = vmul.f32 %v6002_v12, %v3360_v18  ;;  %6011 = vrcp.f32 %v3087_v19  ;;  %v976_v0 = vmul.f32 %v8844_v55, %v8844_v55  ;;  %v8959_v55 = vpop.xlane.xlu1 %782  ;;  %v8977_v18 = vld [vmem:[%s7253_s9 + $0x6c0] sm:$0xff]  ;;  %v8980_v19 = vld [vmem:[%s7253_s9 + $0x6c8] sm:$0xff] }
 0x1e4   : > { %v6006_v2 = vpop.eup %6005  ;;  %v3745_v60 = vmul.f32 %v6004_v8, %v3489_v10  ;;  %v3744_v41 = vmul.f32 %v6004_v8, %v3488_v59  ;;  %6013 = vrcp.f32 %v3151_v15  ;;  %v1466_v38 = vadd.f32 %v1105_v53, %v1104_v28  ;;  %v8982_v29 = vpop.xlane.xlu0 %590  ;;  %v8991_v28 = vld [vmem:[%s7253_s9 + $0x2c0] sm:$0xff] }
 0x1e5   : > { %v8946_v34 = vpop.eup %6007  ;;  %4072 = vmatprep.mubr.f32.mxu0 %v3617_v17  ;;  %v977_v13 = vmul.f32 %v8847_v58, %v8847_v58  ;;  %v2761_v14 = vmul.f32 %v8872_v47, %v8741_v36  ;;  %6015 = vrsqrt.f32 %v8889_v32  ;;  %v1748_v10 = vmul.f32 %v8898_v22, %v8717_v25 }
 0x1e6   : > { %v1684_v42 = vmul.f32 %v8901_v5, %v8729_v23  ;;  %4456 = vmatprep.mubr.f32.mxu1 %v3745_v60  ;;  %4073 = vmatmul.mubr.f32.gmra.mrb[36].mxu0 %v3616_v7  ;;  %v6010_v27 = vpop.eup %6009  ;;  %v8962_v58 = vmul.f32 %v6006_v2, %v8823_v33  ;;  %v8964_v47 = vmax.f32 %v2003_v43, 0.0  ;;  %vm2314_vm0 = vcmp.eq.f32.partialorder %v8721_v26, inf  ;;  %v6439_v60 = vld [vmem:[%s7253_s9 + $0x130] sm:$0xff] }
 0x1e7   : > { %4457 = vmatmul.mubr.f32.gmra.mrb[36].mxu1 %v3744_v41  ;;  %1467 = vadd.xlane.f32.xlu1 %v1466_v38  ;;  %v1274_v25 = vadd.f32 %v977_v13, %v976_v0  ;;  %6017 = vrsqrt.f32 %v8944_v62  ;;  %v8969_v23 = vmul.f32 0.00390625, %v8795_v6  ;;  %v8972_v21 = vmul.f32 0.00390625, %v8814_v24 }
 0x1e8   : > { %v2315_v52 = vsel %vm2314_vm0, %v8721_v26, %v8884_v49  ;;  %v3363_v12 = vsub.f32 %v6437_v37, %v8536_v56  ;;  %v3491_v59 = vsub.f32 %v6438_v30, %v8511_v35  ;;  %v2317_v15 = vand.u32 2147483648, %v8721_v26  ;;  %v8994_v49 = vld [vmem:[%s7253_s9 + $0x2c8] sm:$0xff]  ;;  %v9016_v30 = vpop.xlane.xlu0 %1227 }
 0x1e9   : > { %1275 = vadd.xlane.f32.xlu0 %v1274_v25  ;;  %vm2762_vm1 = vcmp.eq.f32.partialorder %v8741_v36, inf  ;;  %v1876_v53 = vsub.f32 %v8853_v31, %v1748_v10  ;;  %vm2316_vm2 = vcmp.eq.f32.partialorder %v8721_v26, 0.0  ;;  %v2765_v17 = vand.u32 2147483648, %v8741_v36  ;;  %v9008_v31 = vpop.xlane.xlu1 %1419 }
 0x1ea   : > { %v2763_v8 = vsel %vm2762_vm1, %v8741_v36, %v2761_v14  ;;  %v1812_v7 = vsub.f32 %v8862_v54, %v1684_v42  ;;  %v2318_v43 = vsel %vm2316_vm2, %v2317_v15, %v2315_v52  ;;  %vm2764_vm3 = vcmp.eq.f32.partialorder %v8741_v36, 0.0  ;;  %v6440_v14 = vld [vmem:[%s7253_s9 + $0x530] sm:$0xff] }
 0x1eb   : > { %v832_v2 = vadd.f32 %v8980_v19, %v8977_v18  ;;  %v3362_v41 = vsub.f32 %v6439_v60, %v8536_v56  ;;  %v3088_v38 = vadd.f32 1e-06, %v2318_v43  ;;  %v2766_v0 = vsel %vm2764_vm3, %v2765_v17, %v2763_v8 }
 0x1ec   : > { %v640_v26 = vadd.f32 %v8994_v49, %v8991_v28  ;;  %v3490_v54 = vsub.f32 %v6440_v14, %v8511_v35  ;;  %v3152_v10 = vadd.f32 1e-06, %v2766_v0  ;;  %v1106_v36 = vmul.f32 %v8906_v46, %v8906_v46  ;;  %v6441_v0 = vld [vmem:[%s7253_s9 + $0x148] sm:$0xff] }
 0x1ed   : > { %v6012_v13 = vpop.eup %6011  ;;  %833 = vadd.xlane.f32.xlu1 %v832_v2  ;;  %v1107_v42 = vmul.f32 %v8909_v50, %v8909_v50  ;;  %v2004_v37 = vmul.f32 0.003921569, %v1876_v53  ;;  %6019 = vrcp.f32 %v3088_v38  ;;  %v1940_v17 = vmul.f32 0.003921569, %v1812_v7  ;;  %v9055_v38 = vld [vmem:[%s7253_s9 + $0x6d8] sm:$0xff] }
 0x1ee   : > { %v6014_v56 = vpop.eup %6013  ;;  %v3619_v25 = vmul.f32 %v6012_v13, %v3363_v12  ;;  %v3618_v52 = vmul.f32 %v6012_v13, %v3362_v41  ;;  %641 = vadd.xlane.f32.xlu0 %v640_v26  ;;  %6021 = vrcp.f32 %v3152_v10  ;;  %v978_v46 = vmul.f32 %v8918_v40, %v8918_v40  ;;  %v9052_v41 = vld [vmem:[%s7253_s9 + $0x6d0] sm:$0xff]  ;;  %v6442_v13 = vld [vmem:[%s7253_s9 + $0x548] sm:$0xff] }
 0x1ef   : > { %v3747_v15 = vmul.f32 %v6014_v56, %v3491_v59  ;;  %v3746_v8 = vmul.f32 %v6014_v56, %v3490_v54  ;;  %v9018_v35 = vpop.eup %6015  ;;  %v1469_v43 = vadd.f32 %v1107_v42, %v1106_v36  ;;  %v979_v50 = vmul.f32 %v8921_v45, %v8921_v45  ;;  %v9064_v10 = vld [vmem:[%s7253_s9 + $0x2d0] sm:$0xff]  ;;  %v9067_v36 = vld [vmem:[%s7253_s9 + $0x2d8] sm:$0xff] }
 0x1f0   : > { %4078 = vmatprep.mubr.f32.mxu0 %v3619_v25  ;;  %v2768_v12 = vmul.f32 %v8946_v34, %v8821_v61  ;;  %v9027_v53 = vmul.f32 %v6010_v27, %v8870_v4  ;;  %6023 = vrsqrt.f32 %v8964_v47  ;;  %v1749_v59 = vmul.f32 %v8969_v23, %v8795_v6  ;;  %v9039_v6 = vpop.xlane.xlu1 %785 }
 0x1f1   : > { %4462 = vmatprep.mubr.f32.mxu1 %v3747_v15  ;;  %4079 = vmatmul.mubr.f32.gmra.mrb[38].mxu0 %v3618_v52  ;;  %v9032_v40 = vpop.eup %6017  ;;  %v1685_v45 = vmul.f32 %v8972_v21, %v8814_v24  ;;  %v9036_v34 = vmax.f32 %v2004_v37, 0.0  ;;  %v1277_v27 = vadd.f32 %v979_v50, %v978_v46  ;;  %vm2321_vm4 = vcmp.eq.f32.partialorder %v8823_v33, inf  ;;  %v6444_v50 = vld [vmem:[%s7253_s9 + $0x540] sm:$0xff] }
 0x1f2   : > { %4463 = vmatmul.mubr.f32.gmra.mrb[38].mxu1 %v3746_v8  ;;  %1470 = vadd.xlane.f32.xlu1 %v1469_v43  ;;  %v9041_v7 = vmax.f32 %v1940_v17, 0.0  ;;  %v9044_v2 = vmul.f32 0.00390625, %v8879_v39  ;;  %v9047_v60 = vmul.f32 0.00390625, %v8894_v44  ;;  %v2322_v24 = vsel %vm2321_vm4, %v8823_v33, %v8962_v58  ;;  %v9069_v58 = vpop.xlane.xlu0 %593  ;;  %v6443_v8 = vld [vmem:[%s7253_s9 + $0x140] sm:$0xff] }
 0x1f3   : > { %v3365_v26 = vsub.f32 %v6441_v0, %v8594_v51  ;;  %v3493_v14 = vsub.f32 %v6442_v13, %v8591_v3  ;;  %1278 = vadd.xlane.f32.xlu0 %v1277_v27  ;;  %v2324_v54 = vand.u32 2147483648, %v8823_v33  ;;  %vm2769_vm5 = vcmp.eq.f32.partialorder %v8821_v61, inf }
 0x1f4   : > { %v1877_v42 = vsub.f32 %v8930_v9, %v1749_v59  ;;  %vm2323_vm6 = vcmp.eq.f32.partialorder %v8823_v33, 0.0  ;;  %v2770_v56 = vsel %vm2769_vm5, %v8821_v61, %v2768_v12  ;;  %v2772_v25 = vand.u32 2147483648, %v8821_v61 }
 0x1f5   : > { %v1813_v52 = vsub.f32 %v8942_v57, %v1685_v45  ;;  %v2325_v37 = vsel %vm2323_vm6, %v2324_v54, %v2322_v24  ;;  %vm2771_vm7 = vcmp.eq.f32.partialorder %v8821_v61, 0.0  ;;  %v835_v15 = vadd.f32 %v9055_v38, %v9052_v41  ;;  %v9089_v45 = vpop.xlane.xlu1 %1422 }
 0x1f6   : > { %v3364_v17 = vsub.f32 %v6443_v8, %v8594_v51  ;;  %v3089_v43 = vadd.f32 1e-06, %v2325_v37  ;;  %v2773_v46 = vsel %vm2771_vm7, %v2772_v25, %v2770_v56  ;;  %v643_v33 = vadd.f32 %v9067_v36, %v9064_v10 }
 0x1f7   : > { %v6020_v9 = vpop.eup %6019  ;;  %v3492_v12 = vsub.f32 %v6444_v50, %v8591_v3  ;;  %v3153_v59 = vadd.f32 1e-06, %v2773_v46  ;;  %836 = vadd.xlane.f32.xlu1 %v835_v15  ;;  %v1108_v61 = vmul.f32 %v8977_v18, %v8977_v18  ;;  %v1109_v57 = vmul.f32 %v8980_v19, %v8980_v19  ;;  %v9091_v3 = vpop.xlane.xlu0 %1230  ;;  %v9122_v15 = vld [vmem:[%s7253_s9 + $0x6e0] sm:$0xff]  ;;  %v6446_v46 = vld [vmem:[%s7253_s9 + $0x558] sm:$0xff] }
 0x1f8   : > { %v6022_v51 = vpop.eup %6021  ;;  %v3621_v27 = vmul.f32 %v6020_v9, %v3365_v26  ;;  %v3620_v24 = vmul.f32 %v6020_v9, %v3364_v17  ;;  %v2005_v0 = vmul.f32 0.003921569, %v1877_v42  ;;  %6025 = vrcp.f32 %v3089_v43  ;;  %644 = vadd.xlane.f32.xlu0 %v643_v33  ;;  %v6445_v17 = vld [vmem:[%s7253_s9 + $0x158] sm:$0xff]  ;;  %v9136_v50 = vld [vmem:[%s7253_s9 + $0x2e0] sm:$0xff] }
 0x1f9   : > { %v3749_v13 = vmul.f32 %v6022_v51, %v3493_v14  ;;  %v3748_v54 = vmul.f32 %v6022_v51, %v3492_v12  ;;  %v1941_v56 = vmul.f32 0.003921569, %v1813_v52  ;;  %6027 = vrcp.f32 %v3153_v59  ;;  %v9127_v8 = vpop.xlane.xlu1 %788  ;;  %v6447_v12 = vld [vmem:[%s7253_s9 + $0x150] sm:$0xff] }
 0x1fa   : > { %v9093_v25 = vpop.eup %6023  ;;  %6029 = vrsqrt.f32 %v9041_v7  ;;  %4084 = vmatprep.mubr.f32.mxu0 %v3621_v27  ;;  %v1472_v18 = vadd.f32 %v1109_v57, %v1108_v61  ;;  %v980_v19 = vmul.f32 %v8991_v28, %v8991_v28  ;;  %v981_v26 = vmul.f32 %v8994_v49, %v8994_v49 }
 0x1fb   : > { %v2775_v14 = vmul.f32 %v9018_v35, %v8889_v32  ;;  %v9104_v42 = vmul.f32 %v9032_v40, %v8944_v62  ;;  %6031 = vrsqrt.f32 %v9036_v34  ;;  %4468 = vmatprep.mubr.f32.mxu1 %v3749_v13  ;;  %4085 = vmatmul.mubr.f32.gmra.mrb[40].mxu0 %v3620_v24  ;;  %v1750_v28 = vmul.f32 %v9044_v2, %v8879_v39  ;;  %v9146_v51 = vpop.xlane.xlu0 %596 }
 0x1fc   : > { %v1686_v49 = vmul.f32 %v9047_v60, %v8894_v44  ;;  %4469 = vmatmul.mubr.f32.gmra.mrb[40].mxu1 %v3748_v54  ;;  %1473 = vadd.xlane.f32.xlu1 %v1472_v18  ;;  %v1280_v35 = vadd.f32 %v981_v26, %v980_v19  ;;  %vm2328_vm8 = vcmp.eq.f32.partialorder %v8870_v4, inf  ;;  %v9112_v40 = vmax.f32 %v2005_v0, 0.0  ;;  %v9125_v44 = vld [vmem:[%s7253_s9 + $0x6e8] sm:$0xff]  ;;  %v6448_v18 = vld [vmem:[%s7253_s9 + $0x550] sm:$0xff] }
 0x1fd   : > { %v9114_v52 = vmax.f32 %v1941_v56, 0.0  ;;  %v9117_v37 = vmul.f32 0.00390625, %v8959_v55  ;;  %v2329_v39 = vsel %vm2328_vm8, %v8870_v4, %v9027_v53  ;;  %v3367_v43 = vsub.f32 %v6445_v17, %v8672_v16  ;;  %v9139_v53 = vld [vmem:[%s7253_s9 + $0x2e8] sm:$0xff] }
 0x1fe   : > { %v3495_v33 = vsub.f32 %v6446_v46, %v8664_v11  ;;  %1281 = vadd.xlane.f32.xlu0 %v1280_v35  ;;  %v2331_v9 = vand.u32 2147483648, %v8870_v4  ;;  %vm2776_vm9 = vcmp.eq.f32.partialorder %v8889_v32, inf  ;;  %v3366_v59 = vsub.f32 %v6447_v12, %v8672_v16  ;;  %v9164_v35 = vpop.xlane.xlu1 %1425 }
 0x1ff   : > { %13331 = vst [vmem:[#allocation12_spill] sm:$0xff] %v9117_v37  ;;  %vm2330_vm10 = vcmp.eq.f32.partialorder %v8870_v4, 0.0  ;;  %v2777_v61 = vsel %vm2776_vm9, %v8889_v32, %v2775_v14  ;;  %v2779_v57 = vand.u32 2147483648, %v8889_v32  ;;  %v1878_v27 = vsub.f32 %v9008_v31, %v1750_v28 }
 0x200   : > { %v2332_v24 = vsel %vm2330_vm10, %v2331_v9, %v2329_v39  ;;  %vm2778_vm11 = vcmp.eq.f32.partialorder %v8889_v32, 0.0  ;;  %v838_v0 = vadd.f32 %v9125_v44, %v9122_v15  ;;  %v1814_v13 = vsub.f32 %v9016_v30, %v1686_v49 }
 0x201   : > { %v3090_v54 = vadd.f32 1e-06, %v2332_v24  ;;  %v2780_v16 = vsel %vm2778_vm11, %v2779_v57, %v2777_v61  ;;  %v646_v4 = vadd.f32 %v9139_v53, %v9136_v50  ;;  %v3494_v19 = vsub.f32 %v6448_v18, %v8664_v11  ;;  %v9193_v24 = vld [vmem:[%s7253_s9 + $0x6f0] sm:$0xff] }
 0x202   : > { %v6026_v56 = vpop.eup %6025  ;;  %v3154_v26 = vadd.f32 1e-06, %v2780_v16  ;;  %839 = vadd.xlane.f32.xlu1 %v838_v0  ;;  %v1110_v31 = vmul.f32 %v9052_v41, %v9052_v41  ;;  %v1111_v32 = vmul.f32 %v9055_v38, %v9055_v38  ;;  %v9162_v30 = vmul.f32 0.00390625, %v8982_v29  ;;  %v9196_v0 = vld [vmem:[%s7253_s9 + $0x6f8] sm:$0xff]  ;;  %v6449_v16 = vld [vmem:[%s7253_s9 + $0x168] sm:$0xff] }
 0x203   : > { %v6028_v14 = vpop.eup %6027  ;;  %v3623_v28 = vmul.f32 %v6026_v56, %v3367_v43  ;;  %v3622_v49 = vmul.f32 %v6026_v56, %v3366_v59  ;;  %6033 = vrcp.f32 %v3090_v54  ;;  %647 = vadd.xlane.f32.xlu0 %v646_v4  ;;  %v2006_v46 = vmul.f32 0.003921569, %v1878_v27  ;;  %v9172_v59 = vpop.xlane.xlu0 %1233  ;;  %v9207_v4 = vld [vmem:[%s7253_s9 + $0x2f0] sm:$0xff] }
 0x204   : > { %v6030_v39 = vpop.eup %6029  ;;  %v3751_v11 = vmul.f32 %v6028_v14, %v3495_v33  ;;  %v3750_v17 = vmul.f32 %v6028_v14, %v3494_v19  ;;  %6035 = vrcp.f32 %v3154_v26  ;;  %v1942_v41 = vmul.f32 0.003921569, %v1814_v13  ;;  %v9212_v56 = vpop.xlane.xlu1 %791  ;;  %v6450_v19 = vld [vmem:[%s7253_s9 + $0x568] sm:$0xff] }
 0x205   : > { %v9166_v9 = vpop.eup %6031  ;;  %4090 = vmatprep.mubr.f32.mxu0 %v3623_v28  ;;  %v1475_v38 = vadd.f32 %v1111_v32, %v1110_v31  ;;  %v982_v12 = vmul.f32 %v9064_v10, %v9064_v10  ;;  %v983_v43 = vmul.f32 %v9067_v36, %v9067_v36  ;;  %v2782_v33 = vmul.f32 %v9093_v25, %v8964_v47 }
 0x206   : > { %6037 = vrsqrt.f32 %v9114_v52  ;;  %4474 = vmatprep.mubr.f32.mxu1 %v3751_v11  ;;  %4091 = vmatmul.mubr.f32.gmra.mrb[42].mxu0 %v3622_v49  ;;  %v9178_v61 = vmul.f32 %v6030_v39, %v9041_v7  ;;  %vm2335_vm12 = vcmp.eq.f32.partialorder %v8944_v62, inf  ;;  %v1751_v36 = vmul.f32 %v9117_v37, %v8959_v55  ;;  %v6451_v49 = vld [vmem:[%s7253_s9 + $0x160] sm:$0xff] }
 0x207   : > { %6039 = vrsqrt.f32 %v9112_v40  ;;  %4475 = vmatmul.mubr.f32.gmra.mrb[42].mxu1 %v3750_v17  ;;  %1476 = vadd.xlane.f32.xlu1 %v1475_v38  ;;  %v1283_v10 = vadd.f32 %v983_v43, %v982_v12  ;;  %v9186_v25 = vmul.f32 %v9162_v30, %v8982_v29  ;;  %v9188_v57 = vmax.f32 %v2006_v46, 0.0  ;;  %v9198_v13 = vpop.f32.mrb[0].mxu1  ;;  %v9230_v46 = vpop.xlane.xlu0 %599 }
 0x208   : > { %v2336_v27 = vsel %vm2335_vm12, %v8944_v62, %v9104_v42  ;;  %v9200_v54 = vmax.f32 %v1942_v41, 0.0  ;;  %v3369_v55 = vsub.f32 %v6449_v16, %v8749_v1  ;;  %v2338_v29 = vand.u32 2147483648, %v8944_v62  ;;  %v9210_v42 = vld [vmem:[%s7253_s9 + $0x2f8] sm:$0xff]  ;;  %v9214_v18 = vpop.f32.mrb[0].mxu0  ;;  %v9223_v28 = vpop.f32.mrb[1].mxu1 }
 0x209   : > { %1284 = vadd.xlane.f32.xlu0 %v1283_v10  ;;  %vm2783_vm13 = vcmp.eq.f32.partialorder %v8964_v47, inf  ;;  %v3497_v26 = vsub.f32 %v6450_v19, %v8744_v48  ;;  %vm2337_vm14 = vcmp.eq.f32.partialorder %v8944_v62, 0.0  ;;  %v2786_v32 = vand.u32 2147483648, %v8964_v47  ;;  %v9221_v14 = vpop.f32.mrb[1].mxu0 }
 0x20a   : > { %v2784_v31 = vsel %vm2783_vm13, %v8964_v47, %v2782_v33  ;;  %v3368_v39 = vsub.f32 %v6451_v49, %v8749_v1  ;;  %v2339_v11 = vsel %vm2337_vm14, %v2338_v29, %v2336_v27  ;;  %vm2785_vm15 = vcmp.eq.f32.partialorder %v8964_v47, 0.0  ;;  %v6452_v33 = vld [vmem:[%s7253_s9 + $0x560] sm:$0xff] }
 0x20b   : > { %v841_v17 = vadd.f32 %v9196_v0, %v9193_v24  ;;  %v1879_v62 = vsub.f32 %v9089_v45, %v1751_v36  ;;  %v3091_v41 = vadd.f32 1e-06, %v2339_v11  ;;  %v2787_v38 = vsel %vm2785_vm15, %v2786_v32, %v2784_v31 }
 0x20c   : > { %v649_v12 = vadd.f32 %v9210_v42, %v9207_v4  ;;  %v3496_v10 = vsub.f32 %v6452_v33, %v8744_v48  ;;  %v3155_v1 = vadd.f32 1e-06, %v2787_v38  ;;  %v1112_v47 = vmul.f32 %v9122_v15, %v9122_v15  ;;  %v9285_v33 = vld [vmem:[%s7253_s9 + $0x708] sm:$0xff] }
 0x20d   : > { %v6034_v43 = vpop.eup %6033  ;;  %842 = vadd.xlane.f32.xlu1 %v841_v17  ;;  %v1113_v27 = vmul.f32 %v9125_v44, %v9125_v44  ;;  %v9244_v36 = vmul.f32 0.00390625, %v9039_v6  ;;  %6041 = vrcp.f32 %v3091_v41  ;;  %v1815_v15 = vsub.f32 %v9091_v3, %v9186_v25  ;;  %v9258_v41 = vpop.xlane.xlu1 %1428 }
 0x20e   : > { %v9241_v16 = vpop.f32.mrb[2].mxu0  ;;  %v6036_v45 = vpop.eup %6035  ;;  %v3625_v29 = vmul.f32 %v6034_v43, %v3369_v55  ;;  %v3624_v19 = vmul.f32 %v6034_v43, %v3368_v39  ;;  %650 = vadd.xlane.f32.xlu0 %v649_v12  ;;  %6043 = vrcp.f32 %v3155_v1  ;;  %v2007_v17 = vmul.f32 0.003921569, %v1879_v62  ;;  %v9282_v43 = vld [vmem:[%s7253_s9 + $0x700] sm:$0xff] }
 0x20f   : > { %13332 = vst [vmem:[#allocation13_spill] sm:$0xff] %v9244_v36  ;;  %v9246_v31 = vpop.f32.mrb[2].mxu1  ;;  %v9248_v48 = vpop.f32.mrb[3].mxu0  ;;  %v3753_v32 = vmul.f32 %v6036_v45, %v3497_v26  ;;  %v3752_v49 = vmul.f32 %v6036_v45, %v3496_v10  ;;  %v1478_v38 = vadd.f32 %v1113_v27, %v1112_v47  ;;  %v984_v55 = vmul.f32 %v9136_v50, %v9136_v50  ;;  %v9288_v10 = vld [vmem:[%s7253_s9 + $0x300] sm:$0xff]  ;;  %v6453_v45 = vld [vmem:[%s7253_s9 + $0x178] sm:$0xff] }
 0x210   : > { %v9252_v44 = vpop.f32.mrb[3].mxu1  ;;  %v6038_v11 = vpop.eup %6037  ;;  %4096 = vmatprep.mubr.f32.mxu0 %v3625_v29  ;;  %v985_v39 = vmul.f32 %v9139_v53, %v9139_v53  ;;  %v2789_v3 = vmul.f32 %v9166_v9, %v9036_v34  ;;  %6045 = vrsqrt.f32 %v9200_v54  ;;  %v9268_v50 = vmul.f32 0.00390625, %v9069_v58 }
 0x211   : > { %v9260_v26 = vpop.eup %6039  ;;  %4480 = vmatprep.mubr.f32.mxu1 %v3753_v32  ;;  %4097 = vmatmul.mubr.f32.gmra.mrb[44].mxu0 %v3624_v19  ;;  %v9265_v25 = vpop.xlane.xlu0 %1236  ;;  %vm2342_vm0 = vcmp.eq.f32.partialorder %v9041_v7, inf  ;;  %v9272_v62 = vmul.f32 %v6038_v11, %v9114_v52  ;;  %6047 = vrsqrt.f32 %v9188_v57  ;;  %v9277_v9 = vmul.f32 %v9244_v36, %v9039_v6  ;;  %v9295_v6 = vld [vmem:[%s7253_s9 + $0x308] sm:$0xff] }
 0x212   : > { %4481 = vmatmul.mubr.f32.gmra.mrb[44].mxu1 %v3752_v49  ;;  %1479 = vadd.xlane.f32.xlu1 %v1478_v38  ;;  %v1286_v53 = vadd.f32 %v985_v39, %v984_v55  ;;  %v2343_v12 = vsel %vm2342_vm0, %v9041_v7, %v9178_v61  ;;  %v9290_v1 = vmax.f32 %v2007_v17, 0.0  ;;  %v1943_v47 = vmul.f32 0.003921569, %v1815_v15  ;;  %v6454_v49 = vld [vmem:[%s7253_s9 + $0x578] sm:$0xff]  ;;  %v9309_v38 = vpop.xlane.xlu1 %794 }
 0x213   : > { %v2345_v27 = vand.u32 2147483648, %v9041_v7  ;;  %vm2790_vm1 = vcmp.eq.f32.partialorder %v9036_v34, inf  ;;  %v3371_v61 = vsub.f32 %v6453_v45, %v8793_v20  ;;  %vm2344_vm2 = vcmp.eq.f32.partialorder %v9041_v7, 0.0  ;;  %v6455_v7 = vld [vmem:[%s7253_s9 + $0x170] sm:$0xff] }
 0x214   : > { %1287 = vadd.xlane.f32.xlu0 %v1286_v53  ;;  %v2791_v29 = vsel %vm2790_vm1, %v9036_v34, %v2789_v3  ;;  %v2793_v19 = vand.u32 2147483648, %v9036_v34  ;;  %v3499_v15 = vsub.f32 %v6454_v49, %v8817_v63  ;;  %vm2792_vm3 = vcmp.eq.f32.partialorder %v9036_v34, 0.0 }
 0x215   : > { %v2346_v11 = vsel %vm2344_vm2, %v2345_v27, %v2343_v12  ;;  %v844_v17 = vadd.f32 %v9285_v33, %v9282_v43  ;;  %v3370_v39 = vsub.f32 %v6455_v7, %v8793_v20  ;;  %v652_v45 = vadd.f32 %v9295_v6, %v9288_v10  ;;  %v9317_v36 = vpop.xlane.xlu0 %602  ;;  %v6456_v27 = vld [vmem:[%s7253_s9 + $0x570] sm:$0xff] }
 0x216   : > { %v3092_v3 = vadd.f32 1e-06, %v2346_v11  ;;  %v2794_v53 = vsel %vm2792_vm3, %v2793_v19, %v2791_v29  ;;  %v3498_v49 = vsub.f32 %v6456_v27, %v8817_v63  ;;  %v1115_v20 = vmul.f32 %v9196_v0, %v9196_v0 }
 0x217   : > { %v9302_v32 = vpop.f32.mrb[4].mxu1  ;;  %v6042_v34 = vpop.eup %6041  ;;  %845 = vadd.xlane.f32.xlu1 %v844_v17  ;;  %v9329_v11 = vmax.f32 %v1943_v47, 0.0  ;;  %v986_v47 = vmul.f32 %v9207_v4, %v9207_v4  ;;  %v9350_v4 = vmul.f32 0.00390625, %v9146_v51  ;;  %vm2349_vm4 = vcmp.eq.f32.partialorder %v9114_v52, inf }
 0x218   : > { %13333 = vst [vmem:[#allocation14_spill] sm:$0xff] %v9302_v32  ;;  %v9311_v55 = vpop.f32.mrb[5].mxu1  ;;  %v3156_v32 = vadd.f32 1e-06, %v2794_v53  ;;  %v6044_v19 = vpop.eup %6043  ;;  %v3627_v7 = vmul.f32 %v6042_v34, %v3371_v61  ;;  %v3626_v37 = vmul.f32 %v6042_v34, %v3370_v39  ;;  %6049 = vrcp.f32 %v3092_v3  ;;  %653 = vadd.xlane.f32.xlu0 %v652_v45  ;;  %v9368_v3 = vld [vmem:[%s7253_s9 + $0x710] sm:$0xff]  ;;  %v9371_v45 = vld [vmem:[%s7253_s9 + $0x718] sm:$0xff] }
 0x219   : > { %13334 = vst [vmem:[#allocation49_spill] sm:$0xff] %v9311_v55  ;;  %v1114_v55 = vmul.f32 %v9193_v24, %v9193_v24  ;;  %v3755_v63 = vmul.f32 %v6044_v19, %v3499_v15  ;;  %v3754_v17 = vmul.f32 %v6044_v19, %v3498_v49  ;;  %v1880_v24 = vsub.f32 %v9164_v35, %v9277_v9  ;;  %v9374_v34 = vld [vmem:[%s7253_s9 + $0x310] sm:$0xff] }
 0x21a   : > { %v9319_v12 = vpop.f32.mrb[4].mxu0  ;;  %6051 = vrcp.f32 %v3156_v32  ;;  %v6046_v53 = vpop.eup %6045  ;;  %4102 = vmatprep.mubr.f32.mxu0 %v3627_v7  ;;  %v987_v61 = vmul.f32 %v9210_v42, %v9210_v42  ;;  %v2796_v39 = vmul.f32 %v9260_v26, %v9112_v40  ;;  %v1688_v15 = vmul.f32 %v9268_v50, %v9069_v58 }
 0x21b   : > { %13335 = vst [vmem:[#allocation15_spill] sm:$0xff] %v9319_v12  ;;  %v9327_v29 = vpop.f32.mrb[5].mxu0  ;;  %v9332_v12 = vmul.f32 0.00390625, %v9127_v8  ;;  %v1481_v0 = vadd.f32 %v1115_v20, %v1114_v55  ;;  %4486 = vmatprep.mubr.f32.mxu1 %v3755_v63  ;;  %4103 = vmatmul.mubr.f32.gmra.mrb[46].mxu0 %v3626_v37  ;;  %v9344_v32 = vpop.xlane.xlu1 %1431  ;;  %6053 = vrsqrt.f32 %v9290_v1  ;;  %v9358_v26 = vmul.f32 %v6046_v53, %v9200_v54  ;;  %v6457_v63 = vld [vmem:[%s7253_s9 + $0x188] sm:$0xff] }
 0x21c   : > { %v9346_v35 = vpop.eup %6047  ;;  %4487 = vmatmul.mubr.f32.gmra.mrb[46].mxu1 %v3754_v17  ;;  %v1289_v42 = vadd.f32 %v987_v61, %v986_v47  ;;  %v9353_v58 = vpop.xlane.xlu0 %1239  ;;  %6055 = vrsqrt.f32 %v9329_v11  ;;  %v2350_v55 = vsel %vm2349_vm4, %v9114_v52, %v9272_v62  ;;  %v2008_v20 = vmul.f32 0.003921569, %v1880_v24  ;;  %v9384_v62 = vld [vmem:[%s7253_s9 + $0x318] sm:$0xff]  ;;  %v6458_v24 = vld [vmem:[%s7253_s9 + $0x588] sm:$0xff] }
 0x21d   : > { %13336 = vst [vmem:[#allocation48_spill] sm:$0xff] %v9332_v12  ;;  %1482 = vadd.xlane.f32.xlu1 %v1481_v0  ;;  %v9363_v9 = vmul.f32 %v9332_v12, %v9127_v8  ;;  %v1816_v19 = vsub.f32 %v9172_v59, %v1688_v15  ;;  %v2352_v8 = vand.u32 2147483648, %v9114_v52  ;;  %vm2797_vm5 = vcmp.eq.f32.partialorder %v9112_v40, inf  ;;  %v6459_v15 = vld [vmem:[%s7253_s9 + $0x180] sm:$0xff] }
 0x21e   : > { %1290 = vadd.xlane.f32.xlu0 %v1289_v42  ;;  %v3373_v17 = vsub.f32 %v6457_v63, %v8901_v5  ;;  %vm2351_vm6 = vcmp.eq.f32.partialorder %v9114_v52, 0.0  ;;  %v2798_v53 = vsel %vm2797_vm5, %v9112_v40, %v2796_v39  ;;  %v2800_v59 = vand.u32 2147483648, %v9112_v40 }
 0x21f   : > { %v3501_v0 = vsub.f32 %v6458_v24, %v8898_v22  ;;  %v2353_v47 = vsel %vm2351_vm6, %v2352_v8, %v2350_v55  ;;  %vm2799_vm7 = vcmp.eq.f32.partialorder %v9112_v40, 0.0  ;;  %v847_v61 = vadd.f32 %v9371_v45, %v9368_v3  ;;  %v9402_v39 = vpop.xlane.xlu1 %797 }
 0x220   : > { %v9355_v37 = vpop.f32.mrb[6].mxu1  ;;  %v3372_v42 = vsub.f32 %v6459_v15, %v8901_v5  ;;  %v3093_v63 = vadd.f32 1e-06, %v2353_v47  ;;  %v2801_v12 = vsel %vm2799_vm7, %v2800_v59, %v2798_v53  ;;  %v655_v52 = vadd.f32 %v9384_v62, %v9374_v34  ;;  %v9410_v15 = vpop.xlane.xlu0 %605 }
 0x221   : > { %13337 = vst [vmem:[#allocation16_spill] sm:$0xff] %v9355_v37  ;;  %v9376_v27 = vpop.f32.mrb[6].mxu0  ;;  %v9378_v49 = vpop.f32.mrb[7].mxu1  ;;  %v3157_v55 = vadd.f32 1e-06, %v2801_v12  ;;  %848 = vadd.xlane.f32.xlu1 %v847_v61  ;;  %v1116_v40 = vmul.f32 %v9282_v43, %v9282_v43  ;;  %v1117_v8 = vmul.f32 %v9285_v33, %v9285_v33  ;;  %v9413_v37 = vmul.f32 0.00390625, %v9212_v56 }
 0x222   : > { %13338 = vst [vmem:[#allocation17_spill] sm:$0xff] %v9378_v49  ;;  %v9386_v7 = vpop.f32.mrb[7].mxu0  ;;  %v6050_v49 = vpop.eup %6049  ;;  %v1944_v47 = vmul.f32 0.003921569, %v1816_v19  ;;  %6057 = vrcp.f32 %v3093_v63  ;;  %656 = vadd.xlane.f32.xlu0 %v655_v52  ;;  %v1881_v43 = vsub.f32 %v9258_v41, %v9363_v9  ;;  %v989_v19 = vmul.f32 %v9295_v6, %v9295_v6 }
 0x223   : > { %13339 = vst [vmem:[#allocation18_spill] sm:$0xff] %v9386_v7  ;;  %v6460_v7 = vld [vmem:[%s7253_s9 + $0x580] sm:$0xff]  ;;  %v3629_v53 = vmul.f32 %v6050_v49, %v3373_v17  ;;  %v3628_v59 = vmul.f32 %v6050_v49, %v3372_v42  ;;  %13340 = vst [vmem:[#allocation19_spill] sm:$0xff] %v9413_v37  ;;  %6059 = vrcp.f32 %v3157_v55  ;;  %v1484_v33 = vadd.f32 %v1117_v8, %v1116_v40  ;;  %v9457_v40 = vld [vmem:[%s7253_s9 + $0x728] sm:$0xff] }
 0x224   : > { %v3500_v24 = vsub.f32 %v6460_v7, %v8898_v22  ;;  %v6052_v5 = vpop.eup %6051  ;;  %v988_v49 = vmul.f32 %v9288_v10, %v9288_v10  ;;  %v2803_v42 = vmul.f32 %v9346_v35, %v9188_v57  ;;  %v1689_v10 = vmul.f32 %v9350_v4, %v9146_v51  ;;  %v9440_v35 = vpop.xlane.xlu1 %1434  ;;  %v9454_v55 = vld [vmem:[%s7253_s9 + $0x720] sm:$0xff] }
 0x225   : > { %v3757_v22 = vmul.f32 %v6052_v5, %v3501_v0  ;;  %4108 = vmatprep.mubr.f32.mxu0 %v3629_v53  ;;  %v9427_v0 = vpop.eup %6053  ;;  %v9437_v6 = vmax.f32 %v2008_v20, 0.0  ;;  %1485 = vadd.xlane.f32.xlu1 %v1484_v33  ;;  %vm2356_vm8 = vcmp.eq.f32.partialorder %v9200_v54, inf  ;;  %v9442_v52 = vmax.f32 %v1944_v47, 0.0  ;;  %v9466_v53 = vld [vmem:[%s7253_s9 + $0x328] sm:$0xff] }
 0x226   : > { %v3756_v12 = vmul.f32 %v6052_v5, %v3500_v24  ;;  %v9415_v7 = vpop.f32.mrb[8].mxu1  ;;  %4109 = vmatmul.mubr.f32.gmra.mrb[48].mxu0 %v3628_v59  ;;  %v9433_v9 = vpop.eup %6055  ;;  %v1292_v63 = vadd.f32 %v989_v19, %v988_v49  ;;  %v9446_v24 = vmul.f32 %v9413_v37, %v9212_v56  ;;  %v9449_v51 = vmul.f32 0.00390625, %v9230_v46  ;;  %v9463_v56 = vld [vmem:[%s7253_s9 + $0x320] sm:$0xff] }
 0x227   : > { %13341 = vst [vmem:[#allocation20_spill] sm:$0xff] %v9415_v7  ;;  %v9423_v17 = vpop.f32.mrb[8].mxu0  ;;  %v9425_v61 = vpop.f32.mrb[9].mxu1  ;;  %4492 = vmatprep.mubr.f32.mxu1 %v3757_v22  ;;  %v2357_v20 = vsel %vm2356_vm8, %v9200_v54, %v9358_v26  ;;  %v2009_v8 = vmul.f32 0.003921569, %v1881_v43  ;;  %v1817_v5 = vsub.f32 %v9265_v25, %v1689_v10  ;;  %v2359_v47 = vand.u32 2147483648, %v9200_v54 }
 0x228   : > { %13342 = vst [vmem:[#allocation21_spill] sm:$0xff] %v9425_v61  ;;  %v9431_v41 = vpop.f32.mrb[9].mxu0  ;;  %4493 = vmatmul.mubr.f32.gmra.mrb[48].mxu1 %v3756_v12  ;;  %1293 = vadd.xlane.f32.xlu0 %v1292_v63  ;;  %vm2804_vm9 = vcmp.eq.f32.partialorder %v9188_v57, inf  ;;  %v9468_v59 = vpop.xlane.xlu0 %1242  ;;  %v6461_v26 = vld [vmem:[%s7253_s9 + $0x198] sm:$0xff]  ;;  %vm2358_vm10 = vcmp.eq.f32.partialorder %v9200_v54, 0.0  ;;  %v2807_v12 = vand.u32 2147483648, %v9188_v57  ;;  %v850_v19 = vadd.f32 %v9457_v40, %v9454_v55 }
 0x229   : > { %13343 = vst [vmem:[#allocation22_spill] sm:$0xff] %v9431_v41  ;;  %v3375_v22 = vsub.f32 %v6461_v26, %v8972_v21  ;;  %v2805_v25 = vsel %vm2804_vm9, %v9188_v57, %v2803_v42  ;;  %v6462_v43 = vld [vmem:[%s7253_s9 + $0x598] sm:$0xff]  ;;  %v2360_v49 = vsel %vm2358_vm10, %v2359_v47, %v2357_v20  ;;  %vm2806_vm11 = vcmp.eq.f32.partialorder %v9188_v57, 0.0  ;;  %v6463_v10 = vld [vmem:[%s7253_s9 + $0x190] sm:$0xff] }
 0x22a   : > { %v3503_v33 = vsub.f32 %v6462_v43, %v8969_v23  ;;  %v3374_v63 = vsub.f32 %v6463_v10, %v8972_v21  ;;  %v3094_v26 = vadd.f32 1e-06, %v2360_v49  ;;  %v2808_v37 = vsel %vm2806_vm11, %v2807_v12, %v2805_v25  ;;  %v6464_v41 = vld [vmem:[%s7253_s9 + $0x590] sm:$0xff]  ;;  %851 = vadd.xlane.f32.xlu1 %v850_v19  ;;  %v9492_v21 = vpop.xlane.xlu1 %800 }
 0x22b   : > { %v658_v54 = vadd.f32 %v9466_v53, %v9463_v56  ;;  %v3502_v43 = vsub.f32 %v6464_v41, %v8969_v23  ;;  %v3158_v20 = vadd.f32 1e-06, %v2808_v37  ;;  %v1118_v57 = vmul.f32 %v9368_v3, %v9368_v3 }
 0x22c   : > { %v6058_v61 = vpop.eup %6057  ;;  %v1119_v47 = vmul.f32 %v9371_v45, %v9371_v45  ;;  %v1945_v49 = vmul.f32 0.003921569, %v1817_v5  ;;  %6061 = vrcp.f32 %v3094_v26  ;;  %v1882_v3 = vsub.f32 %v9344_v32, %v9446_v24  ;;  %v9502_v45 = vpop.xlane.xlu0 %608  ;;  %v6465_v26 = vld [vmem:[%s7253_s9 + $0x1a8] sm:$0xff] }
 0x22d   : > { %v6060_v12 = vpop.eup %6059  ;;  %v3631_v10 = vmul.f32 %v6058_v61, %v3375_v22  ;;  %659 = vadd.xlane.f32.xlu0 %v658_v54  ;;  %6063 = vrcp.f32 %v3158_v20  ;;  %v991_v22 = vmul.f32 %v9384_v62, %v9384_v62  ;;  %v2362_v32 = vmul.f32 %v9433_v9, %v9329_v11  ;;  %v6466_v54 = vld [vmem:[%s7253_s9 + $0x5a8] sm:$0xff] }
 0x22e   : > { %v3759_v37 = vmul.f32 %v6060_v12, %v3503_v33  ;;  %v3758_v41 = vmul.f32 %v6060_v12, %v3502_v43  ;;  %6065 = vrsqrt.f32 %v9437_v6  ;;  %v1487_v5 = vadd.f32 %v1119_v47, %v1118_v57  ;;  %v6467_v43 = vld [vmem:[%s7253_s9 + $0x1a0] sm:$0xff] }
 0x22f   : > { %v9484_v42 = vpop.f32.mrb[10].mxu1  ;;  %4114 = vmatprep.mubr.f32.mxu0 %v3631_v10  ;;  %v2810_v33 = vmul.f32 %v9427_v0, %v9290_v1  ;;  %6067 = vrsqrt.f32 %v9442_v52  ;;  %v9516_v24 = vmul.f32 %v9449_v51, %v9230_v46  ;;  %v9520_v19 = vmax.f32 %v1945_v49, 0.0  ;;  %v6468_v12 = vld [vmem:[%s7253_s9] sm:$0xff] }
 0x230   : > { %13344 = vst [vmem:[#allocation38_spill] sm:$0xff] %v9484_v42  ;;  %v9494_v25 = vpop.f32.mrb[10].mxu0  ;;  %v3630_v42 = vmul.f32 %v6058_v61, %v3374_v63  ;;  %v9498_v23 = vpop.f32.mrb[11].mxu1  ;;  %v990_v61 = vmul.f32 %v9374_v34, %v9374_v34  ;;  %4498 = vmatprep.mubr.f32.mxu1 %v3759_v37  ;;  %v9518_v34 = vmax.f32 %v2009_v8, 0.0  ;;  %1488 = vadd.xlane.f32.xlu1 %v1487_v5  ;;  %v4991_v0 = vlaneseq  ;;  %v4989_v10 = vld [vmem:[#allocation7] sm:$0x3] }
 0x231   : > { %v9496_v7 = vpop.f32.mrb[11].mxu0  ;;  %13345 = vst [vmem:[#allocation23_spill] sm:$0xff] %v9498_v23  ;;  %4499 = vmatmul.mubr.f32.gmra.mrb[50].mxu1 %v3758_v41  ;;  %v9522_v63 = vmul.f32 0.003921569, %v1882_v3  ;;  %v3377_v46 = vsub.f32 %v6465_v26, %v9047_v60  ;;  %v9530_v8 = vpop.xlane.xlu1 %1437  ;;  %v3376_v20 = vsub.f32 %v6467_v43, %v9047_v60  ;;  %vm2363_vm12 = vcmp.eq.f32.partialorder %v9329_v11, inf }
 0x232   : > { %4115 = vmatmul.mubr.f32.gmra.mrb[50].mxu0 %v3630_v42  ;;  %v1295_v62 = vadd.f32 %v991_v22, %v990_v61  ;;  %v3505_v42 = vsub.f32 %v6466_v54, %v9044_v2  ;;  %v4992_v57 = vshrl.u32 %v4991_v0, 7  ;;  %v2366_v47 = vand.u32 2147483648, %v9329_v11  ;;  %v9541_v41 = vpop.xlane.xlu0 %1245  ;;  %v6469_v61 = vld [vmem:[%s7253_s9 + $0x400] sm:$0xff] }
 0x233   : > { %v4733_v49 = vadd.f32 %v6468_v12, %v9214_v18  ;;  %v2364_v37 = vsel %vm2363_vm12, %v9329_v11, %v2362_v32  ;;  %vm2365_vm13 = vcmp.eq.f32.partialorder %v9329_v11, 0.0  ;;  %vm2811_vm14 = vcmp.eq.f32.partialorder %v9290_v1, inf  ;;  %v6470_v11 = vld [vmem:[%s7253_s9 + $0x5a0] sm:$0xff] }
 0x234   : > { %1296 = vadd.xlane.f32.xlu0 %v1295_v62  ;;  %v4993_v3 = vsub.s32 0, %v4992_v57  ;;  %v2367_v5 = vsel %vm2365_vm13, %v2366_v47, %v2364_v37  ;;  %v4861_v22 = vadd.f32 %v6469_v61, %v9198_v13  ;;  %v2812_v18 = vsel %vm2811_vm14, %v9290_v1, %v2810_v33  ;;  %v6471_v47 = vld [vmem:[%s7253_s9 + $0x8] sm:$0xff]  ;;  %v9561_v61 = vld [vmem:[%s7253_s9 + $0x730] sm:$0xff] }
 0x235   : > { %v3504_v62 = vsub.f32 %v6470_v11, %v9044_v2  ;;  %v3095_v0 = vadd.f32 1e-06, %v2367_v5  ;;  %vm2813_vm15 = vcmp.eq.f32.partialorder %v9290_v1, 0.0  ;;  %v2814_v26 = vand.u32 2147483648, %v9290_v1  ;;  %v6472_v33 = vld [vmem:[%s7253_s9 + $0x408] sm:$0xff]  ;;  %v9564_v2 = vld [vmem:[%s7253_s9 + $0x738] sm:$0xff] }
 0x236   : > { %v6062_v54 = vpop.eup %6061  ;;  %v9554_v43 = vrot.slane %v4989_v10, %v4993_v3  ;;  %v4734_v13 = vadd.f32 %v6471_v47, %v9221_v14  ;;  %v4997_v12 = vsub.s32 1, %v4992_v57  ;;  %v4862_v37 = vadd.f32 %v6472_v33, %v9223_v28  ;;  %v9570_v3 = vld [vmem:[%s7253_s9 + $0x338] sm:$0xff] }
 0x237   : > { %v6064_v5 = vpop.eup %6063  ;;  %v3633_v11 = vmul.f32 %v6062_v54, %v3377_v46  ;;  %v3632_v9 = vmul.f32 %v6062_v54, %v3376_v20  ;;  %6069 = vrcp.f32 %v3095_v0  ;;  %v2815_v1 = vsel %vm2813_vm15, %v2814_v26, %v2812_v18  ;;  %v9585_v54 = vpop.xlane.xlu0 %611 }
 0x238   : > { %v9543_v60 = vpop.f32.mrb[12].mxu0  ;;  %v6066_v57 = vpop.eup %6065  ;;  %v3761_v47 = vmul.f32 %v6064_v5, %v3505_v42  ;;  %v3760_v28 = vmul.f32 %v6064_v5, %v3504_v62  ;;  %v5001_v33 = vadd.f32 %v9554_v43, %v4733_v49  ;;  %v5129_v23 = vadd.f32 %v9554_v43, %v4861_v22 }
 0x239   : > { %13346 = vst [vmem:[#allocation24_spill] sm:$0xff] %v9543_v60  ;;  %v9548_v32 = vpop.f32.mrb[13].mxu0  ;;  %v9572_v60 = vpop.xlane.xlu1 %803  ;;  %6071 = vrsqrt.f32 %v9518_v34  ;;  %4120 = vmatprep.mubr.f32.mxu0 %v3633_v11  ;;  %v3159_v18 = vadd.f32 1e-06, %v2815_v1  ;;  %v9581_v0 = vrot.slane %v4989_v10, %v4997_v12  ;;  %v853_v26 = vadd.f32 %v9564_v2, %v9561_v61  ;;  %v6473_v1 = vld [vmem:[%s7253_s9 + $0x10] sm:$0xff] }
 0x23a   : > { %13347 = vst [vmem:[#allocation25_spill] sm:$0xff] %v9548_v32  ;;  %v9567_v32 = vld [vmem:[%s7253_s9 + $0x330] sm:$0xff]  ;;  %v6068_v20 = vpop.eup %6067  ;;  %6073 = vrsqrt.f32 %v9520_v19  ;;  %v9589_v42 = vmul.f32 0.00390625, %v9309_v38  ;;  %v9592_v49 = vmul.f32 0.00390625, %v9317_v36  ;;  %4504 = vmatprep.mubr.f32.mxu1 %v3761_v47  ;;  %4121 = vmatmul.mubr.f32.gmra.mrb[52].mxu0 %v3632_v9  ;;  %5257 = vst [vmem:[%s9596_s20] sm:$0xff] %v5001_v33  ;;  %v9603_v22 = vmul.f32 %v6066_v57, %v9437_v6  ;;  %v6476_v33 = vld [vmem:[%s7253_s9 + $0x418] sm:$0xff] }
 0x23b   : > { %5385 = vst [vmem:[%s9596_s20 + $0x400] sm:$0xff] %v5129_v23  ;;  %v661_v10 = vadd.f32 %v9570_v3, %v9567_v32  ;;  %4505 = vmatmul.mubr.f32.gmra.mrb[52].mxu1 %v3760_v28  ;;  %6075 = vrcp.f32 %v3159_v18  ;;  %v5002_v9 = vadd.f32 %v9581_v0, %v4734_v13  ;;  %v5130_v62 = vadd.f32 %v9581_v0, %v4862_v37  ;;  %v6474_v47 = vld [vmem:[%s7253_s9 + $0x410] sm:$0xff]  ;;  %v6475_v37 = vld [vmem:[%s7253_s9 + $0x18] sm:$0xff] }
 0x23c   : > { %v9574_v14 = vpop.f32.mrb[12].mxu1  ;;  %854 = vadd.xlane.f32.xlu1 %v853_v26  ;;  %v2369_v12 = vmul.f32 %v6068_v20, %v9442_v52  ;;  %v9609_v23 = vmax.f32 %v9522_v63, 0.0  ;;  %v13348_v5 = vsub.f32 %v9353_v58, %v9516_v24  ;;  %v4735_v57 = vadd.f32 %v6473_v1, %v9241_v16 }
 0x23d   : > { %v9578_v46 = vpop.f32.mrb[13].mxu1  ;;  %662 = vadd.xlane.f32.xlu0 %v661_v10  ;;  %5258 = vst [vmem:[%s9596_s20 + $0x8] sm:$0xff] %v5002_v9  ;;  %5386 = vst [vmem:[%s9596_s20 + $0x408] sm:$0xff] %v5130_v62  ;;  %v4863_v13 = vadd.f32 %v6474_v47, %v9246_v31  ;;  %v4736_v28 = vadd.f32 %v6475_v37, %v9248_v48  ;;  %v4864_v63 = vadd.f32 %v6476_v33, %v9252_v44  ;;  %v9626_v24 = vpop.xlane.xlu1 %1440  ;;  %v6477_v62 = vld [vmem:[%s7253_s9 + $0x1b8] sm:$0xff] }
 0x23e   : > { %v1946_v11 = vmul.f32 0.003921569, %v13348_v5  ;;  %v1120_v58 = vmul.f32 %v9454_v55, %v9454_v55  ;;  %v9632_v16 = vmul.f32 %v9589_v42, %v9309_v38  ;;  %v9636_v31 = vmul.f32 %v9592_v49, %v9317_v36  ;;  %v9648_v36 = vpop.xlane.xlu0 %1248  ;;  %v6478_v5 = vld [vmem:[%s7253_s9 + $0x1b0] sm:$0xff] }
 0x23f   : > { %v5003_v48 = vadd.f32 %v9554_v43, %v4735_v57  ;;  %v1121_v44 = vmul.f32 %v9457_v40, %v9457_v40  ;;  %v5131_v18 = vadd.f32 %v9554_v43, %v4863_v13  ;;  %v5004_v26 = vadd.f32 %v9581_v0, %v4736_v28 }
 0x240   : > { %v5132_v10 = vadd.f32 %v9581_v0, %v4864_v63  ;;  %v992_v38 = vmul.f32 %v9463_v56, %v9463_v56  ;;  %v3379_v40 = vsub.f32 %v6477_v62, %v9162_v30  ;;  %v3378_v1 = vsub.f32 %v6478_v5, %v9162_v30 }
 0x241   : > { %5259 = vst [vmem:[%s9596_s20 + $0x10] sm:$0xff] %v5003_v48  ;;  %v1490_v57 = vadd.f32 %v1121_v44, %v1120_v58  ;;  %v993_v47 = vmul.f32 %v9466_v53, %v9466_v53  ;;  %v6070_v13 = vpop.eup %6069  ;;  %6077 = vrsqrt.f32 %v9609_v23  ;;  %v9660_v56 = vmax.f32 %v1946_v11, 0.0  ;;  %5387 = vst [vmem:[%s9596_s20 + $0x410] sm:$0xff] %v5131_v18  ;;  %v9673_v11 = vld [vmem:[%s7253_s9 + $0x740] sm:$0xff]  ;;  %v9676_v58 = vld [vmem:[%s7253_s9 + $0x748] sm:$0xff] }
 0x242   : > { %v9628_v20 = vpop.f32.mrb[14].mxu0  ;;  %v9663_v37 = vmul.f32 0.00390625, %v9402_v39  ;;  %5260 = vst [vmem:[%s9596_s20 + $0x18] sm:$0xff] %v5004_v26  ;;  %5388 = vst [vmem:[%s9596_s20 + $0x418] sm:$0xff] %v5132_v10  ;;  %vm2370_vm0 = vcmp.eq.f32.partialorder %v9442_v52, inf  ;;  %v3635_v28 = vmul.f32 %v6070_v13, %v3379_v40  ;;  %v3634_v53 = vmul.f32 %v6070_v13, %v3378_v1  ;;  %v6479_v18 = vld [vmem:[%s7253_s9 + $0x5b8] sm:$0xff] }
 0x243   : > { %13349 = vst [vmem:[#allocation27_spill] sm:$0xff] %v9628_v20  ;;  %v9641_v55 = vpop.f32.mrb[15].mxu0  ;;  %1491 = vadd.xlane.f32.xlu1 %v1490_v57  ;;  %v1298_v33 = vadd.f32 %v993_v47, %v992_v38  ;;  %v2371_v63 = vsel %vm2370_vm0, %v9442_v52, %v2369_v12  ;;  %v6072_v48 = vpop.eup %6071  ;;  %v1883_v44 = vsub.f32 %v9440_v35, %v9632_v16  ;;  %v13354_v26 = vld [vmem:[#allocation12_spill] sm:$0xff]  ;;  %v2373_v62 = vand.u32 2147483648, %v9442_v52  ;;  %v6480_v40 = vld [vmem:[%s7253_s9 + $0x5b0] sm:$0xff] }
 0x244   : > { %13350 = vst [vmem:[#allocation28_spill] sm:$0xff] %v9641_v55  ;;  %v9650_v9 = vpop.f32.mrb[14].mxu1  ;;  %13352 = vst [vmem:[#allocation44_spill] sm:$0xff] %v9663_v37  ;;  %v3507_v10 = vsub.f32 %v6479_v18, %v13354_v26  ;;  %vm2818_vm1 = vcmp.eq.f32.partialorder %v9437_v6, inf  ;;  %v9684_v38 = vpop.xlane.xlu1 %806  ;;  %4126 = vmatprep.mubr.f32.mxu0 %v3635_v28  ;;  %v3506_v5 = vsub.f32 %v6480_v40, %v13354_v26  ;;  %vm2372_vm2 = vcmp.eq.f32.partialorder %v9442_v52, 0.0  ;;  %v9693_v1 = vld [vmem:[%s7253_s9 + $0x340] sm:$0xff] }
 0x245   : > { %13351 = vst [vmem:[#allocation43_spill] sm:$0xff] %v9650_v9  ;;  %v9669_v30 = vpop.f32.mrb[15].mxu1  ;;  %v6074_v12 = vpop.eup %6073  ;;  %1299 = vadd.xlane.f32.xlu0 %v1298_v33  ;;  %v2819_v35 = vsel %vm2818_vm1, %v9437_v6, %v9603_v22  ;;  %v2821_v16 = vand.u32 2147483648, %v9437_v6  ;;  %v9696_v57 = vld [vmem:[%s7253_s9 + $0x348] sm:$0xff]  ;;  %v1819_v13 = vsub.f32 %v9468_v59, %v9636_v31  ;;  %4127 = vmatmul.mubr.f32.gmra.mrb[54].mxu0 %v3634_v53  ;;  %vm2820_vm3 = vcmp.eq.f32.partialorder %v9437_v6, 0.0 }
 0x246   : > { %13353 = vst [vmem:[#allocation47_spill] sm:$0xff] %v9669_v30  ;;  %v6076_v47 = vpop.eup %6075  ;;  %v2374_v28 = vsel %vm2372_vm2, %v2373_v62, %v2371_v63  ;;  %v856_v52 = vadd.f32 %v9676_v58, %v9673_v11  ;;  %v9703_v33 = vpop.xlane.xlu0 %614  ;;  %v2376_v59 = vmul.f32 %v6074_v12, %v9520_v19  ;;  %v9709_v31 = vmul.f32 0.00390625, %v9410_v15  ;;  %v13358_v62 = vld [vmem:[#allocation15_spill] sm:$0xff]  ;;  %v6483_v12 = vld [vmem:[%s7253_s9 + $0x28] sm:$0xff] }
 0x247   : > { %v3763_v22 = vmul.f32 %v6076_v47, %v3507_v10  ;;  %v3762_v18 = vmul.f32 %v6076_v47, %v3506_v5  ;;  %v3096_v26 = vadd.f32 1e-06, %v2374_v28  ;;  %v2822_v40 = vsel %vm2820_vm3, %v2821_v16, %v2819_v35  ;;  %v6481_v10 = vld [vmem:[%s7253_s9 + $0x20] sm:$0xff]  ;;  %v13359_v16 = vld [vmem:[#allocation14_spill] sm:$0xff] }
 0x248   : > { %13356 = vst [vmem:[#allocation29_spill] sm:$0xff] %v9709_v31  ;;  %v3160_v6 = vadd.f32 1e-06, %v2822_v40  ;;  %857 = vadd.xlane.f32.xlu1 %v856_v52  ;;  %v664_v53 = vadd.f32 %v9696_v57, %v9693_v1  ;;  %v4737_v5 = vadd.f32 %v6481_v10, %v13358_v62  ;;  %v6482_v35 = vld [vmem:[%s7253_s9 + $0x420] sm:$0xff]  ;;  %v4738_v28 = vadd.f32 %v6483_v12, %v9327_v29  ;;  %v6484_v52 = vld [vmem:[%s7253_s9 + $0x428] sm:$0xff] }
 0x249   : > { %4510 = vmatprep.mubr.f32.mxu1 %v3763_v22  ;;  %6079 = vrcp.f32 %v3096_v26  ;;  %v4865_v47 = vadd.f32 %v6482_v35, %v13359_v16  ;;  %v1947_v40 = vmul.f32 0.003921569, %v1819_v13  ;;  %v9723_v26 = vpop.xlane.xlu1 %1443  ;;  %v1122_v29 = vmul.f32 %v9561_v61, %v9561_v61 }
 0x24a   : > { %4511 = vmatmul.mubr.f32.gmra.mrb[54].mxu1 %v3762_v18  ;;  %6081 = vrcp.f32 %v3160_v6  ;;  %665 = vadd.xlane.f32.xlu0 %v664_v53  ;;  %v5005_v10 = vadd.f32 %v9554_v43, %v4737_v5  ;;  %v5006_v35 = vadd.f32 %v9581_v0, %v4738_v28  ;;  %v2824_v13 = vmul.f32 %v6072_v48, %v9518_v34  ;;  %v9733_v6 = vpop.xlane.xlu0 %1251 }
 0x24b   : > { %v9705_v30 = vpop.f32.mrb[16].mxu0  ;;  %v5133_v62 = vadd.f32 %v9554_v43, %v4865_v47  ;;  %6083 = vrsqrt.f32 %v9660_v56  ;;  %v1123_v61 = vmul.f32 %v9564_v2, %v9564_v2  ;;  %v994_v48 = vmul.f32 %v9567_v32, %v9567_v32 }
 0x24c   : > { %13355 = vst [vmem:[#allocation26_spill] sm:$0xff] %v9705_v30  ;;  %v9713_v63 = vpop.f32.mrb[17].mxu0  ;;  %v2011_v30 = vmul.f32 0.003921569, %v1883_v44  ;;  %v6078_v44 = vpop.eup %6077  ;;  %5261 = vst [vmem:[%s9596_s20 + $0x20] sm:$0xff] %v5005_v10  ;;  %v995_v5 = vmul.f32 %v9570_v3, %v9570_v3  ;;  %v9758_v12 = vmax.f32 %v1947_v40, 0.0 }
 0x24d   : > { %13357 = vst [vmem:[#allocation31_spill] sm:$0xff] %v9713_v63  ;;  %v13360_v63 = vld [vmem:[#allocation49_spill] sm:$0xff]  ;;  %5389 = vst [vmem:[%s9596_s20 + $0x420] sm:$0xff] %v5133_v62  ;;  %vm2377_vm4 = vcmp.eq.f32.partialorder %v9520_v19, inf  ;;  %v9763_v32 = vmul.f32 0.00390625, %v9492_v21  ;;  %v1493_v2 = vadd.f32 %v1123_v61, %v1122_v29  ;;  %v9779_v62 = vld [vmem:[%s7253_s9 + $0x758] sm:$0xff] }
 0x24e   : > { %v4866_v22 = vadd.f32 %v6484_v52, %v13360_v63  ;;  %v9739_v63 = vmul.f32 %v9663_v37, %v9402_v39  ;;  %5262 = vst [vmem:[%s9596_s20 + $0x28] sm:$0xff] %v5006_v35  ;;  %v9754_v39 = vmul.f32 %v9709_v31, %v9410_v15  ;;  %v9756_v47 = vmax.f32 %v2011_v30, 0.0  ;;  %v6485_v30 = vld [vmem:[%s7253_s9 + $0x1c8] sm:$0xff]  ;;  %v9776_v10 = vld [vmem:[%s7253_s9 + $0x750] sm:$0xff]  ;;  %v9781_v35 = vpop.xlane.xlu1 %809 }
 0x24f   : > { %v1301_v3 = vadd.f32 %v995_v5, %v994_v48  ;;  %v2378_v28 = vsel %vm2377_vm4, %v9520_v19, %v2376_v59  ;;  %v9767_v52 = vmul.f32 %v6078_v44, %v9609_v23  ;;  %v9770_v15 = vmul.f32 0.00390625, %v9502_v45  ;;  %v6486_v59 = vld [vmem:[%s7253_s9 + $0x5c8] sm:$0xff]  ;;  %1494 = vadd.xlane.f32.xlu1 %v1493_v2  ;;  %v9789_v61 = vld [vmem:[%s7253_s9 + $0x350] sm:$0xff]  ;;  %v9792_v48 = vld [vmem:[%s7253_s9 + $0x358] sm:$0xff]  ;;  %v9798_v2 = vpop.xlane.xlu0 %617 }
 0x250   : > { %v5134_v18 = vadd.f32 %v9581_v0, %v4866_v22  ;;  %v9735_v53 = vpop.f32.mrb[16].mxu1  ;;  %v3381_v40 = vsub.f32 %v6485_v30, %v9268_v50  ;;  %v2380_v22 = vand.u32 2147483648, %v9520_v19  ;;  %v13363_v29 = vld [vmem:[#allocation13_spill] sm:$0xff]  ;;  %vm2379_vm5 = vcmp.eq.f32.partialorder %v9520_v19, 0.0  ;;  %v6487_v5 = vld [vmem:[%s7253_s9 + $0x1c0] sm:$0xff] }
 0x251   : > { %13361 = vst [vmem:[#allocation32_spill] sm:$0xff] %v9735_v53  ;;  %v9750_v16 = vpop.f32.mrb[17].mxu1  ;;  %v3509_v44 = vsub.f32 %v6486_v59, %v13363_v29  ;;  %1302 = vadd.xlane.f32.xlu0 %v1301_v3  ;;  %vm2825_vm6 = vcmp.eq.f32.partialorder %v9518_v34, inf  ;;  %v3380_v30 = vsub.f32 %v6487_v5, %v9268_v50  ;;  %vm2827_vm7 = vcmp.eq.f32.partialorder %v9518_v34, 0.0  ;;  %v6488_v19 = vld [vmem:[%s7253_s9 + $0x5c0] sm:$0xff]  ;;  %v6489_v5 = vld [vmem:[%s7253_s9 + $0x30] sm:$0xff] }
 0x252   : > { %13362 = vst [vmem:[#allocation30_spill] sm:$0xff] %v9750_v16  ;;  %5390 = vst [vmem:[%s9596_s20 + $0x428] sm:$0xff] %v5134_v18  ;;  %v2828_v18 = vand.u32 2147483648, %v9518_v34  ;;  %v2381_v16 = vsel %vm2379_vm5, %v2380_v22, %v2378_v28  ;;  %v2826_v53 = vsel %vm2825_vm6, %v9518_v34, %v2824_v13  ;;  %v3508_v59 = vsub.f32 %v6488_v19, %v13363_v29 }
 0x253   : > { %v6080_v3 = vpop.eup %6079  ;;  %v3097_v55 = vadd.f32 1e-06, %v2381_v16  ;;  %v859_v20 = vadd.f32 %v9779_v62, %v9776_v10  ;;  %v667_v34 = vadd.f32 %v9792_v48, %v9789_v61  ;;  %v1884_v16 = vsub.f32 %v9530_v8, %v9739_v63  ;;  %v13365_v8 = vld [vmem:[#allocation16_spill] sm:$0xff] }
 0x254   : > { %v2829_v9 = vsel %vm2827_vm7, %v2828_v18, %v2826_v53  ;;  %v6082_v31 = vpop.eup %6081  ;;  %v3637_v50 = vmul.f32 %v6080_v3, %v3381_v40  ;;  %v3636_v28 = vmul.f32 %v6080_v3, %v3380_v30  ;;  %v4739_v30 = vadd.f32 %v6489_v5, %v9376_v27  ;;  %v6490_v3 = vld [vmem:[%s7253_s9 + $0x430] sm:$0xff] }
 0x255   : > { %v9804_v37 = vpop.f32.mrb[18].mxu0  ;;  %v3161_v13 = vadd.f32 1e-06, %v2829_v9  ;;  %v3765_v53 = vmul.f32 %v6082_v31, %v3509_v44  ;;  %v3764_v29 = vmul.f32 %v6082_v31, %v3508_v59  ;;  %6085 = vrcp.f32 %v3097_v55  ;;  %860 = vadd.xlane.f32.xlu1 %v859_v20  ;;  %v6084_v40 = vpop.eup %6083  ;;  %668 = vadd.xlane.f32.xlu0 %v667_v34  ;;  %v6491_v20 = vld [vmem:[%s7253_s9 + $0x38] sm:$0xff] }
 0x256   : > { %v9808_v22 = vpop.f32.mrb[19].mxu0  ;;  %v1820_v9 = vsub.f32 %v9541_v41, %v9754_v39  ;;  %4132 = vmatprep.mubr.f32.mxu0 %v3637_v50  ;;  %v4867_v63 = vadd.f32 %v6490_v3, %v13365_v8  ;;  %v9820_v31 = vpop.xlane.xlu1 %1446  ;;  %v13367_v44 = vld [vmem:[#allocation18_spill] sm:$0xff]  ;;  %v13368_v39 = vld [vmem:[#allocation17_spill] sm:$0xff]  ;;  %v1124_v27 = vmul.f32 %v9673_v11, %v9673_v11  ;;  %v5007_v50 = vadd.f32 %v9554_v43, %v4739_v30 }
 0x257   : > { %13364 = vst [vmem:[#allocation33_spill] sm:$0xff] %v9808_v22  ;;  %6087 = vrcp.f32 %v3161_v13  ;;  %4516 = vmatprep.mubr.f32.mxu1 %v3765_v53  ;;  %4133 = vmatmul.mubr.f32.gmra.mrb[56].mxu0 %v3636_v28  ;;  %v4740_v19 = vadd.f32 %v6491_v20, %v13367_v44  ;;  %v6492_v41 = vld [vmem:[%s7253_s9 + $0x438] sm:$0xff]  ;;  %v1125_v28 = vmul.f32 %v9676_v58, %v9676_v58  ;;  %v9835_v34 = vpop.xlane.xlu0 %1254  ;;  %v2012_v3 = vmul.f32 0.003921569, %v1884_v16 }
 0x258   : > { %v9812_v18 = vpop.f32.mrb[18].mxu1  ;;  %v4868_v59 = vadd.f32 %v6492_v41, %v13368_v39  ;;  %6089 = vrsqrt.f32 %v9756_v47  ;;  %4517 = vmatmul.mubr.f32.gmra.mrb[56].mxu1 %v3764_v29  ;;  %v5135_v13 = vadd.f32 %v9554_v43, %v4867_v63  ;;  %v2383_v53 = vmul.f32 %v6084_v40, %v9660_v56  ;;  %5263 = vst [vmem:[%s9596_s20 + $0x30] sm:$0xff] %v5007_v50  ;;  %v13371_v39 = vld [vmem:[#allocation48_spill] sm:$0xff] }
 0x259   : > { %v9822_v55 = vpop.f32.mrb[19].mxu1  ;;  %6091 = vrsqrt.f32 %v9758_v12  ;;  %v5008_v11 = vadd.f32 %v9581_v0, %v4740_v19  ;;  %v9843_v29 = vmul.f32 %v9763_v32, %v9492_v21  ;;  %v1693_v30 = vmul.f32 %v9770_v15, %v9502_v45 }
 0x25a   : > { %13366 = vst [vmem:[#allocation34_spill] sm:$0xff] %v9822_v55  ;;  %v5136_v5 = vadd.f32 %v9581_v0, %v4868_v59  ;;  %5391 = vst [vmem:[%s9596_s20 + $0x430] sm:$0xff] %v5135_v13  ;;  %v1496_v58 = vadd.f32 %v1125_v28, %v1124_v27  ;;  %v996_v40 = vmul.f32 %v9693_v1, %v9693_v1  ;;  %v1948_v8 = vmul.f32 0.003921569, %v1820_v9  ;;  %v9865_v16 = vpop.xlane.xlu1 %812  ;;  %v6495_v27 = vld [vmem:[%s7253_s9 + $0x1d0] sm:$0xff]  ;;  %v9879_v28 = vld [vmem:[%s7253_s9 + $0x760] sm:$0xff] }
 0x25b   : > { %v9852_v63 = vmul.f32 0.00390625, %v9572_v60  ;;  %5264 = vst [vmem:[%s9596_s20 + $0x38] sm:$0xff] %v5008_v11  ;;  %v997_v21 = vmul.f32 %v9696_v57, %v9696_v57  ;;  %v1885_v20 = vsub.f32 %v9626_v24, %v9843_v29  ;;  %v1821_v44 = vsub.f32 %v9648_v36, %v1693_v30  ;;  %v6493_v57 = vld [vmem:[%s7253_s9 + $0x1d8] sm:$0xff]  ;;  %v9882_v11 = vld [vmem:[%s7253_s9 + $0x768] sm:$0xff]  ;;  %v6496_v29 = vld [vmem:[%s7253_s9 + $0x5d0] sm:$0xff] }
 0x25c   : > { %5392 = vst [vmem:[%s9596_s20 + $0x438] sm:$0xff] %v5136_v5  ;;  %1497 = vadd.xlane.f32.xlu1 %v1496_v58  ;;  %vm2384_vm8 = vcmp.eq.f32.partialorder %v9660_v56, inf  ;;  %v2387_v1 = vand.u32 2147483648, %v9660_v56  ;;  %v3383_v19 = vsub.f32 %v6493_v57, %v9350_v4  ;;  %vm2386_vm9 = vcmp.eq.f32.partialorder %v9660_v56, 0.0  ;;  %v6494_v36 = vld [vmem:[%s7253_s9 + $0x5d8] sm:$0xff]  ;;  %v9884_v5 = vpop.xlane.xlu0 %620 }
 0x25d   : > { %v1304_v41 = vadd.f32 %v997_v21, %v996_v40  ;;  %v2385_v24 = vsel %vm2384_vm8, %v9660_v56, %v2383_v53  ;;  %v3511_v59 = vsub.f32 %v6494_v36, %v13371_v39  ;;  %v3382_v50 = vsub.f32 %v6495_v27, %v9350_v4  ;;  %v9894_v21 = vld [vmem:[%s7253_s9 + $0x360] sm:$0xff] }
 0x25e   : > { %v9858_v45 = vpop.f32.mrb[20].mxu0  ;;  %v2388_v13 = vsel %vm2386_vm9, %v2387_v1, %v2385_v24  ;;  %vm2832_vm10 = vcmp.eq.f32.partialorder %v9609_v23, inf  ;;  %v3510_v30 = vsub.f32 %v6496_v29, %v13371_v39  ;;  %v2835_v40 = vand.u32 2147483648, %v9609_v23  ;;  %v9897_v1 = vld [vmem:[%s7253_s9 + $0x368] sm:$0xff] }
 0x25f   : > { %13369 = vst [vmem:[#allocation36_spill] sm:$0xff] %v9858_v45  ;;  %v9867_v9 = vpop.f32.mrb[21].mxu0  ;;  %v6086_v56 = vpop.eup %6085  ;;  %1305 = vadd.xlane.f32.xlu0 %v1304_v41  ;;  %v3098_v58 = vadd.f32 1e-06, %v2388_v13  ;;  %v2833_v4 = vsel %vm2832_vm10, %v9609_v23, %v9767_v52  ;;  %v1949_v36 = vmul.f32 0.003921569, %v1821_v44  ;;  %v670_v44 = vadd.f32 %v9897_v1, %v9894_v21 }
 0x260   : > { %13370 = vst [vmem:[#allocation35_spill] sm:$0xff] %v9867_v9  ;;  %v3639_v27 = vmul.f32 %v6086_v56, %v3383_v19  ;;  %v3638_v9 = vmul.f32 %v6086_v56, %v3382_v50  ;;  %vm2834_vm11 = vcmp.eq.f32.partialorder %v9609_v23, 0.0  ;;  %v9902_v29 = vmax.f32 %v1948_v8, 0.0  ;;  %v9908_v19 = vpop.xlane.xlu1 %1449  ;;  %v6497_v8 = vld [vmem:[%s7253_s9 + $0x40] sm:$0xff]  ;;  %v13376_v45 = vld [vmem:[#allocation21_spill] sm:$0xff] }
 0x261   : > { %v9886_v53 = vpop.f32.mrb[20].mxu1  ;;  %v6088_v24 = vpop.eup %6087  ;;  %6093 = vrcp.f32 %v3098_v58  ;;  %v2836_v52 = vsel %vm2834_vm11, %v2835_v40, %v2833_v4  ;;  %v9913_v50 = vmul.f32 0.00390625, %v9585_v54  ;;  %v4741_v56 = vadd.f32 %v6497_v8, %v9423_v17  ;;  %v13374_v58 = vld [vmem:[#allocation20_spill] sm:$0xff] }
 0x262   : > { %13372 = vst [vmem:[#allocation37_spill] sm:$0xff] %v9886_v53  ;;  %v9899_v57 = vpop.f32.mrb[21].mxu1  ;;  %v3767_v39 = vmul.f32 %v6088_v24, %v3511_v59  ;;  %v3766_v41 = vmul.f32 %v6088_v24, %v3510_v30  ;;  %v6090_v13 = vpop.eup %6089  ;;  %4138 = vmatprep.mubr.f32.mxu0 %v3639_v27  ;;  %v3162_v53 = vadd.f32 1e-06, %v2836_v52  ;;  %v9910_v59 = vmax.f32 %v2012_v3, 0.0  ;;  %v6498_v30 = vld [vmem:[%s7253_s9 + $0x440] sm:$0xff] }
 0x263   : > { %13373 = vst [vmem:[#allocation40_spill] sm:$0xff] %v9899_v57  ;;  %v862_v57 = vadd.f32 %v9882_v11, %v9879_v28  ;;  %v6092_v23 = vpop.eup %6091  ;;  %4139 = vmatmul.mubr.f32.gmra.mrb[58].mxu0 %v3638_v9  ;;  %v4869_v4 = vadd.f32 %v6498_v30, %v13374_v58  ;;  %v2013_v40 = vmul.f32 0.003921569, %v1885_v20  ;;  %v6499_v24 = vld [vmem:[%s7253_s9 + $0x48] sm:$0xff]  ;;  %v13375_v27 = vld [vmem:[#allocation22_spill] sm:$0xff]  ;;  %v9927_v17 = vmax.f32 %v1949_v36, 0.0  ;;  %671 = vadd.xlane.f32.xlu0 %v670_v44 }
 0x264   : > { %4522 = vmatprep.mubr.f32.mxu1 %v3767_v39  ;;  %6095 = vrcp.f32 %v3162_v53  ;;  %v4742_v52 = vadd.f32 %v6499_v24, %v13375_v27  ;;  %v6500_v3 = vld [vmem:[%s7253_s9 + $0x448] sm:$0xff]  ;;  %v9923_v39 = vpop.xlane.xlu0 %1257  ;;  %v5009_v20 = vadd.f32 %v9554_v43, %v4741_v56  ;;  %v2838_v44 = vmul.f32 %v6090_v13, %v9756_v47  ;;  %v9961_v30 = vpop.xlane.xlu1 %815 }
 0x265   : > { %4523 = vmatmul.mubr.f32.gmra.mrb[58].mxu1 %v3766_v41  ;;  %863 = vadd.xlane.f32.xlu1 %v862_v57  ;;  %v4870_v55 = vadd.f32 %v6500_v3, %v13376_v45  ;;  %v5137_v53 = vadd.f32 %v9554_v43, %v4869_v4  ;;  %v1126_v57 = vmul.f32 %v9776_v10, %v9776_v10  ;;  %6097 = vrsqrt.f32 %v9902_v29  ;;  %v9976_v3 = vld [vmem:[%s7253_s9 + $0x770] sm:$0xff] }
 0x266   : > { %v2390_v45 = vmul.f32 %v6092_v23, %v9758_v12  ;;  %v5010_v8 = vadd.f32 %v9581_v0, %v4742_v52  ;;  %6099 = vrsqrt.f32 %v9910_v59  ;;  %5265 = vst [vmem:[%s9596_s20 + $0x40] sm:$0xff] %v5009_v20  ;;  %v1127_v10 = vmul.f32 %v9779_v62, %v9779_v62  ;;  %v9979_v20 = vld [vmem:[%s7253_s9 + $0x778] sm:$0xff] }
 0x267   : > { %v9925_v9 = vpop.f32.mrb[22].mxu0  ;;  %v5138_v36 = vadd.f32 %v9581_v0, %v4870_v55  ;;  %5393 = vst [vmem:[%s9596_s20 + $0x440] sm:$0xff] %v5137_v53  ;;  %v998_v23 = vmul.f32 %v9789_v61, %v9789_v61  ;;  %v9949_v56 = vmul.f32 %v9852_v63, %v9572_v60  ;;  %v9953_v55 = vmul.f32 %v9913_v50, %v9585_v54  ;;  %v6501_v60 = vld [vmem:[%s7253_s9 + $0x1e8] sm:$0xff] }
 0x268   : > { %13377 = vst [vmem:[#allocation42_spill] sm:$0xff] %v9925_v9  ;;  %v9933_v41 = vpop.f32.mrb[23].mxu0  ;;  %v9955_v13 = vmax.f32 %v2013_v40, 0.0  ;;  %5266 = vst [vmem:[%s9596_s20 + $0x48] sm:$0xff] %v5010_v8  ;;  %v999_v62 = vmul.f32 %v9792_v48, %v9792_v48  ;;  %6101 = vrsqrt.f32 %v9927_v17  ;;  %v3385_v58 = vsub.f32 %v6501_v60, %v9449_v51  ;;  %v6502_v40 = vld [vmem:[%s7253_s9 + $0x1e0] sm:$0xff]  ;;  %v9981_v53 = vpop.xlane.xlu0 %623  ;;  %v9991_v8 = vld [vmem:[%s7253_s9 + $0x378] sm:$0xff] }
 0x269   : > { %13378 = vst [vmem:[#allocation39_spill] sm:$0xff] %v9933_v41  ;;  %5394 = vst [vmem:[%s9596_s20 + $0x448] sm:$0xff] %v5138_v36  ;;  %v1499_v54 = vadd.f32 %v1127_v10, %v1126_v57  ;;  %vm2391_vm12 = vcmp.eq.f32.partialorder %v9758_v12, inf  ;;  %v3384_v24 = vsub.f32 %v6502_v40, %v9449_v51  ;;  %v2394_v52 = vand.u32 2147483648, %v9758_v12  ;;  %v6503_v60 = vld [vmem:[%s7253_s9 + $0x5e8] sm:$0xff] }
 0x26a   : > { %v1307_v48 = vadd.f32 %v999_v62, %v998_v23  ;;  %v2392_v27 = vsel %vm2391_vm12, %v9758_v12, %v2390_v45  ;;  %vm2393_vm13 = vcmp.eq.f32.partialorder %v9758_v12, 0.0  ;;  %vm2839_vm14 = vcmp.eq.f32.partialorder %v9756_v47, inf  ;;  %v9988_v45 = vld [vmem:[%s7253_s9 + $0x370] sm:$0xff]  ;;  %v6504_v12 = vld [vmem:[%s7253_s9 + $0x5e0] sm:$0xff] }
 0x26b   : > { %v9963_v61 = vpop.f32.mrb[22].mxu1  ;;  %v6094_v57 = vpop.eup %6093  ;;  %1500 = vadd.xlane.f32.xlu1 %v1499_v54  ;;  %vm2841_vm15 = vcmp.eq.f32.partialorder %v9756_v47, 0.0  ;;  %v2842_v51 = vand.u32 2147483648, %v9756_v47  ;;  %v2395_v23 = vsel %vm2393_vm13, %v2394_v52, %v2392_v27  ;;  %v2840_v62 = vsel %vm2839_vm14, %v9756_v47, %v2838_v44  ;;  %v13381_v54 = vld [vmem:[#allocation19_spill] sm:$0xff] }
 0x26c   : > { %13379 = vst [vmem:[#allocation41_spill] sm:$0xff] %v9963_v61  ;;  %v9969_v4 = vpop.f32.mrb[23].mxu1  ;;  %v3641_v36 = vmul.f32 %v6094_v57, %v3385_v58  ;;  %v3640_v10 = vmul.f32 %v6094_v57, %v3384_v24  ;;  %1308 = vadd.xlane.f32.xlu0 %v1307_v48  ;;  %v3513_v40 = vsub.f32 %v6503_v60, %v13381_v54  ;;  %v3099_v41 = vadd.f32 1e-06, %v2395_v23  ;;  %v10004_v44 = vpop.xlane.xlu1 %1452 }
 0x26d   : > { %13380 = vst [vmem:[#allocation46_spill] sm:$0xff] %v9969_v4  ;;  %v3512_v4 = vsub.f32 %v6504_v12, %v13381_v54  ;;  %v2843_v61 = vsel %vm2841_vm15, %v2842_v51, %v2840_v62  ;;  %v1822_v22 = vsub.f32 %v9733_v6, %v9953_v55  ;;  %v865_v24 = vadd.f32 %v9979_v20, %v9976_v3  ;;  %v6506_v51 = vld [vmem:[%s7253_s9 + $0x450] sm:$0xff]  ;;  %v10016_v62 = vpop.xlane.xlu0 %1260  ;;  %v6508_v54 = vld [vmem:[%s7253_s9 + $0x458] sm:$0xff] }
 0x26e   : > { %v6096_v9 = vpop.eup %6095  ;;  %4144 = vmatprep.mubr.f32.mxu0 %v3641_v36  ;;  %v3163_v58 = vadd.f32 1e-06, %v2843_v61  ;;  %v673_v47 = vadd.f32 %v9991_v8, %v9988_v45  ;;  %v10007_v48 = vmul.f32 0.00390625, %v9684_v38  ;;  %6103 = vrcp.f32 %v3099_v41  ;;  %v6505_v61 = vld [vmem:[%s7253_s9 + $0x50] sm:$0xff] }
 0x26f   : > { %v3769_v27 = vmul.f32 %v6096_v9, %v3513_v40  ;;  %4145 = vmatmul.mubr.f32.gmra.mrb[60].mxu0 %v3640_v10  ;;  %v3768_v52 = vmul.f32 %v6096_v9, %v3512_v4  ;;  %v6098_v6 = vpop.eup %6097  ;;  %v10010_v55 = vmul.f32 0.00390625, %v9703_v33  ;;  %866 = vadd.xlane.f32.xlu1 %v865_v24  ;;  %v4743_v57 = vadd.f32 %v6505_v61, %v9494_v25  ;;  %v13382_v36 = vld [vmem:[#allocation38_spill] sm:$0xff]  ;;  %v13383_v40 = vld [vmem:[#allocation23_spill] sm:$0xff] }
 0x270   : > { %6105 = vrcp.f32 %v3163_v58  ;;  %674 = vadd.xlane.f32.xlu0 %v673_v47  ;;  %v4871_v23 = vadd.f32 %v6506_v51, %v13382_v36  ;;  %v6100_v9 = vpop.eup %6099  ;;  %v1886_v41 = vsub.f32 %v9723_v26, %v9949_v56  ;;  %v6507_v4 = vld [vmem:[%s7253_s9 + $0x58] sm:$0xff]  ;;  %v4872_v25 = vadd.f32 %v6508_v54, %v13383_v40 }
 0x271   : > { %4528 = vmatprep.mubr.f32.mxu1 %v3769_v27  ;;  %v4744_v60 = vadd.f32 %v6507_v4, %v9496_v7  ;;  %v1128_v12 = vmul.f32 %v9879_v28, %v9879_v28  ;;  %v1950_v24 = vmul.f32 0.003921569, %v1822_v22  ;;  %v5011_v47 = vadd.f32 %v9554_v43, %v4743_v57  ;;  %v10044_v57 = vpop.xlane.xlu1 %818 }
 0x272   : > { %4529 = vmatmul.mubr.f32.gmra.mrb[60].mxu1 %v3768_v52  ;;  %v5139_v26 = vadd.f32 %v9554_v43, %v4871_v23  ;;  %v1129_v56 = vmul.f32 %v9882_v11, %v9882_v11  ;;  %v6102_v7 = vpop.eup %6101  ;;  %v2397_v27 = vmul.f32 %v6098_v6, %v9902_v29  ;;  %6107 = vrsqrt.f32 %v9955_v13 }
 0x273   : > { %v10018_v10 = vpop.f32.mrb[24].mxu0  ;;  %v5012_v28 = vadd.f32 %v9581_v0, %v4744_v60  ;;  %v5140_v61 = vadd.f32 %v9581_v0, %v4872_v25  ;;  %5267 = vst [vmem:[%s9596_s20 + $0x50] sm:$0xff] %v5011_v47  ;;  %v1000_v11 = vmul.f32 %v9894_v21, %v9894_v21  ;;  %v2845_v6 = vmul.f32 %v6100_v9, %v9910_v59  ;;  %v10065_v9 = vpop.xlane.xlu0 %626 }
 0x274   : > { %v10028_v58 = vpop.f32.mrb[25].mxu0  ;;  %5395 = vst [vmem:[%s9596_s20 + $0x450] sm:$0xff] %v5139_v26  ;;  %v1502_v52 = vadd.f32 %v1129_v56, %v1128_v12  ;;  %v10051_v36 = vmul.f32 %v10007_v48, %v9684_v38  ;;  %v10055_v23 = vmul.f32 %v10010_v55, %v9703_v33  ;;  %v1001_v21 = vmul.f32 %v9897_v1, %v9897_v1  ;;  %v6509_v33 = vld [vmem:[%s7253_s9 + $0x1f8] sm:$0xff]  ;;  %v6511_v12 = vld [vmem:[%s7253_s9 + $0x1f0] sm:$0xff]  ;;  %v10077_v26 = vld [vmem:[%s7253_s9 + $0x780] sm:$0xff] }
 0x275   : > { %13384 = vst [vmem:[#allocation45_spill] sm:$0xff] %v10028_v58  ;;  %5268 = vst [vmem:[%s9596_s20 + $0x58] sm:$0xff] %v5012_v28  ;;  %v2014_v4 = vmul.f32 0.003921569, %v1886_v41  ;;  %v10061_v60 = vmax.f32 %v1950_v24, 0.0  ;;  %vm2398_vm0 = vcmp.eq.f32.partialorder %v9902_v29, inf  ;;  %v3387_v54 = vsub.f32 %v6509_v33, %v9592_v49 }
 0x276   : > { %v10038_v22 = vpop.f32.mrb[24].mxu1  ;;  %5396 = vst [vmem:[%s9596_s20 + $0x458] sm:$0xff] %v5140_v61  ;;  %1503 = vadd.xlane.f32.xlu1 %v1502_v52  ;;  %v2401_v38 = vand.u32 2147483648, %v9902_v29  ;;  %v1310_v40 = vadd.f32 %v1001_v21, %v1000_v11  ;;  %v2399_v25 = vsel %vm2398_vm0, %v9902_v29, %v2397_v27  ;;  %vm2400_vm1 = vcmp.eq.f32.partialorder %v9902_v29, 0.0  ;;  %v6510_v1 = vld [vmem:[%s7253_s9 + $0x5f8] sm:$0xff]  ;;  %v6512_v28 = vld [vmem:[%s7253_s9 + $0x5f0] sm:$0xff] }
 0x277   : > { %v10046_v51 = vpop.f32.mrb[25].mxu1  ;;  %v3515_v41 = vsub.f32 %v6510_v1, %v9589_v42  ;;  %v3386_v24 = vsub.f32 %v6511_v12, %v9592_v49  ;;  %vm2846_vm2 = vcmp.eq.f32.partialorder %v9910_v59, inf  ;;  %v3514_v27 = vsub.f32 %v6512_v28, %v9589_v42  ;;  %v10084_v11 = vld [vmem:[%s7253_s9 + $0x788] sm:$0xff]  ;;  %v10087_v21 = vld [vmem:[%s7253_s9 + $0x380] sm:$0xff]  ;;  %v10095_v42 = vpop.xlane.xlu1 %1455 }
 0x278   : > { %13385 = vst [vmem:[#allocation12_spill] sm:$0xff] %v10046_v51  ;;  %v2402_v47 = vsel %vm2400_vm1, %v2401_v38, %v2399_v25  ;;  %v6104_v56 = vpop.eup %6103  ;;  %1311 = vadd.xlane.f32.xlu0 %v1310_v40  ;;  %v2847_v29 = vsel %vm2846_vm2, %v9910_v59, %v2845_v6  ;;  %v2849_v52 = vand.u32 2147483648, %v9910_v59  ;;  %v10090_v49 = vld [vmem:[%s7253_s9 + $0x388] sm:$0xff]  ;;  %v10092_v33 = vmax.f32 %v2014_v4, 0.0 }
 0x279   : > { %v3100_v61 = vadd.f32 1e-06, %v2402_v47  ;;  %v3643_v25 = vmul.f32 %v6104_v56, %v3387_v54  ;;  %v3642_v1 = vmul.f32 %v6104_v56, %v3386_v24  ;;  %vm2848_vm3 = vcmp.eq.f32.partialorder %v9910_v59, 0.0  ;;  %v10102_v24 = vpop.xlane.xlu0 %1263 }
 0x27a   : > { %v6106_v38 = vpop.eup %6105  ;;  %v2850_v12 = vsel %vm2848_vm3, %v2849_v52, %v2847_v29  ;;  %v2404_v47 = vmul.f32 %v6102_v7, %v9927_v17  ;;  %v868_v4 = vadd.f32 %v10084_v11, %v10077_v26  ;;  %v676_v54 = vadd.f32 %v10090_v49, %v10087_v21  ;;  %v6513_v7 = vld [vmem:[%s7253_s9 + $0x60] sm:$0xff] }
 0x27b   : > { %v3771_v40 = vmul.f32 %v6106_v38, %v3515_v41  ;;  %v3770_v6 = vmul.f32 %v6106_v38, %v3514_v27  ;;  %6109 = vrcp.f32 %v3100_v61  ;;  %4150 = vmatprep.mubr.f32.mxu0 %v3643_v25  ;;  %v3164_v28 = vadd.f32 1e-06, %v2850_v12  ;;  %v13387_v27 = vld [vmem:[#allocation24_spill] sm:$0xff] }
 0x27c   : > { %v6108_v41 = vpop.eup %6107  ;;  %6111 = vrsqrt.f32 %v10061_v60  ;;  %v10108_v56 = vmul.f32 0.00390625, %v9781_v35  ;;  %4151 = vmatmul.mubr.f32.gmra.mrb[62].mxu0 %v3642_v1  ;;  %v4745_v61 = vadd.f32 %v6513_v7, %v13387_v27  ;;  %v6514_v29 = vld [vmem:[%s7253_s9 + $0x460] sm:$0xff]  ;;  %v1887_v25 = vsub.f32 %v9820_v31, %v10051_v36  ;;  %869 = vadd.xlane.f32.xlu1 %v868_v4  ;;  %v6515_v12 = vld [vmem:[%s7253_s9 + $0x68] sm:$0xff] }
 0x27d   : > { %4534 = vmatprep.mubr.f32.mxu1 %v3771_v40  ;;  %v4873_v52 = vadd.f32 %v6514_v29, %v9574_v14  ;;  %6113 = vrcp.f32 %v3164_v28  ;;  %v6516_v1 = vld [vmem:[%s7253_s9 + $0x468] sm:$0xff]  ;;  %v1823_v7 = vsub.f32 %v9835_v34, %v10055_v23  ;;  %677 = vadd.xlane.f32.xlu0 %v676_v54  ;;  %v1130_v36 = vmul.f32 %v9976_v3, %v9976_v3 }
 0x27e   : > { %4535 = vmatmul.mubr.f32.gmra.mrb[62].mxu1 %v3770_v6  ;;  %v4874_v51 = vadd.f32 %v6516_v1, %v9578_v46  ;;  %v5013_v14 = vadd.f32 %v9554_v43, %v4745_v61  ;;  %v2852_v6 = vmul.f32 %v6108_v41, %v9955_v13  ;;  %v10131_v46 = vpop.xlane.xlu1 %821  ;;  %6115 = vrsqrt.f32 %v10092_v33  ;;  %v6517_v61 = vld [vmem:[%s7253_s9 + $0x208] sm:$0xff] }
 0x27f   : > { %v10104_v59 = vpop.f32.mrb[26].mxu0  ;;  %v5141_v31 = vadd.f32 %v9554_v43, %v4873_v52  ;;  %v10135_v34 = vmul.f32 0.00390625, %v9798_v2  ;;  %v1131_v23 = vmul.f32 %v9979_v20, %v9979_v20  ;;  %v1002_v3 = vmul.f32 %v9988_v45, %v9988_v45  ;;  %v10154_v20 = vpop.xlane.xlu0 %629  ;;  %v13392_v29 = vld [vmem:[#allocation29_spill] sm:$0xff] }
 0x280   : > { %13386 = vst [vmem:[#allocation15_spill] sm:$0xff] %v10104_v59  ;;  %v10114_v38 = vpop.f32.mrb[27].mxu0  ;;  %v13389_v59 = vld [vmem:[#allocation25_spill] sm:$0xff]  ;;  %v5142_v4 = vadd.f32 %v9581_v0, %v4874_v51  ;;  %5269 = vst [vmem:[%s9596_s20 + $0x60] sm:$0xff] %v5013_v14  ;;  %v10147_v51 = vmul.f32 %v10108_v56, %v9781_v35  ;;  %v1003_v41 = vmul.f32 %v9991_v8, %v9991_v8  ;;  %vm2405_vm4 = vcmp.eq.f32.partialorder %v9927_v17, inf }
 0x281   : > { %13388 = vst [vmem:[#allocation14_spill] sm:$0xff] %v10114_v38  ;;  %v4746_v40 = vadd.f32 %v6515_v12, %v13389_v59  ;;  %5397 = vst [vmem:[%s9596_s20 + $0x460] sm:$0xff] %v5141_v31  ;;  %v2015_v59 = vmul.f32 0.003921569, %v1887_v25  ;;  %v1951_v27 = vmul.f32 0.003921569, %v1823_v7  ;;  %v3389_v35 = vsub.f32 %v6517_v61, %v13392_v29 }
 0x282   : > { %5398 = vst [vmem:[%s9596_s20 + $0x468] sm:$0xff] %v5142_v4  ;;  %v1505_v52 = vadd.f32 %v1131_v23, %v1130_v36  ;;  %v2406_v25 = vsel %vm2405_vm4, %v9927_v17, %v2404_v47  ;;  %v6518_v12 = vld [vmem:[%s7253_s9 + $0x200] sm:$0xff]  ;;  %v1313_v8 = vadd.f32 %v1003_v41, %v1002_v3  ;;  %v2408_v1 = vand.u32 2147483648, %v9927_v17  ;;  %v10166_v14 = vld [vmem:[%s7253_s9 + $0x790] sm:$0xff]  ;;  %v10169_v31 = vld [vmem:[%s7253_s9 + $0x798] sm:$0xff] }
 0x283   : > { %v5014_v28 = vadd.f32 %v9581_v0, %v4746_v40  ;;  %v3388_v40 = vsub.f32 %v6518_v12, %v13392_v29  ;;  %vm2853_vm5 = vcmp.eq.f32.partialorder %v9955_v13, inf  ;;  %v13393_v36 = vld [vmem:[#allocation44_spill] sm:$0xff]  ;;  %vm2407_vm6 = vcmp.eq.f32.partialorder %v9927_v17, 0.0  ;;  %v10177_v3 = vld [vmem:[%s7253_s9 + $0x390] sm:$0xff]  ;;  %v10180_v41 = vld [vmem:[%s7253_s9 + $0x398] sm:$0xff] }
 0x284   : > { %v10143_v54 = vpop.f32.mrb[26].mxu1  ;;  %1506 = vadd.xlane.f32.xlu1 %v1505_v52  ;;  %v2854_v47 = vsel %vm2853_vm5, %v9955_v13, %v2852_v6  ;;  %v2856_v23 = vand.u32 2147483648, %v9955_v13  ;;  %1314 = vadd.xlane.f32.xlu0 %v1313_v8  ;;  %v2409_v12 = vsel %vm2407_vm6, %v2408_v1, %v2406_v25  ;;  %vm2855_vm7 = vcmp.eq.f32.partialorder %v9955_v13, 0.0  ;;  %v6520_v52 = vld [vmem:[%s7253_s9 + $0x600] sm:$0xff]  ;;  %v10195_v8 = vpop.xlane.xlu0 %1266 }
 0x285   : > { %13390 = vst [vmem:[#allocation49_spill] sm:$0xff] %v10143_v54  ;;  %5270 = vst [vmem:[%s9596_s20 + $0x68] sm:$0xff] %v5014_v28  ;;  %v10156_v45 = vpop.f32.mrb[27].mxu1  ;;  %v6110_v7 = vpop.eup %6109  ;;  %v6519_v28 = vld [vmem:[%s7253_s9 + $0x608] sm:$0xff]  ;;  %v3516_v17 = vsub.f32 %v6520_v52, %v13393_v36  ;;  %v3101_v6 = vadd.f32 1e-06, %v2409_v12  ;;  %v871_v54 = vadd.f32 %v10169_v31, %v10166_v14  ;;  %v679_v25 = vadd.f32 %v10180_v41, %v10177_v3 }
 0x286   : > { %13391 = vst [vmem:[#allocation13_spill] sm:$0xff] %v10156_v45  ;;  %v3517_v4 = vsub.f32 %v6519_v28, %v13393_v36  ;;  %v3645_v61 = vmul.f32 %v6110_v7, %v3389_v35  ;;  %v3644_v29 = vmul.f32 %v6110_v7, %v3388_v40  ;;  %v10183_v45 = vpop.xlane.xlu1 %1458  ;;  %v6112_v28 = vpop.eup %6111  ;;  %v2857_v38 = vsel %vm2855_vm7, %v2856_v23, %v2854_v47  ;;  %v6521_v36 = vld [vmem:[%s7253_s9 + $0x70] sm:$0xff]  ;;  %v13394_v47 = vld [vmem:[#allocation27_spill] sm:$0xff] }
 0x287   : > { %v6114_v58 = vpop.eup %6113  ;;  %v1696_v35 = vmul.f32 %v10135_v34, %v9798_v2  ;;  %v10191_v40 = vmax.f32 %v1951_v27, 0.0  ;;  %v3165_v13 = vadd.f32 1e-06, %v2857_v38  ;;  %6117 = vrcp.f32 %v3101_v6  ;;  %v13395_v12 = vld [vmem:[#allocation43_spill] sm:$0xff] }
 0x288   : > { %4156 = vmatprep.mubr.f32.mxu0 %v3645_v61  ;;  %v3773_v1 = vmul.f32 %v6114_v58, %v3517_v4  ;;  %v3772_v7 = vmul.f32 %v6114_v58, %v3516_v17  ;;  %872 = vadd.xlane.f32.xlu1 %v871_v54  ;;  %v4747_v2 = vadd.f32 %v6521_v36, %v13394_v47  ;;  %v10202_v38 = vmax.f32 %v2015_v59, 0.0  ;;  %v6522_v61 = vld [vmem:[%s7253_s9 + $0x470] sm:$0xff]  ;;  %v6116_v58 = vpop.eup %6115  ;;  %v6523_v52 = vld [vmem:[%s7253_s9 + $0x78] sm:$0xff]  ;;  %v13397_v17 = vld [vmem:[#allocation28_spill] sm:$0xff] }
 0x289   : > { %4157 = vmatmul.mubr.f32.gmra.mrb[64].mxu0 %v3644_v29  ;;  %v2411_v23 = vmul.f32 %v6112_v28, %v10061_v60  ;;  %6119 = vrcp.f32 %v3165_v13  ;;  %680 = vadd.xlane.f32.xlu0 %v679_v25  ;;  %v4875_v4 = vadd.f32 %v6522_v61, %v13395_v12  ;;  %v4748_v6 = vadd.f32 %v6523_v52, %v13397_v17  ;;  %v6524_v36 = vld [vmem:[%s7253_s9 + $0x478] sm:$0xff] }
 0x28a   : > { %4540 = vmatprep.mubr.f32.mxu1 %v3773_v1  ;;  %v5015_v54 = vadd.f32 %v9554_v43, %v4747_v2  ;;  %v13398_v47 = vld [vmem:[#allocation47_spill] sm:$0xff]  ;;  %v1132_v59 = vmul.f32 %v10077_v26, %v10077_v26  ;;  %6121 = vrsqrt.f32 %v10191_v40  ;;  %v1888_v25 = vsub.f32 %v9908_v19, %v10147_v51  ;;  %v10223_v61 = vpop.xlane.xlu1 %824 }
 0x28b   : > { %v4876_v28 = vadd.f32 %v6524_v36, %v13398_v47  ;;  %4541 = vmatmul.mubr.f32.gmra.mrb[64].mxu1 %v3772_v7  ;;  %v5143_v1 = vadd.f32 %v9554_v43, %v4875_v4  ;;  %v1133_v2 = vmul.f32 %v10084_v11, %v10084_v11  ;;  %v1824_v26 = vsub.f32 %v9923_v39, %v1696_v35  ;;  %v10237_v4 = vpop.xlane.xlu0 %632  ;;  %v6525_v36 = vld [vmem:[%s7253_s9 + $0x218] sm:$0xff] }
 0x28c   : > { %v10199_v27 = vpop.f32.mrb[28].mxu0  ;;  %5271 = vst [vmem:[%s9596_s20 + $0x70] sm:$0xff] %v5015_v54  ;;  %v5016_v52 = vadd.f32 %v9581_v0, %v4748_v6  ;;  %v1004_v19 = vmul.f32 %v10087_v21, %v10087_v21  ;;  %v2859_v51 = vmul.f32 %v6116_v58, %v10092_v33  ;;  %v1005_v7 = vmul.f32 %v10090_v49, %v10090_v49 }
 0x28d   : > { %v10206_v29 = vpop.f32.mrb[29].mxu0  ;;  %v5144_v17 = vadd.f32 %v9581_v0, %v4876_v28  ;;  %5399 = vst [vmem:[%s9596_s20 + $0x470] sm:$0xff] %v5143_v1  ;;  %v1508_v11 = vadd.f32 %v1133_v2, %v1132_v59  ;;  %6123 = vrsqrt.f32 %v10202_v38  ;;  %v10241_v39 = vmul.f32 0.00390625, %v9865_v16  ;;  %v10256_v28 = vld [vmem:[%s7253_s9 + $0x7a0] sm:$0xff]  ;;  %v10259_v59 = vld [vmem:[%s7253_s9 + $0x7a8] sm:$0xff] }
 0x28e   : > { %13396 = vst [vmem:[#allocation16_spill] sm:$0xff] %v10206_v29  ;;  %v10215_v13 = vpop.f32.mrb[28].mxu1  ;;  %v10244_v35 = vmul.f32 0.00390625, %v9884_v5  ;;  %5272 = vst [vmem:[%s9596_s20 + $0x78] sm:$0xff] %v5016_v52  ;;  %vm2412_vm8 = vcmp.eq.f32.partialorder %v10061_v60, inf  ;;  %v1316_v49 = vadd.f32 %v1005_v7, %v1004_v19  ;;  %v2415_v54 = vand.u32 2147483648, %v10061_v60  ;;  %v10265_v52 = vpop.xlane.xlu1 %1461 }
 0x28f   : > { %13399 = vst [vmem:[#allocation18_spill] sm:$0xff] %v10215_v13  ;;  %v10225_v12 = vpop.f32.mrb[29].mxu1  ;;  %5400 = vst [vmem:[%s9596_s20 + $0x478] sm:$0xff] %v5144_v17  ;;  %v2016_v21 = vmul.f32 0.003921569, %v1888_v25  ;;  %1509 = vadd.xlane.f32.xlu1 %v1508_v11  ;;  %v2413_v58 = vsel %vm2412_vm8, %v10061_v60, %v2411_v23  ;;  %v3391_v47 = vsub.f32 %v6525_v36, %v9770_v15  ;;  %vm2414_vm9 = vcmp.eq.f32.partialorder %v10061_v60, 0.0 }
 0x290   : > { %13400 = vst [vmem:[#allocation17_spill] sm:$0xff] %v10225_v12  ;;  %v1952_v6 = vmul.f32 0.003921569, %v1824_v26  ;;  %vm2860_vm10 = vcmp.eq.f32.partialorder %v10092_v33, inf  ;;  %v6526_v25 = vld [vmem:[%s7253_s9 + $0x210] sm:$0xff]  ;;  %1317 = vadd.xlane.f32.xlu0 %v1316_v49  ;;  %v2416_v1 = vsel %vm2414_vm9, %v2415_v54, %v2413_v58  ;;  %v2863_v26 = vand.u32 2147483648, %v10092_v33 }
 0x291   : > { %v3390_v23 = vsub.f32 %v6526_v25, %v9770_v15  ;;  %v2861_v2 = vsel %vm2860_vm10, %v10092_v33, %v2859_v51  ;;  %v6118_v60 = vpop.eup %6117  ;;  %v6527_v17 = vld [vmem:[%s7253_s9 + $0x618] sm:$0xff]  ;;  %v6528_v11 = vld [vmem:[%s7253_s9 + $0x610] sm:$0xff]  ;;  %v3102_v36 = vadd.f32 1e-06, %v2416_v1  ;;  %vm2862_vm11 = vcmp.eq.f32.partialorder %v10092_v33, 0.0  ;;  %v10273_v12 = vld [vmem:[%s7253_s9 + $0x3a0] sm:$0xff] }
 0x292   : > { %v3519_v19 = vsub.f32 %v6527_v17, %v9763_v32  ;;  %v3518_v7 = vsub.f32 %v6528_v11, %v9763_v32  ;;  %v10276_v15 = vld [vmem:[%s7253_s9 + $0x3a8] sm:$0xff]  ;;  %v3647_v58 = vmul.f32 %v6118_v60, %v3391_v47  ;;  %v2864_v25 = vsel %vm2862_vm11, %v2863_v26, %v2861_v2  ;;  %v10282_v17 = vpop.xlane.xlu0 %1269  ;;  %v6529_v26 = vld [vmem:[%s7253_s9 + $0x80] sm:$0xff] }
 0x293   : > { %v6120_v51 = vpop.eup %6119  ;;  %v3646_v54 = vmul.f32 %v6118_v60, %v3390_v23  ;;  %v874_v29 = vadd.f32 %v10259_v59, %v10256_v28  ;;  %6125 = vrcp.f32 %v3102_v36  ;;  %v3166_v11 = vadd.f32 1e-06, %v2864_v25  ;;  %v13403_v60 = vld [vmem:[#allocation26_spill] sm:$0xff]  ;;  %v13404_v36 = vld [vmem:[#allocation32_spill] sm:$0xff] }
 0x294   : > { %v3775_v33 = vmul.f32 %v6120_v51, %v3519_v19  ;;  %v3774_v1 = vmul.f32 %v6120_v51, %v3518_v7  ;;  %v6122_v13 = vpop.eup %6121  ;;  %v1761_v47 = vmul.f32 %v10241_v39, %v9865_v16  ;;  %v10288_v23 = vmax.f32 %v1952_v6, 0.0  ;;  %4162 = vmatprep.mubr.f32.mxu0 %v3647_v58  ;;  %v6530_v7 = vld [vmem:[%s7253_s9 + $0x480] sm:$0xff]  ;;  %v6531_v25 = vld [vmem:[%s7253_s9 + $0x88] sm:$0xff] }
 0x295   : > { %875 = vadd.xlane.f32.xlu1 %v874_v29  ;;  %v682_v2 = vadd.f32 %v10276_v15, %v10273_v12  ;;  %4163 = vmatmul.mubr.f32.gmra.mrb[66].mxu0 %v3646_v54  ;;  %6127 = vrcp.f32 %v3166_v11  ;;  %v4749_v19 = vadd.f32 %v6529_v26, %v13403_v60  ;;  %v4877_v51 = vadd.f32 %v6530_v7, %v13404_v36  ;;  %v6532_v54 = vld [vmem:[%s7253_s9 + $0x488] sm:$0xff]  ;;  %v13407_v11 = vld [vmem:[#allocation30_spill] sm:$0xff]  ;;  %v10309_v60 = vpop.xlane.xlu1 %827 }
 0x296   : > { %v10278_v49 = vpop.f32.mrb[30].mxu0  ;;  %4546 = vmatprep.mubr.f32.mxu1 %v3775_v33  ;;  %v1697_v29 = vmul.f32 %v10244_v35, %v9884_v5  ;;  %v10302_v58 = vmax.f32 %v2016_v21, 0.0  ;;  %v10305_v33 = vmul.f32 0.00390625, %v9961_v30  ;;  %v4878_v26 = vadd.f32 %v6532_v54, %v13407_v11  ;;  %v10323_v11 = vpop.xlane.xlu0 %635 }
 0x297   : > { %13401 = vst [vmem:[#allocation48_spill] sm:$0xff] %v10278_v49  ;;  %v10284_v32 = vpop.f32.mrb[31].mxu0  ;;  %4547 = vmatmul.mubr.f32.gmra.mrb[66].mxu1 %v3774_v1  ;;  %683 = vadd.xlane.f32.xlu0 %v682_v2  ;;  %v6124_v7 = vpop.eup %6123  ;;  %v10314_v5 = vmul.f32 0.00390625, %v9981_v53  ;;  %v5017_v21 = vadd.f32 %v9554_v43, %v4749_v19  ;;  %v5145_v36 = vadd.f32 %v9554_v43, %v4877_v51  ;;  %6129 = vrsqrt.f32 %v10288_v23 }
 0x298   : > { %13402 = vst [vmem:[#allocation20_spill] sm:$0xff] %v10284_v32  ;;  %v13405_v32 = vld [vmem:[#allocation31_spill] sm:$0xff]  ;;  %v2418_v2 = vmul.f32 %v6122_v13, %v10191_v40  ;;  %v5146_v54 = vadd.f32 %v9581_v0, %v4878_v26  ;;  %v1134_v19 = vmul.f32 %v10166_v14, %v10166_v14  ;;  %v1135_v51 = vmul.f32 %v10169_v31, %v10169_v31 }
 0x299   : > { %v4750_v16 = vadd.f32 %v6531_v25, %v13405_v32  ;;  %v1889_v25 = vsub.f32 %v10004_v44, %v1761_v47  ;;  %5273 = vst [vmem:[%s9596_s20 + $0x80] sm:$0xff] %v5017_v21  ;;  %5401 = vst [vmem:[%s9596_s20 + $0x480] sm:$0xff] %v5145_v36  ;;  %v1006_v13 = vmul.f32 %v10177_v3, %v10177_v3  ;;  %6131 = vrsqrt.f32 %v10302_v58  ;;  %v6533_v21 = vld [vmem:[%s7253_s9 + $0x228] sm:$0xff]  ;;  %v6534_v36 = vld [vmem:[%s7253_s9 + $0x220] sm:$0xff] }
 0x29a   : > { %v10298_v6 = vpop.f32.mrb[30].mxu1  ;;  %v1007_v44 = vmul.f32 %v10180_v41, %v10180_v41  ;;  %v2866_v47 = vmul.f32 %v6124_v7, %v10202_v38  ;;  %5402 = vst [vmem:[%s9596_s20 + $0x488] sm:$0xff] %v5146_v54  ;;  %v10345_v14 = vmul.f32 %v10314_v5, %v9981_v53  ;;  %v1825_v31 = vsub.f32 %v10016_v62, %v1697_v29  ;;  %v6535_v54 = vld [vmem:[%s7253_s9 + $0x628] sm:$0xff]  ;;  %v6536_v29 = vld [vmem:[%s7253_s9 + $0x620] sm:$0xff] }
 0x29b   : > { %13406 = vst [vmem:[#allocation22_spill] sm:$0xff] %v10298_v6  ;;  %v10311_v32 = vpop.f32.mrb[31].mxu1  ;;  %v5018_v1 = vadd.f32 %v9581_v0, %v4750_v16  ;;  %v10340_v16 = vmul.f32 %v10305_v33, %v9961_v30  ;;  %v1511_v3 = vadd.f32 %v1135_v51, %v1134_v19  ;;  %v2017_v41 = vmul.f32 0.003921569, %v1889_v25  ;;  %v10353_v30 = vpop.xlane.xlu1 %1464 }
 0x29c   : > { %13408 = vst [vmem:[#allocation21_spill] sm:$0xff] %v10311_v32  ;;  %v1319_v26 = vadd.f32 %v1007_v44, %v1006_v13  ;;  %v3393_v7 = vsub.f32 %v6533_v21, %v9913_v50  ;;  %vm2419_vm12 = vcmp.eq.f32.partialorder %v10191_v40, inf  ;;  %v3521_v62 = vsub.f32 %v6535_v54, %v9852_v63  ;;  %v10364_v44 = vld [vmem:[%s7253_s9 + $0x7b0] sm:$0xff]  ;;  %v10367_v21 = vld [vmem:[%s7253_s9 + $0x7b8] sm:$0xff] }
 0x29d   : > { %5274 = vst [vmem:[%s9596_s20 + $0x88] sm:$0xff] %v5018_v1  ;;  %v3392_v1 = vsub.f32 %v6534_v36, %v9913_v50  ;;  %v6126_v53 = vpop.eup %6125  ;;  %v3520_v25 = vsub.f32 %v6536_v29, %v9852_v63  ;;  %1512 = vadd.xlane.f32.xlu1 %v1511_v3  ;;  %v2420_v19 = vsel %vm2419_vm12, %v10191_v40, %v2418_v2  ;;  %v2422_v50 = vand.u32 2147483648, %v10191_v40  ;;  %v10370_v36 = vld [vmem:[%s7253_s9 + $0x3b0] sm:$0xff]  ;;  %v10372_v63 = vpop.xlane.xlu0 %1272 }
 0x29e   : > { %1320 = vadd.xlane.f32.xlu0 %v1319_v26  ;;  %v3649_v51 = vmul.f32 %v6126_v53, %v3393_v7  ;;  %vm2421_vm13 = vcmp.eq.f32.partialorder %v10191_v40, 0.0  ;;  %vm2867_vm14 = vcmp.eq.f32.partialorder %v10202_v38, inf  ;;  %v1953_v26 = vmul.f32 0.003921569, %v1825_v31  ;;  %v10379_v40 = vld [vmem:[%s7253_s9 + $0x3b8] sm:$0xff] }
 0x29f   : > { %v3648_v13 = vmul.f32 %v6126_v53, %v3392_v1  ;;  %v6128_v2 = vpop.eup %6127  ;;  %v2423_v54 = vsel %vm2421_vm13, %v2422_v50, %v2420_v19  ;;  %v2868_v7 = vsel %vm2867_vm14, %v10202_v38, %v2866_v47  ;;  %v2870_v1 = vand.u32 2147483648, %v10202_v38 }
 0x2a0   : > { %4168 = vmatprep.mubr.f32.mxu0 %v3649_v51  ;;  %v3777_v32 = vmul.f32 %v6128_v2, %v3521_v62  ;;  %v3776_v6 = vmul.f32 %v6128_v2, %v3520_v25  ;;  %v3103_v49 = vadd.f32 1e-06, %v2423_v54  ;;  %vm2869_vm15 = vcmp.eq.f32.partialorder %v10202_v38, 0.0  ;;  %v10399_v2 = vpop.xlane.xlu1 %830 }
 0x2a1   : > { %v10389_v31 = vmul.f32 0.00390625, %v10044_v57  ;;  %v1890_v47 = vsub.f32 %v10095_v42, %v10340_v16  ;;  %4169 = vmatmul.mubr.f32.gmra.mrb[68].mxu0 %v3648_v13  ;;  %v2871_v19 = vsel %vm2869_vm15, %v2870_v1, %v2868_v7  ;;  %v877_v50 = vadd.f32 %v10367_v21, %v10364_v44  ;;  %v6130_v62 = vpop.eup %6129  ;;  %v6537_v13 = vld [vmem:[%s7253_s9 + $0x90] sm:$0xff] }
 0x2a2   : > { %v10395_v25 = vmax.f32 %v2017_v41, 0.0  ;;  %4552 = vmatprep.mubr.f32.mxu1 %v3777_v32  ;;  %6133 = vrcp.f32 %v3103_v49  ;;  %v3167_v38 = vadd.f32 1e-06, %v2871_v19  ;;  %v685_v51 = vadd.f32 %v10379_v40, %v10370_v36  ;;  %v6538_v32 = vld [vmem:[%s7253_s9 + $0x490] sm:$0xff] }
 0x2a3   : > { %v10374_v3 = vpop.f32.mrb[32].mxu0  ;;  %v10401_v42 = vmax.f32 %v1953_v26, 0.0  ;;  %v10404_v16 = vmul.f32 0.00390625, %v10065_v9  ;;  %4553 = vmatmul.mubr.f32.gmra.mrb[68].mxu1 %v3776_v6  ;;  %878 = vadd.xlane.f32.xlu1 %v877_v50  ;;  %v4751_v41 = vadd.f32 %v6537_v13, %v9804_v37  ;;  %v4879_v49 = vadd.f32 %v6538_v32, %v9812_v18  ;;  %v6132_v54 = vpop.eup %6131  ;;  %v6539_v26 = vld [vmem:[%s7253_s9 + $0x98] sm:$0xff]  ;;  %v13413_v1 = vld [vmem:[#allocation33_spill] sm:$0xff] }
 0x2a4   : > { %13409 = vst [vmem:[#allocation19_spill] sm:$0xff] %v10374_v3  ;;  %v10381_v53 = vpop.f32.mrb[32].mxu1  ;;  %v10383_v29 = vpop.f32.mrb[33].mxu0  ;;  %v1826_v7 = vsub.f32 %v10102_v24, %v10345_v14  ;;  %6135 = vrcp.f32 %v3167_v38  ;;  %686 = vadd.xlane.f32.xlu0 %v685_v51  ;;  %v4752_v19 = vadd.f32 %v6539_v26, %v13413_v1  ;;  %v13414_v6 = vld [vmem:[#allocation34_spill] sm:$0xff]  ;;  %v1136_v18 = vmul.f32 %v10256_v28, %v10256_v28 }
 0x2a5   : > { %13410 = vst [vmem:[#allocation38_spill] sm:$0xff] %v10381_v53  ;;  %13411 = vst [vmem:[#allocation23_spill] sm:$0xff] %v10383_v29  ;;  %v10386_v3 = vpop.f32.mrb[33].mxu1  ;;  %v2018_v29 = vmul.f32 0.003921569, %v1890_v47  ;;  %v5019_v37 = vadd.f32 %v9554_v43, %v4751_v41  ;;  %v5147_v13 = vadd.f32 %v9554_v43, %v4879_v49  ;;  %v10420_v24 = vpop.xlane.xlu0 %638  ;;  %v2425_v14 = vmul.f32 %v6130_v62, %v10288_v23 }
 0x2a6   : > { %13412 = vst [vmem:[#allocation24_spill] sm:$0xff] %v10386_v3  ;;  %v6540_v3 = vld [vmem:[%s7253_s9 + $0x498] sm:$0xff]  ;;  %v5020_v38 = vadd.f32 %v9581_v0, %v4752_v19  ;;  %6137 = vrsqrt.f32 %v10401_v42  ;;  %v1763_v47 = vmul.f32 %v10389_v31, %v10044_v57  ;;  %v1008_v28 = vmul.f32 %v10273_v12, %v10273_v12  ;;  %v10440_v32 = vpop.xlane.xlu1 %1467 }
 0x2a7   : > { %v4880_v50 = vadd.f32 %v6540_v3, %v13414_v6  ;;  %v1137_v3 = vmul.f32 %v10259_v59, %v10259_v59  ;;  %5275 = vst [vmem:[%s9596_s20 + $0x90] sm:$0xff] %v5019_v37  ;;  %5403 = vst [vmem:[%s9596_s20 + $0x490] sm:$0xff] %v5147_v13  ;;  %v1009_v62 = vmul.f32 %v10276_v15, %v10276_v15  ;;  %6139 = vrsqrt.f32 %v10395_v25  ;;  %v6544_v37 = vld [vmem:[%s7253_s9 + $0x630] sm:$0xff] }
 0x2a8   : > { %v2873_v41 = vmul.f32 %v6132_v54, %v10302_v58  ;;  %v1954_v59 = vmul.f32 0.003921569, %v1826_v7  ;;  %5276 = vst [vmem:[%s9596_s20 + $0x98] sm:$0xff] %v5020_v38  ;;  %v10442_v57 = vmax.f32 %v2018_v29, 0.0  ;;  %v1891_v49 = vsub.f32 %v10183_v45, %v1763_v47  ;;  %v6541_v54 = vld [vmem:[%s7253_s9 + $0x238] sm:$0xff]  ;;  %v6543_v45 = vld [vmem:[%s7253_s9 + $0x230] sm:$0xff] }
 0x2a9   : > { %v5148_v51 = vadd.f32 %v9581_v0, %v4880_v50  ;;  %v1699_v12 = vmul.f32 %v10404_v16, %v10065_v9  ;;  %v1514_v26 = vadd.f32 %v1137_v3, %v1136_v18  ;;  %v3395_v1 = vsub.f32 %v6541_v54, %v10010_v55  ;;  %v6542_v7 = vld [vmem:[%s7253_s9 + $0x638] sm:$0xff]  ;;  %v10477_v54 = vld [vmem:[%s7253_s9 + $0x7c8] sm:$0xff] }
 0x2aa   : > { %v3523_v19 = vsub.f32 %v6542_v7, %v10007_v48  ;;  %v1322_v6 = vadd.f32 %v1009_v62, %v1008_v28  ;;  %vm2426_vm0 = vcmp.eq.f32.partialorder %v10288_v23, inf  ;;  %v3394_v9 = vsub.f32 %v6543_v45, %v10010_v55  ;;  %v10473_v55 = vld [vmem:[%s7253_s9 + $0x7c0] sm:$0xff] }
 0x2ab   : > { %5404 = vst [vmem:[%s9596_s20 + $0x498] sm:$0xff] %v5148_v51  ;;  %v3522_v13 = vsub.f32 %v6544_v37, %v10007_v48  ;;  %1515 = vadd.xlane.f32.xlu1 %v1514_v26  ;;  %v2427_v18 = vsel %vm2426_vm0, %v10288_v23, %v2425_v14  ;;  %v2429_v38 = vand.u32 2147483648, %v10288_v23  ;;  %v10464_v51 = vpop.xlane.xlu0 %1275  ;;  %vm2428_vm1 = vcmp.eq.f32.partialorder %v10288_v23, 0.0  ;;  %v10480_v7 = vld [vmem:[%s7253_s9 + $0x3c0] sm:$0xff] }
 0x2ac   : > { %v6134_v47 = vpop.eup %6133  ;;  %1323 = vadd.xlane.f32.xlu0 %v1322_v6  ;;  %vm2874_vm2 = vcmp.eq.f32.partialorder %v10302_v58, inf  ;;  %vm2876_vm3 = vcmp.eq.f32.partialorder %v10302_v58, 0.0  ;;  %v2877_v48 = vand.u32 2147483648, %v10302_v58  ;;  %v10483_v6 = vld [vmem:[%s7253_s9 + $0x3c8] sm:$0xff]  ;;  %6141 = vrsqrt.f32 %v10442_v57 }
 0x2ad   : > { %v10447_v15 = vpop.f32.mrb[34].mxu0  ;;  %v3651_v14 = vmul.f32 %v6134_v47, %v3395_v1  ;;  %v3650_v28 = vmul.f32 %v6134_v47, %v3394_v9  ;;  %v2430_v62 = vsel %vm2428_vm1, %v2429_v38, %v2427_v18  ;;  %v2875_v26 = vsel %vm2874_vm2, %v10302_v58, %v2873_v41  ;;  %v13421_v47 = vld [vmem:[#allocation37_spill] sm:$0xff] }
 0x2ae   : > { %13415 = vst [vmem:[#allocation25_spill] sm:$0xff] %v10447_v15  ;;  %v10456_v29 = vpop.f32.mrb[35].mxu0  ;;  %v6136_v23 = vpop.eup %6135  ;;  %v1827_v45 = vsub.f32 %v10195_v8, %v1699_v12  ;;  %v3104_v37 = vadd.f32 1e-06, %v2430_v62  ;;  %v2019_v1 = vmul.f32 0.003921569, %v1891_v49  ;;  %v880_v38 = vadd.f32 %v10477_v54, %v10473_v55 }
 0x2af   : > { %v10454_v50 = vpop.f32.mrb[34].mxu1  ;;  %13417 = vst [vmem:[#allocation44_spill] sm:$0xff] %v10456_v29  ;;  %v10487_v29 = vpop.xlane.xlu1 %833  ;;  %4174 = vmatprep.mubr.f32.mxu0 %v3651_v14  ;;  %v3779_v58 = vmul.f32 %v6136_v23, %v3523_v19  ;;  %v3778_v41 = vmul.f32 %v6136_v23, %v3522_v13  ;;  %v10489_v18 = vmax.f32 %v1954_v59, 0.0  ;;  %v688_v8 = vadd.f32 %v10483_v6, %v10480_v7  ;;  %v6545_v19 = vld [vmem:[%s7253_s9 + $0xa0] sm:$0xff] }
 0x2b0   : > { %13416 = vst [vmem:[#allocation29_spill] sm:$0xff] %v10454_v50  ;;  %v10466_v3 = vpop.f32.mrb[35].mxu1  ;;  %4175 = vmatmul.mubr.f32.gmra.mrb[70].mxu0 %v3650_v28  ;;  %6143 = vrcp.f32 %v3104_v37  ;;  %v6138_v12 = vpop.eup %6137  ;;  %v10496_v49 = vmul.f32 0.00390625, %v10131_v46  ;;  %v13420_v13 = vld [vmem:[#allocation36_spill] sm:$0xff]  ;;  %v1955_v62 = vmul.f32 0.003921569, %v1827_v45  ;;  %881 = vadd.xlane.f32.xlu1 %v880_v38  ;;  %v1138_v45 = vmul.f32 %v10364_v44, %v10364_v44 }
 0x2b1   : > { %13418 = vst [vmem:[#allocation27_spill] sm:$0xff] %v10466_v3  ;;  %v2878_v3 = vsel %vm2876_vm3, %v2877_v48, %v2875_v26  ;;  %4558 = vmatprep.mubr.f32.mxu1 %v3779_v58  ;;  %v4753_v59 = vadd.f32 %v6545_v19, %v13420_v13  ;;  %v10502_v14 = vpop.xlane.xlu0 %641  ;;  %v6140_v28 = vpop.eup %6139  ;;  %v6547_v26 = vld [vmem:[%s7253_s9 + $0xa8] sm:$0xff]  ;;  %v13422_v23 = vld [vmem:[#allocation35_spill] sm:$0xff]  ;;  %v10508_v15 = vmax.f32 %v2019_v1, 0.0  ;;  %689 = vadd.xlane.f32.xlu0 %v688_v8  ;;  %vm2433_vm4 = vcmp.eq.f32.partialorder %v10401_v42, inf }
 0x2b2   : > { %v3168_v9 = vadd.f32 1e-06, %v2878_v3  ;;  %13419 = vst [vmem:[#allocation43_spill] sm:$0xff] %v10496_v49  ;;  %v6546_v3 = vld [vmem:[%s7253_s9 + $0x4a0] sm:$0xff]  ;;  %4559 = vmatmul.mubr.f32.gmra.mrb[70].mxu1 %v3778_v41  ;;  %v4754_v37 = vadd.f32 %v6547_v26, %v13422_v23  ;;  %v6548_v50 = vld [vmem:[%s7253_s9 + $0x4a8] sm:$0xff]  ;;  %v2432_v41 = vmul.f32 %v6138_v12, %v10401_v42  ;;  %v1139_v44 = vmul.f32 %v10367_v21, %v10367_v21 }
 0x2b3   : > { %v4881_v48 = vadd.f32 %v6546_v3, %v13421_v47  ;;  %v13423_v58 = vld [vmem:[#allocation40_spill] sm:$0xff]  ;;  %v5021_v19 = vadd.f32 %v9554_v43, %v4753_v59  ;;  %v10518_v1 = vpop.xlane.xlu1 %1470  ;;  %v10524_v59 = vmul.f32 %v10496_v49, %v10131_v46  ;;  %v1010_v12 = vmul.f32 %v10370_v36, %v10370_v36 }
 0x2b4   : > { %6145 = vrcp.f32 %v3168_v9  ;;  %v4882_v9 = vadd.f32 %v6548_v50, %v13423_v58  ;;  %v5022_v38 = vadd.f32 %v9581_v0, %v4754_v37  ;;  %v1011_v3 = vmul.f32 %v10379_v40, %v10379_v40 }
 0x2b5   : > { %v5149_v13 = vadd.f32 %v9554_v43, %v4881_v48  ;;  %6147 = vrsqrt.f32 %v10489_v18  ;;  %5277 = vst [vmem:[%s9596_s20 + $0xa0] sm:$0xff] %v5021_v19  ;;  %v2880_v46 = vmul.f32 %v6140_v28, %v10395_v25  ;;  %v10540_v26 = vmul.f32 0.00390625, %v10154_v20  ;;  %v10554_v37 = vpop.xlane.xlu0 %1278 }
 0x2b6   : > { %v5150_v50 = vadd.f32 %v9581_v0, %v4882_v9  ;;  %v10543_v23 = vmul.f32 0.00390625, %v10237_v4  ;;  %5278 = vst [vmem:[%s9596_s20 + $0xa8] sm:$0xff] %v5022_v38  ;;  %6149 = vrsqrt.f32 %v10508_v15  ;;  %v10550_v36 = vmax.f32 %v1955_v62, 0.0  ;;  %v6142_v58 = vpop.eup %6141  ;;  %v6549_v9 = vld [vmem:[%s7253_s9 + $0x248] sm:$0xff] }
 0x2b7   : > { %5405 = vst [vmem:[%s9596_s20 + $0x4a0] sm:$0xff] %v5149_v13  ;;  %13427 = vst [vmem:[#allocation32_spill] sm:$0xff] %v10540_v26  ;;  %v1892_v40 = vsub.f32 %v10265_v52, %v10524_v59  ;;  %v1517_v28 = vadd.f32 %v1139_v44, %v1138_v45  ;;  %v3397_v19 = vsub.f32 %v6549_v9, %v10135_v34  ;;  %v6550_v13 = vld [vmem:[%s7253_s9 + $0x648] sm:$0xff]  ;;  %v2436_v59 = vand.u32 2147483648, %v10401_v42  ;;  %v10579_v9 = vld [vmem:[%s7253_s9 + $0x3d0] sm:$0xff] }
 0x2b8   : > { %5406 = vst [vmem:[%s9596_s20 + $0x4a8] sm:$0xff] %v5150_v50  ;;  %v3525_v38 = vsub.f32 %v6550_v13, %v10108_v56  ;;  %v1325_v50 = vadd.f32 %v1011_v3, %v1010_v12  ;;  %v2434_v45 = vsel %vm2433_vm4, %v10401_v42, %v2432_v41  ;;  %vm2435_vm5 = vcmp.eq.f32.partialorder %v10401_v42, 0.0  ;;  %v10572_v12 = vld [vmem:[%s7253_s9 + $0x7d0] sm:$0xff]  ;;  %v10582_v13 = vld [vmem:[%s7253_s9 + $0x3d8] sm:$0xff]  ;;  %v10584_v42 = vpop.xlane.xlu1 %836 }
 0x2b9   : > { %v10520_v8 = vpop.f32.mrb[36].mxu0  ;;  %1518 = vadd.xlane.f32.xlu1 %v1517_v28  ;;  %vm2881_vm6 = vcmp.eq.f32.partialorder %v10395_v25, inf  ;;  %vm2883_vm7 = vcmp.eq.f32.partialorder %v10395_v25, 0.0  ;;  %v10576_v28 = vld [vmem:[%s7253_s9 + $0x7d8] sm:$0xff]  ;;  %v1700_v49 = vmul.f32 %v10540_v26, %v10154_v20  ;;  %6151 = vrsqrt.f32 %v10550_v36 }
 0x2ba   : > { %13424 = vst [vmem:[#allocation28_spill] sm:$0xff] %v10520_v8  ;;  %v10534_v47 = vpop.f32.mrb[36].mxu1  ;;  %v10536_v48 = vpop.f32.mrb[37].mxu0  ;;  %1326 = vadd.xlane.f32.xlu0 %v1325_v50  ;;  %v2882_v41 = vsel %vm2881_vm6, %v10395_v25, %v2880_v46  ;;  %v883_v20 = vadd.f32 %v10576_v28, %v10572_v12  ;;  %v6556_v26 = vld [vmem:[%s7253_s9 + $0x4b8] sm:$0xff]  ;;  %vm2440_vm8 = vcmp.eq.f32.partialorder %v10489_v18, inf  ;;  %vm2442_vm9 = vcmp.eq.f32.partialorder %v10489_v18, 0.0 }
 0x2bb   : > { %13425 = vst [vmem:[#allocation47_spill] sm:$0xff] %v10534_v47  ;;  %13426 = vst [vmem:[#allocation26_spill] sm:$0xff] %v10536_v48  ;;  %v10547_v21 = vpop.f32.mrb[37].mxu1  ;;  %v6552_v48 = vld [vmem:[%s7253_s9 + $0x640] sm:$0xff]  ;;  %v6144_v44 = vpop.eup %6143  ;;  %vm2888_vm10 = vcmp.eq.f32.partialorder %v10442_v57, inf  ;;  %vm2890_vm11 = vcmp.eq.f32.partialorder %v10442_v57, 0.0 }
 0x2bc   : > { %13428 = vst [vmem:[#allocation31_spill] sm:$0xff] %v10547_v21  ;;  %v6551_v21 = vld [vmem:[%s7253_s9 + $0x240] sm:$0xff]  ;;  %v3524_v52 = vsub.f32 %v6552_v48, %v10108_v56  ;;  %v3653_v3 = vmul.f32 %v6144_v44, %v3397_v19  ;;  %v10592_v19 = vpop.xlane.xlu0 %644  ;;  %vm2447_vm12 = vcmp.eq.f32.partialorder %v10550_v36, inf  ;;  %vm2895_vm13 = vcmp.eq.f32.partialorder %v10508_v15, inf }
 0x2bd   : > { %v3396_v62 = vsub.f32 %v6551_v21, %v10135_v34  ;;  %v2884_v34 = vand.u32 2147483648, %v10395_v25  ;;  %v2437_v21 = vsel %vm2435_vm5, %v2436_v59, %v2434_v45  ;;  %v10590_v25 = vmul.f32 0.00390625, %v10223_v61  ;;  %v6553_v45 = vld [vmem:[%s7253_s9 + $0xb0] sm:$0xff]  ;;  %884 = vadd.xlane.f32.xlu1 %v883_v20  ;;  %v10623_v20 = vpop.xlane.xlu1 %1473 }
 0x2be   : > { %v6146_v56 = vpop.eup %6145  ;;  %v3105_v8 = vadd.f32 1e-06, %v2437_v21  ;;  %4180 = vmatprep.mubr.f32.mxu0 %v3653_v3  ;;  %v13430_v59 = vld [vmem:[#allocation42_spill] sm:$0xff]  ;;  %vm2449_vm14 = vcmp.eq.f32.partialorder %v10550_v36, 0.0  ;;  %vm2897_vm15 = vcmp.eq.f32.partialorder %v10508_v15, 0.0 }
 0x2bf   : > { %v3652_v48 = vmul.f32 %v6144_v44, %v3396_v62  ;;  %v3781_v50 = vmul.f32 %v6146_v56, %v3525_v38  ;;  %v3780_v47 = vmul.f32 %v6146_v56, %v3524_v52  ;;  %v2885_v53 = vsel %vm2883_vm7, %v2884_v34, %v2882_v41  ;;  %13429 = vst [vmem:[#allocation30_spill] sm:$0xff] %v10590_v25  ;;  %v6148_v62 = vpop.eup %6147  ;;  %v6554_v44 = vld [vmem:[%s7253_s9 + $0x4b0] sm:$0xff]  ;;  %v6555_v21 = vld [vmem:[%s7253_s9 + $0xb8] sm:$0xff] }
 0x2c0   : > { %v3169_v46 = vadd.f32 1e-06, %v2885_v53  ;;  %v10595_v38 = vmul.f32 %v6142_v58, %v10442_v57  ;;  %6153 = vrcp.f32 %v3105_v8  ;;  %v691_v52 = vadd.f32 %v10582_v13, %v10579_v9  ;;  %v13431_v34 = vld [vmem:[#allocation41_spill] sm:$0xff]  ;;  %v13433_v41 = vld [vmem:[#allocation39_spill] sm:$0xff] }
 0x2c1   : > { %4564 = vmatprep.mubr.f32.mxu1 %v3781_v50  ;;  %4181 = vmatmul.mubr.f32.gmra.mrb[72].mxu0 %v3652_v48  ;;  %v1701_v53 = vmul.f32 %v10543_v23, %v10237_v4  ;;  %v4755_v58 = vadd.f32 %v6553_v45, %v13430_v59  ;;  %v4883_v56 = vadd.f32 %v6554_v44, %v13431_v34  ;;  %v2020_v8 = vmul.f32 0.003921569, %v1892_v40  ;;  %v13434_v4 = vld [vmem:[#allocation46_spill] sm:$0xff]  ;;  %v6150_v59 = vpop.eup %6149 }
 0x2c2   : > { %4565 = vmatmul.mubr.f32.gmra.mrb[72].mxu1 %v3780_v47  ;;  %6155 = vrcp.f32 %v3169_v46  ;;  %v1828_v48 = vsub.f32 %v10282_v17, %v1700_v49  ;;  %692 = vadd.xlane.f32.xlu0 %v691_v52  ;;  %v4756_v50 = vadd.f32 %v6555_v21, %v13433_v41  ;;  %v4884_v47 = vadd.f32 %v6556_v26, %v13434_v4 }
 0x2c3   : > { %v1829_v44 = vsub.f32 %v10372_v63, %v1701_v53  ;;  %v5023_v40 = vadd.f32 %v9554_v43, %v4755_v58  ;;  %v5151_v17 = vadd.f32 %v9554_v43, %v4883_v56  ;;  %v1140_v49 = vmul.f32 %v10473_v55, %v10473_v55  ;;  %v10643_v56 = vpop.xlane.xlu0 %1281 }
 0x2c4   : > { %v10607_v3 = vpop.f32.mrb[38].mxu0  ;;  %v2439_v26 = vmul.f32 %v6148_v62, %v10489_v18  ;;  %v10630_v34 = vmul.f32 %v10590_v25, %v10223_v61  ;;  %v5024_v63 = vadd.f32 %v9581_v0, %v4756_v50  ;;  %v5152_v53 = vadd.f32 %v9581_v0, %v4884_v47 }
 0x2c5   : > { %13432 = vst [vmem:[#allocation33_spill] sm:$0xff] %v10607_v3  ;;  %v10614_v46 = vpop.f32.mrb[38].mxu1  ;;  %v10616_v45 = vpop.f32.mrb[39].mxu0  ;;  %5279 = vst [vmem:[%s9596_s20 + $0xb0] sm:$0xff] %v5023_v40  ;;  %v1141_v55 = vmul.f32 %v10477_v54, %v10477_v54  ;;  %v1012_v62 = vmul.f32 %v10480_v7, %v10480_v7  ;;  %v1013_v61 = vmul.f32 %v10483_v6, %v10483_v6  ;;  %v10648_v41 = vmax.f32 %v2020_v8, 0.0  ;;  %v6558_v40 = vld [vmem:[%s7253_s9 + $0x658] sm:$0xff] }
 0x2c6   : > { %13435 = vst [vmem:[#allocation34_spill] sm:$0xff] %v10614_v46  ;;  %13436 = vst [vmem:[#allocation36_spill] sm:$0xff] %v10616_v45  ;;  %v10625_v52 = vpop.f32.mrb[39].mxu1  ;;  %v10646_v21 = vmul.f32 %v6150_v59, %v10508_v15  ;;  %v1956_v50 = vmul.f32 0.003921569, %v1828_v48  ;;  %v10651_v4 = vmul.f32 0.00390625, %v10309_v60  ;;  %v1893_v7 = vsub.f32 %v10353_v30, %v10630_v34 }
 0x2c7   : > { %13437 = vst [vmem:[#allocation37_spill] sm:$0xff] %v10625_v52  ;;  %5407 = vst [vmem:[%s9596_s20 + $0x4b0] sm:$0xff] %v5151_v17  ;;  %v10656_v54 = vmul.f32 0.00390625, %v10323_v11  ;;  %v1957_v6 = vmul.f32 0.003921569, %v1829_v44  ;;  %v1520_v47 = vadd.f32 %v1141_v55, %v1140_v49  ;;  %v6557_v59 = vld [vmem:[%s7253_s9 + $0x258] sm:$0xff]  ;;  %v3527_v48 = vsub.f32 %v6558_v40, %v10241_v39  ;;  %v10671_v49 = vpop.xlane.xlu1 %839  ;;  %v10691_v40 = vpop.xlane.xlu0 %647 }
 0x2c8   : > { %5280 = vst [vmem:[%s9596_s20 + $0xb8] sm:$0xff] %v5024_v63  ;;  %5408 = vst [vmem:[%s9596_s20 + $0x4b8] sm:$0xff] %v5152_v53  ;;  %v3399_v8 = vsub.f32 %v6557_v59, %v10244_v35  ;;  %v1328_v17 = vadd.f32 %v1013_v61, %v1012_v62  ;;  %v6152_v63 = vpop.eup %6151  ;;  %v6559_v53 = vld [vmem:[%s7253_s9 + $0x250] sm:$0xff]  ;;  %v2441_v30 = vsel %vm2440_vm8, %v10489_v18, %v2439_v26  ;;  %v2443_v44 = vand.u32 2147483648, %v10489_v18  ;;  %v10686_v59 = vld [vmem:[%s7253_s9 + $0x3e0] sm:$0xff] }
 0x2c9   : > { %v3398_v58 = vsub.f32 %v6559_v53, %v10244_v35  ;;  %v6560_v52 = vld [vmem:[%s7253_s9 + $0x650] sm:$0xff]  ;;  %1521 = vadd.xlane.f32.xlu1 %v1520_v47  ;;  %v10678_v35 = vld [vmem:[%s7253_s9 + $0x7e0] sm:$0xff]  ;;  %v2889_v61 = vsel %vm2888_vm10, %v10442_v57, %v10595_v38  ;;  %v10683_v47 = vld [vmem:[%s7253_s9 + $0x7e8] sm:$0xff]  ;;  %v1766_v38 = vmul.f32 %v10651_v4, %v10309_v60  ;;  %vm2902_vm1 = vcmp.eq.f32.partialorder %v10648_v41, inf }
 0x2ca   : > { %v3526_v45 = vsub.f32 %v6560_v52, %v10241_v39  ;;  %v6154_v34 = vpop.eup %6153  ;;  %1329 = vadd.xlane.f32.xlu0 %v1328_v17  ;;  %v2891_v39 = vand.u32 2147483648, %v10442_v57  ;;  %v2444_v62 = vsel %vm2442_vm9, %v2443_v44, %v2441_v30  ;;  %v10689_v18 = vld [vmem:[%s7253_s9 + $0x3e8] sm:$0xff]  ;;  %v10699_v57 = vmax.f32 %v1956_v50, 0.0  ;;  %v6561_v44 = vld [vmem:[%s7253_s9 + $0xc0] sm:$0xff] }
 0x2cb   : > { %v3655_v26 = vmul.f32 %v6154_v34, %v3399_v8  ;;  %v3654_v55 = vmul.f32 %v6154_v34, %v3398_v58  ;;  %v3106_v46 = vadd.f32 1e-06, %v2444_v62  ;;  %v10696_v58 = vmul.f32 %v6152_v63, %v10550_v36 }
 0x2cc   : > { %v6156_v52 = vpop.eup %6155  ;;  %v2892_v3 = vsel %vm2890_vm11, %v2891_v39, %v2889_v61  ;;  %v1702_v63 = vmul.f32 %v10656_v54, %v10323_v11  ;;  %v886_v60 = vadd.f32 %v10683_v47, %v10678_v35  ;;  %v2021_v30 = vmul.f32 0.003921569, %v1893_v7  ;;  %v6562_v11 = vld [vmem:[%s7253_s9 + $0x4c0] sm:$0xff]  ;;  %v6563_v7 = vld [vmem:[%s7253_s9 + $0xc8] sm:$0xff] }
 0x2cd   : > { %v3783_v17 = vmul.f32 %v6156_v52, %v3527_v48  ;;  %v3782_v53 = vmul.f32 %v6156_v52, %v3526_v45  ;;  %4186 = vmatprep.mubr.f32.mxu0 %v3655_v26  ;;  %v3170_v8 = vadd.f32 1e-06, %v2892_v3  ;;  %6157 = vrcp.f32 %v3106_v46  ;;  %v10720_v46 = vpop.xlane.xlu1 %1476  ;;  %v6564_v61 = vld [vmem:[%s7253_s9 + $0x4c8] sm:$0xff] }
 0x2ce   : > { %v10693_v25 = vpop.f32.mrb[40].mxu0  ;;  %4187 = vmatmul.mubr.f32.gmra.mrb[74].mxu0 %v3654_v55  ;;  %v694_v3 = vadd.f32 %v10689_v18, %v10686_v59  ;;  %v4757_v34 = vadd.f32 %v6561_v44, %v10018_v10  ;;  %v4885_v39 = vadd.f32 %v6562_v11, %v10038_v22  ;;  %v10722_v52 = vmax.f32 %v1957_v6, 0.0  ;;  %887 = vadd.xlane.f32.xlu1 %v886_v60  ;;  %v13440_v55 = vld [vmem:[#allocation45_spill] sm:$0xff]  ;;  %v10736_v60 = vpop.xlane.xlu0 %1284 }
 0x2cf   : > { %v10703_v48 = vpop.f32.mrb[40].mxu1  ;;  %v10705_v45 = vpop.f32.mrb[41].mxu0  ;;  %4570 = vmatprep.mubr.f32.mxu1 %v3783_v17  ;;  %6159 = vrcp.f32 %v3170_v8  ;;  %v10725_v26 = vmul.f32 0.00390625, %v10399_v2  ;;  %v4758_v62 = vadd.f32 %v6563_v7, %v13440_v55  ;;  %v13441_v17 = vld [vmem:[#allocation12_spill] sm:$0xff]  ;;  %v1142_v8 = vmul.f32 %v10572_v12, %v10572_v12 }
 0x2d0   : > { %13438 = vst [vmem:[#allocation35_spill] sm:$0xff] %v10705_v45  ;;  %v10714_v50 = vpop.f32.mrb[41].mxu1  ;;  %4571 = vmatmul.mubr.f32.gmra.mrb[74].mxu1 %v3782_v53  ;;  %695 = vadd.xlane.f32.xlu0 %v694_v3  ;;  %v4886_v10 = vadd.f32 %v6564_v61, %v13441_v17  ;;  %v1894_v53 = vsub.f32 %v10440_v32, %v1766_v38  ;;  %6161 = vrsqrt.f32 %v10699_v57  ;;  %v6566_v17 = vld [vmem:[%s7253_s9 + $0x260] sm:$0xff]  ;;  %vm2454_vm0 = vcmp.eq.f32.partialorder %v10699_v57, inf  ;;  %v13450_v45 = vld [vmem:[#allocation13_spill] sm:$0xff] }
 0x2d1   : > { %13439 = vst [vmem:[#allocation40_spill] sm:$0xff] %v10714_v50  ;;  %v5025_v22 = vadd.f32 %v9554_v43, %v4757_v34  ;;  %v5153_v6 = vadd.f32 %v9554_v43, %v4885_v39  ;;  %v1830_v3 = vsub.f32 %v10464_v51, %v1702_v63  ;;  %v5026_v44 = vadd.f32 %v9581_v0, %v4758_v62  ;;  %v10765_v7 = vpop.xlane.xlu1 %842 }
 0x2d2   : > { %v5154_v11 = vadd.f32 %v9581_v0, %v4886_v10  ;;  %6163 = vrsqrt.f32 %v10648_v41  ;;  %v1143_v32 = vmul.f32 %v10576_v28, %v10576_v28  ;;  %v1014_v12 = vmul.f32 %v10579_v9, %v10579_v9 }
 0x2d3   : > { %5281 = vst [vmem:[%s9596_s20 + $0xc0] sm:$0xff] %v5025_v22  ;;  %5409 = vst [vmem:[%s9596_s20 + $0x4c0] sm:$0xff] %v5153_v6  ;;  %v1015_v38 = vmul.f32 %v10582_v13, %v10582_v13  ;;  %v2450_v51 = vand.u32 2147483648, %v10550_v36  ;;  %v10753_v34 = vmax.f32 %v2021_v30, 0.0  ;;  %6165 = vrsqrt.f32 %v10722_v52  ;;  %v6565_v30 = vld [vmem:[%s7253_s9 + $0x268] sm:$0xff]  ;;  %v10782_v22 = vld [vmem:[%s7253_s9 + $0x7f0] sm:$0xff]  ;;  %v10784_v6 = vpop.xlane.xlu0 %650 }
 0x2d4   : > { %5282 = vst [vmem:[%s9596_s20 + $0xc8] sm:$0xff] %v5026_v44  ;;  %5410 = vst [vmem:[%s9596_s20 + $0x4c8] sm:$0xff] %v5154_v11  ;;  %v10760_v28 = vmul.f32 %v10725_v26, %v10399_v2  ;;  %v10763_v9 = vmul.f32 0.00390625, %v10420_v24  ;;  %v2022_v13 = vmul.f32 0.003921569, %v1894_v53  ;;  %v1523_v39 = vadd.f32 %v1143_v32, %v1142_v8  ;;  %v6567_v8 = vld [vmem:[%s7253_s9 + $0x668] sm:$0xff] }
 0x2d5   : > { %v1958_v55 = vmul.f32 0.003921569, %v1830_v3  ;;  %v3401_v62 = vsub.f32 %v6565_v30, %v10314_v5  ;;  %v1331_v61 = vadd.f32 %v1015_v38, %v1014_v12  ;;  %v2448_v2 = vsel %vm2447_vm12, %v10550_v36, %v10696_v58  ;;  %v6568_v44 = vld [vmem:[%s7253_s9 + $0x660] sm:$0xff]  ;;  %v10795_v12 = vld [vmem:[%s7253_s9 + $0x7f8] sm:$0xff]  ;;  %v10798_v38 = vld [vmem:[%s7253_s9 + $0x3f0] sm:$0xff] }
 0x2d6   : > { %v3400_v10 = vsub.f32 %v6566_v17, %v10314_v5  ;;  %1524 = vadd.xlane.f32.xlu1 %v1523_v39  ;;  %v2896_v53 = vsel %vm2895_vm13, %v10508_v15, %v10646_v21  ;;  %v3529_v3 = vsub.f32 %v6567_v8, %v10305_v33  ;;  %v3528_v36 = vsub.f32 %v6568_v44, %v10305_v33  ;;  %v10801_v39 = vld [vmem:[%s7253_s9 + $0x3f8] sm:$0xff] }
 0x2d7   : > { %v6158_v5 = vpop.eup %6157  ;;  %1332 = vadd.xlane.f32.xlu0 %v1331_v61  ;;  %v2451_v11 = vsel %vm2449_vm14, %v2450_v51, %v2448_v2  ;;  %v13443_v32 = vand.u32 2147483648, %v10508_v15  ;;  %v1703_v15 = vmul.f32 %v10763_v9, %v10420_v24  ;;  %v10812_v51 = vmax.f32 %v2022_v13, 0.0  ;;  %v10821_v24 = vpop.xlane.xlu1 %1479 }
 0x2d8   : > { %v3657_v8 = vmul.f32 %v6158_v5, %v3401_v62  ;;  %v3107_v50 = vadd.f32 1e-06, %v2451_v11  ;;  %v10815_v44 = vmax.f32 %v1958_v55, 0.0  ;;  %v889_v62 = vadd.f32 %v10795_v12, %v10782_v22  ;;  %v13447_v55 = vld [vmem:[#allocation15_spill] sm:$0xff] }
 0x2d9   : > { %v10786_v58 = vpop.f32.mrb[42].mxu0  ;;  %v2899_v21 = vsel %vm2897_vm15, %v13443_v32, %v2896_v53  ;;  %v6160_v63 = vpop.eup %6159  ;;  %vm2456_vm2 = vcmp.eq.f32.partialorder %v10699_v57, 0.0  ;;  %vm2904_vm3 = vcmp.eq.f32.partialorder %v10648_v41, 0.0  ;;  %vm2909_vm4 = vcmp.eq.f32.partialorder %v10753_v34, inf }
 0x2da   : > { %13442 = vst [vmem:[#allocation42_spill] sm:$0xff] %v10786_v58  ;;  %v10803_v30 = vpop.f32.mrb[42].mxu1  ;;  %v10805_v17 = vpop.f32.mrb[43].mxu0  ;;  %v3656_v58 = vmul.f32 %v6158_v5, %v3400_v10  ;;  %v3171_v33 = vadd.f32 1e-06, %v2899_v21  ;;  %v3785_v2 = vmul.f32 %v6160_v63, %v3529_v3  ;;  %v3784_v53 = vmul.f32 %v6160_v63, %v3528_v36  ;;  %4192 = vmatprep.mubr.f32.mxu0 %v3657_v8  ;;  %v6569_v63 = vld [vmem:[%s7253_s9 + $0xd0] sm:$0xff] }
 0x2db   : > { %13444 = vst [vmem:[#allocation41_spill] sm:$0xff] %v10803_v30  ;;  %13445 = vst [vmem:[#allocation39_spill] sm:$0xff] %v10805_v17  ;;  %v10807_v61 = vpop.f32.mrb[43].mxu1  ;;  %6167 = vrcp.f32 %v3107_v50  ;;  %v697_v10 = vadd.f32 %v10801_v39, %v10798_v38  ;;  %v6162_v13 = vpop.eup %6161  ;;  %v10824_v5 = vmul.f32 0.00390625, %v10487_v29  ;;  %v4759_v50 = vadd.f32 %v6569_v63, %v13447_v55  ;;  %v6570_v3 = vld [vmem:[%s7253_s9 + $0x4d0] sm:$0xff]  ;;  %890 = vadd.xlane.f32.xlu1 %v889_v62  ;;  %v6571_v8 = vld [vmem:[%s7253_s9 + $0xd8] sm:$0xff] }
 0x2dc   : > { %13446 = vst [vmem:[#allocation46_spill] sm:$0xff] %v10807_v61  ;;  %4576 = vmatprep.mubr.f32.mxu1 %v3785_v2  ;;  %4193 = vmatmul.mubr.f32.gmra.mrb[76].mxu0 %v3656_v58  ;;  %6169 = vrcp.f32 %v3171_v33  ;;  %v13448_v36 = vld [vmem:[#allocation49_spill] sm:$0xff]  ;;  %v6164_v32 = vpop.eup %6163  ;;  %v10831_v21 = vmul.f32 0.00390625, %v10502_v14  ;;  %v13449_v61 = vld [vmem:[#allocation14_spill] sm:$0xff]  ;;  %v1144_v33 = vmul.f32 %v10678_v35, %v10678_v35  ;;  %v10839_v2 = vpop.xlane.xlu0 %1287  ;;  %v1895_v55 = vsub.f32 %v10518_v1, %v10760_v28 }
 0x2dd   : > { %v4887_v11 = vadd.f32 %v6570_v3, %v13448_v36  ;;  %4577 = vmatmul.mubr.f32.gmra.mrb[76].mxu1 %v3784_v53  ;;  %v4760_v17 = vadd.f32 %v6571_v8, %v13449_v61  ;;  %v6572_v30 = vld [vmem:[%s7253_s9 + $0x4d8] sm:$0xff]  ;;  %v6166_v63 = vpop.eup %6165  ;;  %698 = vadd.xlane.f32.xlu0 %v697_v10  ;;  %v5027_v53 = vadd.f32 %v9554_v43, %v4759_v50  ;;  %6171 = vrsqrt.f32 %v10753_v34 }
 0x2de   : > { %v4888_v58 = vadd.f32 %v6572_v30, %v13450_v45  ;;  %v1145_v45 = vmul.f32 %v10683_v47, %v10683_v47  ;;  %v2453_v30 = vmul.f32 %v6162_v13, %v10699_v57  ;;  %v1831_v35 = vsub.f32 %v10554_v37, %v1703_v15 }
 0x2df   : > { %v5155_v61 = vadd.f32 %v9554_v43, %v4887_v11  ;;  %v5028_v62 = vadd.f32 %v9581_v0, %v4760_v17  ;;  %v2901_v1 = vmul.f32 %v6164_v32, %v10648_v41  ;;  %5283 = vst [vmem:[%s9596_s20 + $0xd0] sm:$0xff] %v5027_v53  ;;  %v1016_v10 = vmul.f32 %v10686_v59, %v10686_v59  ;;  %v10866_v17 = vpop.xlane.xlu1 %845 }
 0x2e0   : > { %v5156_v3 = vadd.f32 %v9581_v0, %v4888_v58  ;;  %v1526_v28 = vadd.f32 %v1145_v45, %v1144_v33  ;;  %v2457_v47 = vand.u32 2147483648, %v10699_v57  ;;  %v10859_v13 = vmul.f32 %v6166_v63, %v10722_v52  ;;  %v6574_v33 = vld [vmem:[%s7253_s9 + $0x270] sm:$0xff] }
 0x2e1   : > { %5411 = vst [vmem:[%s9596_s20 + $0x4d0] sm:$0xff] %v5155_v61  ;;  %6173 = vrsqrt.f32 %v10812_v51  ;;  %5284 = vst [vmem:[%s9596_s20 + $0xd8] sm:$0xff] %v5028_v62  ;;  %v1017_v37 = vmul.f32 %v10689_v18, %v10689_v18  ;;  %v10871_v59 = vmul.f32 %v10824_v5, %v10487_v29  ;;  %v10875_v15 = vmul.f32 %v10831_v21, %v10502_v14  ;;  %v10883_v29 = vpop.xlane.xlu0 %653  ;;  %v6573_v14 = vld [vmem:[%s7253_s9 + $0x278] sm:$0xff]  ;;  %v6576_v62 = vld [vmem:[%s7253_s9 + $0x670] sm:$0xff] }
 0x2e2   : > { %5412 = vst [vmem:[%s9596_s20 + $0x4d8] sm:$0xff] %v5156_v3  ;;  %6175 = vrsqrt.f32 %v10815_v44  ;;  %v2023_v50 = vmul.f32 0.003921569, %v1895_v55  ;;  %1527 = vadd.xlane.f32.xlu1 %v1526_v28  ;;  %v1959_v11 = vmul.f32 0.003921569, %v1831_v35  ;;  %v2455_v32 = vsel %vm2454_vm0, %v10699_v57, %v2453_v30  ;;  %v6575_v30 = vld [vmem:[%s7253_s9 + $0x678] sm:$0xff] }
 0x2e3   : > { %v1334_v18 = vadd.f32 %v1017_v37, %v1016_v10  ;;  %v3403_v58 = vsub.f32 %v6573_v14, %v10404_v16  ;;  %v3402_v63 = vsub.f32 %v6574_v33, %v10404_v16  ;;  %v2458_v55 = vsel %vm2456_vm2, %v2457_v47, %v2455_v32 }
 0x2e4   : > { %v10877_v36 = vpop.f32.mrb[44].mxu0  ;;  %v2903_v53 = vsel %vm2902_vm1, %v10648_v41, %v2901_v1  ;;  %v3531_v35 = vsub.f32 %v6575_v30, %v10389_v31  ;;  %v3530_v3 = vsub.f32 %v6576_v62, %v10389_v31  ;;  %v3108_v28 = vadd.f32 1e-06, %v2458_v55  ;;  %v10907_v30 = vpop.xlane.xlu1 %1482  ;;  %v6579_v62 = vld [vmem:[%s7253_s9 + $0xe8] sm:$0xff] }
 0x2e5   : > { %v10885_v8 = vpop.f32.mrb[44].mxu1  ;;  %v10894_v61 = vpop.f32.mrb[45].mxu0  ;;  %1335 = vadd.xlane.f32.xlu0 %v1334_v18  ;;  %v10903_v10 = vmax.f32 %v2023_v50, 0.0  ;;  %v13452_v37 = vand.u32 2147483648, %v10648_v41  ;;  %v10910_v31 = vmax.f32 %v1959_v11, 0.0  ;;  %v1146_v50 = vmul.f32 %v10782_v22, %v10782_v22 }
 0x2e6   : > { %v10896_v45 = vpop.f32.mrb[45].mxu1  ;;  %v6168_v57 = vpop.eup %6167  ;;  %6177 = vrcp.f32 %v3108_v28  ;;  %v1147_v41 = vmul.f32 %v10795_v12, %v10795_v12  ;;  %v1018_v18 = vmul.f32 %v10798_v38, %v10798_v38  ;;  %v1019_v22 = vmul.f32 %v10801_v39, %v10801_v39  ;;  %v6577_v12 = vld [vmem:[%s7253_s9 + $0xe0] sm:$0xff] }
 0x2e7   : > { %13451 = vst [vmem:[#allocation45_spill] sm:$0xff] %v10896_v45  ;;  %v6170_v16 = vpop.eup %6169  ;;  %v3659_v47 = vmul.f32 %v6168_v57, %v3403_v58  ;;  %v3658_v1 = vmul.f32 %v6168_v57, %v3402_v63  ;;  %v2906_v32 = vsel %vm2904_vm3, %v13452_v37, %v2903_v53  ;;  %v10919_v58 = vmul.f32 0.00390625, %v10584_v42  ;;  %v6578_v38 = vld [vmem:[%s7253_s9 + $0x4e0] sm:$0xff]  ;;  %v13453_v57 = vld [vmem:[#allocation18_spill] sm:$0xff]  ;;  %v6580_v37 = vld [vmem:[%s7253_s9 + $0x4e8] sm:$0xff] }
 0x2e8   : > { %v3787_v14 = vmul.f32 %v6170_v16, %v3531_v35  ;;  %v3786_v33 = vmul.f32 %v6170_v16, %v3530_v3  ;;  %v3172_v45 = vadd.f32 1e-06, %v2906_v32  ;;  %v10922_v63 = vmul.f32 0.00390625, %v10592_v19  ;;  %v6172_v11 = vpop.eup %6171  ;;  %v13454_v3 = vld [vmem:[#allocation16_spill] sm:$0xff]  ;;  %v10932_v16 = vpop.xlane.xlu0 %1290  ;;  %v13455_v32 = vld [vmem:[#allocation17_spill] sm:$0xff] }
 0x2e9   : > { %4198 = vmatprep.mubr.f32.mxu0 %v3659_v47  ;;  %v1529_v55 = vadd.f32 %v1147_v41, %v1146_v50  ;;  %v4761_v53 = vadd.f32 %v6577_v12, %v10199_v27  ;;  %v4889_v35 = vadd.f32 %v6578_v38, %v13453_v57  ;;  %v4762_v28 = vadd.f32 %v6579_v62, %v13454_v3 }
 0x2ea   : > { %4582 = vmatprep.mubr.f32.mxu1 %v3787_v14  ;;  %4199 = vmatmul.mubr.f32.gmra.mrb[78].mxu0 %v3658_v1  ;;  %6179 = vrcp.f32 %v3172_v45  ;;  %v1896_v45 = vsub.f32 %v10623_v20, %v10871_v59  ;;  %v1832_v39 = vsub.f32 %v10643_v56, %v10875_v15  ;;  %v1337_v1 = vadd.f32 %v1019_v22, %v1018_v18  ;;  %v10948_v15 = vpop.xlane.xlu1 %848 }
 0x2eb   : > { %4583 = vmatmul.mubr.f32.gmra.mrb[78].mxu1 %v3786_v33  ;;  %v6174_v47 = vpop.eup %6173  ;;  %v4890_v14 = vadd.f32 %v6580_v37, %v13455_v32  ;;  %v2912_v33 = vand.u32 2147483648, %v10753_v34  ;;  %1530 = vadd.xlane.f32.xlu1 %v1529_v55  ;;  %v5029_v50 = vadd.f32 %v9554_v43, %v4761_v53  ;;  %v5157_v41 = vadd.f32 %v9554_v43, %v4889_v35  ;;  %v13461_v37 = vld [vmem:[#allocation43_spill] sm:$0xff] }
 0x2ec   : > { %v6176_v27 = vpop.eup %6175  ;;  %v5030_v20 = vadd.f32 %v9581_v0, %v4762_v28  ;;  %v2908_v59 = vmul.f32 %v6172_v11, %v10753_v34  ;;  %vm2461_vm5 = vcmp.eq.f32.partialorder %v10722_v52, inf  ;;  %6181 = vrsqrt.f32 %v10910_v31  ;;  %1338 = vadd.xlane.f32.xlu0 %v1337_v1  ;;  %v6581_v28 = vld [vmem:[%s7253_s9 + $0x288] sm:$0xff] }
 0x2ed   : > { %v5158_v56 = vadd.f32 %v9581_v0, %v4890_v14  ;;  %v2464_v22 = vand.u32 2147483648, %v10722_v52  ;;  %v10954_v55 = vmul.f32 %v6174_v47, %v10812_v51  ;;  %6183 = vrsqrt.f32 %v10903_v10  ;;  %5285 = vst [vmem:[%s9596_s20 + $0xe0] sm:$0xff] %v5029_v50  ;;  %5413 = vst [vmem:[%s9596_s20 + $0x4e0] sm:$0xff] %v5157_v41  ;;  %v6582_v1 = vld [vmem:[%s7253_s9 + $0x688] sm:$0xff]  ;;  %v6583_v14 = vld [vmem:[%s7253_s9 + $0x280] sm:$0xff]  ;;  %v10981_v50 = vpop.xlane.xlu0 %656 }
 0x2ee   : > { %v10950_v18 = vpop.f32.mrb[46].mxu0  ;;  %5286 = vst [vmem:[%s9596_s20 + $0xe8] sm:$0xff] %v5030_v20  ;;  %v2462_v11 = vsel %vm2461_vm5, %v10722_v52, %v10859_v13  ;;  %v1769_v38 = vmul.f32 %v10919_v58, %v10584_v42  ;;  %v1705_v57 = vmul.f32 %v10922_v63, %v10592_v19  ;;  %v2024_v35 = vmul.f32 0.003921569, %v1896_v45  ;;  %v13460_v13 = vld [vmem:[#allocation32_spill] sm:$0xff] }
 0x2ef   : > { %13456 = vst [vmem:[#allocation12_spill] sm:$0xff] %v10950_v18  ;;  %v10962_v12 = vpop.f32.mrb[46].mxu1  ;;  %v10964_v53 = vpop.f32.mrb[47].mxu0  ;;  %v1960_v62 = vmul.f32 0.003921569, %v1832_v39  ;;  %5414 = vst [vmem:[%s9596_s20 + $0x4e8] sm:$0xff] %v5158_v56  ;;  %v3405_v47 = vsub.f32 %v6581_v28, %v13460_v13  ;;  %v3533_v32 = vsub.f32 %v6582_v1, %v13461_v37  ;;  %v3404_v42 = vsub.f32 %v6583_v14, %v13460_v13 }
 0x2f0   : > { %13457 = vst [vmem:[#allocation15_spill] sm:$0xff] %v10962_v12  ;;  %13458 = vst [vmem:[#allocation49_spill] sm:$0xff] %v10964_v53  ;;  %v10971_v3 = vpop.f32.mrb[47].mxu1  ;;  %vm2468_vm6 = vcmp.eq.f32.partialorder %v10815_v44, inf  ;;  %vm2463_vm7 = vcmp.eq.f32.partialorder %v10722_v52, 0.0  ;;  %v6178_v19 = vpop.eup %6177  ;;  %v6584_v45 = vld [vmem:[%s7253_s9 + $0x680] sm:$0xff]  ;;  %v2910_v20 = vsel %vm2909_vm4, %v10753_v34, %v2908_v59 }
 0x2f1   : > { %13459 = vst [vmem:[#allocation14_spill] sm:$0xff] %v10971_v3  ;;  %v3532_v39 = vsub.f32 %v6584_v45, %v13461_v37  ;;  %v2465_v41 = vsel %vm2463_vm7, %v2464_v22, %v2462_v11  ;;  %vm2911_vm8 = vcmp.eq.f32.partialorder %v10753_v34, 0.0  ;;  %v3661_v56 = vmul.f32 %v6178_v19, %v3405_v47  ;;  %v10993_v11 = vpop.xlane.xlu1 %1485  ;;  %v6610_v12 = vld [vmem:[%s7253_s9 + $0x520] sm:$0xff] }
 0x2f2   : > { %v3660_v28 = vmul.f32 %v6178_v19, %v3404_v42  ;;  %v3109_v1 = vadd.f32 1e-06, %v2465_v41  ;;  %v2913_v13 = vsel %vm2911_vm8, %v2912_v33, %v2910_v20  ;;  %v10989_v52 = vmax.f32 %v1960_v62, 0.0  ;;  %v6585_v62 = vld [vmem:[%s7253_s9 + $0xf0] sm:$0xff]  ;;  %v6587_v41 = vld [vmem:[%s7253_s9 + $0xf8] sm:$0xff] }
 0x2f3   : > { %v1897_v3 = vsub.f32 %v10720_v46, %v1769_v38  ;;  %v1833_v37 = vsub.f32 %v10736_v60, %v1705_v57  ;;  %v3173_v22 = vadd.f32 1e-06, %v2913_v13  ;;  %v10996_v59 = vmul.f32 0.00390625, %v10671_v49  ;;  %4204 = vmatprep.mubr.f32.mxu0 %v3661_v56  ;;  %v13462_v46 = vld [vmem:[#allocation48_spill] sm:$0xff]  ;;  %v6586_v60 = vld [vmem:[%s7253_s9 + $0x4f0] sm:$0xff]  ;;  %v6588_v20 = vld [vmem:[%s7253_s9 + $0x4f8] sm:$0xff] }
 0x2f4   : > { %v6180_v14 = vpop.eup %6179  ;;  %6185 = vrcp.f32 %v3109_v1  ;;  %v2467_v33 = vmul.f32 %v6176_v27, %v10815_v44  ;;  %4205 = vmatmul.mubr.f32.gmra.mrb[80].mxu0 %v3660_v28  ;;  %v4763_v38 = vadd.f32 %v6585_v62, %v13462_v46  ;;  %v13463_v57 = vld [vmem:[#allocation22_spill] sm:$0xff]  ;;  %v11003_v19 = vmax.f32 %v2024_v35, 0.0  ;;  %v13465_v56 = vld [vmem:[#allocation21_spill] sm:$0xff]  ;;  %v11012_v28 = vpop.xlane.xlu0 %1293 }
 0x2f5   : > { %v3789_v34 = vmul.f32 %v6180_v14, %v3533_v32  ;;  %v3788_v47 = vmul.f32 %v6180_v14, %v3532_v39  ;;  %6187 = vrcp.f32 %v3173_v22  ;;  %v4891_v42 = vadd.f32 %v6586_v60, %v13463_v57  ;;  %v13464_v32 = vld [vmem:[#allocation20_spill] sm:$0xff] }
 0x2f6   : > { %v11006_v45 = vmul.f32 0.00390625, %v10691_v40  ;;  %v4764_v39 = vadd.f32 %v6587_v41, %v13464_v32  ;;  %v4892_v27 = vadd.f32 %v6588_v20, %v13465_v56  ;;  %v6182_v1 = vpop.eup %6181  ;;  %v2025_v13 = vmul.f32 0.003921569, %v1897_v3 }
 0x2f7   : > { %4588 = vmatprep.mubr.f32.mxu1 %v3789_v34  ;;  %v1961_v14 = vmul.f32 0.003921569, %v1833_v37  ;;  %v5031_v35 = vadd.f32 %v9554_v43, %v4763_v38  ;;  %v5159_v22 = vadd.f32 %v9554_v43, %v4891_v42  ;;  %v11016_v62 = vpop.eup %6183  ;;  %6189 = vrsqrt.f32 %v10989_v52  ;;  %v11032_v38 = vpop.xlane.xlu1 %851 }
 0x2f8   : > { %4589 = vmatmul.mubr.f32.gmra.mrb[80].mxu1 %v3788_v47  ;;  %v1770_v34 = vmul.f32 %v10996_v59, %v10671_v49  ;;  %v5032_v46 = vadd.f32 %v9581_v0, %v4764_v39  ;;  %v5160_v60 = vadd.f32 %v9581_v0, %v4892_v27  ;;  %vm2916_vm9 = vcmp.eq.f32.partialorder %v10812_v51, inf }
 0x2f9   : > { %v11023_v47 = vpop.f32.mrb[48].mxu0  ;;  %v2919_v3 = vand.u32 2147483648, %v10812_v51  ;;  %5287 = vst [vmem:[%s9596_s20 + $0xf0] sm:$0xff] %v5031_v35  ;;  %5415 = vst [vmem:[%s9596_s20 + $0x4f0] sm:$0xff] %v5159_v22  ;;  %v2469_v37 = vsel %vm2468_vm6, %v10815_v44, %v2467_v33  ;;  %v2471_v57 = vand.u32 2147483648, %v10815_v44  ;;  %v11038_v42 = vmul.f32 %v6182_v1, %v10910_v31  ;;  %v11063_v22 = vpop.xlane.xlu0 %659 }
 0x2fa   : > { %13466 = vst [vmem:[#allocation13_spill] sm:$0xff] %v11023_v47  ;;  %6191 = vrsqrt.f32 %v11003_v19  ;;  %v1898_v41 = vsub.f32 %v10821_v24, %v1770_v34  ;;  %5288 = vst [vmem:[%s9596_s20 + $0xf8] sm:$0xff] %v5032_v46  ;;  %v11044_v32 = vpop.f32.mrb[49].mxu0  ;;  %vm2475_vm10 = vcmp.eq.f32.partialorder %v10910_v31, inf  ;;  %v1706_v39 = vmul.f32 %v11006_v45, %v10691_v40  ;;  %v6589_v24 = vld [vmem:[%s7253_s9 + $0x298] sm:$0xff]  ;;  %v6591_v34 = vld [vmem:[%s7253_s9 + $0x290] sm:$0xff] }
 0x2fb   : > { %v11034_v49 = vpop.f32.mrb[48].mxu1  ;;  %5416 = vst [vmem:[%s9596_s20 + $0x4f8] sm:$0xff] %v5160_v60  ;;  %13468 = vst [vmem:[#allocation16_spill] sm:$0xff] %v11044_v32  ;;  %v11051_v20 = vmax.f32 %v2025_v13, 0.0  ;;  %v11053_v56 = vmax.f32 %v1961_v14, 0.0  ;;  %vm2470_vm11 = vcmp.eq.f32.partialorder %v10815_v44, 0.0  ;;  %v3407_v27 = vsub.f32 %v6589_v24, %v10543_v23 }
 0x2fc   : > { %13467 = vst [vmem:[#allocation18_spill] sm:$0xff] %v11034_v49  ;;  %v11046_v33 = vpop.f32.mrb[49].mxu1  ;;  %v2472_v1 = vsel %vm2470_vm11, %v2471_v57, %v2469_v37  ;;  %v2917_v35 = vsel %vm2916_vm9, %v10812_v51, %v10954_v55  ;;  %vm2918_vm12 = vcmp.eq.f32.partialorder %v10812_v51, 0.0  ;;  %v6590_v40 = vld [vmem:[%s7253_s9 + $0x698] sm:$0xff]  ;;  %v3406_v44 = vsub.f32 %v6591_v34, %v10543_v23  ;;  %v6592_v37 = vld [vmem:[%s7253_s9 + $0x690] sm:$0xff]  ;;  %v6593_v47 = vld [vmem:[%s7253_s9 + $0x100] sm:$0xff] }
 0x2fd   : > { %13469 = vst [vmem:[#allocation17_spill] sm:$0xff] %v11046_v33  ;;  %v13470_v13 = vld [vmem:[#allocation30_spill] sm:$0xff]  ;;  %v3110_v46 = vadd.f32 1e-06, %v2472_v1  ;;  %v2920_v60 = vsel %vm2918_vm12, %v2919_v3, %v2917_v35  ;;  %vm2923_vm13 = vcmp.eq.f32.partialorder %v10903_v10, inf  ;;  %v1834_v51 = vsub.f32 %v10839_v2, %v1706_v39  ;;  %v13471_v23 = vld [vmem:[#allocation19_spill] sm:$0xff] }
 0x2fe   : > { %v3535_v14 = vsub.f32 %v6590_v40, %v13470_v13  ;;  %v6186_v24 = vpop.eup %6185  ;;  %v3534_v57 = vsub.f32 %v6592_v37, %v13470_v13  ;;  %v2026_v55 = vmul.f32 0.003921569, %v1898_v41  ;;  %v3174_v33 = vadd.f32 1e-06, %v2920_v60  ;;  %v11078_v41 = vpop.xlane.xlu1 %1488  ;;  %v13472_v13 = vld [vmem:[#allocation38_spill] sm:$0xff]  ;;  %v13474_v37 = vld [vmem:[#allocation24_spill] sm:$0xff] }
 0x2ff   : > { %v6188_v32 = vpop.eup %6187  ;;  %v3663_v40 = vmul.f32 %v6186_v24, %v3407_v27  ;;  %v3662_v49 = vmul.f32 %v6186_v24, %v3406_v44  ;;  %6193 = vrcp.f32 %v3110_v46  ;;  %v4765_v1 = vadd.f32 %v6593_v47, %v13471_v23  ;;  %v6594_v27 = vld [vmem:[%s7253_s9 + $0x500] sm:$0xff]  ;;  %v6595_v47 = vld [vmem:[%s7253_s9 + $0x108] sm:$0xff] }
 0x300   : > { %v11076_v3 = vmul.f32 0.00390625, %v10765_v7  ;;  %v3791_v35 = vmul.f32 %v6188_v32, %v3535_v14  ;;  %v3790_v34 = vmul.f32 %v6188_v32, %v3534_v57  ;;  %6195 = vrcp.f32 %v3174_v33  ;;  %v13473_v46 = vld [vmem:[#allocation23_spill] sm:$0xff]  ;;  %v6596_v14 = vld [vmem:[%s7253_s9 + $0x508] sm:$0xff] }
 0x301   : > { %v11081_v2 = vmul.f32 0.00390625, %v10784_v6  ;;  %4210 = vmatprep.mubr.f32.mxu0 %v3663_v40  ;;  %v5033_v39 = vadd.f32 %v9554_v43, %v4765_v1  ;;  %v4893_v44 = vadd.f32 %v6594_v27, %v13472_v13  ;;  %v4766_v60 = vadd.f32 %v6595_v47, %v13473_v46  ;;  %v6190_v24 = vpop.eup %6189  ;;  %v11093_v40 = vpop.xlane.xlu0 %1296 }
 0x302   : > { %6197 = vrsqrt.f32 %v11051_v20  ;;  %4594 = vmatprep.mubr.f32.mxu1 %v3791_v35  ;;  %4211 = vmatmul.mubr.f32.gmra.mrb[82].mxu0 %v3662_v49  ;;  %v11089_v32 = vmax.f32 %v2026_v55, 0.0  ;;  %v1962_v33 = vmul.f32 0.003921569, %v1834_v51  ;;  %v4894_v57 = vadd.f32 %v6596_v14, %v13474_v37 }
 0x303   : > { %v2922_v23 = vmul.f32 %v11016_v62, %v10903_v10  ;;  %6199 = vrsqrt.f32 %v11053_v56  ;;  %4595 = vmatmul.mubr.f32.gmra.mrb[82].mxu1 %v3790_v34  ;;  %5289 = vst [vmem:[%s9596_s20 + $0x100] sm:$0xff] %v5033_v39  ;;  %v5161_v1 = vadd.f32 %v9554_v43, %v4893_v44  ;;  %v5034_v49 = vadd.f32 %v9581_v0, %v4766_v60 }
 0x304   : > { %v11103_v51 = vpop.eup %6191  ;;  %v2926_v35 = vand.u32 2147483648, %v10903_v10  ;;  %v2478_v27 = vand.u32 2147483648, %v10910_v31  ;;  %v5162_v62 = vadd.f32 %v9581_v0, %v4894_v57  ;;  %v2476_v34 = vsel %vm2475_vm10, %v10910_v31, %v11038_v42  ;;  %v11112_v39 = vpop.f32.mrb[50].mxu1 }
 0x305   : > { %v11101_v55 = vpop.f32.mrb[50].mxu0  ;;  %13476 = vst [vmem:[#allocation43_spill] sm:$0xff] %v11112_v39  ;;  %v11118_v47 = vmul.f32 %v6190_v24, %v10989_v52  ;;  %v1771_v46 = vmul.f32 %v11076_v3, %v10765_v7  ;;  %v1707_v60 = vmul.f32 %v11081_v2, %v10784_v6  ;;  %5417 = vst [vmem:[%s9596_s20 + $0x500] sm:$0xff] %v5161_v1  ;;  %v11126_v42 = vpop.f32.mrb[51].mxu1  ;;  %vm2482_vm14 = vcmp.eq.f32.partialorder %v10989_v52, inf  ;;  %v6597_v6 = vld [vmem:[%s7253_s9 + $0x2a8] sm:$0xff] }
 0x306   : > { %13475 = vst [vmem:[#allocation32_spill] sm:$0xff] %v11101_v55  ;;  %v11114_v13 = vpop.f32.mrb[51].mxu0  ;;  %5290 = vst [vmem:[%s9596_s20 + $0x108] sm:$0xff] %v5034_v49  ;;  %6201 = vrsqrt.f32 %v11089_v32  ;;  %v11130_v14 = vmax.f32 %v1962_v33, 0.0  ;;  %v11133_v24 = vmul.f32 0.00390625, %v10866_v17  ;;  %vm2477_vm15 = vcmp.eq.f32.partialorder %v10910_v31, 0.0  ;;  %v11137_v7 = vpop.xlane.xlu1 %854 }
 0x307   : > { %13477 = vst [vmem:[#allocation48_spill] sm:$0xff] %v11114_v13  ;;  %13478 = vst [vmem:[#allocation22_spill] sm:$0xff] %v11126_v42  ;;  %v3409_v37 = vsub.f32 %v6597_v6, %v10656_v54  ;;  %v2479_v57 = vsel %vm2477_vm15, %v2478_v27, %v2476_v34  ;;  %v2924_v1 = vsel %vm2923_vm13, %v10903_v10, %v2922_v23  ;;  %vm2925_vm0 = vcmp.eq.f32.partialorder %v10903_v10, 0.0  ;;  %v6598_v33 = vld [vmem:[%s7253_s9 + $0x2a0] sm:$0xff]  ;;  %v11148_v42 = vpop.xlane.xlu0 %662  ;;  %v6599_v27 = vld [vmem:[%s7253_s9 + $0x6a8] sm:$0xff] }
 0x308   : > { %5418 = vst [vmem:[%s9596_s20 + $0x508] sm:$0xff] %v5162_v62  ;;  %v3408_v49 = vsub.f32 %v6598_v33, %v10656_v54  ;;  %v1899_v62 = vsub.f32 %v10907_v30, %v1771_v46  ;;  %v3111_v31 = vadd.f32 1e-06, %v2479_v57  ;;  %v2927_v44 = vsel %vm2925_vm0, %v2926_v35, %v2924_v1  ;;  %v6600_v6 = vld [vmem:[%s7253_s9 + $0x6a0] sm:$0xff]  ;;  %v6601_v35 = vld [vmem:[%s7253_s9 + $0x110] sm:$0xff] }
 0x309   : > { %v6194_v13 = vpop.eup %6193  ;;  %vm2930_vm1 = vcmp.eq.f32.partialorder %v11003_v19, inf  ;;  %v3537_v34 = vsub.f32 %v6599_v27, %v10651_v4  ;;  %v3536_v23 = vsub.f32 %v6600_v6, %v10651_v4  ;;  %v1835_v10 = vsub.f32 %v10932_v16, %v1707_v60  ;;  %v13479_v57 = vld [vmem:[#allocation25_spill] sm:$0xff] }
 0x30a   : > { %v3175_v54 = vadd.f32 1e-06, %v2927_v44  ;;  %v6196_v33 = vpop.eup %6195  ;;  %v3665_v30 = vmul.f32 %v6194_v13, %v3409_v37  ;;  %v3664_v46 = vmul.f32 %v6194_v13, %v3408_v49  ;;  %6203 = vrcp.f32 %v3111_v31  ;;  %v6602_v60 = vld [vmem:[%s7253_s9 + $0x510] sm:$0xff]  ;;  %v6603_v37 = vld [vmem:[%s7253_s9 + $0x118] sm:$0xff]  ;;  %v13481_v49 = vld [vmem:[#allocation44_spill] sm:$0xff] }
 0x30b   : > { %v4767_v1 = vadd.f32 %v6601_v35, %v13479_v57  ;;  %v11159_v39 = vmul.f32 0.00390625, %v10883_v29  ;;  %v3793_v55 = vmul.f32 %v6196_v33, %v3537_v34  ;;  %v3792_v27 = vmul.f32 %v6196_v33, %v3536_v23  ;;  %v13480_v6 = vld [vmem:[#allocation29_spill] sm:$0xff]  ;;  %v11166_v35 = vpop.xlane.xlu1 %1491 }
 0x30c   : > { %6205 = vrcp.f32 %v3175_v54  ;;  %v6198_v4 = vpop.eup %6197  ;;  %4216 = vmatprep.mubr.f32.mxu0 %v3665_v30  ;;  %v2027_v16 = vmul.f32 0.003921569, %v1899_v62  ;;  %v4895_v13 = vadd.f32 %v6602_v60, %v13480_v6  ;;  %v4768_v31 = vadd.f32 %v6603_v37, %v13481_v49  ;;  %v6604_v62 = vld [vmem:[%s7253_s9 + $0x518] sm:$0xff]  ;;  %v11178_v37 = vpop.xlane.xlu0 %1299 }
 0x30d   : > { %v5035_v44 = vadd.f32 %v9554_v43, %v4767_v1  ;;  %v6200_v57 = vpop.eup %6199  ;;  %v2485_v34 = vand.u32 2147483648, %v10989_v52  ;;  %6207 = vrsqrt.f32 %v11130_v14  ;;  %4600 = vmatprep.mubr.f32.mxu1 %v3793_v55  ;;  %4217 = vmatmul.mubr.f32.gmra.mrb[84].mxu0 %v3664_v46  ;;  %v1963_v23 = vmul.f32 0.003921569, %v1835_v10  ;;  %v13482_v54 = vld [vmem:[#allocation27_spill] sm:$0xff]  ;;  %v11180_v55 = vpop.f32.mrb[52].mxu0  ;;  %v6606_v10 = vld [vmem:[%s7253_s9 + $0x2b0] sm:$0xff] }
 0x30e   : > { %v4896_v33 = vadd.f32 %v6604_v62, %v13482_v54  ;;  %v2929_v30 = vmul.f32 %v11103_v51, %v11003_v19  ;;  %4601 = vmatmul.mubr.f32.gmra.mrb[84].mxu1 %v3792_v27  ;;  %v5163_v60 = vadd.f32 %v9554_v43, %v4895_v13  ;;  %v5036_v6 = vadd.f32 %v9581_v0, %v4768_v31  ;;  %v11195_v13 = vpop.f32.mrb[53].mxu0 }
 0x30f   : > { %5291 = vst [vmem:[%s9596_s20 + $0x110] sm:$0xff] %v5035_v44  ;;  %13483 = vst [vmem:[#allocation20_spill] sm:$0xff] %v11180_v55  ;;  %v1772_v46 = vmul.f32 %v11133_v24, %v10866_v17  ;;  %v11187_v51 = vmul.f32 %v11159_v39, %v10883_v29  ;;  %v2483_v27 = vsel %vm2482_vm14, %v10989_v52, %v11118_v47  ;;  %v11193_v44 = vpop.f32.mrb[52].mxu1  ;;  %v11203_v62 = vmax.f32 %v2027_v16, 0.0  ;;  %v6605_v16 = vld [vmem:[%s7253_s9 + $0x2b8] sm:$0xff] }
 0x310   : > { %13484 = vst [vmem:[#allocation21_spill] sm:$0xff] %v11193_v44  ;;  %13485 = vst [vmem:[#allocation30_spill] sm:$0xff] %v11195_v13  ;;  %v6202_v49 = vpop.eup %6201  ;;  %v11198_v31 = vmul.f32 %v6198_v4, %v11051_v20  ;;  %v11201_v17 = vmul.f32 %v6200_v57, %v11053_v56  ;;  %v11206_v29 = vmul.f32 0.00390625, %v10948_v15  ;;  %v11210_v47 = vpop.f32.mrb[53].mxu1  ;;  %vm2489_vm2 = vcmp.eq.f32.partialorder %v11053_v56, inf  ;;  %v6608_v44 = vld [vmem:[%s7253_s9 + $0x6b0] sm:$0xff] }
 0x311   : > { %5419 = vst [vmem:[%s9596_s20 + $0x510] sm:$0xff] %v5163_v60  ;;  %5292 = vst [vmem:[%s9596_s20 + $0x118] sm:$0xff] %v5036_v6  ;;  %v11213_v54 = vmax.f32 %v1963_v23, 0.0  ;;  %v11216_v4 = vmul.f32 0.00390625, %v10981_v50  ;;  %v5164_v57 = vadd.f32 %v9581_v0, %v4896_v33  ;;  %vm2484_vm3 = vcmp.eq.f32.partialorder %v10989_v52, 0.0  ;;  %v11226_v23 = vpop.xlane.xlu1 %857 }
 0x312   : > { %13486 = vst [vmem:[#allocation19_spill] sm:$0xff] %v11210_v47  ;;  %v3411_v1 = vsub.f32 %v6605_v16, %v10763_v9  ;;  %v2486_v60 = vsel %vm2484_vm3, %v2485_v34, %v2483_v27  ;;  %v2931_v6 = vsel %vm2930_vm1, %v11003_v19, %v2929_v30  ;;  %vm2932_vm4 = vcmp.eq.f32.partialorder %v11003_v19, 0.0  ;;  %v6607_v30 = vld [vmem:[%s7253_s9 + $0x6b8] sm:$0xff] }
 0x313   : > { %v3410_v47 = vsub.f32 %v6606_v10, %v10763_v9  ;;  %v1900_v33 = vsub.f32 %v10993_v11, %v1772_v46  ;;  %5420 = vst [vmem:[%s9596_s20 + $0x518] sm:$0xff] %v5164_v57  ;;  %v3112_v52 = vadd.f32 1e-06, %v2486_v60  ;;  %v13487_v16 = vand.u32 2147483648, %v11003_v19  ;;  %v11240_v11 = vpop.xlane.xlu0 %665  ;;  %v6609_v57 = vld [vmem:[%s7253_s9 + $0x120] sm:$0xff] }
 0x314   : > { %v6204_v34 = vpop.eup %6203  ;;  %vm2937_vm5 = vcmp.eq.f32.partialorder %v11051_v20, inf  ;;  %6209 = vrsqrt.f32 %v11203_v62  ;;  %v3539_v27 = vsub.f32 %v6607_v30, %v10725_v26  ;;  %v3538_v55 = vsub.f32 %v6608_v44, %v10725_v26  ;;  %v13488_v60 = vld [vmem:[#allocation28_spill] sm:$0xff] }
 0x315   : > { %v2934_v13 = vsel %vm2932_vm4, %v13487_v16, %v2931_v6  ;;  %v3667_v46 = vmul.f32 %v6204_v34, %v3411_v1  ;;  %v3666_v19 = vmul.f32 %v6204_v34, %v3410_v47  ;;  %6211 = vrcp.f32 %v3112_v52  ;;  %v13489_v1 = vld [vmem:[#allocation47_spill] sm:$0xff]  ;;  %v6611_v52 = vld [vmem:[%s7253_s9 + $0x128] sm:$0xff]  ;;  %v13490_v34 = vld [vmem:[#allocation26_spill] sm:$0xff] }
 0x316   : > { %v3176_v9 = vadd.f32 1e-06, %v2934_v13  ;;  %v6206_v10 = vpop.eup %6205  ;;  %v4769_v6 = vadd.f32 %v6609_v57, %v13488_v60  ;;  %v1836_v30 = vsub.f32 %v11012_v28, %v11187_v51  ;;  %v2028_v44 = vmul.f32 0.003921569, %v1900_v33  ;;  %v6612_v28 = vld [vmem:[%s7253_s9 + $0x528] sm:$0xff]  ;;  %v13491_v51 = vld [vmem:[#allocation31_spill] sm:$0xff] }
 0x317   : > { %v3795_v16 = vmul.f32 %v6206_v10, %v3539_v27  ;;  %v3794_v53 = vmul.f32 %v6206_v10, %v3538_v55  ;;  %v6208_v26 = vpop.eup %6207  ;;  %4222 = vmatprep.mubr.f32.mxu0 %v3667_v46  ;;  %v4897_v47 = vadd.f32 %v6610_v12, %v13489_v1  ;;  %v4770_v18 = vadd.f32 %v6611_v52, %v13490_v34 }
 0x318   : > { %6213 = vrcp.f32 %v3176_v9  ;;  %v5037_v13 = vadd.f32 %v9554_v43, %v4769_v6  ;;  %4223 = vmatmul.mubr.f32.gmra.mrb[86].mxu0 %v3666_v19  ;;  %v4898_v33 = vadd.f32 %v6612_v28, %v13491_v51  ;;  %v11256_v9 = vpop.xlane.xlu1 %1494  ;;  %v11259_v10 = vmul.f32 %v6202_v49, %v11089_v32  ;;  %v11265_v19 = vpop.f32.mrb[54].mxu0  ;;  %v6615_v6 = vld [vmem:[%s7253_s9 + $0x6c8] sm:$0xff] }
 0x319   : > { %6215 = vrsqrt.f32 %v11213_v54  ;;  %4606 = vmatprep.mubr.f32.mxu1 %v3795_v16  ;;  %v5165_v46 = vadd.f32 %v9554_v43, %v4897_v47  ;;  %v5038_v57 = vadd.f32 %v9581_v0, %v4770_v18  ;;  %v11268_v60 = vmul.f32 %v6208_v26, %v11130_v14  ;;  %v11277_v16 = vpop.xlane.xlu0 %1302 }
 0x31a   : > { %4607 = vmatmul.mubr.f32.gmra.mrb[86].mxu1 %v3794_v53  ;;  %5293 = vst [vmem:[%s9596_s20 + $0x120] sm:$0xff] %v5037_v13  ;;  %v1773_v49 = vmul.f32 %v11206_v29, %v10948_v15  ;;  %v2490_v53 = vsel %vm2489_vm2, %v11053_v56, %v11201_v17  ;;  %v11279_v13 = vpop.f32.mrb[55].mxu0  ;;  %v1709_v18 = vmul.f32 %v11216_v4, %v10981_v50  ;;  %v11283_v1 = vmax.f32 %v2028_v44, 0.0  ;;  %v6613_v17 = vld [vmem:[%s7253_s9 + $0x2c8] sm:$0xff] }
 0x31b   : > { %13492 = vst [vmem:[#allocation38_spill] sm:$0xff] %v11279_v13  ;;  %v1964_v26 = vmul.f32 0.003921569, %v1836_v30  ;;  %v11286_v47 = vmul.f32 0.00390625, %v11032_v38  ;;  %5421 = vst [vmem:[%s9596_s20 + $0x520] sm:$0xff] %v5165_v46  ;;  %vm2496_vm6 = vcmp.eq.f32.partialorder %v11130_v14, inf  ;;  %v3413_v52 = vsub.f32 %v6613_v17, %v10831_v21 }
 0x31c   : > { %5294 = vst [vmem:[%s9596_s20 + $0x128] sm:$0xff] %v5038_v57  ;;  %v11292_v15 = vmul.f32 0.00390625, %v11063_v22  ;;  %v5166_v50 = vadd.f32 %v9581_v0, %v4898_v33  ;;  %vm2491_vm7 = vcmp.eq.f32.partialorder %v11053_v56, 0.0  ;;  %v1901_v30 = vsub.f32 %v11078_v41, %v1773_v49  ;;  %v6614_v33 = vld [vmem:[%s7253_s9 + $0x2c0] sm:$0xff]  ;;  %v11314_v17 = vpop.xlane.xlu1 %860 }
 0x31d   : > { %v13493_v44 = vand.u32 2147483648, %v11053_v56  ;;  %v2938_v28 = vsel %vm2937_vm5, %v11051_v20, %v11198_v31  ;;  %vm2939_vm8 = vcmp.eq.f32.partialorder %v11051_v20, 0.0  ;;  %v11306_v51 = vpop.f32.mrb[54].mxu1  ;;  %v3412_v57 = vsub.f32 %v6614_v33, %v10831_v21  ;;  %v6616_v33 = vld [vmem:[%s7253_s9 + $0x6c0] sm:$0xff]  ;;  %v11327_v55 = vpop.xlane.xlu0 %668 }
 0x31e   : > { %13494 = vst [vmem:[#allocation23_spill] sm:$0xff] %v11306_v51  ;;  %v6210_v46 = vpop.eup %6209  ;;  %v1837_v41 = vsub.f32 %v11093_v40, %v1709_v18  ;;  %5422 = vst [vmem:[%s9596_s20 + $0x528] sm:$0xff] %v5166_v50  ;;  %v13495_v49 = vand.u32 2147483648, %v11051_v20  ;;  %v11316_v31 = vpop.f32.mrb[55].mxu1  ;;  %vm2944_vm9 = vcmp.eq.f32.partialorder %v11089_v32, inf  ;;  %v11319_v12 = vmax.f32 %v1964_v26, 0.0 }
 0x31f   : > { %v2493_v34 = vsel %vm2491_vm7, %v13493_v44, %v2490_v53  ;;  %13496 = vst [vmem:[#allocation24_spill] sm:$0xff] %v11316_v31  ;;  %v6212_v44 = vpop.eup %6211  ;;  %v3541_v21 = vsub.f32 %v6615_v6, %v10824_v5  ;;  %v3540_v40 = vsub.f32 %v6616_v33, %v10824_v5  ;;  %v2029_v13 = vmul.f32 0.003921569, %v1901_v30  ;;  %v13498_v33 = vld [vmem:[#allocation34_spill] sm:$0xff] }
 0x320   : > { %v3113_v56 = vadd.f32 1e-06, %v2493_v34  ;;  %v2941_v53 = vsel %vm2939_vm8, %v13495_v49, %v2938_v28  ;;  %v3669_v50 = vmul.f32 %v6212_v44, %v3413_v52  ;;  %v3668_v34 = vmul.f32 %v6212_v44, %v3412_v57  ;;  %v6617_v28 = vld [vmem:[%s7253_s9 + $0x130] sm:$0xff]  ;;  %v13499_v44 = vld [vmem:[#allocation36_spill] sm:$0xff] }
 0x321   : > { %v3177_v18 = vadd.f32 1e-06, %v2941_v53  ;;  %v13497_v49 = vld [vmem:[#allocation33_spill] sm:$0xff]  ;;  %v1965_v5 = vmul.f32 0.003921569, %v1837_v41  ;;  %v11338_v30 = vmul.f32 0.00390625, %v11137_v7 }
 0x322   : > { %v6214_v20 = vpop.eup %6213  ;;  %6217 = vrcp.f32 %v3113_v56  ;;  %v4771_v27 = vadd.f32 %v6617_v28, %v13497_v49  ;;  %4228 = vmatprep.mubr.f32.mxu0 %v3669_v50  ;;  %v6618_v52 = vld [vmem:[%s7253_s9 + $0x530] sm:$0xff]  ;;  %v6619_v56 = vld [vmem:[%s7253_s9 + $0x138] sm:$0xff]  ;;  %vm2503_vm10 = vcmp.eq.f32.partialorder %v11213_v54, inf  ;;  %vm2498_vm11 = vcmp.eq.f32.partialorder %v11130_v14, 0.0 }
 0x323   : > { %v3797_v26 = vmul.f32 %v6214_v20, %v3541_v21  ;;  %v3796_v31 = vmul.f32 %v6214_v20, %v3540_v40  ;;  %6219 = vrcp.f32 %v3177_v18  ;;  %v6216_v6 = vpop.eup %6215  ;;  %v4899_v57 = vadd.f32 %v6618_v52, %v13498_v33  ;;  %4229 = vmatmul.mubr.f32.gmra.mrb[88].mxu0 %v3668_v34  ;;  %v6620_v41 = vld [vmem:[%s7253_s9 + $0x538] sm:$0xff]  ;;  %v13500_v40 = vld [vmem:[#allocation37_spill] sm:$0xff]  ;;  %v11350_v34 = vpop.xlane.xlu1 %1497 }
 0x324   : > { %v5039_v53 = vadd.f32 %v9554_v43, %v4771_v27  ;;  %v4772_v51 = vadd.f32 %v6619_v56, %v13499_v44  ;;  %6221 = vrsqrt.f32 %v11319_v12  ;;  %v1774_v21 = vmul.f32 %v11286_v47, %v11032_v38 }
 0x325   : > { %4612 = vmatprep.mubr.f32.mxu1 %v3797_v26  ;;  %v4900_v18 = vadd.f32 %v6620_v41, %v13500_v40  ;;  %v11343_v27 = vmul.f32 %v6210_v46, %v11203_v62  ;;  %v1710_v20 = vmul.f32 %v11292_v15, %v11063_v22  ;;  %v5167_v38 = vadd.f32 %v9554_v43, %v4899_v57  ;;  %v6623_v57 = vld [vmem:[%s7253_s9 + $0x2d0] sm:$0xff] }
 0x326   : > { %4613 = vmatmul.mubr.f32.gmra.mrb[88].mxu1 %v3796_v31  ;;  %5295 = vst [vmem:[%s9596_s20 + $0x130] sm:$0xff] %v5039_v53  ;;  %v5040_v50 = vadd.f32 %v9581_v0, %v4772_v51  ;;  %v11353_v28 = vmul.f32 %v6216_v6, %v11213_v54  ;;  %6223 = vrsqrt.f32 %v11283_v1  ;;  %v1902_v46 = vsub.f32 %v11166_v35, %v1774_v21  ;;  %v11371_v6 = vpop.xlane.xlu0 %1305 }
 0x327   : > { %v2497_v22 = vsel %vm2496_vm6, %v11130_v14, %v11268_v60  ;;  %v11361_v31 = vmax.f32 %v2029_v13, 0.0  ;;  %v11363_v49 = vmax.f32 %v1965_v5, 0.0  ;;  %v11366_v51 = vmul.f32 0.00390625, %v11148_v42  ;;  %5423 = vst [vmem:[%s9596_s20 + $0x530] sm:$0xff] %v5167_v38  ;;  %v6621_v60 = vld [vmem:[%s7253_s9 + $0x2d8] sm:$0xff] }
 0x328   : > { %v1838_v26 = vsub.f32 %v11178_v37, %v1710_v20  ;;  %5296 = vst [vmem:[%s9596_s20 + $0x138] sm:$0xff] %v5040_v50  ;;  %v11376_v35 = vmul.f32 %v11338_v30, %v11137_v7  ;;  %v3415_v13 = vsub.f32 %v6621_v60, %v10922_v63  ;;  %v5168_v5 = vadd.f32 %v9581_v0, %v4900_v18  ;;  %v6622_v37 = vld [vmem:[%s7253_s9 + $0x6d8] sm:$0xff] }
 0x329   : > { %v3543_v53 = vsub.f32 %v6622_v37, %v10919_v58  ;;  %v13501_v52 = vand.u32 2147483648, %v11130_v14  ;;  %v2945_v7 = vsel %vm2944_vm9, %v11089_v32, %v11259_v10  ;;  %vm2946_vm12 = vcmp.eq.f32.partialorder %v11089_v32, 0.0  ;;  %v6624_v14 = vld [vmem:[%s7253_s9 + $0x6d0] sm:$0xff] }
 0x32a   : > { %v3414_v56 = vsub.f32 %v6623_v57, %v10922_v63  ;;  %v2030_v44 = vmul.f32 0.003921569, %v1902_v46  ;;  %5424 = vst [vmem:[%s9596_s20 + $0x538] sm:$0xff] %v5168_v5  ;;  %v13502_v41 = vand.u32 2147483648, %v11089_v32  ;;  %vm2951_vm13 = vcmp.eq.f32.partialorder %v11203_v62, inf  ;;  %v11404_v63 = vpop.f32.mrb[56].mxu0  ;;  %v11415_v57 = vpop.xlane.xlu0 %671 }
 0x32b   : > { %v2500_v33 = vsel %vm2498_vm11, %v13501_v52, %v2497_v22  ;;  %v3542_v20 = vsub.f32 %v6624_v14, %v10919_v58  ;;  %v1966_v38 = vmul.f32 0.003921569, %v1838_v26  ;;  %v11400_v10 = vmul.f32 0.00390625, %v11226_v23  ;;  %v11402_v22 = vpop.xlane.xlu1 %863  ;;  %v6625_v5 = vld [vmem:[%s7253_s9 + $0x140] sm:$0xff]  ;;  %v11408_v52 = vpop.f32.mrb[56].mxu1 }
 0x32c   : > { %v3114_v21 = vadd.f32 1e-06, %v2500_v33  ;;  %v2948_v40 = vsel %vm2946_vm12, %v13502_v41, %v2945_v7  ;;  %v6218_v18 = vpop.eup %6217  ;;  %v4773_v37 = vadd.f32 %v6625_v5, %v10693_v25  ;;  %v11410_v58 = vpop.f32.mrb[57].mxu0  ;;  %v11413_v7 = vmul.f32 0.00390625, %v11240_v11 }
 0x32d   : > { %v3178_v50 = vadd.f32 1e-06, %v2948_v40  ;;  %v6220_v46 = vpop.eup %6219  ;;  %v3671_v60 = vmul.f32 %v6218_v18, %v3415_v13  ;;  %v3670_v32 = vmul.f32 %v6218_v18, %v3414_v56  ;;  %v1903_v56 = vsub.f32 %v11256_v9, %v11376_v35  ;;  %v13503_v40 = vld [vmem:[#allocation35_spill] sm:$0xff]  ;;  %v11424_v14 = vpop.f32.mrb[57].mxu1  ;;  %v6628_v9 = vld [vmem:[%s7253_s9 + $0x548] sm:$0xff] }
 0x32e   : > { %6225 = vrcp.f32 %v3114_v21  ;;  %v3799_v26 = vmul.f32 %v6220_v46, %v3543_v53  ;;  %v3798_v33 = vmul.f32 %v6220_v46, %v3542_v20  ;;  %v6222_v13 = vpop.eup %6221  ;;  %v5041_v25 = vadd.f32 %v9554_v43, %v4773_v37  ;;  %v6626_v21 = vld [vmem:[%s7253_s9 + $0x540] sm:$0xff]  ;;  %v6627_v53 = vld [vmem:[%s7253_s9 + $0x148] sm:$0xff] }
 0x32f   : > { %6227 = vrcp.f32 %v3178_v50  ;;  %4234 = vmatprep.mubr.f32.mxu0 %v3671_v60  ;;  %v4901_v41 = vadd.f32 %v6626_v21, %v10703_v48  ;;  %v4774_v18 = vadd.f32 %v6627_v53, %v13503_v40  ;;  %v1711_v50 = vmul.f32 %v11366_v51, %v11148_v42  ;;  %v13504_v35 = vld [vmem:[#allocation40_spill] sm:$0xff]  ;;  %v11470_v40 = vpop.xlane.xlu0 %1308 }
 0x330   : > { %6229 = vrsqrt.f32 %v11363_v49  ;;  %4618 = vmatprep.mubr.f32.mxu1 %v3799_v26  ;;  %4235 = vmatmul.mubr.f32.gmra.mrb[90].mxu0 %v3670_v32  ;;  %v4902_v46 = vadd.f32 %v6628_v9, %v13504_v35  ;;  %v11432_v60 = vpop.eup %6223  ;;  %5297 = vst [vmem:[%s9596_s20 + $0x140] sm:$0xff] %v5041_v25  ;;  %v11440_v32 = vmul.f32 %v6222_v13, %v11319_v12  ;;  %v11442_v37 = vmax.f32 %v2030_v44, 0.0  ;;  %v6632_v35 = vld [vmem:[%s7253_s9 + $0x6e0] sm:$0xff] }
 0x331   : > { %6231 = vrsqrt.f32 %v11361_v31  ;;  %4619 = vmatmul.mubr.f32.gmra.mrb[90].mxu1 %v3798_v33  ;;  %v5169_v5 = vadd.f32 %v9554_v43, %v4901_v41  ;;  %v5042_v42 = vadd.f32 %v9581_v0, %v4774_v18  ;;  %v1839_v26 = vsub.f32 %v11277_v16, %v1711_v50  ;;  %v11449_v33 = vpop.xlane.xlu1 %1500  ;;  %v6629_v16 = vld [vmem:[%s7253_s9 + $0x2e8] sm:$0xff] }
 0x332   : > { %v2504_v21 = vsel %vm2503_vm10, %v11213_v54, %v11353_v28  ;;  %v11451_v25 = vmax.f32 %v1966_v38, 0.0  ;;  %v11455_v41 = vmul.f32 %v11400_v10, %v11226_v23  ;;  %v11459_v44 = vmul.f32 %v11413_v7, %v11240_v11  ;;  %v6630_v38 = vld [vmem:[%s7253_s9 + $0x6e8] sm:$0xff]  ;;  %v6631_v11 = vld [vmem:[%s7253_s9 + $0x2e0] sm:$0xff] }
 0x333   : > { %v2031_v13 = vmul.f32 0.003921569, %v1903_v56  ;;  %5425 = vst [vmem:[%s9596_s20 + $0x540] sm:$0xff] %v5169_v5  ;;  %5298 = vst [vmem:[%s9596_s20 + $0x148] sm:$0xff] %v5042_v42  ;;  %vm2510_vm14 = vcmp.eq.f32.partialorder %v11319_v12, inf  ;;  %v3417_v28 = vsub.f32 %v6629_v16, %v11006_v45  ;;  %v3545_v53 = vsub.f32 %v6630_v38, %v10996_v59 }
 0x334   : > { %v5170_v23 = vadd.f32 %v9581_v0, %v4902_v46  ;;  %vm2505_vm15 = vcmp.eq.f32.partialorder %v11213_v54, 0.0  ;;  %v3416_v56 = vsub.f32 %v6631_v11, %v11006_v45  ;;  %v13505_v18 = vand.u32 2147483648, %v11213_v54 }
 0x335   : > { %v2952_v9 = vsel %vm2951_vm13, %v11203_v62, %v11343_v27  ;;  %vm2953_vm0 = vcmp.eq.f32.partialorder %v11203_v62, 0.0  ;;  %v3544_v46 = vsub.f32 %v6632_v35, %v10996_v59  ;;  %v1967_v5 = vmul.f32 0.003921569, %v1839_v26 }
 0x336   : > { %v2507_v50 = vsel %vm2505_vm15, %v13505_v18, %v2504_v21  ;;  %5426 = vst [vmem:[%s9596_s20 + $0x548] sm:$0xff] %v5170_v23  ;;  %v13506_v16 = vand.u32 2147483648, %v11203_v62  ;;  %vm2958_vm1 = vcmp.eq.f32.partialorder %v11283_v1, inf  ;;  %v11487_v54 = vmax.f32 %v2031_v13, 0.0  ;;  %v6633_v23 = vld [vmem:[%s7253_s9 + $0x150] sm:$0xff]  ;;  %v11499_v13 = vpop.f32.mrb[58].mxu0 }
 0x337   : > { %v3115_v42 = vadd.f32 1e-06, %v2507_v50  ;;  %v11490_v21 = vmul.f32 0.00390625, %v11314_v17  ;;  %v11493_v27 = vmul.f32 0.00390625, %v11327_v55  ;;  %v13507_v62 = vld [vmem:[#allocation42_spill] sm:$0xff]  ;;  %v1904_v20 = vsub.f32 %v11350_v34, %v11455_v41  ;;  %v11514_v34 = vpop.xlane.xlu0 %674 }
 0x338   : > { %v2955_v45 = vsel %vm2953_vm0, %v13506_v16, %v2952_v9  ;;  %v6226_v38 = vpop.eup %6225  ;;  %v4775_v50 = vadd.f32 %v6633_v23, %v13507_v62  ;;  %v11497_v9 = vpop.xlane.xlu1 %866  ;;  %v6634_v23 = vld [vmem:[%s7253_s9 + $0x550] sm:$0xff]  ;;  %vm2517_vm2 = vcmp.eq.f32.partialorder %v11363_v49, inf  ;;  %vm2512_vm3 = vcmp.eq.f32.partialorder %v11319_v12, 0.0 }
 0x339   : > { %v3179_v11 = vadd.f32 1e-06, %v2955_v45  ;;  %v6228_v18 = vpop.eup %6227  ;;  %v3673_v59 = vmul.f32 %v6226_v38, %v3417_v28  ;;  %v3672_v26 = vmul.f32 %v6226_v38, %v3416_v56  ;;  %6233 = vrcp.f32 %v3115_v42  ;;  %v11503_v45 = vpop.f32.mrb[58].mxu1  ;;  %v13509_v62 = vld [vmem:[#allocation41_spill] sm:$0xff] }
 0x33a   : > { %v3801_v35 = vmul.f32 %v6228_v18, %v3545_v53  ;;  %v3800_v16 = vmul.f32 %v6228_v18, %v3544_v46  ;;  %v11505_v28 = vpop.f32.mrb[59].mxu0  ;;  %v6230_v56 = vpop.eup %6229  ;;  %v1840_v42 = vsub.f32 %v11371_v6, %v11459_v44  ;;  %v5043_v38 = vadd.f32 %v9554_v43, %v4775_v50  ;;  %v6635_v46 = vld [vmem:[%s7253_s9 + $0x158] sm:$0xff] }
 0x33b   : > { %6235 = vrcp.f32 %v3179_v11  ;;  %13508 = vst [vmem:[#allocation25_spill] sm:$0xff] %v11505_v28  ;;  %4240 = vmatprep.mubr.f32.mxu0 %v3673_v59  ;;  %v4903_v53 = vadd.f32 %v6634_v23, %v13509_v62  ;;  %v13510_v11 = vld [vmem:[#allocation39_spill] sm:$0xff]  ;;  %v11516_v41 = vpop.f32.mrb[59].mxu1  ;;  %v11518_v48 = vpop.eup %6231  ;;  %v2957_v59 = vmul.f32 %v11432_v60, %v11283_v1  ;;  %v13512_v50 = vld [vmem:[#allocation46_spill] sm:$0xff]  ;;  %vm2960_vm4 = vcmp.eq.f32.partialorder %v11283_v1, 0.0 }
 0x33c   : > { %v4776_v18 = vadd.f32 %v6635_v46, %v13510_v11  ;;  %13511 = vst [vmem:[#allocation29_spill] sm:$0xff] %v11516_v41  ;;  %6237 = vrsqrt.f32 %v11451_v25  ;;  %4624 = vmatprep.mubr.f32.mxu1 %v3801_v35  ;;  %4241 = vmatmul.mubr.f32.gmra.mrb[92].mxu0 %v3672_v26  ;;  %v6636_v44 = vld [vmem:[%s7253_s9 + $0x558] sm:$0xff]  ;;  %5299 = vst [vmem:[%s9596_s20 + $0x150] sm:$0xff] %v5043_v38  ;;  %v11532_v35 = vmul.f32 %v6230_v56, %v11363_v49 }
 0x33d   : > { %v4904_v23 = vadd.f32 %v6636_v44, %v13512_v50  ;;  %6239 = vrsqrt.f32 %v11442_v37  ;;  %4625 = vmatmul.mubr.f32.gmra.mrb[92].mxu1 %v3800_v16  ;;  %v5171_v60 = vadd.f32 %v9554_v43, %v4903_v53  ;;  %v11534_v26 = vmax.f32 %v1967_v5, 0.0  ;;  %v6638_v5 = vld [vmem:[%s7253_s9 + $0x6f8] sm:$0xff] }
 0x33e   : > { %v5044_v46 = vadd.f32 %v9581_v0, %v4776_v18  ;;  %v2032_v11 = vmul.f32 0.003921569, %v1904_v20  ;;  %v2511_v44 = vsel %vm2510_vm14, %v11319_v12, %v11440_v32  ;;  %6241 = vrsqrt.f32 %v11487_v54  ;;  %v6637_v20 = vld [vmem:[%s7253_s9 + $0x2f8] sm:$0xff]  ;;  %v11558_v18 = vpop.xlane.xlu1 %1503 }
 0x33f   : > { %v11543_v16 = vmul.f32 %v11490_v21, %v11314_v17  ;;  %v11547_v38 = vmul.f32 %v11493_v27, %v11327_v55  ;;  %v1968_v56 = vmul.f32 0.003921569, %v1840_v42  ;;  %5427 = vst [vmem:[%s9596_s20 + $0x550] sm:$0xff] %v5171_v60  ;;  %v3419_v32 = vsub.f32 %v6637_v20, %v11081_v2  ;;  %v6639_v55 = vld [vmem:[%s7253_s9 + $0x2f0] sm:$0xff]  ;;  %v11568_v20 = vpop.xlane.xlu0 %1311 }
 0x340   : > { %5300 = vst [vmem:[%s9596_s20 + $0x158] sm:$0xff] %v5044_v46  ;;  %v3547_v53 = vsub.f32 %v6638_v5, %v11076_v3  ;;  %v5172_v17 = vadd.f32 %v9581_v0, %v4904_v23  ;;  %v3418_v42 = vsub.f32 %v6639_v55, %v11081_v2  ;;  %v13513_v50 = vand.u32 2147483648, %v11319_v12  ;;  %v6640_v5 = vld [vmem:[%s7253_s9 + $0x6f0] sm:$0xff] }
 0x341   : > { %v2959_v46 = vsel %vm2958_vm1, %v11283_v1, %v2957_v59  ;;  %v3546_v23 = vsub.f32 %v6640_v5, %v11076_v3  ;;  %v11572_v6 = vmax.f32 %v2032_v11, 0.0  ;;  %v13514_v2 = vand.u32 2147483648, %v11283_v1  ;;  %v6641_v1 = vld [vmem:[%s7253_s9 + $0x160] sm:$0xff] }
 0x342   : > { %v2514_v60 = vsel %vm2512_vm3, %v13513_v50, %v2511_v44  ;;  %5428 = vst [vmem:[%s9596_s20 + $0x558] sm:$0xff] %v5172_v17  ;;  %vm2965_vm5 = vcmp.eq.f32.partialorder %v11361_v31, inf  ;;  %v11578_v55 = vmax.f32 %v1968_v56, 0.0  ;;  %v11581_v59 = vmul.f32 0.00390625, %v11402_v22 }
 0x343   : > { %v3116_v62 = vadd.f32 1e-06, %v2514_v60  ;;  %v2962_v12 = vsel %vm2960_vm4, %v13514_v2, %v2959_v46  ;;  %v6234_v44 = vpop.eup %6233  ;;  %v11584_v50 = vmul.f32 0.00390625, %v11415_v57  ;;  %v4777_v60 = vadd.f32 %v6641_v1, %v10877_v36  ;;  %v11590_v2 = vpop.f32.mrb[60].mxu0  ;;  %v6643_v36 = vld [vmem:[%s7253_s9 + $0x168] sm:$0xff] }
 0x344   : > { %v3180_v41 = vadd.f32 1e-06, %v2962_v12  ;;  %v3675_v11 = vmul.f32 %v6234_v44, %v3419_v32  ;;  %v3674_v17 = vmul.f32 %v6234_v44, %v3418_v42  ;;  %v1905_v56 = vsub.f32 %v11449_v33, %v11543_v16  ;;  %13515 = vst [vmem:[#allocation44_spill] sm:$0xff] %v11590_v2  ;;  %v11601_v33 = vpop.f32.mrb[61].mxu0  ;;  %v13524_v2 = vld [vmem:[#allocation15_spill] sm:$0xff] }
 0x345   : > { %v6236_v3 = vpop.eup %6235  ;;  %6243 = vrcp.f32 %v3116_v62  ;;  %v1841_v32 = vsub.f32 %v11470_v40, %v11547_v38  ;;  %v5045_v42 = vadd.f32 %v9554_v43, %v4777_v60  ;;  %v6642_v62 = vld [vmem:[%s7253_s9 + $0x560] sm:$0xff]  ;;  %13516 = vst [vmem:[#allocation27_spill] sm:$0xff] %v11601_v33  ;;  %v13517_v38 = vld [vmem:[#allocation45_spill] sm:$0xff]  ;;  %vm2524_vm6 = vcmp.eq.f32.partialorder %v11451_v25, inf }
 0x346   : > { %v3803_v46 = vmul.f32 %v6236_v3, %v3547_v53  ;;  %v3802_v5 = vmul.f32 %v6236_v3, %v3546_v23  ;;  %6245 = vrcp.f32 %v3180_v41  ;;  %v6238_v28 = vpop.eup %6237  ;;  %4246 = vmatprep.mubr.f32.mxu0 %v3675_v11  ;;  %v4905_v12 = vadd.f32 %v6642_v62, %v10885_v8  ;;  %v11599_v53 = vpop.xlane.xlu1 %869  ;;  %v6644_v8 = vld [vmem:[%s7253_s9 + $0x568] sm:$0xff] }
 0x347   : > { %v4778_v41 = vadd.f32 %v6643_v36, %v10894_v61  ;;  %v11603_v16 = vpop.eup %6239  ;;  %v2964_v23 = vmul.f32 %v11518_v48, %v11361_v31  ;;  %6247 = vrsqrt.f32 %v11534_v26  ;;  %4247 = vmatmul.mubr.f32.gmra.mrb[94].mxu0 %v3674_v17  ;;  %v4906_v44 = vadd.f32 %v6644_v8, %v13517_v38  ;;  %v11611_v3 = vpop.xlane.xlu0 %677  ;;  %5301 = vst [vmem:[%s9596_s20 + $0x160] sm:$0xff] %v5045_v42  ;;  %v6647_v8 = vld [vmem:[%s7253_s9 + $0x300] sm:$0xff] }
 0x348   : > { %4630 = vmatprep.mubr.f32.mxu1 %v3803_v46  ;;  %6249 = vrsqrt.f32 %v11572_v6  ;;  %v5173_v48 = vadd.f32 %v9554_v43, %v4905_v12  ;;  %v11618_v17 = vpop.f32.mrb[60].mxu1  ;;  %v11620_v1 = vpop.eup %6241  ;;  %v11623_v60 = vmul.f32 %v6238_v28, %v11451_v25  ;;  %v2033_v46 = vmul.f32 0.003921569, %v1905_v56  ;;  %v6645_v28 = vld [vmem:[%s7253_s9 + $0x308] sm:$0xff] }
 0x349   : > { %4631 = vmatmul.mubr.f32.gmra.mrb[94].mxu1 %v3802_v5  ;;  %v5046_v11 = vadd.f32 %v9581_v0, %v4778_v41  ;;  %13518 = vst [vmem:[#allocation28_spill] sm:$0xff] %v11618_v17  ;;  %6251 = vrsqrt.f32 %v11578_v55  ;;  %v2518_v5 = vsel %vm2517_vm2, %v11363_v49, %v11532_v35  ;;  %v11630_v42 = vpop.f32.mrb[61].mxu1  ;;  %v1778_v62 = vmul.f32 %v11581_v59, %v11402_v22  ;;  %v6646_v35 = vld [vmem:[%s7253_s9 + $0x708] sm:$0xff] }
 0x34a   : > { %13519 = vst [vmem:[#allocation47_spill] sm:$0xff] %v11630_v42  ;;  %v11636_v12 = vmul.f32 %v11584_v50, %v11415_v57  ;;  %v3421_v36 = vsub.f32 %v6645_v28, %v11159_v39  ;;  %v1969_v41 = vmul.f32 0.003921569, %v1841_v32  ;;  %5429 = vst [vmem:[%s9596_s20 + $0x560] sm:$0xff] %v5173_v48  ;;  %v3549_v56 = vsub.f32 %v6646_v35, %v11133_v24  ;;  %v6648_v57 = vld [vmem:[%s7253_s9 + $0x700] sm:$0xff]  ;;  %v11657_v28 = vpop.xlane.xlu1 %1506 }
 0x34b   : > { %5302 = vst [vmem:[%s9596_s20 + $0x168] sm:$0xff] %v5046_v11  ;;  %v3420_v38 = vsub.f32 %v6647_v8, %v11159_v39  ;;  %v5174_v22 = vadd.f32 %v9581_v0, %v4906_v44  ;;  %vm2519_vm7 = vcmp.eq.f32.partialorder %v11363_v49, 0.0  ;;  %v3548_v40 = vsub.f32 %v6648_v57, %v11133_v24 }
 0x34c   : > { %v13520_v32 = vand.u32 2147483648, %v11363_v49  ;;  %v2966_v11 = vsel %vm2965_vm5, %v11361_v31, %v2964_v23  ;;  %vm2967_vm8 = vcmp.eq.f32.partialorder %v11361_v31, 0.0  ;;  %v11659_v35 = vmax.f32 %v2033_v46, 0.0 }
 0x34d   : > { %5430 = vst [vmem:[%s9596_s20 + $0x568] sm:$0xff] %v5174_v22  ;;  %v11663_v39 = vmul.f32 0.00390625, %v11497_v9  ;;  %v13522_v24 = vand.u32 2147483648, %v11361_v31  ;;  %vm2972_vm9 = vcmp.eq.f32.partialorder %v11442_v37, inf  ;;  %v11670_v23 = vmax.f32 %v1969_v41, 0.0  ;;  %v6649_v31 = vld [vmem:[%s7253_s9 + $0x170] sm:$0xff] }
 0x34e   : > { %v2521_v48 = vsel %vm2519_vm7, %v13520_v32, %v2518_v5  ;;  %v11667_v5 = vpop.xlane.xlu0 %1314  ;;  %v11673_v57 = vmul.f32 0.00390625, %v11514_v34  ;;  %v1906_v22 = vsub.f32 %v11558_v18, %v1778_v62  ;;  %v1842_v41 = vsub.f32 %v11568_v20, %v11636_v12  ;;  %v6650_v62 = vld [vmem:[%s7253_s9 + $0x570] sm:$0xff]  ;;  %v6652_v12 = vld [vmem:[%s7253_s9 + $0x578] sm:$0xff] }
 0x34f   : > { %13521 = vst [vmem:[#allocation26_spill] sm:$0xff] %v11663_v39  ;;  %v3117_v44 = vadd.f32 1e-06, %v2521_v48  ;;  %v2969_v49 = vsel %vm2967_vm8, %v13522_v24, %v2966_v11  ;;  %v6244_v8 = vpop.eup %6243  ;;  %v13523_v11 = vld [vmem:[#allocation12_spill] sm:$0xff]  ;;  %vm2531_vm10 = vcmp.eq.f32.partialorder %v11534_v26, inf  ;;  %vm2526_vm11 = vcmp.eq.f32.partialorder %v11451_v25, 0.0 }
 0x350   : > { %v3181_v46 = vadd.f32 1e-06, %v2969_v49  ;;  %v6246_v32 = vpop.eup %6245  ;;  %v3677_v48 = vmul.f32 %v6244_v8, %v3421_v36  ;;  %v3676_v61 = vmul.f32 %v6244_v8, %v3420_v38  ;;  %v4779_v24 = vadd.f32 %v6649_v31, %v13523_v11  ;;  %v6651_v38 = vld [vmem:[%s7253_s9 + $0x178] sm:$0xff]  ;;  %v11707_v11 = vpop.f32.mrb[62].mxu0 }
 0x351   : > { %6253 = vrcp.f32 %v3117_v44  ;;  %v3805_v42 = vmul.f32 %v6246_v32, %v3549_v56  ;;  %v3804_v33 = vmul.f32 %v6246_v32, %v3548_v40  ;;  %v6248_v17 = vpop.eup %6247  ;;  %v2034_v49 = vmul.f32 0.003921569, %v1906_v22  ;;  %v13525_v44 = vld [vmem:[#allocation49_spill] sm:$0xff]  ;;  %v11693_v32 = vpop.xlane.xlu1 %872  ;;  %13527 = vst [vmem:[#allocation31_spill] sm:$0xff] %v11707_v11  ;;  %v13534_v11 = vld [vmem:[#allocation18_spill] sm:$0xff] }
 0x352   : > { %6255 = vrcp.f32 %v3181_v46  ;;  %4252 = vmatprep.mubr.f32.mxu0 %v3677_v48  ;;  %v5047_v18 = vadd.f32 %v9554_v43, %v4779_v24  ;;  %v4907_v36 = vadd.f32 %v6650_v62, %v13524_v2  ;;  %v4780_v8 = vadd.f32 %v6651_v38, %v13525_v44  ;;  %v11685_v31 = vpop.eup %6249  ;;  %v13526_v46 = vld [vmem:[#allocation14_spill] sm:$0xff]  ;;  %v11721_v62 = vpop.f32.mrb[63].mxu0 }
 0x353   : > { %v2971_v40 = vmul.f32 %v11603_v16, %v11442_v37  ;;  %4636 = vmatprep.mubr.f32.mxu1 %v3805_v42  ;;  %4253 = vmatmul.mubr.f32.gmra.mrb[96].mxu0 %v3676_v61  ;;  %v4908_v22 = vadd.f32 %v6652_v12, %v13526_v46  ;;  %v11695_v2 = vpop.eup %6251  ;;  %v11699_v48 = vmul.f32 %v11620_v1, %v11487_v54  ;;  %6257 = vrsqrt.f32 %v11659_v35  ;;  %v11705_v42 = vpop.xlane.xlu0 %680  ;;  %v6655_v46 = vld [vmem:[%s7253_s9 + $0x310] sm:$0xff] }
 0x354   : > { %4637 = vmatmul.mubr.f32.gmra.mrb[96].mxu1 %v3804_v33  ;;  %5303 = vst [vmem:[%s9596_s20 + $0x170] sm:$0xff] %v5047_v18  ;;  %v5175_v16 = vadd.f32 %v9554_v43, %v4907_v36  ;;  %v5048_v61 = vadd.f32 %v9581_v0, %v4780_v8  ;;  %v11710_v24 = vmul.f32 %v6248_v17, %v11534_v26  ;;  %6259 = vrsqrt.f32 %v11670_v23  ;;  %v11719_v18 = vpop.f32.mrb[62].mxu1  ;;  %v6653_v36 = vld [vmem:[%s7253_s9 + $0x318] sm:$0xff] }
 0x355   : > { %v1779_v33 = vmul.f32 %v11663_v39, %v11497_v9  ;;  %v2525_v1 = vsel %vm2524_vm6, %v11451_v25, %v11623_v60  ;;  %13528 = vst [vmem:[#allocation33_spill] sm:$0xff] %v11719_v18  ;;  %13529 = vst [vmem:[#allocation34_spill] sm:$0xff] %v11721_v62  ;;  %v11725_v17 = vmul.f32 %v11673_v57, %v11514_v34  ;;  %v11729_v44 = vmax.f32 %v2034_v49, 0.0  ;;  %v11733_v8 = vpop.f32.mrb[63].mxu1  ;;  %v6654_v60 = vld [vmem:[%s7253_s9 + $0x718] sm:$0xff]  ;;  %v6656_v49 = vld [vmem:[%s7253_s9 + $0x710] sm:$0xff] }
 0x356   : > { %v3423_v38 = vsub.f32 %v6653_v36, %v11216_v4  ;;  %v1970_v9 = vmul.f32 0.003921569, %v1842_v41  ;;  %5431 = vst [vmem:[%s9596_s20 + $0x570] sm:$0xff] %v5175_v16  ;;  %5304 = vst [vmem:[%s9596_s20 + $0x178] sm:$0xff] %v5048_v61  ;;  %v3551_v12 = vsub.f32 %v6654_v60, %v11206_v29  ;;  %v3422_v34 = vsub.f32 %v6655_v46, %v11216_v4 }
 0x357   : > { %13530 = vst [vmem:[#allocation36_spill] sm:$0xff] %v11733_v8  ;;  %v5176_v56 = vadd.f32 %v9581_v0, %v4908_v22  ;;  %v3550_v41 = vsub.f32 %v6656_v49, %v11206_v29  ;;  %v13531_v16 = vand.u32 2147483648, %v11451_v25  ;;  %v2973_v36 = vsel %vm2972_vm9, %v11442_v37, %v2971_v40  ;;  %v11759_v25 = vpop.xlane.xlu1 %1509 }
 0x358   : > { %vm2974_vm12 = vcmp.eq.f32.partialorder %v11442_v37, 0.0  ;;  %v11752_v60 = vmul.f32 0.00390625, %v11599_v53  ;;  %v11755_v4 = vmul.f32 0.00390625, %v11611_v3  ;;  %v13532_v29 = vand.u32 2147483648, %v11442_v37 }
 0x359   : > { %v2528_v61 = vsel %vm2526_vm11, %v13531_v16, %v2525_v1  ;;  %5432 = vst [vmem:[%s9596_s20 + $0x578] sm:$0xff] %v5176_v56  ;;  %vm2979_vm13 = vcmp.eq.f32.partialorder %v11487_v54, inf  ;;  %6261 = vrsqrt.f32 %v11729_v44  ;;  %v11763_v40 = vmax.f32 %v1970_v9, 0.0  ;;  %v11766_v16 = vpop.xlane.xlu0 %1317 }
 0x35a   : > { %v3118_v22 = vadd.f32 1e-06, %v2528_v61  ;;  %v2976_v46 = vsel %vm2974_vm12, %v13532_v29, %v2973_v36  ;;  %v1907_v49 = vsub.f32 %v11657_v28, %v1779_v33  ;;  %v6657_v36 = vld [vmem:[%s7253_s9 + $0x180] sm:$0xff]  ;;  %v13533_v29 = vld [vmem:[#allocation13_spill] sm:$0xff]  ;;  %v1843_v9 = vsub.f32 %v11667_v5, %v11725_v17 }
 0x35b   : > { %v6254_v1 = vpop.eup %6253  ;;  %v3182_v56 = vadd.f32 1e-06, %v2976_v46  ;;  %v4781_v8 = vadd.f32 %v6657_v36, %v13533_v29  ;;  %v6658_v33 = vld [vmem:[%s7253_s9 + $0x580] sm:$0xff]  ;;  %v13536_v17 = vld [vmem:[#allocation17_spill] sm:$0xff]  ;;  %vm2538_vm14 = vcmp.eq.f32.partialorder %v11578_v55, inf  ;;  %vm2533_vm15 = vcmp.eq.f32.partialorder %v11534_v26, 0.0 }
 0x35c   : > { %v6256_v61 = vpop.eup %6255  ;;  %v3679_v20 = vmul.f32 %v6254_v1, %v3423_v38  ;;  %v3678_v37 = vmul.f32 %v6254_v1, %v3422_v34  ;;  %6263 = vrcp.f32 %v3118_v22  ;;  %v2035_v46 = vmul.f32 0.003921569, %v1907_v49  ;;  %v6659_v34 = vld [vmem:[%s7253_s9 + $0x188] sm:$0xff]  ;;  %v11809_v29 = vpop.f32.mrb[64].mxu0 }
 0x35d   : > { %v3807_v62 = vmul.f32 %v6256_v61, %v3551_v12  ;;  %v3806_v18 = vmul.f32 %v6256_v61, %v3550_v41  ;;  %6265 = vrcp.f32 %v3182_v56  ;;  %v5049_v28 = vadd.f32 %v9554_v43, %v4781_v8  ;;  %v13535_v22 = vld [vmem:[#allocation16_spill] sm:$0xff]  ;;  %v11777_v39 = vpop.eup %6257  ;;  %v11797_v61 = vpop.xlane.xlu1 %875 }
 0x35e   : > { %4258 = vmatprep.mubr.f32.mxu0 %v3679_v20  ;;  %v4909_v38 = vadd.f32 %v6658_v33, %v13534_v11  ;;  %v4782_v1 = vadd.f32 %v6659_v34, %v13535_v22  ;;  %v11781_v12 = vmul.f32 %v11685_v31, %v11572_v6  ;;  %v6660_v20 = vld [vmem:[%s7253_s9 + $0x588] sm:$0xff]  ;;  %v11787_v11 = vpop.eup %6259  ;;  %v11791_v56 = vmul.f32 %v11695_v2, %v11578_v55  ;;  %v11807_v36 = vpop.xlane.xlu0 %683 }
 0x35f   : > { %4642 = vmatprep.mubr.f32.mxu1 %v3807_v62  ;;  %4259 = vmatmul.mubr.f32.gmra.mrb[98].mxu0 %v3678_v37  ;;  %v4910_v8 = vadd.f32 %v6660_v20, %v13536_v17  ;;  %5305 = vst [vmem:[%s9596_s20 + $0x180] sm:$0xff] %v5049_v28  ;;  %6267 = vrsqrt.f32 %v11763_v40  ;;  %v1780_v2 = vmul.f32 %v11752_v60, %v11599_v53  ;;  %v6661_v33 = vld [vmem:[%s7253_s9 + $0x328] sm:$0xff]  ;;  %v11817_v34 = vmax.f32 %v2035_v46, 0.0  ;;  %v11828_v17 = vpop.f32.mrb[65].mxu0  ;;  %v6664_v46 = vld [vmem:[%s7253_s9 + $0x720] sm:$0xff] }
 0x360   : > { %4643 = vmatmul.mubr.f32.gmra.mrb[98].mxu1 %v3806_v18  ;;  %v5177_v31 = vadd.f32 %v9554_v43, %v4909_v38  ;;  %v5050_v62 = vadd.f32 %v9581_v0, %v4782_v1  ;;  %v2532_v18 = vsel %vm2531_vm10, %v11534_v26, %v11710_v24  ;;  %v11813_v28 = vmul.f32 %v11755_v4, %v11611_v3  ;;  %v6662_v24 = vld [vmem:[%s7253_s9 + $0x728] sm:$0xff]  ;;  %v6663_v1 = vld [vmem:[%s7253_s9 + $0x320] sm:$0xff] }
 0x361   : > { %v3425_v38 = vsub.f32 %v6661_v33, %v11292_v15  ;;  %v1971_v53 = vmul.f32 0.003921569, %v1843_v9  ;;  %v3553_v22 = vsub.f32 %v6662_v24, %v11286_v47  ;;  %v3424_v20 = vsub.f32 %v6663_v1, %v11292_v15  ;;  %13537 = vst [vmem:[#allocation37_spill] sm:$0xff] %v11828_v17  ;;  %v11839_v15 = vpop.f32.mrb[64].mxu1  ;;  %v11857_v37 = vpop.xlane.xlu1 %1512 }
 0x362   : > { %5433 = vst [vmem:[%s9596_s20 + $0x580] sm:$0xff] %v5177_v31  ;;  %5306 = vst [vmem:[%s9596_s20 + $0x188] sm:$0xff] %v5050_v62  ;;  %v5178_v3 = vadd.f32 %v9581_v0, %v4910_v8  ;;  %v3552_v9 = vsub.f32 %v6664_v46, %v11286_v47  ;;  %v13538_v31 = vand.u32 2147483648, %v11534_v26  ;;  %v2980_v33 = vsel %vm2979_vm13, %v11487_v54, %v11699_v48  ;;  %v11850_v46 = vpop.f32.mrb[65].mxu1 }
 0x363   : > { %vm2981_vm0 = vcmp.eq.f32.partialorder %v11487_v54, 0.0  ;;  %13539 = vst [vmem:[#allocation35_spill] sm:$0xff] %v11839_v15  ;;  %v6262_v8 = vpop.eup %6261  ;;  %v11843_v24 = vmul.f32 0.00390625, %v11693_v32  ;;  %v11846_v47 = vmul.f32 0.00390625, %v11705_v42  ;;  %13541 = vst [vmem:[#allocation40_spill] sm:$0xff] %v11850_v46  ;;  %vm2986_vm1 = vcmp.eq.f32.partialorder %v11572_v6, inf  ;;  %v11861_v46 = vpop.xlane.xlu0 %1320 }
 0x364   : > { %v2535_v62 = vsel %vm2533_vm15, %v13538_v31, %v2532_v18  ;;  %5434 = vst [vmem:[%s9596_s20 + $0x588] sm:$0xff] %v5178_v3  ;;  %v13540_v18 = vand.u32 2147483648, %v11487_v54  ;;  %6269 = vrsqrt.f32 %v11817_v34  ;;  %v11854_v31 = vmax.f32 %v1971_v53, 0.0  ;;  %v13544_v15 = vld [vmem:[#allocation48_spill] sm:$0xff] }
 0x365   : > { %v3119_v26 = vadd.f32 1e-06, %v2535_v62  ;;  %v1908_v49 = vsub.f32 %v11759_v25, %v1780_v2  ;;  %v1844_v25 = vsub.f32 %v11766_v16, %v11813_v28  ;;  %vm2545_vm2 = vcmp.eq.f32.partialorder %v11670_v23, inf  ;;  %v13551_v16 = vld [vmem:[#allocation20_spill] sm:$0xff] }
 0x366   : > { %v2983_v1 = vsel %vm2981_vm0, %v13540_v18, %v2980_v33  ;;  %v6264_v48 = vpop.eup %6263  ;;  %v6665_v33 = vld [vmem:[%s7253_s9 + $0x190] sm:$0xff]  ;;  %v13542_v18 = vld [vmem:[#allocation32_spill] sm:$0xff]  ;;  %vm2540_vm3 = vcmp.eq.f32.partialorder %v11578_v55, 0.0  ;;  %vm2988_vm4 = vcmp.eq.f32.partialorder %v11572_v6, 0.0  ;;  %vm2993_vm5 = vcmp.eq.f32.partialorder %v11659_v35, inf }
 0x367   : > { %v3183_v3 = vadd.f32 1e-06, %v2983_v1  ;;  %v6266_v41 = vpop.eup %6265  ;;  %v3681_v62 = vmul.f32 %v6264_v48, %v3425_v38  ;;  %v3680_v54 = vmul.f32 %v6264_v48, %v3424_v20  ;;  %6271 = vrcp.f32 %v3119_v26  ;;  %v6666_v38 = vld [vmem:[%s7253_s9 + $0x590] sm:$0xff]  ;;  %v13543_v20 = vld [vmem:[#allocation43_spill] sm:$0xff] }
 0x368   : > { %v4783_v5 = vadd.f32 %v6665_v33, %v13542_v18  ;;  %v3809_v17 = vmul.f32 %v6266_v41, %v3553_v22  ;;  %v3808_v53 = vmul.f32 %v6266_v41, %v3552_v9  ;;  %v2036_v2 = vmul.f32 0.003921569, %v1908_v49  ;;  %v6667_v48 = vld [vmem:[%s7253_s9 + $0x198] sm:$0xff] }
 0x369   : > { %6273 = vrcp.f32 %v3183_v3  ;;  %4264 = vmatprep.mubr.f32.mxu0 %v3681_v62  ;;  %v4911_v26 = vadd.f32 %v6666_v38, %v13543_v20  ;;  %v4784_v33 = vadd.f32 %v6667_v48, %v13544_v15  ;;  %v11872_v22 = vmul.f32 %v11777_v39, %v11659_v35  ;;  %v13545_v49 = vld [vmem:[#allocation22_spill] sm:$0xff]  ;;  %v11881_v9 = vpop.eup %6267 }
 0x36a   : > { %v5051_v1 = vadd.f32 %v9554_v43, %v4783_v5  ;;  %v11876_v41 = vmul.f32 %v11787_v11, %v11670_v23  ;;  %4648 = vmatprep.mubr.f32.mxu1 %v3809_v17  ;;  %4265 = vmatmul.mubr.f32.gmra.mrb[100].mxu0 %v3680_v54  ;;  %v6668_v5 = vld [vmem:[%s7253_s9 + $0x598] sm:$0xff]  ;;  %v11884_v15 = vmul.f32 %v6262_v8, %v11729_v44  ;;  %6275 = vrsqrt.f32 %v11854_v31  ;;  %v11897_v54 = vpop.xlane.xlu1 %878  ;;  %v6672_v48 = vld [vmem:[%s7253_s9 + $0x730] sm:$0xff] }
 0x36b   : > { %v4912_v28 = vadd.f32 %v6668_v5, %v13545_v49  ;;  %4649 = vmatmul.mubr.f32.gmra.mrb[100].mxu1 %v3808_v53  ;;  %v5179_v11 = vadd.f32 %v9554_v43, %v4911_v26  ;;  %v5052_v17 = vadd.f32 %v9581_v0, %v4784_v33  ;;  %v1781_v3 = vmul.f32 %v11843_v24, %v11693_v32  ;;  %v6669_v53 = vld [vmem:[%s7253_s9 + $0x338] sm:$0xff]  ;;  %v11909_v32 = vpop.xlane.xlu0 %686 }
 0x36c   : > { %5307 = vst [vmem:[%s9596_s20 + $0x190] sm:$0xff] %v5051_v1  ;;  %v1972_v62 = vmul.f32 0.003921569, %v1844_v25  ;;  %v2539_v8 = vsel %vm2538_vm14, %v11578_v55, %v11791_v56  ;;  %v1717_v18 = vmul.f32 %v11846_v47, %v11705_v42  ;;  %v3427_v1 = vsub.f32 %v6669_v53, %v11366_v51  ;;  %v6670_v38 = vld [vmem:[%s7253_s9 + $0x738] sm:$0xff]  ;;  %v6671_v56 = vld [vmem:[%s7253_s9 + $0x330] sm:$0xff] }
 0x36d   : > { %v3555_v20 = vsub.f32 %v6670_v38, %v11338_v30  ;;  %v11905_v26 = vmax.f32 %v2036_v2, 0.0  ;;  %5435 = vst [vmem:[%s9596_s20 + $0x590] sm:$0xff] %v5179_v11  ;;  %5308 = vst [vmem:[%s9596_s20 + $0x198] sm:$0xff] %v5052_v17  ;;  %v3426_v25 = vsub.f32 %v6671_v56, %v11366_v51  ;;  %v3554_v42 = vsub.f32 %v6672_v48, %v11338_v30  ;;  %v11928_v51 = vpop.f32.mrb[66].mxu0  ;;  %v11938_v38 = vpop.f32.mrb[66].mxu1 }
 0x36e   : > { %v5180_v33 = vadd.f32 %v9581_v0, %v4912_v28  ;;  %v11919_v2 = vmul.f32 0.00390625, %v11797_v61  ;;  %v13546_v5 = vand.u32 2147483648, %v11578_v55  ;;  %v2987_v11 = vsel %vm2986_vm1, %v11572_v6, %v11781_v12  ;;  %13547 = vst [vmem:[#allocation42_spill] sm:$0xff] %v11928_v51  ;;  %v6270_v30 = vpop.eup %6269  ;;  %13549 = vst [vmem:[#allocation41_spill] sm:$0xff] %v11938_v38  ;;  %v11950_v38 = vpop.xlane.xlu1 %1515 }
 0x36f   : > { %v11930_v17 = vmax.f32 %v1972_v62, 0.0  ;;  %v11934_v28 = vmul.f32 0.00390625, %v11807_v36  ;;  %v13548_v55 = vand.u32 2147483648, %v11572_v6  ;;  %6277 = vrsqrt.f32 %v11905_v26 }
 0x370   : > { %v2542_v49 = vsel %vm2540_vm3, %v13546_v5, %v2539_v8  ;;  %5436 = vst [vmem:[%s9596_s20 + $0x598] sm:$0xff] %v5180_v33  ;;  %v1909_v62 = vsub.f32 %v11857_v37, %v1781_v3  ;;  %v1845_v48 = vsub.f32 %v11861_v46, %v1717_v18  ;;  %v11944_v33 = vpop.f32.mrb[67].mxu0  ;;  %v11946_v5 = vpop.f32.mrb[67].mxu1  ;;  %vm2552_vm6 = vcmp.eq.f32.partialorder %v11763_v40, inf }
 0x371   : > { %v3120_v53 = vadd.f32 1e-06, %v2542_v49  ;;  %v2990_v8 = vsel %vm2988_vm4, %v13548_v55, %v2987_v11  ;;  %v6272_v56 = vpop.eup %6271  ;;  %13550 = vst [vmem:[#allocation39_spill] sm:$0xff] %v11946_v5  ;;  %v6673_v55 = vld [vmem:[%s7253_s9 + $0x1a0] sm:$0xff]  ;;  %v11952_v46 = vpop.xlane.xlu0 %1323  ;;  %v13553_v5 = vld [vmem:[#allocation30_spill] sm:$0xff]  ;;  %vm2547_vm7 = vcmp.eq.f32.partialorder %v11670_v23, 0.0 }
 0x372   : > { %v3184_v12 = vadd.f32 1e-06, %v2990_v8  ;;  %v3683_v6 = vmul.f32 %v6272_v56, %v3427_v1  ;;  %v3682_v11 = vmul.f32 %v6272_v56, %v3426_v25  ;;  %v4785_v39 = vadd.f32 %v6673_v55, %v13551_v16  ;;  %v6674_v1 = vld [vmem:[%s7253_s9 + $0x5a0] sm:$0xff]  ;;  %v13552_v25 = vld [vmem:[#allocation21_spill] sm:$0xff] }
 0x373   : > { %v6274_v49 = vpop.eup %6273  ;;  %6279 = vrcp.f32 %v3120_v53  ;;  %v2037_v37 = vmul.f32 0.003921569, %v1909_v62  ;;  %v1973_v3 = vmul.f32 0.003921569, %v1845_v48  ;;  %v4913_v53 = vadd.f32 %v6674_v1, %v13552_v25  ;;  %v6675_v56 = vld [vmem:[%s7253_s9 + $0x1a8] sm:$0xff] }
 0x374   : > { %v3811_v8 = vmul.f32 %v6274_v49, %v3555_v20  ;;  %v3810_v51 = vmul.f32 %v6274_v49, %v3554_v42  ;;  %6281 = vrcp.f32 %v3184_v12  ;;  %4270 = vmatprep.mubr.f32.mxu0 %v3683_v6  ;;  %v5053_v18 = vadd.f32 %v9554_v43, %v4785_v39  ;;  %v6676_v12 = vld [vmem:[%s7253_s9 + $0x5a8] sm:$0xff]  ;;  %v13554_v39 = vld [vmem:[#allocation19_spill] sm:$0xff]  ;;  %v11967_v48 = vpop.eup %6275 }
 0x375   : > { %v4786_v16 = vadd.f32 %v6675_v56, %v13553_v5  ;;  %v11961_v20 = vmul.f32 %v11881_v9, %v11763_v40  ;;  %4271 = vmatmul.mubr.f32.gmra.mrb[102].mxu0 %v3682_v11  ;;  %6283 = vrsqrt.f32 %v11930_v17  ;;  %v4914_v62 = vadd.f32 %v6676_v12, %v13554_v39  ;;  %v6678_v25 = vld [vmem:[%s7253_s9 + $0x748] sm:$0xff]  ;;  %v12004_v39 = vpop.xlane.xlu0 %689 }
 0x376   : > { %4654 = vmatprep.mubr.f32.mxu1 %v3811_v8  ;;  %v11970_v49 = vmul.f32 %v6270_v30, %v11817_v34  ;;  %5309 = vst [vmem:[%s9596_s20 + $0x1a0] sm:$0xff] %v5053_v18  ;;  %v5181_v5 = vadd.f32 %v9554_v43, %v4913_v53  ;;  %v1782_v55 = vmul.f32 %v11919_v2, %v11797_v61  ;;  %v11979_v8 = vmax.f32 %v2037_v37, 0.0  ;;  %v6677_v18 = vld [vmem:[%s7253_s9 + $0x348] sm:$0xff]  ;;  %v11995_v61 = vpop.xlane.xlu1 %881  ;;  %v6679_v37 = vld [vmem:[%s7253_s9 + $0x340] sm:$0xff] }
 0x377   : > { %4655 = vmatmul.mubr.f32.gmra.mrb[102].mxu1 %v3810_v51  ;;  %v5054_v6 = vadd.f32 %v9581_v0, %v4786_v16  ;;  %v2546_v30 = vsel %vm2545_vm2, %v11670_v23, %v11876_v41  ;;  %v1718_v51 = vmul.f32 %v11934_v28, %v11807_v36  ;;  %v3429_v1 = vsub.f32 %v6677_v18, %v11413_v7  ;;  %v6680_v16 = vld [vmem:[%s7253_s9 + $0x740] sm:$0xff] }
 0x378   : > { %v3557_v53 = vsub.f32 %v6678_v25, %v11400_v10  ;;  %v11991_v56 = vmax.f32 %v1973_v3, 0.0  ;;  %5437 = vst [vmem:[%s9596_s20 + $0x5a0] sm:$0xff] %v5181_v5  ;;  %v3428_v41 = vsub.f32 %v6679_v37, %v11413_v7  ;;  %v3556_v36 = vsub.f32 %v6680_v16, %v11400_v10 }
 0x379   : > { %5310 = vst [vmem:[%s9596_s20 + $0x1a8] sm:$0xff] %v5054_v6  ;;  %v5182_v12 = vadd.f32 %v9581_v0, %v4914_v62  ;;  %v12007_v3 = vmul.f32 0.00390625, %v11897_v54  ;;  %v13555_v5 = vand.u32 2147483648, %v11670_v23  ;;  %v2994_v7 = vsel %vm2993_vm5, %v11659_v35, %v11872_v22  ;;  %v6278_v10 = vpop.eup %6277 }
 0x37a   : > { %vm2995_vm8 = vcmp.eq.f32.partialorder %v11659_v35, 0.0  ;;  %6285 = vrsqrt.f32 %v11979_v8  ;;  %v12019_v62 = vmul.f32 0.00390625, %v11909_v32  ;;  %v13556_v25 = vand.u32 2147483648, %v11659_v35  ;;  %v6681_v35 = vld [vmem:[%s7253_s9 + $0x1b0] sm:$0xff] }
 0x37b   : > { %v2549_v6 = vsel %vm2547_vm7, %v13555_v5, %v2546_v30  ;;  %5438 = vst [vmem:[%s9596_s20 + $0x5a8] sm:$0xff] %v5182_v12  ;;  %v12023_v30 = vpop.f32.mrb[68].mxu0  ;;  %vm3000_vm9 = vcmp.eq.f32.partialorder %v11729_v44, inf  ;;  %6287 = vrsqrt.f32 %v11991_v56  ;;  %v1910_v16 = vsub.f32 %v11950_v38, %v1782_v55  ;;  %v12035_v38 = vpop.xlane.xlu1 %1518 }
 0x37c   : > { %v3121_v18 = vadd.f32 1e-06, %v2549_v6  ;;  %v2997_v23 = vsel %vm2995_vm8, %v13556_v25, %v2994_v7  ;;  %13557 = vst [vmem:[#allocation46_spill] sm:$0xff] %v12023_v30  ;;  %v1846_v12 = vsub.f32 %v11952_v46, %v1718_v51  ;;  %v12029_v5 = vpop.f32.mrb[69].mxu0  ;;  %v4787_v7 = vadd.f32 %v6681_v35, %v11265_v19  ;;  %v12033_v25 = vpop.f32.mrb[68].mxu1  ;;  %v13562_v35 = vld [vmem:[#allocation38_spill] sm:$0xff] }
 0x37d   : > { %v6280_v37 = vpop.eup %6279  ;;  %v3185_v22 = vadd.f32 1e-06, %v2997_v23  ;;  %13558 = vst [vmem:[#allocation45_spill] sm:$0xff] %v12029_v5  ;;  %13559 = vst [vmem:[#allocation12_spill] sm:$0xff] %v12033_v25  ;;  %v2038_v23 = vmul.f32 0.003921569, %v1910_v16 }
 0x37e   : > { %v6282_v11 = vpop.eup %6281  ;;  %v3685_v42 = vmul.f32 %v6280_v37, %v3429_v1  ;;  %v3684_v6 = vmul.f32 %v6280_v37, %v3428_v41  ;;  %6289 = vrcp.f32 %v3121_v18  ;;  %v12037_v46 = vpop.f32.mrb[69].mxu1  ;;  %v1974_v51 = vmul.f32 0.003921569, %v1846_v12  ;;  %v6682_v41 = vld [vmem:[%s7253_s9 + $0x5b0] sm:$0xff]  ;;  %v13561_v18 = vld [vmem:[#allocation23_spill] sm:$0xff]  ;;  %v13563_v12 = vld [vmem:[#allocation24_spill] sm:$0xff] }
 0x37f   : > { %v3813_v9 = vmul.f32 %v6282_v11, %v3557_v53  ;;  %v3812_v30 = vmul.f32 %v6282_v11, %v3556_v36  ;;  %6291 = vrcp.f32 %v3185_v22  ;;  %13560 = vst [vmem:[#allocation15_spill] sm:$0xff] %v12037_v46  ;;  %v6284_v55 = vpop.eup %6283  ;;  %v5055_v1 = vadd.f32 %v9554_v43, %v4787_v7  ;;  %v6683_v37 = vld [vmem:[%s7253_s9 + $0x1b8] sm:$0xff]  ;;  %v12044_v11 = vpop.xlane.xlu0 %1326 }
 0x380   : > { %4276 = vmatprep.mubr.f32.mxu0 %v3685_v42  ;;  %v4915_v19 = vadd.f32 %v6682_v41, %v13561_v18  ;;  %v4788_v53 = vadd.f32 %v6683_v37, %v13562_v35  ;;  %v12048_v36 = vmul.f32 %v11967_v48, %v11854_v31  ;;  %v12051_v42 = vmax.f32 %v2038_v23, 0.0  ;;  %v6684_v16 = vld [vmem:[%s7253_s9 + $0x5b8] sm:$0xff] }
 0x381   : > { %4660 = vmatprep.mubr.f32.mxu1 %v3813_v9  ;;  %4277 = vmatmul.mubr.f32.gmra.mrb[104].mxu0 %v3684_v6  ;;  %v4916_v7 = vadd.f32 %v6684_v16, %v13563_v12  ;;  %v12056_v41 = vmul.f32 %v6278_v10, %v11905_v26  ;;  %5311 = vst [vmem:[%s9596_s20 + $0x1b0] sm:$0xff] %v5055_v1  ;;  %v6686_v35 = vld [vmem:[%s7253_s9 + $0x758] sm:$0xff]  ;;  %vm2559_vm10 = vcmp.eq.f32.partialorder %v11854_v31, inf  ;;  %vm2554_vm11 = vcmp.eq.f32.partialorder %v11763_v40, 0.0  ;;  %v12088_v16 = vpop.xlane.xlu1 %884 }
 0x382   : > { %4661 = vmatmul.mubr.f32.gmra.mrb[104].mxu1 %v3812_v30  ;;  %v5183_v9 = vadd.f32 %v9554_v43, %v4915_v19  ;;  %v5056_v6 = vadd.f32 %v9581_v0, %v4788_v53  ;;  %v12063_v23 = vmul.f32 %v6284_v55, %v11930_v17  ;;  %v1783_v10 = vmul.f32 %v12007_v3, %v11897_v54  ;;  %v6685_v19 = vld [vmem:[%s7253_s9 + $0x358] sm:$0xff]  ;;  %v6687_v54 = vld [vmem:[%s7253_s9 + $0x350] sm:$0xff] }
 0x383   : > { %v2553_v30 = vsel %vm2552_vm6, %v11763_v40, %v11961_v20  ;;  %v1719_v1 = vmul.f32 %v12019_v62, %v11909_v32  ;;  %v3431_v37 = vsub.f32 %v6685_v19, %v11493_v27  ;;  %v3559_v55 = vsub.f32 %v6686_v35, %v11490_v21  ;;  %v6688_v19 = vld [vmem:[%s7253_s9 + $0x750] sm:$0xff]  ;;  %v12099_v35 = vpop.xlane.xlu0 %692 }
 0x384   : > { %v12078_v53 = vmax.f32 %v1974_v51, 0.0  ;;  %5439 = vst [vmem:[%s9596_s20 + $0x5b0] sm:$0xff] %v5183_v9  ;;  %5312 = vst [vmem:[%s9596_s20 + $0x1b8] sm:$0xff] %v5056_v6  ;;  %v3430_v20 = vsub.f32 %v6687_v54, %v11493_v27  ;;  %6293 = vrsqrt.f32 %v12051_v42  ;;  %v5184_v32 = vadd.f32 %v9581_v0, %v4916_v7  ;;  %v6286_v12 = vpop.eup %6285 }
 0x385   : > { %v3558_v51 = vsub.f32 %v6688_v19, %v11490_v21  ;;  %v13564_v9 = vand.u32 2147483648, %v11763_v40  ;;  %v3001_v27 = vsel %vm3000_vm9, %v11729_v44, %v11884_v15  ;;  %vm3002_vm12 = vcmp.eq.f32.partialorder %v11729_v44, 0.0  ;;  %v6288_v7 = vpop.eup %6287 }
 0x386   : > { %5440 = vst [vmem:[%s9596_s20 + $0x5b8] sm:$0xff] %v5184_v32  ;;  %v12103_v54 = vmul.f32 0.00390625, %v11995_v61  ;;  %v12106_v21 = vmul.f32 0.00390625, %v12004_v39  ;;  %vm3007_vm13 = vcmp.eq.f32.partialorder %v11817_v34, inf  ;;  %6295 = vrsqrt.f32 %v12078_v53 }
 0x387   : > { %v2556_v6 = vsel %vm2554_vm11, %v13564_v9, %v2553_v30  ;;  %v13565_v30 = vand.u32 2147483648, %v11729_v44  ;;  %v1911_v48 = vsub.f32 %v12035_v38, %v1783_v10  ;;  %v1847_v32 = vsub.f32 %v12044_v11, %v1719_v1  ;;  %v6690_v38 = vld [vmem:[%s7253_s9 + $0x5c0] sm:$0xff]  ;;  %v6691_v10 = vld [vmem:[%s7253_s9 + $0x1c8] sm:$0xff] }
 0x388   : > { %v3122_v40 = vadd.f32 1e-06, %v2556_v6  ;;  %v6290_v9 = vpop.eup %6289  ;;  %v6689_v6 = vld [vmem:[%s7253_s9 + $0x1c0] sm:$0xff]  ;;  %v4917_v11 = vadd.f32 %v6690_v38, %v11408_v52  ;;  %v4790_v1 = vadd.f32 %v6691_v10, %v11410_v58  ;;  %v12136_v58 = vmul.f32 %v6288_v7, %v11991_v56 }
 0x389   : > { %v3004_v19 = vsel %vm3002_vm12, %v13565_v30, %v3001_v27  ;;  %v6292_v18 = vpop.eup %6291  ;;  %v3687_v22 = vmul.f32 %v6290_v9, %v3431_v37  ;;  %v3686_v46 = vmul.f32 %v6290_v9, %v3430_v20  ;;  %v4789_v44 = vadd.f32 %v6689_v6, %v11404_v63  ;;  %v12121_v37 = vpop.xlane.xlu1 %1521  ;;  %v6693_v6 = vld [vmem:[%s7253_s9 + $0x368] sm:$0xff] }
 0x38a   : > { %v3186_v15 = vadd.f32 1e-06, %v3004_v19  ;;  %6297 = vrcp.f32 %v3122_v40  ;;  %v3815_v27 = vmul.f32 %v6292_v18, %v3559_v55  ;;  %v3814_v30 = vmul.f32 %v6292_v18, %v3558_v51  ;;  %v12123_v20 = vpop.f32.mrb[70].mxu0  ;;  %v6692_v18 = vld [vmem:[%s7253_s9 + $0x5c8] sm:$0xff]  ;;  %v1330_v55 = vpop.xlane.xlu0 %1329 }
 0x38b   : > { %v2039_v5 = vmul.f32 0.003921569, %v1911_v48  ;;  %4282 = vmatprep.mubr.f32.mxu0 %v3687_v22  ;;  %v1975_v19 = vmul.f32 0.003921569, %v1847_v32  ;;  %v5057_v25 = vadd.f32 %v9554_v43, %v4789_v44  ;;  %v12126_v63 = vmul.f32 %v6286_v12, %v11979_v8  ;;  %v12133_v51 = vpop.f32.mrb[71].mxu0 }
 0x38c   : > { %6299 = vrcp.f32 %v3186_v15  ;;  %4666 = vmatprep.mubr.f32.mxu1 %v3815_v27  ;;  %4283 = vmatmul.mubr.f32.gmra.mrb[106].mxu0 %v3686_v46  ;;  %v4918_v52 = vadd.f32 %v6692_v18, %v11424_v14  ;;  %v5185_v46 = vadd.f32 %v9554_v43, %v4917_v11  ;;  %v12143_v14 = vpop.f32.mrb[70].mxu1  ;;  %v1784_v7 = vmul.f32 %v12103_v54, %v11995_v61  ;;  %v6694_v27 = vld [vmem:[%s7253_s9 + $0x768] sm:$0xff] }
 0x38d   : > { %v12129_v48 = vmax.f32 %v2039_v5, 0.0  ;;  %4667 = vmatmul.mubr.f32.gmra.mrb[106].mxu1 %v3814_v30  ;;  %v12138_v12 = vmax.f32 %v1975_v19, 0.0  ;;  %5313 = vst [vmem:[%s9596_s20 + $0x1c0] sm:$0xff] %v5057_v25  ;;  %v5058_v5 = vadd.f32 %v9581_v0, %v4790_v1  ;;  %v1720_v9 = vmul.f32 %v12106_v21, %v12004_v39  ;;  %v12154_v15 = vpop.f32.mrb[71].mxu1  ;;  %v6695_v19 = vld [vmem:[%s7253_s9 + $0x360] sm:$0xff] }
 0x38e   : > { %v2560_v25 = vsel %vm2559_vm10, %v11854_v31, %v12048_v36  ;;  %v6294_v32 = vpop.eup %6293  ;;  %v3433_v44 = vsub.f32 %v6693_v6, %v11584_v50  ;;  %v3561_v30 = vsub.f32 %v6694_v27, %v11581_v59  ;;  %v3432_v61 = vsub.f32 %v6695_v19, %v11584_v50  ;;  %5441 = vst [vmem:[%s9596_s20 + $0x5c0] sm:$0xff] %v5185_v46  ;;  %v6696_v39 = vld [vmem:[%s7253_s9 + $0x760] sm:$0xff]  ;;  %v12192_v6 = vpop.xlane.xlu0 %695 }
 0x38f   : > { %6301 = vrsqrt.f32 %v12129_v48  ;;  %5314 = vst [vmem:[%s9596_s20 + $0x1c8] sm:$0xff] %v5058_v5  ;;  %vm2566_vm14 = vcmp.eq.f32.partialorder %v11930_v17, inf  ;;  %v3560_v36 = vsub.f32 %v6696_v39, %v11581_v59  ;;  %v5186_v38 = vadd.f32 %v9581_v0, %v4918_v52 }
 0x390   : > { %6303 = vrsqrt.f32 %v12138_v12  ;;  %vm2561_vm15 = vcmp.eq.f32.partialorder %v11854_v31, 0.0  ;;  %v12172_v11 = vmul.f32 0.00390625, %v12088_v16  ;;  %v13566_v50 = vand.u32 2147483648, %v11854_v31  ;;  %v6296_v59 = vpop.eup %6295 }
 0x391   : > { %v3008_v1 = vsel %vm3007_vm13, %v11817_v34, %v11970_v49  ;;  %vm3009_vm0 = vcmp.eq.f32.partialorder %v11817_v34, 0.0  ;;  %v12182_v18 = vmul.f32 %v6294_v32, %v12051_v42  ;;  %5442 = vst [vmem:[%s9596_s20 + $0x5c8] sm:$0xff] %v5186_v38  ;;  %v12186_v52 = vmul.f32 0.00390625, %v12099_v35 }
 0x392   : > { %v2563_v10 = vsel %vm2561_vm15, %v13566_v50, %v2560_v25  ;;  %v13567_v31 = vand.u32 2147483648, %v11817_v34  ;;  %v12190_v25 = vpop.xlane.xlu1 %887  ;;  %vm3014_vm1 = vcmp.eq.f32.partialorder %v11905_v26, inf  ;;  %v1912_v19 = vsub.f32 %v12121_v37, %v1784_v7  ;;  %v6697_v34 = vld [vmem:[%s7253_s9 + $0x1d0] sm:$0xff]  ;;  %v6699_v7 = vld [vmem:[%s7253_s9 + $0x1d8] sm:$0xff] }
 0x393   : > { %v3123_v46 = vadd.f32 1e-06, %v2563_v10  ;;  %v1848_v39 = vsub.f32 %v1330_v55, %v1720_v9  ;;  %v6698_v37 = vld [vmem:[%s7253_s9 + $0x5d0] sm:$0xff]  ;;  %vm2573_vm2 = vcmp.eq.f32.partialorder %v11991_v56, inf  ;;  %vm2568_vm3 = vcmp.eq.f32.partialorder %v11930_v17, 0.0 }
 0x394   : > { %v3011_v5 = vsel %vm3009_vm0, %v13567_v31, %v3008_v1  ;;  %v6298_v49 = vpop.eup %6297  ;;  %v4791_v1 = vadd.f32 %v6697_v34, %v11499_v13  ;;  %v2040_v40 = vmul.f32 0.003921569, %v1912_v19  ;;  %v4919_v55 = vadd.f32 %v6698_v37, %v11503_v45  ;;  %v13568_v9 = vld [vmem:[#allocation25_spill] sm:$0xff] }
 0x395   : > { %v3187_v32 = vadd.f32 1e-06, %v3011_v5  ;;  %v3689_v50 = vmul.f32 %v6298_v49, %v3433_v44  ;;  %v3688_v10 = vmul.f32 %v6298_v49, %v3432_v61  ;;  %6305 = vrcp.f32 %v3123_v46  ;;  %v13569_v46 = vld [vmem:[#allocation29_spill] sm:$0xff] }
 0x396   : > { %v6300_v38 = vpop.eup %6299  ;;  %v1976_v27 = vmul.f32 0.003921569, %v1848_v39  ;;  %v5059_v5 = vadd.f32 %v9554_v43, %v4791_v1  ;;  %v4792_v44 = vadd.f32 %v6699_v7, %v13568_v9  ;;  %v12205_v61 = vmul.f32 %v6296_v59, %v12078_v53  ;;  %v1525_v39 = vpop.xlane.xlu1 %1524  ;;  %v6702_v1 = vld [vmem:[%s7253_s9 + $0x778] sm:$0xff]  ;;  %v6703_v37 = vld [vmem:[%s7253_s9 + $0x370] sm:$0xff] }
 0x397   : > { %v3817_v31 = vmul.f32 %v6300_v38, %v3561_v30  ;;  %v3816_v22 = vmul.f32 %v6300_v38, %v3560_v36  ;;  %6307 = vrcp.f32 %v3187_v32  ;;  %4288 = vmatprep.mubr.f32.mxu0 %v3689_v50  ;;  %v12208_v30 = vmax.f32 %v2040_v40, 0.0  ;;  %v6700_v36 = vld [vmem:[%s7253_s9 + $0x5d8] sm:$0xff]  ;;  %v1333_v40 = vpop.xlane.xlu0 %1332  ;;  %v12239_v9 = vpop.f32.mrb[72].mxu1 }
 0x398   : > { %4289 = vmatmul.mubr.f32.gmra.mrb[108].mxu0 %v3688_v10  ;;  %v4920_v49 = vadd.f32 %v6700_v36, %v13569_v46  ;;  %v1785_v45 = vmul.f32 %v12172_v11, %v12088_v16  ;;  %v12214_v32 = vmax.f32 %v1976_v27, 0.0  ;;  %5315 = vst [vmem:[%s9596_s20 + $0x1d0] sm:$0xff] %v5059_v5  ;;  %v5187_v59 = vadd.f32 %v9554_v43, %v4919_v55  ;;  %v6701_v50 = vld [vmem:[%s7253_s9 + $0x378] sm:$0xff]  ;;  %v12228_v10 = vpop.f32.mrb[72].mxu0  ;;  %v12252_v46 = vpop.f32.mrb[73].mxu1 }
 0x399   : > { %4672 = vmatprep.mubr.f32.mxu1 %v3817_v31  ;;  %v5060_v19 = vadd.f32 %v9581_v0, %v4792_v44  ;;  %v6302_v38 = vpop.eup %6301  ;;  %v3435_v16 = vsub.f32 %v6701_v50, %v11673_v57  ;;  %6309 = vrsqrt.f32 %v12208_v30  ;;  %v2567_v27 = vsel %vm2566_vm14, %v11930_v17, %v12063_v23  ;;  %v13570_v31 = vld [vmem:[#allocation26_spill] sm:$0xff]  ;;  %13571 = vst [vmem:[#allocation49_spill] sm:$0xff] %v12239_v9  ;;  %v12241_v23 = vpop.f32.mrb[73].mxu0 }
 0x39a   : > { %4673 = vmatmul.mubr.f32.gmra.mrb[108].mxu1 %v3816_v22  ;;  %v1721_v22 = vmul.f32 %v12186_v52, %v12099_v35  ;;  %v6304_v34 = vpop.eup %6303  ;;  %v3563_v5 = vsub.f32 %v6702_v1, %v13570_v31  ;;  %v3434_v55 = vsub.f32 %v6703_v37, %v11673_v57  ;;  %v6704_v35 = vld [vmem:[%s7253_s9 + $0x770] sm:$0xff]  ;;  %6311 = vrsqrt.f32 %v12214_v32  ;;  %5443 = vst [vmem:[%s9596_s20 + $0x5d0] sm:$0xff] %v5187_v59 }
 0x39b   : > { %v3562_v7 = vsub.f32 %v6704_v35, %v13570_v31  ;;  %5316 = vst [vmem:[%s9596_s20 + $0x1d8] sm:$0xff] %v5060_v19  ;;  %13572 = vst [vmem:[#allocation14_spill] sm:$0xff] %v12241_v23  ;;  %v5188_v44 = vadd.f32 %v9581_v0, %v4920_v49  ;;  %v12246_v36 = vmul.f32 0.00390625, %v12190_v25  ;;  %v12249_v57 = vmul.f32 0.00390625, %v12192_v6 }
 0x39c   : > { %13573 = vst [vmem:[#allocation13_spill] sm:$0xff] %v12252_v46  ;;  %v12255_v59 = vmul.f32 %v6302_v38, %v12129_v48  ;;  %v13574_v19 = vand.u32 2147483648, %v11930_v17  ;;  %v3015_v49 = vsel %vm3014_vm1, %v11905_v26, %v12056_v41  ;;  %vm3016_vm4 = vcmp.eq.f32.partialorder %v11905_v26, 0.0  ;;  %v891_v46 = vpop.xlane.xlu1 %890 }
 0x39d   : > { %v12265_v1 = vmul.f32 %v6304_v34, %v12138_v12  ;;  %5444 = vst [vmem:[%s9596_s20 + $0x5d8] sm:$0xff] %v5188_v44  ;;  %v13575_v38 = vand.u32 2147483648, %v11905_v26  ;;  %vm3021_vm5 = vcmp.eq.f32.partialorder %v11979_v8, inf  ;;  %v1913_v41 = vsub.f32 %v1525_v39, %v1785_v45  ;;  %v12273_v34 = vpop.xlane.xlu0 %698  ;;  %v13576_v26 = vld [vmem:[#allocation44_spill] sm:$0xff] }
 0x39e   : > { %v2570_v50 = vsel %vm2568_vm3, %v13574_v19, %v2567_v27  ;;  %v1849_v13 = vsub.f32 %v1333_v40, %v1721_v22  ;;  %v6706_v40 = vld [vmem:[%s7253_s9 + $0x5e0] sm:$0xff]  ;;  %vm2580_vm6 = vcmp.eq.f32.partialorder %v12078_v53, inf  ;;  %vm2575_vm7 = vcmp.eq.f32.partialorder %v11991_v56, 0.0 }
 0x39f   : > { %v3124_v37 = vadd.f32 1e-06, %v2570_v50  ;;  %v3018_v35 = vsel %vm3016_vm4, %v13575_v38, %v3015_v49  ;;  %v6306_v17 = vpop.eup %6305  ;;  %v6705_v50 = vld [vmem:[%s7253_s9 + $0x1e0] sm:$0xff]  ;;  %v2041_v27 = vmul.f32 0.003921569, %v1913_v41  ;;  %v6709_v41 = vld [vmem:[%s7253_s9 + $0x388] sm:$0xff] }
 0x3a0   : > { %v3188_v19 = vadd.f32 1e-06, %v3018_v35  ;;  %v3691_v23 = vmul.f32 %v6306_v17, %v3435_v16  ;;  %v3690_v44 = vmul.f32 %v6306_v17, %v3434_v55  ;;  %v4793_v49 = vadd.f32 %v6705_v50, %v13576_v26  ;;  %v13577_v22 = vld [vmem:[#allocation28_spill] sm:$0xff]  ;;  %v13578_v55 = vld [vmem:[#allocation27_spill] sm:$0xff] }
 0x3a1   : > { %v6308_v31 = vpop.eup %6307  ;;  %6313 = vrcp.f32 %v3124_v37  ;;  %v1977_v45 = vmul.f32 0.003921569, %v1849_v13  ;;  %v4921_v35 = vadd.f32 %v6706_v40, %v13577_v22  ;;  %v6707_v16 = vld [vmem:[%s7253_s9 + $0x1e8] sm:$0xff]  ;;  %v12290_v13 = vmax.f32 %v2041_v27, 0.0  ;;  %v6711_v40 = vld [vmem:[%s7253_s9 + $0x380] sm:$0xff] }
 0x3a2   : > { %v3819_v38 = vmul.f32 %v6308_v31, %v3563_v5  ;;  %v3818_v9 = vmul.f32 %v6308_v31, %v3562_v7  ;;  %6315 = vrcp.f32 %v3188_v19  ;;  %4294 = vmatprep.mubr.f32.mxu0 %v3691_v23  ;;  %v5061_v39 = vadd.f32 %v9554_v43, %v4793_v49  ;;  %v6708_v23 = vld [vmem:[%s7253_s9 + $0x5e8] sm:$0xff]  ;;  %v13579_v31 = vld [vmem:[#allocation47_spill] sm:$0xff] }
 0x3a3   : > { %v4794_v37 = vadd.f32 %v6707_v16, %v13578_v55  ;;  %4295 = vmatmul.mubr.f32.gmra.mrb[110].mxu0 %v3690_v44  ;;  %v12284_v5 = vmul.f32 %v12246_v36, %v12190_v25  ;;  %v12288_v7 = vmul.f32 %v12249_v57, %v12192_v6  ;;  %v4922_v17 = vadd.f32 %v6708_v23, %v13579_v31  ;;  %v6310_v19 = vpop.eup %6309  ;;  %v6710_v26 = vld [vmem:[%s7253_s9 + $0x788] sm:$0xff] }
 0x3a4   : > { %4678 = vmatprep.mubr.f32.mxu1 %v3819_v38  ;;  %v3437_v44 = vsub.f32 %v6709_v41, %v11755_v4  ;;  %v12296_v50 = vmax.f32 %v1977_v45, 0.0  ;;  %5317 = vst [vmem:[%s9596_s20 + $0x1e0] sm:$0xff] %v5061_v39  ;;  %v5189_v25 = vadd.f32 %v9554_v43, %v4921_v35  ;;  %v6312_v27 = vpop.eup %6311  ;;  %v3565_v49 = vsub.f32 %v6710_v26, %v11752_v60  ;;  %v1528_v45 = vpop.xlane.xlu1 %1527  ;;  %v6712_v35 = vld [vmem:[%s7253_s9 + $0x780] sm:$0xff] }
 0x3a5   : > { %4679 = vmatmul.mubr.f32.gmra.mrb[110].mxu1 %v3818_v9  ;;  %v5062_v6 = vadd.f32 %v9581_v0, %v4794_v37  ;;  %6317 = vrsqrt.f32 %v12290_v13  ;;  %v12304_v9 = vmul.f32 0.00390625, %v891_v46  ;;  %v2574_v38 = vsel %vm2573_vm2, %v11991_v56, %v12136_v58  ;;  %v1336_v39 = vpop.xlane.xlu0 %1335  ;;  %v12344_v26 = vpop.f32.mrb[74].mxu1  ;;  %v13585_v37 = vld [vmem:[#allocation31_spill] sm:$0xff] }
 0x3a6   : > { %v3436_v22 = vsub.f32 %v6711_v40, %v11755_v4  ;;  %v3564_v16 = vsub.f32 %v6712_v35, %v11752_v60  ;;  %6319 = vrsqrt.f32 %v12296_v50  ;;  %5445 = vst [vmem:[%s9596_s20 + $0x5e0] sm:$0xff] %v5189_v25  ;;  %v12318_v55 = vmul.f32 0.00390625, %v12273_v34  ;;  %13582 = vst [vmem:[#allocation18_spill] sm:$0xff] %v12344_v26 }
 0x3a7   : > { %5318 = vst [vmem:[%s9596_s20 + $0x1e8] sm:$0xff] %v5062_v6  ;;  %v12322_v58 = vmul.f32 %v6310_v19, %v12208_v30  ;;  %v5190_v4 = vadd.f32 %v9581_v0, %v4922_v17  ;;  %v12328_v60 = vmul.f32 %v6312_v27, %v12214_v32  ;;  %v13580_v23 = vand.u32 2147483648, %v11991_v56  ;;  %v12337_v19 = vpop.f32.mrb[74].mxu0 }
 0x3a8   : > { %v3022_v41 = vsel %vm3021_vm5, %v11979_v8, %v12126_v63  ;;  %vm3023_vm8 = vcmp.eq.f32.partialorder %v11979_v8, 0.0  ;;  %v1787_v17 = vmul.f32 %v12304_v9, %v891_v46  ;;  %v13581_v27 = vand.u32 2147483648, %v11979_v8 }
 0x3a9   : > { %v2577_v31 = vsel %vm2575_vm7, %v13580_v23, %v2574_v38  ;;  %5446 = vst [vmem:[%s9596_s20 + $0x5e8] sm:$0xff] %v5190_v4  ;;  %v12346_v38 = vpop.f32.mrb[75].mxu0  ;;  %vm3028_vm9 = vcmp.eq.f32.partialorder %v12051_v42, inf  ;;  %v1723_v63 = vmul.f32 %v12318_v55, %v12273_v34  ;;  %v1914_v4 = vsub.f32 %v1528_v45, %v12284_v5  ;;  %v12353_v23 = vpop.f32.mrb[75].mxu1 }
 0x3aa   : > { %v3125_v6 = vadd.f32 1e-06, %v2577_v31  ;;  %v3025_v56 = vsel %vm3023_vm8, %v13581_v27, %v3022_v41  ;;  %13583 = vst [vmem:[#allocation16_spill] sm:$0xff] %v12346_v38  ;;  %v1850_v46 = vsub.f32 %v1336_v39, %v12288_v7  ;;  %13584 = vst [vmem:[#allocation17_spill] sm:$0xff] %v12353_v23  ;;  %v6713_v27 = vld [vmem:[%s7253_s9 + $0x1f0] sm:$0xff]  ;;  %v1531_v38 = vpop.xlane.xlu1 %1530  ;;  %v1339_v26 = vpop.xlane.xlu0 %1338  ;;  %vm2587_vm10 = vcmp.eq.f32.partialorder %v12138_v12, inf }
 0x3ab   : > { %v6314_v40 = vpop.eup %6313  ;;  %v3189_v35 = vadd.f32 1e-06, %v3025_v56  ;;  %v4795_v25 = vadd.f32 %v6713_v27, %v13585_v37  ;;  %v2042_v5 = vmul.f32 0.003921569, %v1914_v4  ;;  %v6714_v39 = vld [vmem:[%s7253_s9 + $0x5f0] sm:$0xff]  ;;  %v1915_v4 = vsub.f32 %v1531_v38, %v1787_v17 }
 0x3ac   : > { %v6316_v8 = vpop.eup %6315  ;;  %v3693_v31 = vmul.f32 %v6314_v40, %v3437_v44  ;;  %v3692_v41 = vmul.f32 %v6314_v40, %v3436_v22  ;;  %6321 = vrcp.f32 %v3125_v6  ;;  %v1978_v7 = vmul.f32 0.003921569, %v1850_v46  ;;  %v13586_v44 = vld [vmem:[#allocation33_spill] sm:$0xff]  ;;  %v6715_v6 = vld [vmem:[%s7253_s9 + $0x1f8] sm:$0xff] }
 0x3ad   : > { %v3821_v34 = vmul.f32 %v6316_v8, %v3565_v49  ;;  %v3820_v56 = vmul.f32 %v6316_v8, %v3564_v16  ;;  %6323 = vrcp.f32 %v3189_v35  ;;  %v5063_v45 = vadd.f32 %v9554_v43, %v4795_v25  ;;  %v13587_v40 = vld [vmem:[#allocation34_spill] sm:$0xff]  ;;  %v13588_v16 = vld [vmem:[#allocation36_spill] sm:$0xff] }
 0x3ae   : > { %4300 = vmatprep.mubr.f32.mxu0 %v3693_v31  ;;  %v4923_v22 = vadd.f32 %v6714_v39, %v13586_v44  ;;  %v4796_v23 = vadd.f32 %v6715_v6, %v13587_v40  ;;  %v12362_v37 = vmax.f32 %v2042_v5, 0.0  ;;  %v6716_v49 = vld [vmem:[%s7253_s9 + $0x5f8] sm:$0xff]  ;;  %v1851_v46 = vsub.f32 %v1339_v26, %v1723_v63  ;;  %v6719_v26 = vld [vmem:[%s7253_s9 + $0x390] sm:$0xff] }
 0x3af   : > { %4684 = vmatprep.mubr.f32.mxu1 %v3821_v34  ;;  %4301 = vmatmul.mubr.f32.gmra.mrb[112].mxu0 %v3692_v41  ;;  %v4924_v35 = vadd.f32 %v6716_v49, %v13588_v16  ;;  %v6318_v8 = vpop.eup %6317  ;;  %v6717_v25 = vld [vmem:[%s7253_s9 + $0x398] sm:$0xff]  ;;  %v12368_v27 = vmax.f32 %v1978_v7, 0.0  ;;  %5319 = vst [vmem:[%s9596_s20 + $0x1f0] sm:$0xff] %v5063_v45  ;;  %v3438_v38 = vsub.f32 %v6719_v26, %v11846_v47  ;;  %v2043_v44 = vmul.f32 0.003921569, %v1915_v4 }
 0x3b0   : > { %4685 = vmatmul.mubr.f32.gmra.mrb[112].mxu1 %v3820_v56  ;;  %v3439_v31 = vsub.f32 %v6717_v25, %v11846_v47  ;;  %v5191_v41 = vadd.f32 %v9554_v43, %v4923_v22  ;;  %v5064_v34 = vadd.f32 %v9581_v0, %v4796_v23  ;;  %v6320_v5 = vpop.eup %6319  ;;  %v6718_v39 = vld [vmem:[%s7253_s9 + $0x798] sm:$0xff]  ;;  %6325 = vrsqrt.f32 %v12362_v37  ;;  %v6720_v23 = vld [vmem:[%s7253_s9 + $0x790] sm:$0xff]  ;;  %v12414_v25 = vld [vmem:[%s7253_s9 + $0x3a8] sm:$0xff] }
 0x3b1   : > { %v3567_v17 = vsub.f32 %v6718_v39, %v11843_v24  ;;  %v2581_v63 = vsel %vm2580_vm6, %v12078_v53, %v12205_v61  ;;  %v12384_v56 = vmul.f32 %v6318_v8, %v12290_v13  ;;  %v3566_v7 = vsub.f32 %v6720_v23, %v11843_v24 }
 0x3b2   : > { %6327 = vrsqrt.f32 %v12368_v27  ;;  %5447 = vst [vmem:[%s9596_s20 + $0x5f0] sm:$0xff] %v5191_v41  ;;  %5320 = vst [vmem:[%s9596_s20 + $0x1f8] sm:$0xff] %v5064_v34  ;;  %v5192_v47 = vadd.f32 %v9581_v0, %v4924_v35  ;;  %v1979_v61 = vmul.f32 0.003921569, %v1851_v46  ;;  %vm2582_vm11 = vcmp.eq.f32.partialorder %v12078_v53, 0.0  ;;  %v12419_v34 = vld [vmem:[%s7253_s9 + $0x7a8] sm:$0xff] }
 0x3b3   : > { %vm3035_vm12 = vcmp.eq.f32.partialorder %v12129_v48, inf  ;;  %v12396_v22 = vmul.f32 %v6320_v5, %v12296_v50  ;;  %v13589_v24 = vand.u32 2147483648, %v12078_v53  ;;  %v3029_v40 = vsel %vm3028_vm9, %v12051_v42, %v12182_v18  ;;  %v13592_v53 = vld [vmem:[#allocation37_spill] sm:$0xff] }
 0x3b4   : > { %vm3030_vm13 = vcmp.eq.f32.partialorder %v12051_v42, 0.0  ;;  %5448 = vst [vmem:[%s9596_s20 + $0x5f8] sm:$0xff] %v5192_v47  ;;  %v12406_v49 = vmax.f32 %v2043_v44, 0.0  ;;  %v12408_v16 = vmax.f32 %v1979_v61, 0.0  ;;  %v13590_v4 = vand.u32 2147483648, %v12051_v42  ;;  %v12430_v47 = vpop.f32.mrb[76].mxu0 }
 0x3b5   : > { %v2584_v6 = vsel %vm2582_vm11, %v13589_v24, %v2581_v63  ;;  %v3441_v18 = vsub.f32 %v12414_v25, %v11934_v28  ;;  %vm2594_vm14 = vcmp.eq.f32.partialorder %v12214_v32, inf  ;;  %v12426_v63 = vld [vmem:[%s7253_s9 + $0x3a0] sm:$0xff]  ;;  %vm3042_vm15 = vcmp.eq.f32.partialorder %v12208_v30, inf }
 0x3b6   : > { %v3126_v35 = vadd.f32 1e-06, %v2584_v6  ;;  %v3032_v46 = vsel %vm3030_vm13, %v13590_v4, %v3029_v40  ;;  %v6322_v8 = vpop.eup %6321  ;;  %6329 = vrsqrt.f32 %v12406_v49  ;;  %v3440_v23 = vsub.f32 %v12426_v63, %v11934_v28  ;;  %v12434_v24 = vld [vmem:[%s7253_s9 + $0x7a0] sm:$0xff]  ;;  %v12440_v6 = vpop.f32.mrb[77].mxu0 }
 0x3b7   : > { %v3190_v41 = vadd.f32 1e-06, %v3032_v46  ;;  %v6324_v39 = vpop.eup %6323  ;;  %v3695_v42 = vmul.f32 %v6322_v8, %v3439_v31  ;;  %v3694_v26 = vmul.f32 %v6322_v8, %v3438_v38  ;;  %6331 = vrsqrt.f32 %v12408_v16  ;;  %v12438_v38 = vpop.f32.mrb[76].mxu1  ;;  %v6726_v8 = vld [vmem:[%s7253_s9 + $0x600] sm:$0xff] }
 0x3b8   : > { %v3823_v44 = vmul.f32 %v6324_v39, %v3567_v17  ;;  %v3822_v61 = vmul.f32 %v6324_v39, %v3566_v7  ;;  %6333 = vrcp.f32 %v3126_v35  ;;  %v6725_v7 = vld [vmem:[%s7253_s9 + $0x200] sm:$0xff]  ;;  %v12446_v46 = vpop.f32.mrb[77].mxu1  ;;  %v6728_v17 = vld [vmem:[%s7253_s9 + $0x608] sm:$0xff]  ;;  %vm2589_vm0 = vcmp.eq.f32.partialorder %v12138_v12, 0.0 }
 0x3b9   : > { %4306 = vmatprep.mubr.f32.mxu0 %v3695_v42  ;;  %v4797_v4 = vadd.f32 %v6725_v7, %v11809_v29  ;;  %6335 = vrcp.f32 %v3190_v41  ;;  %v13591_v39 = vld [vmem:[#allocation35_spill] sm:$0xff]  ;;  %v6727_v42 = vld [vmem:[%s7253_s9 + $0x208] sm:$0xff]  ;;  %v2588_v41 = vsel %vm2587_vm10, %v12138_v12, %v12265_v1  ;;  %vm3037_vm1 = vcmp.eq.f32.partialorder %v12129_v48, 0.0 }
 0x3ba   : > { %4690 = vmatprep.mubr.f32.mxu1 %v3823_v44  ;;  %4307 = vmatmul.mubr.f32.gmra.mrb[114].mxu0 %v3694_v26  ;;  %v4925_v45 = vadd.f32 %v6726_v8, %v13591_v39  ;;  %v4798_v40 = vadd.f32 %v6727_v42, %v13592_v53  ;;  %v13593_v35 = vld [vmem:[#allocation40_spill] sm:$0xff]  ;;  %v6326_v5 = vpop.eup %6325  ;;  %v12462_v26 = vld [vmem:[%s7253_s9 + $0x3b8] sm:$0xff]  ;;  %v13594_v8 = vand.u32 2147483648, %v12138_v12  ;;  %vm2601_vm2 = vcmp.eq.f32.partialorder %v12296_v50, inf }
 0x3bb   : > { %v4926_v31 = vadd.f32 %v6728_v17, %v13593_v35  ;;  %4691 = vmatmul.mubr.f32.gmra.mrb[114].mxu1 %v3822_v61  ;;  %v5065_v29 = vadd.f32 %v9554_v43, %v4797_v4  ;;  %v12467_v61 = vmul.f32 %v6326_v5, %v12362_v37  ;;  %v3036_v5 = vsel %vm3035_vm12, %v12129_v48, %v12255_v59  ;;  %v12489_v12 = vld [vmem:[%s7253_s9 + $0x7b8] sm:$0xff]  ;;  %v12494_v35 = vld [vmem:[%s7253_s9 + $0x3b0] sm:$0xff] }
 0x3bc   : > { %v6328_v44 = vpop.eup %6327  ;;  %v5193_v17 = vadd.f32 %v9554_v43, %v4925_v45  ;;  %v5066_v7 = vadd.f32 %v9581_v0, %v4798_v40  ;;  %v2591_v39 = vsel %vm2589_vm0, %v13594_v8, %v2588_v41  ;;  %v12500_v41 = vld [vmem:[%s7253_s9 + $0x7b0] sm:$0xff]  ;;  %v6736_v42 = vld [vmem:[%s7253_s9 + $0x618] sm:$0xff]  ;;  %vm3049_vm3 = vcmp.eq.f32.partialorder %v12290_v13, inf }
 0x3bd   : > { %v5194_v1 = vadd.f32 %v9581_v0, %v4926_v31  ;;  %v12473_v4 = vmul.f32 %v6328_v44, %v12368_v27  ;;  %5321 = vst [vmem:[%s9596_s20 + $0x200] sm:$0xff] %v5065_v29  ;;  %v3127_v45 = vadd.f32 1e-06, %v2591_v39  ;;  %v13595_v31 = vand.u32 2147483648, %v12129_v48  ;;  %v6733_v44 = vld [vmem:[%s7253_s9 + $0x210] sm:$0xff]  ;;  %v13598_v59 = vld [vmem:[#allocation39_spill] sm:$0xff] }
 0x3be   : > { %5449 = vst [vmem:[%s9596_s20 + $0x600] sm:$0xff] %v5193_v17  ;;  %5322 = vst [vmem:[%s9596_s20 + $0x208] sm:$0xff] %v5066_v7  ;;  %v13596_v17 = vld [vmem:[#allocation42_spill] sm:$0xff]  ;;  %v13597_v8 = vld [vmem:[#allocation41_spill] sm:$0xff]  ;;  %v4928_v53 = vadd.f32 %v6736_v42, %v13598_v59  ;;  %vm2596_vm4 = vcmp.eq.f32.partialorder %v12214_v32, 0.0  ;;  %vm3044_vm5 = vcmp.eq.f32.partialorder %v12208_v30, 0.0  ;;  %v13600_v28 = vsub.f32 %v12419_v34, %v11919_v2 }
 0x3bf   : > { %5450 = vst [vmem:[%s9596_s20 + $0x608] sm:$0xff] %v5194_v1  ;;  %v3039_v40 = vsel %vm3037_vm1, %v13595_v31, %v3036_v5  ;;  %v4799_v7 = vadd.f32 %v6733_v44, %v13596_v17  ;;  %v6734_v1 = vld [vmem:[%s7253_s9 + $0x610] sm:$0xff]  ;;  %6337 = vrcp.f32 %v3127_v45  ;;  %v6735_v5 = vld [vmem:[%s7253_s9 + $0x218] sm:$0xff]  ;;  %v13599_v17 = vand.u32 2147483648, %v12214_v32 }
 0x3c0   : > { %v3191_v29 = vadd.f32 1e-06, %v3039_v40  ;;  %v4927_v39 = vadd.f32 %v6734_v1, %v13597_v8  ;;  %v4800_v31 = vadd.f32 %v6735_v5, %v11944_v33  ;;  %v2595_v40 = vsel %vm2594_vm14, %v12214_v32, %v12328_v60  ;;  %v6330_v48 = vpop.eup %6329 }
 0x3c1   : > { %v5067_v45 = vadd.f32 %v9554_v43, %v4799_v7  ;;  %v6332_v33 = vpop.eup %6331  ;;  %v12521_v42 = vmul.f32 %v6330_v48, %v12406_v49  ;;  %v5196_v60 = vadd.f32 %v9581_v0, %v4928_v53  ;;  %v3043_v53 = vsel %vm3042_vm15, %v12208_v30, %v12322_v58  ;;  %v13606_v58 = vld [vmem:[#allocation15_spill] sm:$0xff] }
 0x3c2   : > { %6339 = vrcp.f32 %v3191_v29  ;;  %v5195_v44 = vadd.f32 %v9554_v43, %v4927_v39  ;;  %v5068_v59 = vadd.f32 %v9581_v0, %v4800_v31  ;;  %v2598_v29 = vsel %vm2596_vm4, %v13599_v17, %v2595_v40  ;;  %v6334_v1 = vpop.eup %6333  ;;  %v12533_v39 = vld [vmem:[%s7253_s9 + $0x3c8] sm:$0xff]  ;;  %v12571_v17 = vld [vmem:[%s7253_s9 + $0x3c0] sm:$0xff] }
 0x3c3   : > { %v12528_v7 = vmul.f32 %v6332_v33, %v12408_v16  ;;  %5323 = vst [vmem:[%s9596_s20 + $0x210] sm:$0xff] %v5067_v45  ;;  %v3128_v8 = vadd.f32 1e-06, %v2598_v29  ;;  %v3445_v48 = vsub.f32 %v12533_v39, %v12106_v21  ;;  %v6336_v32 = vpop.eup %6335  ;;  %v3697_v5 = vmul.f32 %v6334_v1, %v3441_v18  ;;  %5452 = vst [vmem:[%s9596_s20 + $0x618] sm:$0xff] %v5196_v60  ;;  %v12551_v40 = vld [vmem:[%s7253_s9 + $0x7c8] sm:$0xff]  ;;  %v12555_v45 = vpop.f32.mrb[78].mxu0 }
 0x3c4   : > { %5451 = vst [vmem:[%s9596_s20 + $0x610] sm:$0xff] %v5195_v44  ;;  %v3696_v31 = vmul.f32 %v6334_v1, %v3440_v23  ;;  %5324 = vst [vmem:[%s9596_s20 + $0x218] sm:$0xff] %v5068_v59  ;;  %vm2608_vm6 = vcmp.eq.f32.partialorder %v12368_v27, inf  ;;  %v3825_v25 = vmul.f32 %v6336_v32, %v13600_v28  ;;  %v13601_v18 = vsub.f32 %v12434_v24, %v11919_v2  ;;  %v12566_v33 = vpop.f32.mrb[78].mxu1  ;;  %v12568_v59 = vpop.f32.mrb[79].mxu0  ;;  %v12576_v2 = vld [vmem:[%s7253_s9 + $0x7c0] sm:$0xff] }
 0x3c5   : > { %6341 = vrcp.f32 %v3128_v8  ;;  %v13602_v23 = vand.u32 2147483648, %v12208_v30  ;;  %4312 = vmatprep.mubr.f32.mxu0 %v3697_v5  ;;  %v3572_v24 = vsub.f32 %v12576_v2, %v12103_v54  ;;  %v6741_v30 = vld [vmem:[%s7253_s9 + $0x220] sm:$0xff]  ;;  %v13603_v29 = vld [vmem:[#allocation46_spill] sm:$0xff]  ;;  %v12582_v8 = vpop.f32.mrb[79].mxu1  ;;  %v6743_v28 = vld [vmem:[%s7253_s9 + $0x228] sm:$0xff]  ;;  %vm2603_vm7 = vcmp.eq.f32.partialorder %v12296_v50, 0.0 }
 0x3c6   : > { %v3824_v63 = vmul.f32 %v6336_v32, %v13601_v18  ;;  %v4801_v1 = vadd.f32 %v6741_v30, %v13603_v29  ;;  %4696 = vmatprep.mubr.f32.mxu1 %v3825_v25  ;;  %4313 = vmatmul.mubr.f32.gmra.mrb[116].mxu0 %v3696_v31  ;;  %v13604_v32 = vld [vmem:[#allocation12_spill] sm:$0xff]  ;;  %v13605_v18 = vld [vmem:[#allocation45_spill] sm:$0xff]  ;;  %vm3056_vm8 = vcmp.eq.f32.partialorder %v12362_v37, inf  ;;  %v2602_v31 = vsel %vm2601_vm2, %v12296_v50, %v12396_v22  ;;  %v12598_v30 = vld [vmem:[%s7253_s9 + $0x3d8] sm:$0xff] }
 0x3c7   : > { %v3046_v44 = vsel %vm3044_vm5, %v13602_v23, %v3043_v53  ;;  %v6742_v53 = vld [vmem:[%s7253_s9 + $0x620] sm:$0xff]  ;;  %v4802_v23 = vadd.f32 %v6743_v28, %v13605_v18  ;;  %v3447_v29 = vsub.f32 %v12598_v30, %v12186_v52  ;;  %v3050_v28 = vsel %vm3049_vm3, %v12290_v13, %v12384_v56 }
 0x3c8   : > { %v3192_v60 = vadd.f32 1e-06, %v3046_v44  ;;  %v4929_v5 = vadd.f32 %v6742_v53, %v13604_v32  ;;  %v6744_v44 = vld [vmem:[%s7253_s9 + $0x628] sm:$0xff]  ;;  %4697 = vmatmul.mubr.f32.gmra.mrb[116].mxu1 %v3824_v63  ;;  %v5069_v25 = vadd.f32 %v9554_v43, %v4801_v1  ;;  %vm3051_vm9 = vcmp.eq.f32.partialorder %v12290_v13, 0.0 }
 0x3c9   : > { %v4930_v34 = vadd.f32 %v6744_v44, %v13606_v58  ;;  %v5070_v53 = vadd.f32 %v9581_v0, %v4802_v23  ;;  %v6338_v32 = vpop.eup %6337  ;;  %vm2615_vm10 = vcmp.eq.f32.partialorder %v12408_v16, inf  ;;  %v13609_v44 = vsub.f32 %v12494_v35, %v12019_v62 }
 0x3ca   : > { %6343 = vrcp.f32 %v3192_v60  ;;  %v5197_v58 = vadd.f32 %v9554_v43, %v4929_v5  ;;  %v13607_v60 = vand.u32 2147483648, %v12296_v50  ;;  %5325 = vst [vmem:[%s9596_s20 + $0x220] sm:$0xff] %v5069_v25  ;;  %v12614_v5 = vld [vmem:[%s7253_s9 + $0x7d8] sm:$0xff]  ;;  %v13608_v50 = vsub.f32 %v12462_v26, %v12019_v62 }
 0x3cb   : > { %v5198_v63 = vadd.f32 %v9581_v0, %v4930_v34  ;;  %v3575_v18 = vsub.f32 %v12614_v5, %v12172_v11  ;;  %v3698_v56 = vmul.f32 %v6338_v32, %v13609_v44  ;;  %5326 = vst [vmem:[%s9596_s20 + $0x228] sm:$0xff] %v5070_v53  ;;  %v13610_v25 = vand.u32 2147483648, %v12290_v13  ;;  %v12643_v53 = vld [vmem:[%s7253_s9 + $0x7d0] sm:$0xff]  ;;  %v6751_v44 = vld [vmem:[%s7253_s9 + $0x238] sm:$0xff] }
 0x3cc   : > { %v2605_v1 = vsel %vm2603_vm7, %v13607_v60, %v2602_v31  ;;  %v6340_v34 = vpop.eup %6339  ;;  %v3699_v23 = vmul.f32 %v6338_v32, %v13608_v50  ;;  %5453 = vst [vmem:[%s9596_s20 + $0x620] sm:$0xff] %v5197_v58  ;;  %v12631_v60 = vld [vmem:[%s7253_s9 + $0x3d0] sm:$0xff]  ;;  %vm3063_vm11 = vcmp.eq.f32.partialorder %v12406_v49, inf  ;;  %v13611_v62 = vsub.f32 %v12489_v12, %v12007_v3 }
 0x3cd   : > { %v3129_v22 = vadd.f32 1e-06, %v2605_v1  ;;  %5454 = vst [vmem:[%s9596_s20 + $0x628] sm:$0xff] %v5198_v63  ;;  %v3053_v31 = vsel %vm3051_vm9, %v13610_v25, %v3050_v28  ;;  %v3446_v1 = vsub.f32 %v12631_v60, %v12186_v52  ;;  %v13612_v35 = vsub.f32 %v12500_v41, %v12007_v3  ;;  %v6749_v32 = vld [vmem:[%s7253_s9 + $0x230] sm:$0xff]  ;;  %v6752_v3 = vld [vmem:[%s7253_s9 + $0x638] sm:$0xff] }
 0x3ce   : > { %v3827_v26 = vmul.f32 %v6340_v34, %v13611_v62  ;;  %v3193_v13 = vadd.f32 1e-06, %v3053_v31  ;;  %4318 = vmatprep.mubr.f32.mxu0 %v3699_v23  ;;  %v3574_v63 = vsub.f32 %v12643_v53, %v12172_v11  ;;  %v4803_v28 = vadd.f32 %v6749_v32, %v12123_v20  ;;  %v6750_v50 = vld [vmem:[%s7253_s9 + $0x630] sm:$0xff] }
 0x3cf   : > { %v3826_v58 = vmul.f32 %v6340_v34, %v13612_v35  ;;  %6345 = vrcp.f32 %v3129_v22  ;;  %v4931_v12 = vadd.f32 %v6750_v50, %v12143_v14  ;;  %v4804_v25 = vadd.f32 %v6751_v44, %v12133_v51  ;;  %4319 = vmatmul.mubr.f32.gmra.mrb[118].mxu0 %v3698_v56  ;;  %v6342_v14 = vpop.eup %6341  ;;  %v12672_v35 = vpop.f32.mrb[80].mxu0  ;;  %v12703_v44 = vld [vmem:[%s7253_s9 + $0x7e0] sm:$0xff]  ;;  %v6766_v11 = vld [vmem:[%s7253_s9 + $0x650] sm:$0xff] }
 0x3d0   : > { %4702 = vmatprep.mubr.f32.mxu1 %v3827_v26  ;;  %6347 = vrcp.f32 %v3193_v13  ;;  %v4932_v41 = vadd.f32 %v6752_v3, %v12154_v15  ;;  %v2609_v20 = vsel %vm2608_vm6, %v12368_v27, %v12473_v4  ;;  %vm2610_vm12 = vcmp.eq.f32.partialorder %v12368_v27, 0.0  ;;  %v12692_v13 = vpop.f32.mrb[81].mxu0  ;;  %v12707_v3 = vpop.f32.mrb[80].mxu1 }
 0x3d1   : > { %4703 = vmatmul.mubr.f32.gmra.mrb[118].mxu1 %v3826_v58  ;;  %v5071_v51 = vadd.f32 %v9554_v43, %v4803_v28  ;;  %v5199_v22 = vadd.f32 %v9554_v43, %v4931_v12  ;;  %v5072_v34 = vadd.f32 %v9581_v0, %v4804_v25  ;;  %v13613_v15 = vand.u32 2147483648, %v12368_v27  ;;  %v12678_v27 = vld [vmem:[%s7253_s9 + $0x3e8] sm:$0xff]  ;;  %v12698_v12 = vld [vmem:[%s7253_s9 + $0x3e0] sm:$0xff] }
 0x3d2   : > { %v3701_v56 = vmul.f32 %v6342_v14, %v3445_v48  ;;  %v13614_v4 = vsub.f32 %v12571_v17, %v12106_v21  ;;  %v5200_v62 = vadd.f32 %v9581_v0, %v4932_v41  ;;  %v3449_v39 = vsub.f32 %v12678_v27, %v12249_v57  ;;  %v12688_v48 = vld [vmem:[%s7253_s9 + $0x7e8] sm:$0xff] }
 0x3d3   : > { %v2612_v23 = vsel %vm2610_vm12, %v13613_v15, %v2609_v20  ;;  %5327 = vst [vmem:[%s9596_s20 + $0x230] sm:$0xff] %v5071_v51  ;;  %5455 = vst [vmem:[%s9596_s20 + $0x630] sm:$0xff] %v5199_v22  ;;  %v3057_v21 = vsel %vm3056_vm8, %v12362_v37, %v12467_v61  ;;  %vm3058_vm13 = vcmp.eq.f32.partialorder %v12362_v37, 0.0  ;;  %v3577_v58 = vsub.f32 %v12688_v48, %v12246_v36  ;;  %v6757_v51 = vld [vmem:[%s7253_s9 + $0x240] sm:$0xff] }
 0x3d4   : > { %v3700_v31 = vmul.f32 %v6342_v14, %v13614_v4  ;;  %v3130_v26 = vadd.f32 1e-06, %v2612_v23  ;;  %5328 = vst [vmem:[%s9596_s20 + $0x238] sm:$0xff] %v5072_v34  ;;  %v6344_v32 = vpop.eup %6343  ;;  %4324 = vmatprep.mubr.f32.mxu0 %v3701_v56  ;;  %5456 = vst [vmem:[%s9596_s20 + $0x638] sm:$0xff] %v5200_v62  ;;  %v13615_v28 = vand.u32 2147483648, %v12362_v37  ;;  %v3448_v61 = vsub.f32 %v12698_v12, %v12249_v57  ;;  %v12717_v34 = vpop.f32.mrb[81].mxu1 }
 0x3d5   : > { %v3576_v25 = vsub.f32 %v12703_v44, %v12246_v36  ;;  %v13616_v41 = vsub.f32 %v12551_v40, %v12103_v54  ;;  %v3828_v37 = vmul.f32 %v6344_v32, %v3572_v24  ;;  %v4805_v22 = vadd.f32 %v6757_v51, %v12228_v10  ;;  %v12725_v40 = vld [vmem:[%s7253_s9 + $0x3f8] sm:$0xff]  ;;  %v6759_v24 = vld [vmem:[%s7253_s9 + $0x640] sm:$0xff]  ;;  %v13617_v23 = vld [vmem:[#allocation49_spill] sm:$0xff] }
 0x3d6   : > { %6349 = vrcp.f32 %v3130_v26  ;;  %v3060_v50 = vsel %vm3058_vm13, %v13615_v28, %v3057_v21  ;;  %4325 = vmatmul.mubr.f32.gmra.mrb[120].mxu0 %v3700_v31  ;;  %v2616_v15 = vsel %vm2615_vm10, %v12408_v16, %v12528_v7  ;;  %vm2617_vm14 = vcmp.eq.f32.partialorder %v12408_v16, 0.0 }
 0x3d7   : > { %v3829_v20 = vmul.f32 %v6344_v32, %v13616_v41  ;;  %v3194_v14 = vadd.f32 1e-06, %v3060_v50  ;;  %v3451_v54 = vsub.f32 %v12725_v40, %v12318_v55  ;;  %v4933_v56 = vadd.f32 %v6759_v24, %v13617_v23  ;;  %v12741_v32 = vld [vmem:[%s7253_s9 + $0x7f8] sm:$0xff] }
 0x3d8   : > { %v5073_v10 = vadd.f32 %v9554_v43, %v4805_v22  ;;  %v13618_v4 = vand.u32 2147483648, %v12408_v16  ;;  %v3064_v31 = vsel %vm3063_vm11, %v12406_v49, %v12521_v42  ;;  %vm3065_vm15 = vcmp.eq.f32.partialorder %v12406_v49, 0.0 }
 0x3d9   : > { %4708 = vmatprep.mubr.f32.mxu1 %v3829_v20  ;;  %6351 = vrcp.f32 %v3194_v14  ;;  %v6346_v62 = vpop.eup %6345  ;;  %v5201_v21 = vadd.f32 %v9554_v43, %v4933_v56  ;;  %v3579_v16 = vsub.f32 %v12741_v32, %v12304_v9  ;;  %v13619_v50 = vand.u32 2147483648, %v12406_v49  ;;  %v6761_v20 = vld [vmem:[%s7253_s9 + $0x248] sm:$0xff] }
 0x3da   : > { %v2619_v7 = vsel %vm2617_vm14, %v13618_v4, %v2616_v15  ;;  %4709 = vmatmul.mubr.f32.gmra.mrb[120].mxu1 %v3828_v37  ;;  %v3703_v28 = vmul.f32 %v6346_v62, %v3447_v29  ;;  %v3702_v42 = vmul.f32 %v6346_v62, %v3446_v1  ;;  %5329 = vst [vmem:[%s9596_s20 + $0x240] sm:$0xff] %v5073_v10  ;;  %v13620_v37 = vld [vmem:[#allocation14_spill] sm:$0xff]  ;;  %v6348_v51 = vpop.eup %6347  ;;  %v6763_v29 = vld [vmem:[%s7253_s9 + $0x648] sm:$0xff] }
 0x3db   : > { %v3131_v26 = vadd.f32 1e-06, %v2619_v7  ;;  %v3067_v41 = vsel %vm3065_vm15, %v13619_v50, %v3064_v31  ;;  %v4806_v14 = vadd.f32 %v6761_v20, %v13620_v37  ;;  %5457 = vst [vmem:[%s9596_s20 + $0x640] sm:$0xff] %v5201_v21  ;;  %v12758_v15 = vld [vmem:[%s7253_s9 + $0x3f0] sm:$0xff]  ;;  %v3831_v24 = vmul.f32 %v6348_v51, %v3575_v18  ;;  %v13623_v21 = vld [vmem:[#allocation16_spill] sm:$0xff]  ;;  %v6768_v50 = vld [vmem:[%s7253_s9 + $0x658] sm:$0xff] }
 0x3dc   : > { %v3195_v22 = vadd.f32 1e-06, %v3067_v41  ;;  %v3450_v52 = vsub.f32 %v12758_v15, %v12318_v55  ;;  %v13621_v1 = vld [vmem:[#allocation13_spill] sm:$0xff]  ;;  %4330 = vmatprep.mubr.f32.mxu0 %v3703_v28  ;;  %v3830_v23 = vmul.f32 %v6348_v51, %v3574_v63  ;;  %v13622_v62 = vld [vmem:[#allocation18_spill] sm:$0xff]  ;;  %v6769_v20 = vld [vmem:[%s7253_s9 + $0x260] sm:$0xff] }
 0x3dd   : > { %6353 = vrcp.f32 %v3131_v26  ;;  %v4934_v49 = vadd.f32 %v6763_v29, %v13621_v1  ;;  %v5074_v56 = vadd.f32 %v9581_v0, %v4806_v14  ;;  %v12772_v10 = vld [vmem:[%s7253_s9 + $0x7f0] sm:$0xff]  ;;  %4331 = vmatmul.mubr.f32.gmra.mrb[122].mxu0 %v3702_v42  ;;  %v4935_v63 = vadd.f32 %v6766_v11, %v13622_v62  ;;  %4714 = vmatprep.mubr.f32.mxu1 %v3831_v24  ;;  %v6767_v26 = vld [vmem:[%s7253_s9 + $0x258] sm:$0xff]  ;;  %v6770_v14 = vld [vmem:[%s7253_s9 + $0x660] sm:$0xff] }
 0x3de   : > { %v3578_v4 = vsub.f32 %v12772_v10, %v12304_v9  ;;  %6355 = vrcp.f32 %v3195_v22  ;;  %v6765_v31 = vld [vmem:[%s7253_s9 + $0x250] sm:$0xff]  ;;  %v4808_v28 = vadd.f32 %v6767_v26, %v13623_v21  ;;  %v4809_v37 = vadd.f32 %v6769_v20, %v12430_v47  ;;  %4715 = vmatmul.mubr.f32.gmra.mrb[122].mxu1 %v3830_v23  ;;  %v6771_v1 = vld [vmem:[%s7253_s9 + $0x268] sm:$0xff]  ;;  %v6783_v55 = vld [vmem:[%s7253_s9 + $0x298] sm:$0xff] }
 0x3df   : > { %v5202_v7 = vadd.f32 %v9581_v0, %v4934_v49  ;;  %v4807_v18 = vadd.f32 %v6765_v31, %v12337_v19  ;;  %5330 = vst [vmem:[%s9596_s20 + $0x248] sm:$0xff] %v5074_v56  ;;  %v13624_v41 = vld [vmem:[#allocation17_spill] sm:$0xff]  ;;  %v4937_v19 = vadd.f32 %v6770_v14, %v12438_v38  ;;  %v5203_v29 = vadd.f32 %v9554_v43, %v4935_v63 }
 0x3e0   : > { %v4936_v42 = vadd.f32 %v6768_v50, %v13624_v41  ;;  %v6350_v51 = vpop.eup %6349  ;;  %v4810_v49 = vadd.f32 %v6771_v1, %v12440_v6  ;;  %v6772_v24 = vld [vmem:[%s7253_s9 + $0x668] sm:$0xff]  ;;  %v5076_v23 = vadd.f32 %v9581_v0, %v4808_v28  ;;  %v4212_v6 = vpop.f32.mrb[82].mxu0  ;;  %v6773_v62 = vld [vmem:[%s7253_s9 + $0x270] sm:$0xff]  ;;  %v6775_v28 = vld [vmem:[%s7253_s9 + $0x278] sm:$0xff] }
 0x3e1   : > { %5458 = vst [vmem:[%s9596_s20 + $0x648] sm:$0xff] %v5202_v7  ;;  %v5075_v22 = vadd.f32 %v9554_v43, %v4807_v18  ;;  %v4938_v56 = vadd.f32 %v6772_v24, %v12446_v46  ;;  %v3705_v47 = vmul.f32 %v6350_v51, %v3449_v39  ;;  %v3704_v38 = vmul.f32 %v6350_v51, %v3448_v61  ;;  %v4596_v61 = vpop.f32.mrb[82].mxu1  ;;  %v4214_v18 = vpop.f32.mrb[83].mxu0  ;;  %v6774_v26 = vld [vmem:[%s7253_s9 + $0x670] sm:$0xff]  ;;  %v6776_v41 = vld [vmem:[%s7253_s9 + $0x678] sm:$0xff]  ;;  %v6780_v1 = vld [vmem:[%s7253_s9 + $0x688] sm:$0xff] }
 0x3e2   : > { %v5204_v7 = vadd.f32 %v9581_v0, %v4936_v42  ;;  %5459 = vst [vmem:[%s9596_s20 + $0x650] sm:$0xff] %v5203_v29  ;;  %v5077_v46 = vadd.f32 %v9554_v43, %v4809_v37  ;;  %v5205_v39 = vadd.f32 %v9554_v43, %v4937_v19  ;;  %v5078_v31 = vadd.f32 %v9581_v0, %v4810_v49  ;;  %v4598_v20 = vpop.f32.mrb[83].mxu1  ;;  %v4218_v9 = vpop.f32.mrb[84].mxu0 }
 0x3e3   : > { %5331 = vst [vmem:[%s9596_s20 + $0x250] sm:$0xff] %v5075_v22  ;;  %v5206_v57 = vadd.f32 %v9581_v0, %v4938_v56  ;;  %v6352_v11 = vpop.eup %6351  ;;  %4336 = vmatprep.mubr.f32.mxu0 %v3705_v47  ;;  %5332 = vst [vmem:[%s9596_s20 + $0x258] sm:$0xff] %v5076_v23  ;;  %v4811_v63 = vadd.f32 %v6773_v62, %v12555_v45  ;;  %v4939_v21 = vadd.f32 %v6774_v26, %v12566_v33  ;;  %v6777_v33 = vld [vmem:[%s7253_s9 + $0x280] sm:$0xff]  ;;  %v6779_v22 = vld [vmem:[%s7253_s9 + $0x288] sm:$0xff]  ;;  %v4602_v62 = vpop.f32.mrb[84].mxu1 }
 0x3e4   : > { %5460 = vst [vmem:[%s9596_s20 + $0x658] sm:$0xff] %v5204_v7  ;;  %v4812_v50 = vadd.f32 %v6775_v28, %v12568_v59  ;;  %v4940_v42 = vadd.f32 %v6776_v41, %v12582_v8  ;;  %v3833_v37 = vmul.f32 %v6352_v11, %v3577_v58  ;;  %4337 = vmatmul.mubr.f32.gmra.mrb[124].mxu0 %v3704_v38  ;;  %5333 = vst [vmem:[%s9596_s20 + $0x260] sm:$0xff] %v5077_v46  ;;  %v6778_v8 = vld [vmem:[%s7253_s9 + $0x680] sm:$0xff]  ;;  %v6782_v38 = vld [vmem:[%s7253_s9 + $0x690] sm:$0xff]  ;;  %v4604_v41 = vpop.f32.mrb[85].mxu1 }
 0x3e5   : > { %v3832_v45 = vmul.f32 %v6352_v11, %v3576_v25  ;;  %5461 = vst [vmem:[%s9596_s20 + $0x660] sm:$0xff] %v5205_v39  ;;  %5334 = vst [vmem:[%s9596_s20 + $0x268] sm:$0xff] %v5078_v31  ;;  %v4813_v59 = vadd.f32 %v6777_v33, %v12672_v35  ;;  %v4941_v14 = vadd.f32 %v6778_v8, %v12707_v3  ;;  %v6784_v46 = vld [vmem:[%s7253_s9 + $0x698] sm:$0xff]  ;;  %v6786_v26 = vld [vmem:[%s7253_s9 + $0x6a0] sm:$0xff] }
 0x3e6   : > { %5462 = vst [vmem:[%s9596_s20 + $0x668] sm:$0xff] %v5206_v57  ;;  %v5079_v58 = vadd.f32 %v9554_v43, %v4811_v63  ;;  %v5207_v19 = vadd.f32 %v9554_v43, %v4939_v21  ;;  %v5080_v36 = vadd.f32 %v9581_v0, %v4812_v50  ;;  %v5208_v25 = vadd.f32 %v9581_v0, %v4940_v42  ;;  %v4220_v63 = vpop.f32.mrb[85].mxu0  ;;  %v6787_v28 = vld [vmem:[%s7253_s9 + $0x2a8] sm:$0xff] }
 0x3e7   : > { %v6354_v51 = vpop.eup %6353  ;;  %4720 = vmatprep.mubr.f32.mxu1 %v3833_v37  ;;  %v5081_v35 = vadd.f32 %v9554_v43, %v4813_v59  ;;  %v5209_v3 = vadd.f32 %v9554_v43, %v4941_v14  ;;  %v4814_v29 = vadd.f32 %v6779_v22, %v12692_v13  ;;  %v4942_v49 = vadd.f32 %v6780_v1, %v12717_v34  ;;  %v6781_v13 = vld [vmem:[%s7253_s9 + $0x290] sm:$0xff]  ;;  %v6792_v1 = vld [vmem:[%s7253_s9 + $0x6b8] sm:$0xff] }
 0x3e8   : > { %4721 = vmatmul.mubr.f32.gmra.mrb[124].mxu1 %v3832_v45  ;;  %v3707_v24 = vmul.f32 %v6354_v51, %v3451_v54  ;;  %v3706_v56 = vmul.f32 %v6354_v51, %v3450_v52  ;;  %5335 = vst [vmem:[%s9596_s20 + $0x270] sm:$0xff] %v5079_v58  ;;  %5463 = vst [vmem:[%s9596_s20 + $0x670] sm:$0xff] %v5207_v19  ;;  %v4815_v47 = vadd.f32 %v6781_v13, %v4212_v6  ;;  %v6356_v34 = vpop.eup %6355  ;;  %v6789_v14 = vld [vmem:[%s7253_s9 + $0x2b0] sm:$0xff] }
 0x3e9   : > { %5336 = vst [vmem:[%s9596_s20 + $0x278] sm:$0xff] %v5080_v36  ;;  %5464 = vst [vmem:[%s9596_s20 + $0x678] sm:$0xff] %v5208_v25  ;;  %v4943_v23 = vadd.f32 %v6782_v38, %v4596_v61  ;;  %v5082_v54 = vadd.f32 %v9581_v0, %v4814_v29  ;;  %v5210_v7 = vadd.f32 %v9581_v0, %v4942_v49  ;;  %v6790_v25 = vld [vmem:[%s7253_s9 + $0x6b0] sm:$0xff]  ;;  %v6793_v38 = vld [vmem:[%s7253_s9 + $0x2c0] sm:$0xff] }
 0x3ea   : > { %5337 = vst [vmem:[%s9596_s20 + $0x280] sm:$0xff] %v5081_v35  ;;  %5465 = vst [vmem:[%s9596_s20 + $0x680] sm:$0xff] %v5209_v3  ;;  %v4816_v52 = vadd.f32 %v6783_v55, %v4214_v18  ;;  %v4944_v39 = vadd.f32 %v6784_v46, %v4598_v20  ;;  %4342 = vmatprep.mubr.f32.mxu0 %v3707_v24  ;;  %v3835_v6 = vmul.f32 %v6356_v34, %v3579_v16  ;;  %v6785_v16 = vld [vmem:[%s7253_s9 + $0x2a0] sm:$0xff]  ;;  %v6788_v20 = vld [vmem:[%s7253_s9 + $0x6a8] sm:$0xff] }
 0x3eb   : > { %v3834_v31 = vmul.f32 %v6356_v34, %v3578_v4  ;;  %v5083_v57 = vadd.f32 %v9554_v43, %v4815_v47  ;;  %v5211_v61 = vadd.f32 %v9554_v43, %v4943_v23  ;;  %4343 = vmatmul.mubr.f32.gmra.mrb[126].mxu0 %v3706_v56  ;;  %5338 = vst [vmem:[%s9596_s20 + $0x288] sm:$0xff] %v5082_v54  ;;  %5466 = vst [vmem:[%s9596_s20 + $0x688] sm:$0xff] %v5210_v7  ;;  %v4224_v8 = vpop.f32.mrb[86].mxu0  ;;  %v6791_v35 = vld [vmem:[%s7253_s9 + $0x2b8] sm:$0xff]  ;;  %v6794_v7 = vld [vmem:[%s7253_s9 + $0x6c0] sm:$0xff] }
 0x3ec   : > { %v5084_v18 = vadd.f32 %v9581_v0, %v4816_v52  ;;  %v5212_v11 = vadd.f32 %v9581_v0, %v4944_v39  ;;  %4726 = vmatprep.mubr.f32.mxu1 %v3835_v6  ;;  %v4817_v4 = vadd.f32 %v6785_v16, %v4218_v9  ;;  %v4945_v21 = vadd.f32 %v6786_v26, %v4602_v62  ;;  %v4226_v36 = vpop.f32.mrb[87].mxu0  ;;  %v6795_v52 = vld [vmem:[%s7253_s9 + $0x2c8] sm:$0xff]  ;;  %v6797_v16 = vld [vmem:[%s7253_s9 + $0x2d0] sm:$0xff] }
 0x3ed   : > { %5339 = vst [vmem:[%s9596_s20 + $0x290] sm:$0xff] %v5083_v57  ;;  %5467 = vst [vmem:[%s9596_s20 + $0x690] sm:$0xff] %v5211_v61  ;;  %4727 = vmatmul.mubr.f32.gmra.mrb[126].mxu1 %v3834_v31  ;;  %v4818_v50 = vadd.f32 %v6787_v28, %v4220_v63  ;;  %v4946_v37 = vadd.f32 %v6788_v20, %v4604_v41  ;;  %v4819_v58 = vadd.f32 %v6789_v14, %v4224_v8  ;;  %v4608_v19 = vpop.f32.mrb[86].mxu1  ;;  %v6796_v31 = vld [vmem:[%s7253_s9 + $0x6c8] sm:$0xff]  ;;  %v6798_v26 = vld [vmem:[%s7253_s9 + $0x6d0] sm:$0xff] }
 0x3ee   : > { %5340 = vst [vmem:[%s9596_s20 + $0x298] sm:$0xff] %v5084_v18  ;;  %5468 = vst [vmem:[%s9596_s20 + $0x698] sm:$0xff] %v5212_v11  ;;  %v5085_v42 = vadd.f32 %v9554_v43, %v4817_v4  ;;  %v5213_v45 = vadd.f32 %v9554_v43, %v4945_v21  ;;  %v4947_v51 = vadd.f32 %v6790_v25, %v4608_v19  ;;  %v4610_v22 = vpop.f32.mrb[87].mxu1  ;;  %v6799_v28 = vld [vmem:[%s7253_s9 + $0x2d8] sm:$0xff]  ;;  %v6801_v14 = vld [vmem:[%s7253_s9 + $0x2e0] sm:$0xff] }
 0x3ef   : > { %v5086_v33 = vadd.f32 %v9581_v0, %v4818_v50  ;;  %v5214_v59 = vadd.f32 %v9581_v0, %v4946_v37  ;;  %v4820_v3 = vadd.f32 %v6791_v35, %v4226_v36  ;;  %v5087_v29 = vadd.f32 %v9554_v43, %v4819_v58  ;;  %v6800_v20 = vld [vmem:[%s7253_s9 + $0x6d8] sm:$0xff]  ;;  %v6802_v25 = vld [vmem:[%s7253_s9 + $0x6e0] sm:$0xff]  ;;  %v6803_v35 = vld [vmem:[%s7253_s9 + $0x2e8] sm:$0xff] }
 0x3f0   : > { %5341 = vst [vmem:[%s9596_s20 + $0x2a0] sm:$0xff] %v5085_v42  ;;  %5469 = vst [vmem:[%s9596_s20 + $0x6a0] sm:$0xff] %v5213_v45  ;;  %v4948_v49 = vadd.f32 %v6792_v1, %v4610_v22  ;;  %v5215_v24 = vadd.f32 %v9554_v43, %v4947_v51  ;;  %v6804_v1 = vld [vmem:[%s7253_s9 + $0x6e8] sm:$0xff] }
 0x3f1   : > { %5342 = vst [vmem:[%s9596_s20 + $0x2a8] sm:$0xff] %v5086_v33  ;;  %5470 = vst [vmem:[%s9596_s20 + $0x6a8] sm:$0xff] %v5214_v59  ;;  %v5088_v56 = vadd.f32 %v9581_v0, %v4820_v3 }
 0x3f2   : > { %5343 = vst [vmem:[%s9596_s20 + $0x2b0] sm:$0xff] %v5087_v29  ;;  %v5216_v13 = vadd.f32 %v9581_v0, %v4948_v49  ;;  %5471 = vst [vmem:[%s9596_s20 + $0x6b0] sm:$0xff] %v5215_v24 }
 0x3f3   : > { %5344 = vst [vmem:[%s9596_s20 + $0x2b8] sm:$0xff] %v5088_v56 }
 0x3f4   : > { %5472 = vst [vmem:[%s9596_s20 + $0x6b8] sm:$0xff] %v5216_v13 }
 0x3f6   : > { %v4230_v47 = vpop.f32.mrb[88].mxu0 }
 0x3f7   : > { %v4821_v23 = vadd.f32 %v6793_v38, %v4230_v47  ;;  %v4232_v54 = vpop.f32.mrb[89].mxu0  ;;  %v6805_v38 = vld [vmem:[%s7253_s9 + $0x2f0] sm:$0xff] }
 0x3f8   : > { %v4822_v46 = vadd.f32 %v6795_v52, %v4232_v54  ;;  %v6807_v52 = vld [vmem:[%s7253_s9 + $0x2f8] sm:$0xff] }
 0x3f9   : > { %v4614_v34 = vpop.f32.mrb[88].mxu1  ;;  %v5089_v6 = vadd.f32 %v9554_v43, %v4821_v23 }
 0x3fa   : > { %v4949_v55 = vadd.f32 %v6794_v7, %v4614_v34  ;;  %v4616_v39 = vpop.f32.mrb[89].mxu1  ;;  %v5090_v18 = vadd.f32 %v9581_v0, %v4822_v46  ;;  %v6806_v7 = vld [vmem:[%s7253_s9 + $0x6f0] sm:$0xff] }
 0x3fb   : > { %v4950_v57 = vadd.f32 %v6796_v31, %v4616_v39  ;;  %5345 = vst [vmem:[%s9596_s20 + $0x2c0] sm:$0xff] %v5089_v6  ;;  %v6808_v31 = vld [vmem:[%s7253_s9 + $0x6f8] sm:$0xff] }
 0x3fc   : > { %v5217_v61 = vadd.f32 %v9554_v43, %v4949_v55  ;;  %5346 = vst [vmem:[%s9596_s20 + $0x2c8] sm:$0xff] %v5090_v18 }
 0x3fd   : > { %v5218_v11 = vadd.f32 %v9581_v0, %v4950_v57 }
 0x3fe   : > { %5473 = vst [vmem:[%s9596_s20 + $0x6c0] sm:$0xff] %v5217_v61 }
 0x3ff   : > { %5474 = vst [vmem:[%s9596_s20 + $0x6c8] sm:$0xff] %v5218_v11 }
 0x403   : > { %v4236_v9 = vpop.f32.mrb[90].mxu0 }
 0x404   : > { %v4823_v4 = vadd.f32 %v6797_v16, %v4236_v9  ;;  %v4620_v62 = vpop.f32.mrb[90].mxu1  ;;  %v4238_v63 = vpop.f32.mrb[91].mxu0  ;;  %v6809_v16 = vld [vmem:[%s7253_s9 + $0x300] sm:$0xff] }
 0x405   : > { %v4951_v21 = vadd.f32 %v6798_v26, %v4620_v62  ;;  %v4824_v50 = vadd.f32 %v6799_v28, %v4238_v63  ;;  %v4622_v41 = vpop.f32.mrb[91].mxu1  ;;  %v6810_v26 = vld [vmem:[%s7253_s9 + $0x700] sm:$0xff]  ;;  %v6811_v28 = vld [vmem:[%s7253_s9 + $0x308] sm:$0xff] }
 0x406   : > { %v5091_v42 = vadd.f32 %v9554_v43, %v4823_v4  ;;  %v4952_v37 = vadd.f32 %v6800_v20, %v4622_v41  ;;  %v6812_v20 = vld [vmem:[%s7253_s9 + $0x708] sm:$0xff] }
 0x407   : > { %v5219_v45 = vadd.f32 %v9554_v43, %v4951_v21  ;;  %v5092_v33 = vadd.f32 %v9581_v0, %v4824_v50 }
 0x408   : > { %5347 = vst [vmem:[%s9596_s20 + $0x2d0] sm:$0xff] %v5091_v42  ;;  %v5220_v59 = vadd.f32 %v9581_v0, %v4952_v37 }
 0x409   : > { %5475 = vst [vmem:[%s9596_s20 + $0x6d0] sm:$0xff] %v5219_v45  ;;  %5348 = vst [vmem:[%s9596_s20 + $0x2d8] sm:$0xff] %v5092_v33 }
 0x40a   : > { %5476 = vst [vmem:[%s9596_s20 + $0x6d8] sm:$0xff] %v5220_v59 }
 0x40f   : > { %v4242_v8 = vpop.f32.mrb[92].mxu0 }
 0x410   : > { %v4825_v58 = vadd.f32 %v6801_v14, %v4242_v8  ;;  %v4626_v19 = vpop.f32.mrb[92].mxu1  ;;  %v4244_v36 = vpop.f32.mrb[93].mxu0  ;;  %v6813_v14 = vld [vmem:[%s7253_s9 + $0x310] sm:$0xff] }
 0x411   : > { %v4953_v51 = vadd.f32 %v6802_v25, %v4626_v19  ;;  %v4826_v3 = vadd.f32 %v6803_v35, %v4244_v36  ;;  %v4628_v22 = vpop.f32.mrb[93].mxu1  ;;  %v6814_v25 = vld [vmem:[%s7253_s9 + $0x710] sm:$0xff]  ;;  %v6815_v35 = vld [vmem:[%s7253_s9 + $0x318] sm:$0xff] }
 0x412   : > { %v5093_v29 = vadd.f32 %v9554_v43, %v4825_v58  ;;  %v4954_v49 = vadd.f32 %v6804_v1, %v4628_v22  ;;  %v6816_v1 = vld [vmem:[%s7253_s9 + $0x718] sm:$0xff] }
 0x413   : > { %v5221_v24 = vadd.f32 %v9554_v43, %v4953_v51  ;;  %v5094_v56 = vadd.f32 %v9581_v0, %v4826_v3 }
 0x414   : > { %5349 = vst [vmem:[%s9596_s20 + $0x2e0] sm:$0xff] %v5093_v29  ;;  %v5222_v13 = vadd.f32 %v9581_v0, %v4954_v49 }
 0x415   : > { %5477 = vst [vmem:[%s9596_s20 + $0x6e0] sm:$0xff] %v5221_v24  ;;  %5350 = vst [vmem:[%s9596_s20 + $0x2e8] sm:$0xff] %v5094_v56 }
 0x416   : > { %5478 = vst [vmem:[%s9596_s20 + $0x6e8] sm:$0xff] %v5222_v13 }
 0x41a   : > { %v4248_v47 = vpop.f32.mrb[94].mxu0 }
 0x41b   : > { %v4827_v23 = vadd.f32 %v6805_v38, %v4248_v47  ;;  %v4250_v54 = vpop.f32.mrb[95].mxu0  ;;  %v6817_v38 = vld [vmem:[%s7253_s9 + $0x320] sm:$0xff] }
 0x41c   : > { %v4632_v34 = vpop.f32.mrb[94].mxu1  ;;  %v4828_v46 = vadd.f32 %v6807_v52, %v4250_v54  ;;  %v6819_v52 = vld [vmem:[%s7253_s9 + $0x328] sm:$0xff] }
 0x41d   : > { %v4955_v55 = vadd.f32 %v6806_v7, %v4632_v34  ;;  %v4634_v39 = vpop.f32.mrb[95].mxu1  ;;  %v5095_v6 = vadd.f32 %v9554_v43, %v4827_v23  ;;  %v6818_v7 = vld [vmem:[%s7253_s9 + $0x720] sm:$0xff] }
 0x41e   : > { %v4956_v57 = vadd.f32 %v6808_v31, %v4634_v39  ;;  %v5096_v18 = vadd.f32 %v9581_v0, %v4828_v46  ;;  %v6820_v31 = vld [vmem:[%s7253_s9 + $0x728] sm:$0xff] }
 0x41f   : > { %v5223_v61 = vadd.f32 %v9554_v43, %v4955_v55  ;;  %5351 = vst [vmem:[%s9596_s20 + $0x2f0] sm:$0xff] %v5095_v6 }
 0x420   : > { %v5224_v11 = vadd.f32 %v9581_v0, %v4956_v57  ;;  %5352 = vst [vmem:[%s9596_s20 + $0x2f8] sm:$0xff] %v5096_v18 }
 0x421   : > { %5479 = vst [vmem:[%s9596_s20 + $0x6f0] sm:$0xff] %v5223_v61 }
 0x422   : > { %5480 = vst [vmem:[%s9596_s20 + $0x6f8] sm:$0xff] %v5224_v11 }
 0x426   : > { %v4254_v9 = vpop.f32.mrb[96].mxu0 }
 0x427   : > { %v4829_v4 = vadd.f32 %v6809_v16, %v4254_v9  ;;  %v4638_v62 = vpop.f32.mrb[96].mxu1  ;;  %v4256_v63 = vpop.f32.mrb[97].mxu0  ;;  %v6821_v16 = vld [vmem:[%s7253_s9 + $0x330] sm:$0xff] }
 0x428   : > { %v4957_v21 = vadd.f32 %v6810_v26, %v4638_v62  ;;  %v4830_v50 = vadd.f32 %v6811_v28, %v4256_v63  ;;  %v4640_v41 = vpop.f32.mrb[97].mxu1  ;;  %v6822_v26 = vld [vmem:[%s7253_s9 + $0x730] sm:$0xff]  ;;  %v6823_v28 = vld [vmem:[%s7253_s9 + $0x338] sm:$0xff] }
 0x429   : > { %v5097_v42 = vadd.f32 %v9554_v43, %v4829_v4  ;;  %v4958_v37 = vadd.f32 %v6812_v20, %v4640_v41  ;;  %v6824_v20 = vld [vmem:[%s7253_s9 + $0x738] sm:$0xff] }
 0x42a   : > { %v5225_v45 = vadd.f32 %v9554_v43, %v4957_v21  ;;  %v5098_v33 = vadd.f32 %v9581_v0, %v4830_v50 }
 0x42b   : > { %5353 = vst [vmem:[%s9596_s20 + $0x300] sm:$0xff] %v5097_v42  ;;  %v5226_v59 = vadd.f32 %v9581_v0, %v4958_v37 }
 0x42c   : > { %5481 = vst [vmem:[%s9596_s20 + $0x700] sm:$0xff] %v5225_v45  ;;  %5354 = vst [vmem:[%s9596_s20 + $0x308] sm:$0xff] %v5098_v33 }
 0x42d   : > { %5482 = vst [vmem:[%s9596_s20 + $0x708] sm:$0xff] %v5226_v59 }
 0x432   : > { %v4260_v8 = vpop.f32.mrb[98].mxu0 }
 0x433   : > { %v4831_v58 = vadd.f32 %v6813_v14, %v4260_v8  ;;  %v4644_v19 = vpop.f32.mrb[98].mxu1  ;;  %v4262_v36 = vpop.f32.mrb[99].mxu0  ;;  %v6825_v14 = vld [vmem:[%s7253_s9 + $0x340] sm:$0xff] }
 0x434   : > { %v4959_v51 = vadd.f32 %v6814_v25, %v4644_v19  ;;  %v4832_v3 = vadd.f32 %v6815_v35, %v4262_v36  ;;  %v4646_v22 = vpop.f32.mrb[99].mxu1  ;;  %v6826_v25 = vld [vmem:[%s7253_s9 + $0x740] sm:$0xff]  ;;  %v6827_v35 = vld [vmem:[%s7253_s9 + $0x348] sm:$0xff] }
 0x435   : > { %v5099_v29 = vadd.f32 %v9554_v43, %v4831_v58  ;;  %v4960_v49 = vadd.f32 %v6816_v1, %v4646_v22  ;;  %v6828_v1 = vld [vmem:[%s7253_s9 + $0x748] sm:$0xff] }
 0x436   : > { %v5227_v24 = vadd.f32 %v9554_v43, %v4959_v51  ;;  %v5100_v56 = vadd.f32 %v9581_v0, %v4832_v3 }
 0x437   : > { %5355 = vst [vmem:[%s9596_s20 + $0x310] sm:$0xff] %v5099_v29  ;;  %v5228_v13 = vadd.f32 %v9581_v0, %v4960_v49 }
 0x438   : > { %5483 = vst [vmem:[%s9596_s20 + $0x710] sm:$0xff] %v5227_v24  ;;  %5356 = vst [vmem:[%s9596_s20 + $0x318] sm:$0xff] %v5100_v56 }
 0x439   : > { %5484 = vst [vmem:[%s9596_s20 + $0x718] sm:$0xff] %v5228_v13 }
 0x43d   : > { %v4266_v47 = vpop.f32.mrb[100].mxu0 }
 0x43e   : > { %v4833_v23 = vadd.f32 %v6817_v38, %v4266_v47  ;;  %v4650_v34 = vpop.f32.mrb[100].mxu1  ;;  %v4268_v54 = vpop.f32.mrb[101].mxu0  ;;  %v6829_v38 = vld [vmem:[%s7253_s9 + $0x350] sm:$0xff] }
 0x43f   : > { %v4961_v55 = vadd.f32 %v6818_v7, %v4650_v34  ;;  %v4834_v46 = vadd.f32 %v6819_v52, %v4268_v54  ;;  %v4652_v39 = vpop.f32.mrb[101].mxu1  ;;  %v6830_v7 = vld [vmem:[%s7253_s9 + $0x750] sm:$0xff]  ;;  %v6831_v52 = vld [vmem:[%s7253_s9 + $0x358] sm:$0xff] }
 0x440   : > { %v5101_v6 = vadd.f32 %v9554_v43, %v4833_v23  ;;  %v4962_v57 = vadd.f32 %v6820_v31, %v4652_v39  ;;  %v6832_v31 = vld [vmem:[%s7253_s9 + $0x758] sm:$0xff] }
 0x441   : > { %v5229_v61 = vadd.f32 %v9554_v43, %v4961_v55  ;;  %v5102_v18 = vadd.f32 %v9581_v0, %v4834_v46 }
 0x442   : > { %5357 = vst [vmem:[%s9596_s20 + $0x320] sm:$0xff] %v5101_v6  ;;  %v5230_v11 = vadd.f32 %v9581_v0, %v4962_v57 }
 0x443   : > { %5485 = vst [vmem:[%s9596_s20 + $0x720] sm:$0xff] %v5229_v61  ;;  %5358 = vst [vmem:[%s9596_s20 + $0x328] sm:$0xff] %v5102_v18 }
 0x444   : > { %5486 = vst [vmem:[%s9596_s20 + $0x728] sm:$0xff] %v5230_v11 }
 0x448   : > { %v4272_v9 = vpop.f32.mrb[102].mxu0 }
 0x449   : > { %v4835_v4 = vadd.f32 %v6821_v16, %v4272_v9  ;;  %v4274_v63 = vpop.f32.mrb[103].mxu0  ;;  %v6833_v16 = vld [vmem:[%s7253_s9 + $0x360] sm:$0xff] }
 0x44a   : > { %v4656_v62 = vpop.f32.mrb[102].mxu1  ;;  %v4836_v50 = vadd.f32 %v6823_v28, %v4274_v63  ;;  %v6835_v28 = vld [vmem:[%s7253_s9 + $0x368] sm:$0xff] }
 0x44b   : > { %v4963_v21 = vadd.f32 %v6822_v26, %v4656_v62  ;;  %v4658_v41 = vpop.f32.mrb[103].mxu1  ;;  %v5103_v42 = vadd.f32 %v9554_v43, %v4835_v4  ;;  %v6834_v26 = vld [vmem:[%s7253_s9 + $0x760] sm:$0xff] }
 0x44c   : > { %v4964_v37 = vadd.f32 %v6824_v20, %v4658_v41  ;;  %v5104_v33 = vadd.f32 %v9581_v0, %v4836_v50  ;;  %v6836_v20 = vld [vmem:[%s7253_s9 + $0x768] sm:$0xff] }
 0x44d   : > { %v5231_v45 = vadd.f32 %v9554_v43, %v4963_v21  ;;  %5359 = vst [vmem:[%s9596_s20 + $0x330] sm:$0xff] %v5103_v42 }
 0x44e   : > { %v5232_v59 = vadd.f32 %v9581_v0, %v4964_v37  ;;  %5360 = vst [vmem:[%s9596_s20 + $0x338] sm:$0xff] %v5104_v33 }
 0x44f   : > { %5487 = vst [vmem:[%s9596_s20 + $0x730] sm:$0xff] %v5231_v45 }
 0x450   : > { %5488 = vst [vmem:[%s9596_s20 + $0x738] sm:$0xff] %v5232_v59 }
 0x454   : > { %v4278_v8 = vpop.f32.mrb[104].mxu0 }
 0x455   : > { %v4837_v58 = vadd.f32 %v6825_v14, %v4278_v8  ;;  %v4662_v19 = vpop.f32.mrb[104].mxu1  ;;  %v4280_v36 = vpop.f32.mrb[105].mxu0  ;;  %v6837_v14 = vld [vmem:[%s7253_s9 + $0x370] sm:$0xff] }
 0x456   : > { %v4965_v51 = vadd.f32 %v6826_v25, %v4662_v19  ;;  %v4838_v3 = vadd.f32 %v6827_v35, %v4280_v36  ;;  %v4664_v22 = vpop.f32.mrb[105].mxu1  ;;  %v6838_v25 = vld [vmem:[%s7253_s9 + $0x770] sm:$0xff]  ;;  %v6839_v35 = vld [vmem:[%s7253_s9 + $0x378] sm:$0xff] }
 0x457   : > { %v5105_v29 = vadd.f32 %v9554_v43, %v4837_v58  ;;  %v4966_v49 = vadd.f32 %v6828_v1, %v4664_v22  ;;  %v6840_v1 = vld [vmem:[%s7253_s9 + $0x778] sm:$0xff] }
 0x458   : > { %v5233_v24 = vadd.f32 %v9554_v43, %v4965_v51  ;;  %v5106_v56 = vadd.f32 %v9581_v0, %v4838_v3 }
 0x459   : > { %5361 = vst [vmem:[%s9596_s20 + $0x340] sm:$0xff] %v5105_v29  ;;  %v5234_v13 = vadd.f32 %v9581_v0, %v4966_v49 }
 0x45a   : > { %5489 = vst [vmem:[%s9596_s20 + $0x740] sm:$0xff] %v5233_v24  ;;  %5362 = vst [vmem:[%s9596_s20 + $0x348] sm:$0xff] %v5106_v56 }
 0x45b   : > { %5490 = vst [vmem:[%s9596_s20 + $0x748] sm:$0xff] %v5234_v13 }
 0x45f   : > { %v4284_v47 = vpop.f32.mrb[106].mxu0 }
 0x460   : > { %v4839_v23 = vadd.f32 %v6829_v38, %v4284_v47  ;;  %v4668_v34 = vpop.f32.mrb[106].mxu1  ;;  %v4286_v54 = vpop.f32.mrb[107].mxu0  ;;  %v6841_v38 = vld [vmem:[%s7253_s9 + $0x380] sm:$0xff] }
 0x461   : > { %v4967_v55 = vadd.f32 %v6830_v7, %v4668_v34  ;;  %v4840_v46 = vadd.f32 %v6831_v52, %v4286_v54  ;;  %v4670_v39 = vpop.f32.mrb[107].mxu1  ;;  %v6842_v7 = vld [vmem:[%s7253_s9 + $0x780] sm:$0xff]  ;;  %v6843_v52 = vld [vmem:[%s7253_s9 + $0x388] sm:$0xff] }
 0x462   : > { %v5107_v6 = vadd.f32 %v9554_v43, %v4839_v23  ;;  %v4968_v57 = vadd.f32 %v6832_v31, %v4670_v39  ;;  %v6844_v31 = vld [vmem:[%s7253_s9 + $0x788] sm:$0xff] }
 0x463   : > { %v5235_v61 = vadd.f32 %v9554_v43, %v4967_v55  ;;  %v5108_v18 = vadd.f32 %v9581_v0, %v4840_v46 }
 0x464   : > { %5363 = vst [vmem:[%s9596_s20 + $0x350] sm:$0xff] %v5107_v6  ;;  %v5236_v11 = vadd.f32 %v9581_v0, %v4968_v57 }
 0x465   : > { %5491 = vst [vmem:[%s9596_s20 + $0x750] sm:$0xff] %v5235_v61  ;;  %5364 = vst [vmem:[%s9596_s20 + $0x358] sm:$0xff] %v5108_v18 }
 0x466   : > { %5492 = vst [vmem:[%s9596_s20 + $0x758] sm:$0xff] %v5236_v11 }
 0x46b   : > { %v4290_v9 = vpop.f32.mrb[108].mxu0 }
 0x46c   : > { %v4841_v4 = vadd.f32 %v6833_v16, %v4290_v9  ;;  %v4292_v63 = vpop.f32.mrb[109].mxu0  ;;  %v6845_v16 = vld [vmem:[%s7253_s9 + $0x390] sm:$0xff] }
 0x46d   : > { %v4674_v62 = vpop.f32.mrb[108].mxu1  ;;  %v4842_v50 = vadd.f32 %v6835_v28, %v4292_v63  ;;  %v6847_v28 = vld [vmem:[%s7253_s9 + $0x398] sm:$0xff] }
 0x46e   : > { %v4969_v21 = vadd.f32 %v6834_v26, %v4674_v62  ;;  %v4676_v41 = vpop.f32.mrb[109].mxu1  ;;  %v5109_v42 = vadd.f32 %v9554_v43, %v4841_v4  ;;  %v6846_v26 = vld [vmem:[%s7253_s9 + $0x790] sm:$0xff] }
 0x46f   : > { %v4970_v37 = vadd.f32 %v6836_v20, %v4676_v41  ;;  %v5110_v33 = vadd.f32 %v9581_v0, %v4842_v50  ;;  %v6848_v20 = vld [vmem:[%s7253_s9 + $0x798] sm:$0xff] }
 0x470   : > { %v5237_v45 = vadd.f32 %v9554_v43, %v4969_v21  ;;  %5365 = vst [vmem:[%s9596_s20 + $0x360] sm:$0xff] %v5109_v42 }
 0x471   : > { %v5238_v59 = vadd.f32 %v9581_v0, %v4970_v37  ;;  %5366 = vst [vmem:[%s9596_s20 + $0x368] sm:$0xff] %v5110_v33 }
 0x472   : > { %5493 = vst [vmem:[%s9596_s20 + $0x760] sm:$0xff] %v5237_v45 }
 0x473   : > { %5494 = vst [vmem:[%s9596_s20 + $0x768] sm:$0xff] %v5238_v59 }
 0x476   : > { %v4296_v8 = vpop.f32.mrb[110].mxu0 }
 0x477   : > { %v4843_v58 = vadd.f32 %v6837_v14, %v4296_v8  ;;  %v4298_v36 = vpop.f32.mrb[111].mxu0  ;;  %v6849_v14 = vld [vmem:[%s7253_s9 + $0x3a0] sm:$0xff] }
 0x478   : > { %v4680_v19 = vpop.f32.mrb[110].mxu1  ;;  %v4844_v3 = vadd.f32 %v6839_v35, %v4298_v36  ;;  %v6851_v35 = vld [vmem:[%s7253_s9 + $0x3a8] sm:$0xff] }
 0x479   : > { %v4971_v51 = vadd.f32 %v6838_v25, %v4680_v19  ;;  %v4682_v22 = vpop.f32.mrb[111].mxu1  ;;  %v5111_v29 = vadd.f32 %v9554_v43, %v4843_v58  ;;  %v6850_v25 = vld [vmem:[%s7253_s9 + $0x7a0] sm:$0xff] }
 0x47a   : > { %v4972_v49 = vadd.f32 %v6840_v1, %v4682_v22  ;;  %v5112_v56 = vadd.f32 %v9581_v0, %v4844_v3  ;;  %v6852_v1 = vld [vmem:[%s7253_s9 + $0x7a8] sm:$0xff] }
 0x47b   : > { %v5239_v24 = vadd.f32 %v9554_v43, %v4971_v51  ;;  %5367 = vst [vmem:[%s9596_s20 + $0x370] sm:$0xff] %v5111_v29 }
 0x47c   : > { %v5240_v13 = vadd.f32 %v9581_v0, %v4972_v49  ;;  %5368 = vst [vmem:[%s9596_s20 + $0x378] sm:$0xff] %v5112_v56 }
 0x47d   : > { %5495 = vst [vmem:[%s9596_s20 + $0x770] sm:$0xff] %v5239_v24 }
 0x47e   : > { %5496 = vst [vmem:[%s9596_s20 + $0x778] sm:$0xff] %v5240_v13 }
 0x482   : > { %v4302_v47 = vpop.f32.mrb[112].mxu0 }
 0x483   : > { %v4845_v23 = vadd.f32 %v6841_v38, %v4302_v47  ;;  %v4686_v34 = vpop.f32.mrb[112].mxu1  ;;  %v4304_v54 = vpop.f32.mrb[113].mxu0  ;;  %v6853_v38 = vld [vmem:[%s7253_s9 + $0x3b0] sm:$0xff] }
 0x484   : > { %v4973_v55 = vadd.f32 %v6842_v7, %v4686_v34  ;;  %v4846_v46 = vadd.f32 %v6843_v52, %v4304_v54  ;;  %v4688_v39 = vpop.f32.mrb[113].mxu1  ;;  %v6854_v7 = vld [vmem:[%s7253_s9 + $0x7b0] sm:$0xff]  ;;  %v6855_v52 = vld [vmem:[%s7253_s9 + $0x3b8] sm:$0xff] }
 0x485   : > { %v5113_v6 = vadd.f32 %v9554_v43, %v4845_v23  ;;  %v4974_v57 = vadd.f32 %v6844_v31, %v4688_v39  ;;  %v6856_v31 = vld [vmem:[%s7253_s9 + $0x7b8] sm:$0xff] }
 0x486   : > { %v5241_v61 = vadd.f32 %v9554_v43, %v4973_v55  ;;  %v5114_v18 = vadd.f32 %v9581_v0, %v4846_v46 }
 0x487   : > { %5369 = vst [vmem:[%s9596_s20 + $0x380] sm:$0xff] %v5113_v6  ;;  %v5242_v11 = vadd.f32 %v9581_v0, %v4974_v57 }
 0x488   : > { %5497 = vst [vmem:[%s9596_s20 + $0x780] sm:$0xff] %v5241_v61  ;;  %5370 = vst [vmem:[%s9596_s20 + $0x388] sm:$0xff] %v5114_v18 }
 0x489   : > { %5498 = vst [vmem:[%s9596_s20 + $0x788] sm:$0xff] %v5242_v11 }
 0x48d   : > { %v4308_v9 = vpop.f32.mrb[114].mxu0 }
 0x48e   : > { %v4847_v4 = vadd.f32 %v6845_v16, %v4308_v9  ;;  %v4692_v62 = vpop.f32.mrb[114].mxu1  ;;  %v4310_v63 = vpop.f32.mrb[115].mxu0 }
 0x48f   : > { %v4975_v21 = vadd.f32 %v6846_v26, %v4692_v62  ;;  %v4848_v50 = vadd.f32 %v6847_v28, %v4310_v63  ;;  %v4694_v41 = vpop.f32.mrb[115].mxu1  ;;  %v6857_v62 = vld [vmem:[%s7253_s9 + $0x3c8] sm:$0xff] }
 0x490   : > { %v5115_v42 = vadd.f32 %v9554_v43, %v4847_v4  ;;  %v4976_v37 = vadd.f32 %v6848_v20, %v4694_v41 }
 0x491   : > { %v5243_v45 = vadd.f32 %v9554_v43, %v4975_v21  ;;  %v5116_v33 = vadd.f32 %v9581_v0, %v4848_v50 }
 0x492   : > { %5371 = vst [vmem:[%s9596_s20 + $0x390] sm:$0xff] %v5115_v42  ;;  %v5244_v59 = vadd.f32 %v9581_v0, %v4976_v37  ;;  %v6858_v42 = vld [vmem:[%s7253_s9 + $0x7c8] sm:$0xff] }
 0x493   : > { %5499 = vst [vmem:[%s9596_s20 + $0x790] sm:$0xff] %v5243_v45  ;;  %5372 = vst [vmem:[%s9596_s20 + $0x398] sm:$0xff] %v5116_v33 }
 0x494   : > { %5500 = vst [vmem:[%s9596_s20 + $0x798] sm:$0xff] %v5244_v59 }
 0x499   : > { %v4314_v8 = vpop.f32.mrb[116].mxu0 }
 0x49a   : > { %v4849_v58 = vadd.f32 %v6849_v14, %v4314_v8  ;;  %v4316_v36 = vpop.f32.mrb[117].mxu0 }
 0x49b   : > { %v4698_v19 = vpop.f32.mrb[116].mxu1  ;;  %v4850_v3 = vadd.f32 %v6851_v35, %v4316_v36 }
 0x49c   : > { %v4977_v51 = vadd.f32 %v6850_v25, %v4698_v19  ;;  %v4700_v22 = vpop.f32.mrb[117].mxu1  ;;  %v5117_v29 = vadd.f32 %v9554_v43, %v4849_v58 }
 0x49d   : > { %v4978_v49 = vadd.f32 %v6852_v1, %v4700_v22  ;;  %v5118_v56 = vadd.f32 %v9581_v0, %v4850_v3 }
 0x49e   : > { %v5245_v24 = vadd.f32 %v9554_v43, %v4977_v51  ;;  %5373 = vst [vmem:[%s9596_s20 + $0x3a0] sm:$0xff] %v5117_v29 }
 0x49f   : > { %v5246_v13 = vadd.f32 %v9581_v0, %v4978_v49  ;;  %5374 = vst [vmem:[%s9596_s20 + $0x3a8] sm:$0xff] %v5118_v56 }
 0x4a0   : > { %5501 = vst [vmem:[%s9596_s20 + $0x7a0] sm:$0xff] %v5245_v24 }
 0x4a1   : > { %5502 = vst [vmem:[%s9596_s20 + $0x7a8] sm:$0xff] %v5246_v13 }
 0x4a2   : > { %v4320_v47 = vpop.f32.mrb[118].mxu0 }
 0x4a3   : > { %v4851_v23 = vadd.f32 %v6853_v38, %v4320_v47  ;;  %v4322_v54 = vpop.f32.mrb[119].mxu0 }
 0x4a4   : > { %v4704_v34 = vpop.f32.mrb[118].mxu1  ;;  %v4852_v46 = vadd.f32 %v6855_v52, %v4322_v54 }
 0x4a5   : > { %v4979_v55 = vadd.f32 %v6854_v7, %v4704_v34  ;;  %v4706_v39 = vpop.f32.mrb[119].mxu1  ;;  %v5119_v6 = vadd.f32 %v9554_v43, %v4851_v23 }
 0x4a6   : > { %v4980_v57 = vadd.f32 %v6856_v31, %v4706_v39  ;;  %v5120_v18 = vadd.f32 %v9581_v0, %v4852_v46 }
 0x4a7   : > { %v5247_v61 = vadd.f32 %v9554_v43, %v4979_v55  ;;  %5375 = vst [vmem:[%s9596_s20 + $0x3b0] sm:$0xff] %v5119_v6 }
 0x4a8   : > { %v5248_v11 = vadd.f32 %v9581_v0, %v4980_v57  ;;  %5376 = vst [vmem:[%s9596_s20 + $0x3b8] sm:$0xff] %v5120_v18 }
 0x4a9   : > { %v4326_v9 = vpop.f32.mrb[120].mxu0  ;;  %5503 = vst [vmem:[%s9596_s20 + $0x7b0] sm:$0xff] %v5247_v61 }
 0x4aa   : > { %v4853_v16 = vadd.f32 %v12571_v17, %v4326_v9  ;;  %v4328_v4 = vpop.f32.mrb[121].mxu0  ;;  %5504 = vst [vmem:[%s9596_s20 + $0x7b8] sm:$0xff] %v5248_v11 }
 0x4ab   : > { %v4854_v63 = vadd.f32 %v6857_v62, %v4328_v4 }
 0x4ac   : > { %v5121_v26 = vadd.f32 %v9554_v43, %v4853_v16 }
 0x4ad   : > { %v4710_v21 = vpop.f32.mrb[120].mxu1  ;;  %v5122_v50 = vadd.f32 %v9581_v0, %v4854_v63 }
 0x4ae   : > { %v4981_v28 = vadd.f32 %v12576_v2, %v4710_v21  ;;  %v4712_v41 = vpop.f32.mrb[121].mxu1  ;;  %5377 = vst [vmem:[%s9596_s20 + $0x3c0] sm:$0xff] %v5121_v26 }
 0x4af   : > { %v4982_v20 = vadd.f32 %v6858_v42, %v4712_v41  ;;  %5378 = vst [vmem:[%s9596_s20 + $0x3c8] sm:$0xff] %v5122_v50 }
 0x4b0   : > { %v5249_v17 = vadd.f32 %v9554_v43, %v4981_v28  ;;  %v4332_v45 = vpop.f32.mrb[122].mxu0 }
 0x4b1   : > { %v5250_v37 = vadd.f32 %v9581_v0, %v4982_v20  ;;  %v4855_v33 = vadd.f32 %v12631_v60, %v4332_v45  ;;  %v4334_v59 = vpop.f32.mrb[123].mxu0  ;;  %v4716_v2 = vpop.f32.mrb[122].mxu1 }
 0x4b2   : > { %5505 = vst [vmem:[%s9596_s20 + $0x7c0] sm:$0xff] %v5249_v17  ;;  %v4856_v8 = vadd.f32 %v12598_v30, %v4334_v59  ;;  %v4983_v58 = vadd.f32 %v12643_v53, %v4716_v2  ;;  %v4718_v19 = vpop.f32.mrb[123].mxu1 }
 0x4b3   : > { %5506 = vst [vmem:[%s9596_s20 + $0x7c8] sm:$0xff] %v5250_v37  ;;  %v5123_v14 = vadd.f32 %v9554_v43, %v4855_v33  ;;  %v4984_v25 = vadd.f32 %v12614_v5, %v4718_v19 }
 0x4b4   : > { %v5124_v36 = vadd.f32 %v9581_v0, %v4856_v8  ;;  %v5251_v51 = vadd.f32 %v9554_v43, %v4983_v58 }
 0x4b5   : > { %5379 = vst [vmem:[%s9596_s20 + $0x3d0] sm:$0xff] %v5123_v14  ;;  %v5252_v60 = vadd.f32 %v9581_v0, %v4984_v25 }
 0x4b6   : > { %5380 = vst [vmem:[%s9596_s20 + $0x3d8] sm:$0xff] %v5124_v36  ;;  %5507 = vst [vmem:[%s9596_s20 + $0x7d0] sm:$0xff] %v5251_v51 }
 0x4b7   : > { %v4338_v35 = vpop.f32.mrb[124].mxu0  ;;  %5508 = vst [vmem:[%s9596_s20 + $0x7d8] sm:$0xff] %v5252_v60 }
 0x4b8   : > { %v4857_v30 = vadd.f32 %v12698_v12, %v4338_v35  ;;  %v4340_v3 = vpop.f32.mrb[125].mxu0 }
 0x4b9   : > { %v4858_v53 = vadd.f32 %v12678_v27, %v4340_v3 }
 0x4ba   : > { %v5125_v22 = vadd.f32 %v9554_v43, %v4857_v30 }
 0x4bb   : > { %v4722_v5 = vpop.f32.mrb[124].mxu1  ;;  %v5126_v1 = vadd.f32 %v9581_v0, %v4858_v53 }
 0x4bc   : > { %v4985_v29 = vadd.f32 %v12703_v44, %v4722_v5  ;;  %v4724_v49 = vpop.f32.mrb[125].mxu1  ;;  %5381 = vst [vmem:[%s9596_s20 + $0x3e0] sm:$0xff] %v5125_v22 }
 0x4bd   : > { %v4986_v24 = vadd.f32 %v12688_v48, %v4724_v49  ;;  %5382 = vst [vmem:[%s9596_s20 + $0x3e8] sm:$0xff] %v5126_v1 }
 0x4be   : > { %v5253_v12 = vadd.f32 %v9554_v43, %v4985_v29  ;;  %v4344_v56 = vpop.f32.mrb[126].mxu0 }
 0x4bf   : > { %v5254_v27 = vadd.f32 %v9581_v0, %v4986_v24  ;;  %v4859_v13 = vadd.f32 %v12758_v15, %v4344_v56  ;;  %v4346_v47 = vpop.f32.mrb[127].mxu0 }
 0x4c0   : > { %5509 = vst [vmem:[%s9596_s20 + $0x7e0] sm:$0xff] %v5253_v12  ;;  %v4728_v44 = vpop.f32.mrb[126].mxu1  ;;  %v4860_v38 = vadd.f32 %v12725_v40, %v4346_v47 }
 0x4c1   : > { %5510 = vst [vmem:[%s9596_s20 + $0x7e8] sm:$0xff] %v5254_v27  ;;  %v5127_v48 = vadd.f32 %v9554_v43, %v4859_v13  ;;  %v4987_v23 = vadd.f32 %v12772_v10, %v4728_v44  ;;  %v4730_v34 = vpop.f32.mrb[127].mxu1 }
 0x4c2   : > { %v5128_v15 = vadd.f32 %v9581_v0, %v4860_v38  ;;  %v4988_v54 = vadd.f32 %v12741_v32, %v4730_v34 }
 0x4c3   : > { %5383 = vst [vmem:[%s9596_s20 + $0x3f0] sm:$0xff] %v5127_v48  ;;  %v5255_v7 = vadd.f32 %v9554_v43, %v4987_v23 }
 0x4c4   : > { %5384 = vst [vmem:[%s9596_s20 + $0x3f8] sm:$0xff] %v5128_v15  ;;  %v5256_v40 = vadd.f32 %v9581_v0, %v4988_v54 }
 0x4c5   : > { %5511 = vst [vmem:[%s9596_s20 + $0x7f0] sm:$0xff] %v5255_v7 }
 0x4c6   : > { %5512 = vst [vmem:[%s9596_s20 + $0x7f8] sm:$0xff] %v5256_v40 }
 0x4c7   : > { %6958 = shalt.err (!%p6955_p5)
}
 0x4c8   : > { %s6959_s21 = scalar_lea.hbm %s13144_s15, 32768  ;;  %s6963_s4 = scalar_lea.hbm %s13201_s3, 131072 }
 0x4c9   : > { %p6960_p9 = scmp.ne.s32.totalorder %s13144_s15, %s6959_s21  ;;  %p6964_p3 = scmp.lt.u32.totalorder %s13144_s15, %s13201_s3 }
 0x4ca   : > { %p6965_p7 = scmp.lt.u32.totalorder %s6963_s4, %s6959_s21  ;;  %p6967_p2 = scmp.lt.u32.totalorder %s6959_s21, %s13144_s15 }
 0x4cb   : > { %p6961_p12 = pnand %p6960_p9, %p7189_p11 }
 0x4cc   : > { %p6966_p10 = por %p6965_p7, %p6964_p3 }
 0x4cd   : > { %p6962_p1 = pneg %p6961_p12 }
 0x4ce   : > { %p6968_p4 = por %p6967_p2, %p6966_p10 }
 0x4d0   : > { %p6969_p6 = pnand %p6968_p4, %p6962_p1 }
 0x4d2   : > { %6972 = shalt.err (!%p6969_p6)
}
 0x4d3   : > { %s7039_s20 = smov 256   ;;  %s7040_s22 = smov 16  }
 0x4d4   : > { %5768 = dma.vmem_to_hbm [thread:$0]  (%p7189_p11), %s13146_s24, 32768, %s13144_s15, %s5514_s8, %s7039_s20, %s7039_s20, %s7040_s22  }
 0x4d5 PF: > { %p5790_p8 = scmp.ge.s32.totalorder %s7031_s17, 2  ;;  %s5545_s11 = sand.u32 1, %s7011_s12  }
 0x4d6   : > { %p13625_p13 = scmp.ne.s32.totalorder %s13232_s23, 0  ;;  %s5546_s18 = scalar_lea.sflag [#allocation4], %s5545_s11 }
 0x4d8   : > { %p5782_p0 = pnand %p5790_p8, %p13625_p13 }
 0x4da   : > { %7006 = dma.done.wait (!%p5782_p0), %s5546_s18, 32768  }
 0x4db   : > { %7008 = vsyncadd (!%p5782_p0), %s5546_s18, 4294934528  ;;  %s20_s17 = sadd.s32 1, %s7031_s17   ;;  %s13626_s12 = smov %s7015_s13 }
 0x4dc   : > { %p17_p5 = scmp.ge.s32.totalorder %s20_s17, 6   ;;  %s13627_s13 = smov %s7019_s14 }
 0x4dd   : > { %s13628_s14 = smov %s7198_s5  ;;  %s13629_s15 = smov %s7027_s16 }
 0x4de   : > { %s13630_s16 = smov %s13632_s19  ;;  %19 = sbr.rel (!%p17_p5) target bundleno = 7 (0x7), region = 87 }
 0x4e5   :  { %5551 = vsyncpa [#allocation3], 1 }
 0x4e6   :  { %5553 = vsyncpa [#allocation3 + $0x1], 1 }
 0x4e7   :  { %5554 = vsyncpa [#allocation6], 1 }
 0x4e8   :  { %5555 = vsyncpa [#allocation4], 1 }
 0x4e9   :  { %5557 = vsyncpa [#allocation4 + $0x1], 1 }

</bundles_post_ra>
